<compile_context>
chip_gen: v6e
topology: v6e:2x2x1
jax: 0.10.0
libtpu: 0.0.40
codegen_flags: <defaults>
</compile_context>

<pallas_src>
import jax
import jax.numpy as jnp
import numpy as np
from jax.experimental import pallas as pl
from jax.experimental.pallas import tpu as pltpu

EPS = 1e-5          # nn.BatchNorm2d default eps
NEG_SLOPE = 0.1     # nn.LeakyReLU(0.1)


def _default_vmem_limit():
    # ~3/4 of physical VMEM: 96 MiB on v5e/v6e (128 MiB), 48 MiB on v7x (64 MiB).
    try:
        cap = int(pltpu.get_tpu_info().vmem_capacity_bytes)
        return max(16 * 1024 * 1024, min((cap * 3) // 4, 96 * 1024 * 1024))
    except Exception:
        return 32 * 1024 * 1024


VMEM_LIMIT = _default_vmem_limit()


def _cparams(*sem):
    return pltpu.CompilerParams(dimension_semantics=sem,
                                vmem_limit_bytes=VMEM_LIMIT)


def _leaky_relu(v):
    return jnp.where(v > 0, v, NEG_SLOPE * v)


def _finalize_bn(stats, c, count, gamma, beta):
    # stats: (N, 2*c, 1) per-image partial (sum, sum_sq); biased variance like
    # training-mode BatchNorm.  E[x^2]-E[x]^2 in f32 is fine at these sizes.
    # TODO(synk): Welford-style merge for very large N*H*W feature maps.
    s = jnp.sum(stats[:, :c, 0], axis=0)
    ss = jnp.sum(stats[:, c:, 0], axis=0)
    mean = s / count
    var = jnp.maximum(ss / count - mean * mean, 0.0)
    scale = gamma * jax.lax.rsqrt(var + EPS)
    shift = beta - mean * scale
    return scale.reshape(-1, 1), shift.reshape(-1, 1)


def _resblock_fwd(x_nchw, params, use_bf16):
    cdt = jnp.bfloat16 if use_bf16 else jnp.float32
    prec = jax.lax.Precision.DEFAULT if use_bf16 else jax.lax.Precision.HIGHEST

    w1 = params["w1"]                          # (Cin, C1)
    w2 = params["w2"]                          # (3, 3, C1, C2)  HWIO
    Cin, C1 = w1.shape
    C2 = w2.shape[3]
    N, Cx, H, W = x_nchw.shape
    assert Cx == Cin and C2 == Cin, "residual add needs planes[1] == inplanes"
    HW = H * W
    PAD = HW + 2 * W + 2                       # row-padded flat window + guards

    g1 = params["g1"].astype(jnp.float32)
    b1 = params["b1"].astype(jnp.float32)
    g2 = params["g2"].astype(jnp.float32)
    b2 = params["b2"].astype(jnp.float32)

    # NCHW-native: only free reshapes at the boundary, no transposes.
    x3 = x_nchw.astype(jnp.float32).reshape(N, Cin, HW)
    w1t = jnp.transpose(w1, (1, 0)).astype(cdt)                      # (C1, Cin)
    w2t = jnp.transpose(w2, (0, 1, 3, 2)).reshape(9, C2, C1).astype(cdt)

    # 0/1 lane masks that replace the left/right zero-column padding of conv2.
    col = jnp.arange(HW, dtype=jnp.int32) % W
    m_nf = (col != 0).astype(cdt).reshape(1, HW)        # not first column
    m_nl = (col != (W - 1)).astype(cdt).reshape(1, HW)  # not last column

    # ============== pass 1: conv1 (1x1) -> BN1 partial stats only ============
    def stats1_kernel(x_ref, w1t_ref, st_ref):
        xa = x_ref[0].astype(cdt)                              # (Cin, HW)
        y = jnp.dot(w1t_ref[...], xa,
                    preferred_element_type=jnp.float32, precision=prec)
        both = jnp.concatenate([y, y * y], axis=0)             # (2*C1, HW)
        st_ref[0] = jnp.sum(both, axis=1, keepdims=True)       # single store

    st1 = pl.pallas_call(
        stats1_kernel,
        grid=(N,),
        in_specs=[pl.BlockSpec((1, Cin, HW), lambda n: (n, 0, 0)),
                  pl.BlockSpec((C1, Cin), lambda n: (0, 0))],
        out_specs=pl.BlockSpec((1, 2 * C1, 1), lambda n: (n, 0, 0)),
        out_shape=jax.ShapeDtypeStruct((N, 2 * C1, 1), jnp.float32),
        compiler_params=_cparams("parallel"),
    )(x3, w1t)

    scale1, shift1 = _finalize_bn(st1, C1, float(N * HW), g1, b1)    # (C1, 1)

    # == pass 2: conv1 recompute + BN1 + LReLU + 3x3 conv + BN2 partial stats ==
    def conv2_kernel(x_ref, w1t_ref, sc1_ref, sh1_ref, w2t_ref,
                     mnf_ref, mnl_ref, y2_ref, st_ref, af_ref):
        xa = x_ref[0].astype(cdt)                              # (Cin, HW)
        z1 = jnp.dot(w1t_ref[...], xa,
                     preferred_element_type=jnp.float32, precision=prec)
        a1 = _leaky_relu(z1 * sc1_ref[...] + sh1_ref[...])     # (C1, HW) f32

        # Row-padded flat activation: act at [W+1 : W+1+HW]; only the two zero
        # pad rows (+ 1-lane guards) are written each step, not the full window.
        zrow = jnp.zeros((C1, W + 1), af_ref.dtype)
        af_ref[:, 0:W + 1] = zrow
        af_ref[:, W + 1 + HW:] = zrow
        af_ref[:, W + 1:W + 1 + HW] = a1.astype(af_ref.dtype)

        mnf = mnf_ref[...]
        mnl = mnl_ref[...]
        acc = jnp.zeros((C2, HW), jnp.float32)
        for dy in range(3):
            for dx in range(3):
                s = dy * W + dx
                tap = af_ref[:, s:s + HW]                      # lane-shifted view
                if dx == 0:
                    tap = tap * mnf                            # mask left edge
                elif dx == 2:
                    tap = tap * mnl                            # mask right edge
                acc = acc + jnp.dot(w2t_ref[dy * 3 + dx], tap,
                                    preferred_element_type=jnp.float32,
                                    precision=prec)

        y2s = acc.astype(y2_ref.dtype)
        y2_ref[0] = y2s
        # BN2 stats from the *stored* values so stats/apply stay consistent.
        y2f = y2s.astype(jnp.float32)
        both = jnp.concatenate([y2f, y2f * y2f], axis=0)       # (2*C2, HW)
        st_ref[0] = jnp.sum(both, axis=1, keepdims=True)

    y2, st2 = pl.pallas_call(
        conv2_kernel,
        grid=(N,),
        in_specs=[
            pl.BlockSpec((1, Cin, HW), lambda n: (n, 0, 0)),
            pl.BlockSpec((C1, Cin), lambda n: (0, 0)),
            pl.BlockSpec((C1, 1), lambda n: (0, 0)),
            pl.BlockSpec((C1, 1), lambda n: (0, 0)),
            pl.BlockSpec((9, C2, C1), lambda n: (0, 0, 0)),
            pl.BlockSpec((1, HW), lambda n: (0, 0)),
            pl.BlockSpec((1, HW), lambda n: (0, 0)),
        ],
        out_specs=(pl.BlockSpec((1, C2, HW), lambda n: (n, 0, 0)),
                   pl.BlockSpec((1, 2 * C2, 1), lambda n: (n, 0, 0))),
        out_shape=(jax.ShapeDtypeStruct((N, C2, HW), cdt),
                   jax.ShapeDtypeStruct((N, 2 * C2, 1), jnp.float32)),
        scratch_shapes=[pltpu.VMEM((C1, PAD), cdt)],
        compiler_params=_cparams("parallel"),
    )(x3, w1t, scale1, shift1, w2t, m_nf, m_nl)

    scale2, shift2 = _finalize_bn(st2, C2, float(N * HW), g2, b2)    # (C2, 1)

    # ======= pass 3: BN2 apply + LeakyReLU + f32 residual (lane-dense) =======
    # TODO(synk): alias y2 with the output (input_output_aliases) when
    # use_bf16=False to reuse the largest intermediate's buffer.
    def bn2_res_kernel(y2_ref, x_ref, sc2_ref, sh2_ref, o_ref):
        z = y2_ref[0].astype(jnp.float32) * sc2_ref[...] + sh2_ref[...]
        o_ref[0] = _leaky_relu(z) + x_ref[0]

    out3 = pl.pallas_call(
        bn2_res_kernel,
        grid=(N,),
        in_specs=[pl.BlockSpec((1, C2, HW), lambda n: (n, 0, 0)),
                  pl.BlockSpec((1, Cin, HW), lambda n: (n, 0, 0)),
                  pl.BlockSpec((C2, 1), lambda n: (0, 0)),
                  pl.BlockSpec((C2, 1), lambda n: (0, 0))],
        out_specs=pl.BlockSpec((1, C2, HW), lambda n: (n, 0, 0)),
        out_shape=jax.ShapeDtypeStruct((N, C2, HW), jnp.float32),
        compiler_params=_cparams("parallel"),
    )(y2, x3, scale2, shift2)

    return out3.reshape(N, C2, H, W)


resblock_pallas = jax.jit(_resblock_fwd, static_argnames=("use_bf16",))


def init_params(key, inplanes=64, planes=(32, 64)):
    # conv1 weight (PyTorch OIHW (C1,Cin,1,1)) stored as (Cin, C1);
    # conv2 weight (PyTorch OIHW (C2,C1,3,3)) stored as HWIO (3,3,C1,C2).
    c1, c2 = planes
    k1, k2, k3, k4, k5, k6 = jax.random.split(key, 6)
    w1 = jax.random.normal(k1, (inplanes, c1), jnp.float32) / np.sqrt(inplanes)
    g1 = 1.0 + 0.1 * jax.random.normal(k2, (c1,), jnp.float32)
    b1 = 0.1 * jax.random.normal(k3, (c1,), jnp.float32)
    w2 = jax.random.normal(k4, (3, 3, c1, c2), jnp.float32) / np.sqrt(9 * c1)
    g2 = 1.0 + 0.1 * jax.random.normal(k5, (c2,), jnp.float32)
    b2 = 0.1 * jax.random.normal(k6, (c2,), jnp.float32)
    return dict(w1=w1, g1=g1, b1=b1, w2=w2, g2=g2, b2=b2)


def resblock_ref(x_nchw, params):
    # Pure-JAX f32 reference (NCHW, training-mode BN), precision=HIGHEST.
    x = x_nchw.astype(jnp.float32)

    def bn(y, g, b):
        mean = jnp.mean(y, axis=(0, 2, 3), keepdims=True)
        var = jnp.mean((y - mean) ** 2, axis=(0, 2, 3), keepdims=True)
        return ((y - mean) * jax.lax.rsqrt(var + EPS)
                * g[None, :, None, None] + b[None, :, None, None])

    def lrelu(z):
        return jnp.where(z > 0, z, NEG_SLOPE * z)

    w1_oihw = jnp.transpose(params["w1"], (1, 0))[:, :, None, None]
    y = jax.lax.conv_general_dilated(
        x, w1_oihw, (1, 1), "VALID",
        dimension_numbers=("NCHW", "OIHW", "NCHW"),
        precision=jax.lax.Precision.HIGHEST)
    y = lrelu(bn(y, params["g1"], params["b1"]))

    w2_oihw = jnp.transpose(params["w2"], (3, 2, 0, 1))
    y = jax.lax.conv_general_dilated(
        y, w2_oihw, (1, 1), ((1, 1), (1, 1)),
        dimension_numbers=("NCHW", "OIHW", "NCHW"),
        precision=jax.lax.Precision.HIGHEST)
    y = lrelu(bn(y, params["g2"], params["b2"]))
    return y + x


if __name__ == "__main__":
    key = jax.random.PRNGKey(0)
    kx, kp = jax.random.split(key)

    inplanes, planes = 64, (32, 64)   # ResBlock defaults (planes[1]==inplanes)
    N, H, W = 2, 16, 16
    x = jax.random.normal(kx, (N, inplanes, H, W), jnp.float32)   # NCHW
    params = init_params(kp, inplanes, planes)

    ref = jax.block_until_ready(resblock_ref(x, params))

    # f32 path: tight validation of the conv/BN/stats pipeline.
    out_f32 = jax.block_until_ready(resblock_pallas(x, params, use_bf16=False))
    assert out_f32.shape == (N, planes[1], H, W), out_f32.shape
    np.testing.assert_allclose(np.asarray(out_f32), np.asarray(ref),
                               atol=1e-4, rtol=1e-4)

    # bf16-MXU path (default perf config on v6e/v7x): bf16-level tolerance.
    out_bf16 = jax.block_until_ready(resblock_pallas(x, params, use_bf16=True))
    np.testing.assert_allclose(np.asarray(out_bf16), np.asarray(ref),
                               atol=5e-2, rtol=5e-2)

    print("KERNEL_OK")
</pallas_src>

<mosaic_0001>
module attributes {stable_mosaic.version = 11 : i64} {
  func.func @stats1_kernel(%arg0: i32, %arg1: memref<1x64x256xf32, #tpu.memory_space<vmem>>, %arg2: memref<32x64xf32, #tpu.memory_space<vmem>>, %arg3: memref<1x64x1xf32, #tpu.memory_space<vmem>>) attributes {dimension_semantics = [#tpu.dimension_semantics<parallel>], iteration_bounds = array<i64: 2>, scalar_prefetch = 0 : i64, scratch_operands = 0 : i64, tpu.core_type = #tpu.core_type<tc>, window_params = [{transform_indices = @transform_0, window_bounds = array<i64: 1, 64, 256>}, {pipeline_mode = #tpu.pipeline_mode<synchronous>, transform_indices = @transform_1, window_bounds = array<i64: 32, 64>}, {transform_indices = @transform_2, window_bounds = array<i64: 1, 64, 1>}]} {
    %c0 = arith.constant 0 : index
    %c0_0 = arith.constant 0 : index
    %c0_1 = arith.constant 0 : index
    %0 = vector.load %arg1[%c0, %c0_0, %c0_1] : memref<1x64x256xf32, #tpu.memory_space<vmem>>, vector<1x64x256xf32>
    %1 = vector.shape_cast %0 : vector<1x64x256xf32> to vector<64x256xf32>
    %c0_2 = arith.constant 0 : index
    %c0_3 = arith.constant 0 : index
    %2 = vector.load %arg2[%c0_2, %c0_3] : memref<32x64xf32, #tpu.memory_space<vmem>>, vector<32x64xf32>
    %cst = arith.constant dense<0.000000e+00> : vector<32x256xf32>
    %3 = tpu.matmul %2, %1, %cst {dimension_numbers = #tpu.dot_dimension_numbers<[1], [0], [0], [1], [0, 0, 1, 1], [], []>, precision = #tpu.contract_precision<fp32>} : vector<32x64xf32>, vector<64x256xf32>, vector<32x256xf32> -> vector<32x256xf32>
    %4 = arith.mulf %3, %3 : vector<32x256xf32>
    %5 = tpu.concatenate %3, %4 in 0 : vector<32x256xf32>, vector<32x256xf32> -> vector<64x256xf32>
    %cst_4 = arith.constant dense<0.000000e+00> : vector<64xf32>
    %6 = vector.multi_reduction <add>, %5, %cst_4 [1] : vector<64x256xf32> to vector<64xf32>
    %7 = vector.shape_cast %6 : vector<64xf32> to vector<64x1xf32>
    %c0_5 = arith.constant 0 : index
    %c0_6 = arith.constant 0 : index
    %c0_7 = arith.constant 0 : index
    %8 = vector.load %arg3[%c0_5, %c0_6, %c0_7] : memref<1x64x1xf32, #tpu.memory_space<vmem>>, vector<1x64x1xf32>
    %9 = vector.shape_cast %8 : vector<1x64x1xf32> to vector<64x1xf32>
    %10 = vector.shape_cast %7 : vector<64x1xf32> to vector<1x64x1xf32>
    tpu.vector_store %arg3[%c0_5, %c0_6, %c0_7], %10 {strides = array<i32>} : memref<1x64x1xf32, #tpu.memory_space<vmem>>, vector<1x64x1xf32>,
    return
  }
  func.func @transform_0(%arg0: i32) -> (i32, i32, i32) {
    %c0_i32 = arith.constant 0 : i32
    %c0_i32_0 = arith.constant 0 : i32
    %c0_i32_1 = arith.constant 0 : i32
    return %arg0, %c0_i32, %c0_i32_0 : i32, i32, i32
  }
  func.func @transform_1(%arg0: i32) -> (i32, i32) {
    %c0_i32 = arith.constant 0 : i32
    %c0_i32_0 = arith.constant 0 : i32
    %c0_i32_1 = arith.constant 0 : i32
    return %c0_i32, %c0_i32_0 : i32, i32
  }
  func.func @transform_2(%arg0: i32) -> (i32, i32, i32) {
    %c0_i32 = arith.constant 0 : i32
    %c0_i32_0 = arith.constant 0 : i32
    %c0_i32_1 = arith.constant 0 : i32
    return %arg0, %c0_i32, %c0_i32_0 : i32, i32, i32
  }
}

module attributes {stable_mosaic.version = 11 : i64} {
  func.func @conv2_kernel(%arg0: i32, %arg1: memref<1x64x256xf32, #tpu.memory_space<vmem>>, %arg2: memref<32x64xf32, #tpu.memory_space<vmem>>, %arg3: memref<32x1xf32, #tpu.memory_space<vmem>>, %arg4: memref<32x1xf32, #tpu.memory_space<vmem>>, %arg5: memref<9x64x32xf32, #tpu.memory_space<vmem>>, %arg6: memref<1x256xf32, #tpu.memory_space<vmem>>, %arg7: memref<1x256xf32, #tpu.memory_space<vmem>>, %arg8: memref<1x64x256xf32, #tpu.memory_space<vmem>>, %arg9: memref<1x128x1xf32, #tpu.memory_space<vmem>>, %arg10: memref<32x290xf32, #tpu.memory_space<vmem>>) attributes {dimension_semantics = [#tpu.dimension_semantics<parallel>], iteration_bounds = array<i64: 2>, scalar_prefetch = 0 : i64, scratch_operands = 1 : i64, tpu.core_type = #tpu.core_type<tc>, window_params = [{transform_indices = @transform_0, window_bounds = array<i64: 1, 64, 256>}, {pipeline_mode = #tpu.pipeline_mode<synchronous>, transform_indices = @transform_1, window_bounds = array<i64: 32, 64>}, {pipeline_mode = #tpu.pipeline_mode<synchronous>, transform_indices = @transform_2, window_bounds = array<i64: 32, 1>}, {pipeline_mode = #tpu.pipeline_mode<synchronous>, transform_indices = @transform_3, window_bounds = array<i64: 32, 1>}, {pipeline_mode = #tpu.pipeline_mode<synchronous>, transform_indices = @transform_4, window_bounds = array<i64: 9, 64, 32>}, {pipeline_mode = #tpu.pipeline_mode<synchronous>, transform_indices = @transform_5, window_bounds = array<i64: 1, 256>}, {pipeline_mode = #tpu.pipeline_mode<synchronous>, transform_indices = @transform_6, window_bounds = array<i64: 1, 256>}, {transform_indices = @transform_7, window_bounds = array<i64: 1, 64, 256>}, {transform_indices = @transform_8, window_bounds = array<i64: 1, 128, 1>}]} {
    %c0 = arith.constant 0 : index
    %c0_0 = arith.constant 0 : index
    %c0_1 = arith.constant 0 : index
    %0 = vector.load %arg1[%c0, %c0_0, %c0_1] : memref<1x64x256xf32, #tpu.memory_space<vmem>>, vector<1x64x256xf32>
    %1 = vector.shape_cast %0 : vector<1x64x256xf32> to vector<64x256xf32>
    %c0_2 = arith.constant 0 : index
    %c0_3 = arith.constant 0 : index
    %2 = vector.load %arg2[%c0_2, %c0_3] : memref<32x64xf32, #tpu.memory_space<vmem>>, vector<32x64xf32>
    %cst = arith.constant dense<0.000000e+00> : vector<32x256xf32>
    %3 = tpu.matmul %2, %1, %cst {dimension_numbers = #tpu.dot_dimension_numbers<[1], [0], [0], [1], [0, 0, 1, 1], [], []>, precision = #tpu.contract_precision<fp32>} : vector<32x64xf32>, vector<64x256xf32>, vector<32x256xf32> -> vector<32x256xf32>
    %c0_4 = arith.constant 0 : index
    %c0_5 = arith.constant 0 : index
    %4 = vector.load %arg3[%c0_4, %c0_5] : memref<32x1xf32, #tpu.memory_space<vmem>>, vector<32x1xf32>
    %5 = vector.broadcast %4 : vector<32x1xf32> to vector<32x256xf32>
    %6 = arith.mulf %3, %5 : vector<32x256xf32>
    %c0_6 = arith.constant 0 : index
    %c0_7 = arith.constant 0 : index
    %7 = vector.load %arg4[%c0_6, %c0_7] : memref<32x1xf32, #tpu.memory_space<vmem>>, vector<32x1xf32>
    %8 = vector.broadcast %7 : vector<32x1xf32> to vector<32x256xf32>
    %9 = arith.addf %6, %8 : vector<32x256xf32>
    %cst_8 = arith.constant 0.000000e+00 : f32
    %10 = vector.broadcast %cst_8 : f32 to vector<32x256xf32>
    %11 = arith.cmpf ogt, %9, %10 : vector<32x256xf32>
    %cst_9 = arith.constant 1.000000e-01 : f32
    %12 = vector.broadcast %cst_9 : f32 to vector<32x256xf32>
    %13 = arith.mulf %12, %9 : vector<32x256xf32>
    %14 = arith.select %11, %9, %13 : vector<32x256xi1>, vector<32x256xf32>
    %cst_10 = arith.constant 0.000000e+00 : f32
    %15 = vector.broadcast %cst_10 : f32 to vector<32x17xf32>
    %c0_11 = arith.constant 0 : index
    %c0_12 = arith.constant 0 : index
    %16 = vector.load %arg10[%c0_11, %c0_12] : memref<32x290xf32, #tpu.memory_space<vmem>>, vector<32x17xf32>
    tpu.vector_store %arg10[%c0_11, %c0_12], %15 {strides = array<i32>} : memref<32x290xf32, #tpu.memory_space<vmem>>, vector<32x17xf32>,
    %c0_13 = arith.constant 0 : index
    %c273 = arith.constant 273 : index
    %17 = vector.load %arg10[%c0_13, %c273] : memref<32x290xf32, #tpu.memory_space<vmem>>, vector<32x17xf32>
    tpu.vector_store %arg10[%c0_13, %c273], %15 {strides = array<i32>} : memref<32x290xf32, #tpu.memory_space<vmem>>, vector<32x17xf32>,
    %c0_14 = arith.constant 0 : index
    %c17 = arith.constant 17 : index
    %18 = vector.load %arg10[%c0_14, %c17] : memref<32x290xf32, #tpu.memory_space<vmem>>, vector<32x256xf32>
    tpu.vector_store %arg10[%c0_14, %c17], %14 {strides = array<i32>} : memref<32x290xf32, #tpu.memory_space<vmem>>, vector<32x256xf32>,
    %c0_15 = arith.constant 0 : index
    %c0_16 = arith.constant 0 : index
    %19 = vector.load %arg6[%c0_15, %c0_16] : memref<1x256xf32, #tpu.memory_space<vmem>>, vector<1x256xf32>
    %c0_17 = arith.constant 0 : index
    %c0_18 = arith.constant 0 : index
    %20 = vector.load %arg7[%c0_17, %c0_18] : memref<1x256xf32, #tpu.memory_space<vmem>>, vector<1x256xf32>
    %cst_19 = arith.constant 0.000000e+00 : f32
    %21 = vector.broadcast %cst_19 : f32 to vector<64x256xf32>
    %c0_20 = arith.constant 0 : index
    %c0_21 = arith.constant 0 : index
    %22 = vector.load %arg10[%c0_20, %c0_21] : memref<32x290xf32, #tpu.memory_space<vmem>>, vector<32x256xf32>
    %23 = vector.broadcast %19 : vector<1x256xf32> to vector<32x256xf32>
    %24 = arith.mulf %22, %23 : vector<32x256xf32>
    %c0_22 = arith.constant 0 : index
    %c0_23 = arith.constant 0 : index
    %c0_24 = arith.constant 0 : index
    %25 = vector.load %arg5[%c0_22, %c0_23, %c0_24] : memref<9x64x32xf32, #tpu.memory_space<vmem>>, vector<1x64x32xf32>
    %26 = vector.shape_cast %25 : vector<1x64x32xf32> to vector<64x32xf32>
    %cst_25 = arith.constant dense<0.000000e+00> : vector<64x256xf32>
    %27 = tpu.matmul %26, %24, %cst_25 {dimension_numbers = #tpu.dot_dimension_numbers<[1], [0], [0], [1], [0, 0, 1, 1], [], []>, precision = #tpu.contract_precision<fp32>} : vector<64x32xf32>, vector<32x256xf32>, vector<64x256xf32> -> vector<64x256xf32>
    %28 = arith.addf %21, %27 : vector<64x256xf32>
    %c0_26 = arith.constant 0 : index
    %c1 = arith.constant 1 : index
    %29 = vector.load %arg10[%c0_26, %c1] : memref<32x290xf32, #tpu.memory_space<vmem>>, vector<32x256xf32>
    %c1_27 = arith.constant 1 : index
    %c0_28 = arith.constant 0 : index
    %c0_29 = arith.constant 0 : index
    %30 = vector.load %arg5[%c1_27, %c0_28, %c0_29] : memref<9x64x32xf32, #tpu.memory_space<vmem>>, vector<1x64x32xf32>
    %31 = vector.shape_cast %30 : vector<1x64x32xf32> to vector<64x32xf32>
    %cst_30 = arith.constant dense<0.000000e+00> : vector<64x256xf32>
    %32 = tpu.matmul %31, %29, %cst_30 {dimension_numbers = #tpu.dot_dimension_numbers<[1], [0], [0], [1], [0, 0, 1, 1], [], []>, precision = #tpu.contract_precision<fp32>} : vector<64x32xf32>, vector<32x256xf32>, vector<64x256xf32> -> vector<64x256xf32>
    %33 = arith.addf %28, %32 : vector<64x256xf32>
    %c0_31 = arith.constant 0 : index
    %c2 = arith.constant 2 : index
    %34 = vector.load %arg10[%c0_31, %c2] : memref<32x290xf32, #tpu.memory_space<vmem>>, vector<32x256xf32>
    %35 = vector.broadcast %20 : vector<1x256xf32> to vector<32x256xf32>
    %36 = arith.mulf %34, %35 : vector<32x256xf32>
    %c2_32 = arith.constant 2 : index
    %c0_33 = arith.constant 0 : index
    %c0_34 = arith.constant 0 : index
    %37 = vector.load %arg5[%c2_32, %c0_33, %c0_34] : memref<9x64x32xf32, #tpu.memory_space<vmem>>, vector<1x64x32xf32>
    %38 = vector.shape_cast %37 : vector<1x64x32xf32> to vector<64x32xf32>
    %cst_35 = arith.constant dense<0.000000e+00> : vector<64x256xf32>
    %39 = tpu.matmul %38, %36, %cst_35 {dimension_numbers = #tpu.dot_dimension_numbers<[1], [0], [0], [1], [0, 0, 1, 1], [], []>, precision = #tpu.contract_precision<fp32>} : vector<64x32xf32>, vector<32x256xf32>, vector<64x256xf32> -> vector<64x256xf32>
    %40 = arith.addf %33, %39 : vector<64x256xf32>
    %c0_36 = arith.constant 0 : index
    %c16 = arith.constant 16 : index
    %41 = vector.load %arg10[%c0_36, %c16] : memref<32x290xf32, #tpu.memory_space<vmem>>, vector<32x256xf32>
    %42 = vector.broadcast %19 : vector<1x256xf32> to vector<32x256xf32>
    %43 = arith.mulf %41, %42 : vector<32x256xf32>
    %c3 = arith.constant 3 : index
    %c0_37 = arith.constant 0 : index
    %c0_38 = arith.constant 0 : index
    %44 = vector.load %arg5[%c3, %c0_37, %c0_38] : memref<9x64x32xf32, #tpu.memory_space<vmem>>, vector<1x64x32xf32>
    %45 = vector.shape_cast %44 : vector<1x64x32xf32> to vector<64x32xf32>
    %cst_39 = arith.constant dense<0.000000e+00> : vector<64x256xf32>
    %46 = tpu.matmul %45, %43, %cst_39 {dimension_numbers = #tpu.dot_dimension_numbers<[1], [0], [0], [1], [0, 0, 1, 1], [], []>, precision = #tpu.contract_precision<fp32>} : vector<64x32xf32>, vector<32x256xf32>, vector<64x256xf32> -> vector<64x256xf32>
    %47 = arith.addf %40, %46 : vector<64x256xf32>
    %c0_40 = arith.constant 0 : index
    %c17_41 = arith.constant 17 : index
    %48 = vector.load %arg10[%c0_40, %c17_41] : memref<32x290xf32, #tpu.memory_space<vmem>>, vector<32x256xf32>
    %c4 = arith.constant 4 : index
    %c0_42 = arith.constant 0 : index
    %c0_43 = arith.constant 0 : index
    %49 = vector.load %arg5[%c4, %c0_42, %c0_43] : memref<9x64x32xf32, #tpu.memory_space<vmem>>, vector<1x64x32xf32>
    %50 = vector.shape_cast %49 : vector<1x64x32xf32> to vector<64x32xf32>
    %cst_44 = arith.constant dense<0.000000e+00> : vector<64x256xf32>
    %51 = tpu.matmul %50, %48, %cst_44 {dimension_numbers = #tpu.dot_dimension_numbers<[1], [0], [0], [1], [0, 0, 1, 1], [], []>, precision = #tpu.contract_precision<fp32>} : vector<64x32xf32>, vector<32x256xf32>, vector<64x256xf32> -> vector<64x256xf32>
    %52 = arith.addf %47, %51 : vector<64x256xf32>
    %c0_45 = arith.constant 0 : index
    %c18 = arith.constant 18 : index
    %53 = vector.load %arg10[%c0_45, %c18] : memref<32x290xf32, #tpu.memory_space<vmem>>, vector<32x256xf32>
    %54 = vector.broadcast %20 : vector<1x256xf32> to vector<32x256xf32>
    %55 = arith.mulf %53, %54 : vector<32x256xf32>
    %c5 = arith.constant 5 : index
    %c0_46 = arith.constant 0 : index
    %c0_47 = arith.constant 0 : index
    %56 = vector.load %arg5[%c5, %c0_46, %c0_47] : memref<9x64x32xf32, #tpu.memory_space<vmem>>, vector<1x64x32xf32>
    %57 = vector.shape_cast %56 : vector<1x64x32xf32> to vector<64x32xf32>
    %cst_48 = arith.constant dense<0.000000e+00> : vector<64x256xf32>
    %58 = tpu.matmul %57, %55, %cst_48 {dimension_numbers = #tpu.dot_dimension_numbers<[1], [0], [0], [1], [0, 0, 1, 1], [], []>, precision = #tpu.contract_precision<fp32>} : vector<64x32xf32>, vector<32x256xf32>, vector<64x256xf32> -> vector<64x256xf32>
    %59 = arith.addf %52, %58 : vector<64x256xf32>
    %c0_49 = arith.constant 0 : index
    %c32 = arith.constant 32 : index
    %60 = vector.load %arg10[%c0_49, %c32] : memref<32x290xf32, #tpu.memory_space<vmem>>, vector<32x256xf32>
    %61 = vector.broadcast %19 : vector<1x256xf32> to vector<32x256xf32>
    %62 = arith.mulf %60, %61 : vector<32x256xf32>
    %c6 = arith.constant 6 : index
    %c0_50 = arith.constant 0 : index
    %c0_51 = arith.constant 0 : index
    %63 = vector.load %arg5[%c6, %c0_50, %c0_51] : memref<9x64x32xf32, #tpu.memory_space<vmem>>, vector<1x64x32xf32>
    %64 = vector.shape_cast %63 : vector<1x64x32xf32> to vector<64x32xf32>
    %cst_52 = arith.constant dense<0.000000e+00> : vector<64x256xf32>
    %65 = tpu.matmul %64, %62, %cst_52 {dimension_numbers = #tpu.dot_dimension_numbers<[1], [0], [0], [1], [0, 0, 1, 1], [], []>, precision = #tpu.contract_precision<fp32>} : vector<64x32xf32>, vector<32x256xf32>, vector<64x256xf32> -> vector<64x256xf32>
    %66 = arith.addf %59, %65 : vector<64x256xf32>
    %c0_53 = arith.constant 0 : index
    %c33 = arith.constant 33 : index
    %67 = vector.load %arg10[%c0_53, %c33] : memref<32x290xf32, #tpu.memory_space<vmem>>, vector<32x256xf32>
    %c7 = arith.constant 7 : index
    %c0_54 = arith.constant 0 : index
    %c0_55 = arith.constant 0 : index
    %68 = vector.load %arg5[%c7, %c0_54, %c0_55] : memref<9x64x32xf32, #tpu.memory_space<vmem>>, vector<1x64x32xf32>
    %69 = vector.shape_cast %68 : vector<1x64x32xf32> to vector<64x32xf32>
    %cst_56 = arith.constant dense<0.000000e+00> : vector<64x256xf32>
    %70 = tpu.matmul %69, %67, %cst_56 {dimension_numbers = #tpu.dot_dimension_numbers<[1], [0], [0], [1], [0, 0, 1, 1], [], []>, precision = #tpu.contract_precision<fp32>} : vector<64x32xf32>, vector<32x256xf32>, vector<64x256xf32> -> vector<64x256xf32>
    %71 = arith.addf %66, %70 : vector<64x256xf32>
    %c0_57 = arith.constant 0 : index
    %c34 = arith.constant 34 : index
    %72 = vector.load %arg10[%c0_57, %c34] : memref<32x290xf32, #tpu.memory_space<vmem>>, vector<32x256xf32>
    %73 = vector.broadcast %20 : vector<1x256xf32> to vector<32x256xf32>
    %74 = arith.mulf %72, %73 : vector<32x256xf32>
    %c8 = arith.constant 8 : index
    %c0_58 = arith.constant 0 : index
    %c0_59 = arith.constant 0 : index
    %75 = vector.load %arg5[%c8, %c0_58, %c0_59] : memref<9x64x32xf32, #tpu.memory_space<vmem>>, vector<1x64x32xf32>
    %76 = vector.shape_cast %75 : vector<1x64x32xf32> to vector<64x32xf32>
    %cst_60 = arith.constant dense<0.000000e+00> : vector<64x256xf32>
    %77 = tpu.matmul %76, %74, %cst_60 {dimension_numbers = #tpu.dot_dimension_numbers<[1], [0], [0], [1], [0, 0, 1, 1], [], []>, precision = #tpu.contract_precision<fp32>} : vector<64x32xf32>, vector<32x256xf32>, vector<64x256xf32> -> vector<64x256xf32>
    %78 = arith.addf %71, %77 : vector<64x256xf32>
    %c0_61 = arith.constant 0 : index
    %c0_62 = arith.constant 0 : index
    %c0_63 = arith.constant 0 : index
    %79 = vector.load %arg8[%c0_61, %c0_62, %c0_63] : memref<1x64x256xf32, #tpu.memory_space<vmem>>, vector<1x64x256xf32>
    %80 = vector.shape_cast %79 : vector<1x64x256xf32> to vector<64x256xf32>
    %81 = vector.shape_cast %78 : vector<64x256xf32> to vector<1x64x256xf32>
    tpu.vector_store %arg8[%c0_61, %c0_62, %c0_63], %81 {strides = array<i32>} : memref<1x64x256xf32, #tpu.memory_space<vmem>>, vector<1x64x256xf32>,
    %82 = arith.mulf %78, %78 : vector<64x256xf32>
    %83 = tpu.concatenate %78, %82 in 0 : vector<64x256xf32>, vector<64x256xf32> -> vector<128x256xf32>
    %cst_64 = arith.constant dense<0.000000e+00> : vector<128xf32>
    %84 = vector.multi_reduction <add>, %83, %cst_64 [1] : vector<128x256xf32> to vector<128xf32>
    %85 = vector.shape_cast %84 : vector<128xf32> to vector<128x1xf32>
    %c0_65 = arith.constant 0 : index
    %c0_66 = arith.constant 0 : index
    %c0_67 = arith.constant 0 : index
    %86 = vector.load %arg9[%c0_65, %c0_66, %c0_67] : memref<1x128x1xf32, #tpu.memory_space<vmem>>, vector<1x128x1xf32>
    %87 = vector.shape_cast %86 : vector<1x128x1xf32> to vector<128x1xf32>
    %88 = vector.shape_cast %85 : vector<128x1xf32> to vector<1x128x1xf32>
    tpu.vector_store %arg9[%c0_65, %c0_66, %c0_67], %88 {strides = array<i32>} : memref<1x128x1xf32, #tpu.memory_space<vmem>>, vector<1x128x1xf32>,
    return
  }
  func.func @transform_0(%arg0: i32) -> (i32, i32, i32) {
    %c0_i32 = arith.constant 0 : i32
    %c0_i32_0 = arith.constant 0 : i32
    %c0_i32_1 = arith.constant 0 : i32
    return %arg0, %c0_i32, %c0_i32_0 : i32, i32, i32
  }
  func.func @transform_1(%arg0: i32) -> (i32, i32) {
    %c0_i32 = arith.constant 0 : i32
    %c0_i32_0 = arith.constant 0 : i32
    %c0_i32_1 = arith.constant 0 : i32
    return %c0_i32, %c0_i32_0 : i32, i32
  }
  func.func @transform_2(%arg0: i32) -> (i32, i32) {
    %c0_i32 = arith.constant 0 : i32
    %c0_i32_0 = arith.constant 0 : i32
    %c0_i32_1 = arith.constant 0 : i32
    return %c0_i32, %c0_i32_0 : i32, i32
  }
  func.func @transform_3(%arg0: i32) -> (i32, i32) {
    %c0_i32 = arith.constant 0 : i32
    %c0_i32_0 = arith.constant 0 : i32
    %c0_i32_1 = arith.constant 0 : i32
    return %c0_i32, %c0_i32_0 : i32, i32
  }
  func.func @transform_4(%arg0: i32) -> (i32, i32, i32) {
    %c0_i32 = arith.constant 0 : i32
    %c0_i32_0 = arith.constant 0 : i32
    %c0_i32_1 = arith.constant 0 : i32
    %c0_i32_2 = arith.constant 0 : i32
    return %c0_i32, %c0_i32_0, %c0_i32_1 : i32, i32, i32
  }
  func.func @transform_5(%arg0: i32) -> (i32, i32) {
    %c0_i32 = arith.constant 0 : i32
    %c0_i32_0 = arith.constant 0 : i32
    %c0_i32_1 = arith.constant 0 : i32
    return %c0_i32, %c0_i32_0 : i32, i32
  }
  func.func @transform_6(%arg0: i32) -> (i32, i32) {
    %c0_i32 = arith.constant 0 : i32
    %c0_i32_0 = arith.constant 0 : i32
    %c0_i32_1 = arith.constant 0 : i32
    return %c0_i32, %c0_i32_0 : i32, i32
  }
  func.func @transform_7(%arg0: i32) -> (i32, i32, i32) {
    %c0_i32 = arith.constant 0 : i32
    %c0_i32_0 = arith.constant 0 : i32
    %c0_i32_1 = arith.constant 0 : i32
    return %arg0, %c0_i32, %c0_i32_0 : i32, i32, i32
  }
  func.func @transform_8(%arg0: i32) -> (i32, i32, i32) {
    %c0_i32 = arith.constant 0 : i32
    %c0_i32_0 = arith.constant 0 : i32
    %c0_i32_1 = arith.constant 0 : i32
    return %arg0, %c0_i32, %c0_i32_0 : i32, i32, i32
  }
}

module attributes {stable_mosaic.version = 11 : i64} {
  func.func @bn2_res_kernel(%arg0: i32, %arg1: memref<1x64x256xf32, #tpu.memory_space<vmem>>, %arg2: memref<1x64x256xf32, #tpu.memory_space<vmem>>, %arg3: memref<64x1xf32, #tpu.memory_space<vmem>>, %arg4: memref<64x1xf32, #tpu.memory_space<vmem>>, %arg5: memref<1x64x256xf32, #tpu.memory_space<vmem>>) attributes {dimension_semantics = [#tpu.dimension_semantics<parallel>], iteration_bounds = array<i64: 2>, scalar_prefetch = 0 : i64, scratch_operands = 0 : i64, tpu.core_type = #tpu.core_type<tc>, window_params = [{transform_indices = @transform_0, window_bounds = array<i64: 1, 64, 256>}, {transform_indices = @transform_1, window_bounds = array<i64: 1, 64, 256>}, {pipeline_mode = #tpu.pipeline_mode<synchronous>, transform_indices = @transform_2, window_bounds = array<i64: 64, 1>}, {pipeline_mode = #tpu.pipeline_mode<synchronous>, transform_indices = @transform_3, window_bounds = array<i64: 64, 1>}, {transform_indices = @transform_4, window_bounds = array<i64: 1, 64, 256>}]} {
    %c0 = arith.constant 0 : index
    %c0_0 = arith.constant 0 : index
    %c0_1 = arith.constant 0 : index
    %0 = vector.load %arg1[%c0, %c0_0, %c0_1] : memref<1x64x256xf32, #tpu.memory_space<vmem>>, vector<1x64x256xf32>
    %1 = vector.shape_cast %0 : vector<1x64x256xf32> to vector<64x256xf32>
    %c0_2 = arith.constant 0 : index
    %c0_3 = arith.constant 0 : index
    %2 = vector.load %arg3[%c0_2, %c0_3] : memref<64x1xf32, #tpu.memory_space<vmem>>, vector<64x1xf32>
    %3 = vector.broadcast %2 : vector<64x1xf32> to vector<64x256xf32>
    %4 = arith.mulf %1, %3 : vector<64x256xf32>
    %c0_4 = arith.constant 0 : index
    %c0_5 = arith.constant 0 : index
    %5 = vector.load %arg4[%c0_4, %c0_5] : memref<64x1xf32, #tpu.memory_space<vmem>>, vector<64x1xf32>
    %6 = vector.broadcast %5 : vector<64x1xf32> to vector<64x256xf32>
    %7 = arith.addf %4, %6 : vector<64x256xf32>
    %cst = arith.constant 0.000000e+00 : f32
    %8 = vector.broadcast %cst : f32 to vector<64x256xf32>
    %9 = arith.cmpf ogt, %7, %8 : vector<64x256xf32>
    %cst_6 = arith.constant 1.000000e-01 : f32
    %10 = vector.broadcast %cst_6 : f32 to vector<64x256xf32>
    %11 = arith.mulf %10, %7 : vector<64x256xf32>
    %12 = arith.select %9, %7, %11 : vector<64x256xi1>, vector<64x256xf32>
    %c0_7 = arith.constant 0 : index
    %c0_8 = arith.constant 0 : index
    %c0_9 = arith.constant 0 : index
    %13 = vector.load %arg2[%c0_7, %c0_8, %c0_9] : memref<1x64x256xf32, #tpu.memory_space<vmem>>, vector<1x64x256xf32>
    %14 = vector.shape_cast %13 : vector<1x64x256xf32> to vector<64x256xf32>
    %15 = arith.addf %12, %14 : vector<64x256xf32>
    %c0_10 = arith.constant 0 : index
    %c0_11 = arith.constant 0 : index
    %c0_12 = arith.constant 0 : index
    %16 = vector.load %arg5[%c0_10, %c0_11, %c0_12] : memref<1x64x256xf32, #tpu.memory_space<vmem>>, vector<1x64x256xf32>
    %17 = vector.shape_cast %16 : vector<1x64x256xf32> to vector<64x256xf32>
    %18 = vector.shape_cast %15 : vector<64x256xf32> to vector<1x64x256xf32>
    tpu.vector_store %arg5[%c0_10, %c0_11, %c0_12], %18 {strides = array<i32>} : memref<1x64x256xf32, #tpu.memory_space<vmem>>, vector<1x64x256xf32>,
    return
  }
  func.func @transform_0(%arg0: i32) -> (i32, i32, i32) {
    %c0_i32 = arith.constant 0 : i32
    %c0_i32_0 = arith.constant 0 : i32
    %c0_i32_1 = arith.constant 0 : i32
    return %arg0, %c0_i32, %c0_i32_0 : i32, i32, i32
  }
  func.func @transform_1(%arg0: i32) -> (i32, i32, i32) {
    %c0_i32 = arith.constant 0 : i32
    %c0_i32_0 = arith.constant 0 : i32
    %c0_i32_1 = arith.constant 0 : i32
    return %arg0, %c0_i32, %c0_i32_0 : i32, i32, i32
  }
  func.func @transform_2(%arg0: i32) -> (i32, i32) {
    %c0_i32 = arith.constant 0 : i32
    %c0_i32_0 = arith.constant 0 : i32
    %c0_i32_1 = arith.constant 0 : i32
    return %c0_i32, %c0_i32_0 : i32, i32
  }
  func.func @transform_3(%arg0: i32) -> (i32, i32) {
    %c0_i32 = arith.constant 0 : i32
    %c0_i32_0 = arith.constant 0 : i32
    %c0_i32_1 = arith.constant 0 : i32
    return %c0_i32, %c0_i32_0 : i32, i32
  }
  func.func @transform_4(%arg0: i32) -> (i32, i32, i32) {
    %c0_i32 = arith.constant 0 : i32
    %c0_i32_0 = arith.constant 0 : i32
    %c0_i32_1 = arith.constant 0 : i32
    return %arg0, %c0_i32, %c0_i32_0 : i32, i32, i32
  }
}

</mosaic_0001>

<bundles_post_ra>
// kernel: _resblock_fwd.5
= control target key start
LH: loop header
LB: loop body
LE: loop exit
PB: predicated region body
PF: predicated region fallthrough
CT: control target
= control target key end

     0   :  { %s586_s15 = smov 0   ;;  %s717_s0 = inlined_call_operand.vmem [shape: f32[2,64,256], index: 0, kind: input, shape index: {}]   ;;  %s718_s1 = inlined_call_operand.vmem [shape: f32[2,64,256], index: 1, kind: input, shape index: {}]   ;;  %s719_s2 = inlined_call_operand.vmem [shape: f32[64,1], index: 2, kind: input, shape index: {}]   ;;  %s720_s3 = inlined_call_operand.vmem [shape: f32[64,1], index: 3, kind: input, shape index: {}]   ;;  %s721_s4 = inlined_call_operand.vmem [shape: f32[2,64,256], index: 4, kind: output, shape index: {}]  }
   0x1 LB: > { %s525_s16 = sadd.s32 4294967295, %s558_s15   ;;  %p529_p0 = scmp.ge.s32.totalorder %s558_s15, 1  ;;  %s558_s15 = sphi %s586_s15, %s14_s15  }
   0x2   : > { %p172_p1 = scmp.lt.s32.totalorder %s558_s15, 3 }
   0x4   : > { %p173_p2 = pnand %p529_p0, %p172_p1 }
   0x5   : > { %p203_p3 = scmp.lt.s32.totalorder (!%p173_p2), %s525_s16, 1 }
   0x6   : > { %176 = sbr.rel (%p173_p2) target bundleno = 178 (0xb2), region = 36 }
   0xb   : > { %v236_v0 = vld [vmem:[%s719_s2 + $0x10] sm:$0xff]  ;;  %v234_v1 = vld [vmem:[%s719_s2] sm:$0xff]  ;;  %v560_v2 = vmov 0   ;;  %v237_v3 = vld [vmem:[%s719_s2 + $0x18] sm:$0xff]  ;;  %s723_s16 = smov (!%p203_p3, %s525_s16), 1 }
   0xc   : > { %551 = vset.pattern.permute.xlu1 %v560_v2  ;;  %550 = vset.pattern.permute.xlu0 %v560_v2  ;;  %v235_v4 = vld [vmem:[%s719_s2 + $0x8] sm:$0xff]  ;;  %v238_v6 = vld [vmem:[%s719_s2 + $0x20] sm:$0xff]  ;;  %v241_v7 = vld [vmem:[%s719_s2 + $0x38] sm:$0xff]  ;;  %s646_s25 = sshll.u32 %s723_s16, 7 }
   0xd   : > { %254 = vperm.xlu1 %551, %v236_v0   ;;  %244 = vperm.xlu0 %550, %v234_v1   ;;  %v239_v5 = vld [vmem:[%s719_s2 + $0x28] sm:$0xff]  ;;  %v240_v8 = vld [vmem:[%s719_s2 + $0x30] sm:$0xff]  ;;  %v298_v10 = vld [vmem:[%s720_s3] sm:$0xff]  ;;  %s207_s28 = scalar_lea.vmem %s717_s0, %s646_s25  ;;  %s656_s30 = scalar_lea.vmem %s718_s1, %s646_s25 }
   0xe   : > { %v299_v9 = vld [vmem:[%s720_s3 + $0x8] sm:$0xff]  ;;  %v301_v11 = vld [vmem:[%s720_s3 + $0x18] sm:$0xff]  ;;  %v300_v12 = vld [vmem:[%s720_s3 + $0x10] sm:$0xff]  ;;  %s674_s7 = scalar_lea.vmem %s721_s4, %s646_s25 }
   0xf   : > { %v303_v13 = vld [vmem:[%s720_s3 + $0x28] sm:$0xff]  ;;  %v302_v14 = vld [vmem:[%s720_s3 + $0x20] sm:$0xff]  ;;  %v305_v15 = vld [vmem:[%s720_s3 + $0x38] sm:$0xff] }
  0x10   : > { %v304_v16 = vld [vmem:[%s720_s3 + $0x30] sm:$0xff]  ;;  %v222_v23 = vld [vmem:[%s207_s28 + $0x20] sm:$0xff]  ;;  %v223_v24 = vld [vmem:[%s207_s28 + $0x28] sm:$0xff] }
  0x11   : > { %259 = vperm.xlu1 %551, %v237_v3   ;;  %249 = vperm.xlu0 %550, %v235_v4   ;;  %v218_v25 = vld [vmem:[%s207_s28] sm:$0xff]  ;;  %v219_v26 = vld [vmem:[%s207_s28 + $0x8] sm:$0xff]  ;;  %v224_v27 = vld [vmem:[%s207_s28 + $0x30] sm:$0xff] }
  0x12   : > { %v225_v28 = vld [vmem:[%s207_s28 + $0x38] sm:$0xff]  ;;  %v220_v29 = vld [vmem:[%s207_s28 + $0x10] sm:$0xff]  ;;  %v226_v35 = vld [vmem:[%s207_s28 + $0x40] sm:$0xff] }
  0x13   : > { %v221_v30 = vld [vmem:[%s207_s28 + $0x18] sm:$0xff]  ;;  %v228_v31 = vld [vmem:[%s207_s28 + $0x50] sm:$0xff]  ;;  %v227_v36 = vld [vmem:[%s207_s28 + $0x48] sm:$0xff] }
  0x14   : > { %v229_v34 = vld [vmem:[%s207_s28 + $0x58] sm:$0xff]  ;;  %v232_v41 = vld [vmem:[%s207_s28 + $0x70] sm:$0xff]  ;;  %v230_v47 = vld [vmem:[%s207_s28 + $0x60] sm:$0xff] }
  0x15   : > { %269 = vperm.xlu1 %551, %v239_v5   ;;  %264 = vperm.xlu0 %550, %v238_v6   ;;  %v233_v46 = vld [vmem:[%s207_s28 + $0x78] sm:$0xff]  ;;  %v231_v48 = vld [vmem:[%s207_s28 + $0x68] sm:$0xff]  ;;  %v412_v57 = vld [vmem:[%s656_s30 + $0x10] sm:$0xff] }
  0x16   : > { %v413_v0 = vld [vmem:[%s656_s30 + $0x18] sm:$0xff]  ;;  %v410_v1 = vld [vmem:[%s656_s30] sm:$0xff]  ;;  %v411_v2 = vld [vmem:[%s656_s30 + $0x8] sm:$0xff] }
  0x19   : > { %279 = vperm.xlu1 %551, %v241_v7   ;;  %274 = vperm.xlu0 %550, %v240_v8  }
  0x1d   : > { %313 = vperm.xlu1 %551, %v299_v9   ;;  %308 = vperm.xlu0 %550, %v298_v10  }
  0x21   : > { %323 = vperm.xlu1 %551, %v301_v11   ;;  %318 = vperm.xlu0 %550, %v300_v12  }
  0x25   : > { %333 = vperm.xlu1 %551, %v303_v13   ;;  %328 = vperm.xlu0 %550, %v302_v14  }
  0x29   : > { %343 = vperm.xlu1 %551, %v305_v15   ;;  %338 = vperm.xlu0 %550, %v304_v16  }
  0x88   : > { %v255_v17 = vpop.permute.xlu1 %254  ;;  %v245_v18 = vpop.permute.xlu0 %244 }
  0x89   : > { %v286_v37 = vmul.f32 %v255_v17, %v222_v23  ;;  %v287_v38 = vmul.f32 %v255_v17, %v223_v24  ;;  %v282_v39 = vmul.f32 %v245_v18, %v218_v25  ;;  %v283_v40 = vmul.f32 %v245_v18, %v219_v26 }
  0x8c   : > { %v260_v19 = vpop.permute.xlu1 %259  ;;  %v250_v20 = vpop.permute.xlu0 %249 }
  0x8d   : > { %v288_v42 = vmul.f32 %v260_v19, %v224_v27  ;;  %v289_v43 = vmul.f32 %v260_v19, %v225_v28  ;;  %v284_v44 = vmul.f32 %v250_v20, %v220_v29  ;;  %v285_v45 = vmul.f32 %v250_v20, %v221_v30 }
  0x90   : > { %v270_v21 = vpop.permute.xlu1 %269  ;;  %v265_v22 = vpop.permute.xlu0 %264 }
  0x91   : > { %v292_v49 = vmul.f32 %v270_v21, %v228_v31  ;;  %v293_v50 = vmul.f32 %v270_v21, %v229_v34  ;;  %v290_v51 = vmul.f32 %v265_v22, %v226_v35  ;;  %v291_v52 = vmul.f32 %v265_v22, %v227_v36  ;;  %v416_v21 = vld [vmem:[%s656_s30 + $0x30] sm:$0xff]  ;;  %v417_v22 = vld [vmem:[%s656_s30 + $0x38] sm:$0xff]  ;;  %v415_v34 = vld [vmem:[%s656_s30 + $0x28] sm:$0xff] }
  0x94   : > { %v280_v32 = vpop.permute.xlu1 %279  ;;  %v275_v33 = vpop.permute.xlu0 %274 }
  0x95   : > { %v659_v60 = vmul.f32 %v280_v32, %v232_v41  ;;  %v661_v61 = vmul.f32 %v280_v32, %v233_v46  ;;  %v663_v62 = vmul.f32 %v275_v33, %v230_v47  ;;  %v665_v63 = vmul.f32 %v275_v33, %v231_v48  ;;  %v414_v33 = vld [vmem:[%s656_s30 + $0x20] sm:$0xff] }
  0x98   : > { %v314_v53 = vpop.permute.xlu1 %313  ;;  %v309_v54 = vpop.permute.xlu0 %308 }
  0x99   : > { %v348_v55 = vadd.f32 %v314_v53, %v284_v44  ;;  %v349_v56 = vadd.f32 %v314_v53, %v285_v45  ;;  %v346_v58 = vadd.f32 %v309_v54, %v282_v39  ;;  %v347_v59 = vadd.f32 %v309_v54, %v283_v40  ;;  %v420_v39 = vld [vmem:[%s656_s30 + $0x50] sm:$0xff]  ;;  %v421_v40 = vld [vmem:[%s656_s30 + $0x58] sm:$0xff] }
  0x9b   : > { %vm364_vm0 = vcmp.gt.f32.partialorder %v348_v55, 0.0  ;;  %vm365_vm1 = vcmp.gt.f32.partialorder %v349_v56, 0.0  ;;  %v380_v3 = vmul.f32 0.1, %v348_v55  ;;  %v381_v4 = vmul.f32 0.1, %v349_v56 }
  0x9c   : > { %vm362_vm2 = vcmp.gt.f32.partialorder %v346_v58, 0.0  ;;  %vm363_vm3 = vcmp.gt.f32.partialorder %v347_v59, 0.0  ;;  %v378_v5 = vmul.f32 0.1, %v346_v58  ;;  %v379_v6 = vmul.f32 0.1, %v347_v59  ;;  %v324_v7 = vpop.permute.xlu1 %323  ;;  %v319_v8 = vpop.permute.xlu0 %318 }
  0x9d   : > { %v396_v9 = vsel %vm364_vm0, %v348_v55, %v380_v3  ;;  %v397_v10 = vsel %vm365_vm1, %v349_v56, %v381_v4  ;;  %v352_v11 = vadd.f32 %v324_v7, %v288_v42  ;;  %v353_v12 = vadd.f32 %v324_v7, %v289_v43  ;;  %v418_v55 = vld [vmem:[%s656_s30 + $0x40] sm:$0xff]  ;;  %v419_v56 = vld [vmem:[%s656_s30 + $0x48] sm:$0xff] }
  0x9e   : > { %v428_v13 = vadd.f32 %v412_v57, %v396_v9  ;;  %v429_v14 = vadd.f32 %v413_v0, %v397_v10  ;;  %v394_v15 = vsel %vm362_vm2, %v346_v58, %v378_v5  ;;  %v395_v16 = vsel %vm363_vm3, %v347_v59, %v379_v6  ;;  %v422_v7 = vld [vmem:[%s656_s30 + $0x60] sm:$0xff] }
  0x9f   : > { %v426_v17 = vadd.f32 %v410_v1, %v394_v15  ;;  %v427_v18 = vadd.f32 %v411_v2, %v395_v16  ;;  %vm368_vm4 = vcmp.gt.f32.partialorder %v352_v11, 0.0  ;;  %vm369_vm5 = vcmp.gt.f32.partialorder %v353_v12, 0.0 }
  0xa0   : > { %444 = vst [vmem:[%s674_s7 + $0x10] sm:$0xff] %v428_v13  ;;  %445 = vst [vmem:[%s674_s7 + $0x18] sm:$0xff] %v429_v14  ;;  %v384_v19 = vmul.f32 0.1, %v352_v11  ;;  %v385_v20 = vmul.f32 0.1, %v353_v12  ;;  %v350_v23 = vadd.f32 %v319_v8, %v286_v37  ;;  %v351_v24 = vadd.f32 %v319_v8, %v287_v38  ;;  %v334_v25 = vpop.permute.xlu1 %333  ;;  %v329_v26 = vpop.permute.xlu0 %328 }
  0xa1   : > { %442 = vst [vmem:[%s674_s7] sm:$0xff] %v426_v17  ;;  %443 = vst [vmem:[%s674_s7 + $0x8] sm:$0xff] %v427_v18  ;;  %v356_v27 = vadd.f32 %v334_v25, %v292_v49  ;;  %v357_v28 = vadd.f32 %v334_v25, %v293_v50  ;;  %v354_v29 = vadd.f32 %v329_v26, %v290_v51  ;;  %v423_v8 = vld [vmem:[%s656_s30 + $0x68] sm:$0xff] }
  0xa2   : > { %v355_v30 = vadd.f32 %v329_v26, %v291_v52  ;;  %v400_v31 = vsel %vm368_vm4, %v352_v11, %v384_v19  ;;  %v401_v32 = vsel %vm369_vm5, %v353_v12, %v385_v20  ;;  %vm366_vm6 = vcmp.gt.f32.partialorder %v350_v23, 0.0 }
  0xa3   : > { %vm367_vm7 = vcmp.gt.f32.partialorder %v351_v24, 0.0  ;;  %v432_v35 = vadd.f32 %v416_v21, %v400_v31  ;;  %v433_v36 = vadd.f32 %v417_v22, %v401_v32  ;;  %v382_v37 = vmul.f32 0.1, %v350_v23 }
  0xa4   : > { %v383_v38 = vmul.f32 0.1, %v351_v24  ;;  %vm372_vm8 = vcmp.gt.f32.partialorder %v356_v27, 0.0  ;;  %vm373_vm9 = vcmp.gt.f32.partialorder %v357_v28, 0.0  ;;  %v388_v41 = vmul.f32 0.1, %v356_v27  ;;  %v344_v45 = vpop.permute.xlu1 %343  ;;  %v339_v46 = vpop.permute.xlu0 %338 }
  0xa5   : > { %v389_v42 = vmul.f32 0.1, %v357_v28  ;;  %448 = vst [vmem:[%s674_s7 + $0x30] sm:$0xff] %v432_v35  ;;  %449 = vst [vmem:[%s674_s7 + $0x38] sm:$0xff] %v433_v36  ;;  %v398_v43 = vsel %vm366_vm6, %v350_v23, %v382_v37  ;;  %vm370_vm10 = vcmp.gt.f32.partialorder %v354_v29, 0.0  ;;  %vm371_vm11 = vcmp.gt.f32.partialorder %v355_v30, 0.0 }
  0xa6   : > { %v399_v44 = vsel %vm367_vm7, %v351_v24, %v383_v38  ;;  %v430_v47 = vadd.f32 %v414_v33, %v398_v43  ;;  %v404_v49 = vsel %vm372_vm8, %v356_v27, %v388_v41  ;;  %v386_v53 = vmul.f32 0.1, %v354_v29 }
  0xa7   : > { %v431_v48 = vadd.f32 %v415_v34, %v399_v44  ;;  %v405_v50 = vsel %vm373_vm9, %v357_v28, %v389_v42  ;;  %v436_v51 = vadd.f32 %v420_v39, %v404_v49  ;;  %v387_v54 = vmul.f32 0.1, %v355_v30 }
  0xa8   : > { %v437_v52 = vadd.f32 %v421_v40, %v405_v50  ;;  %446 = vst [vmem:[%s674_s7 + $0x20] sm:$0xff] %v430_v47  ;;  %v360_v57 = vadd.f32 %v344_v45, %v659_v60  ;;  %v361_v58 = vadd.f32 %v344_v45, %v661_v61  ;;  %v358_v59 = vadd.f32 %v339_v46, %v663_v62  ;;  %v424_v60 = vld [vmem:[%s656_s30 + $0x70] sm:$0xff]  ;;  %v425_v61 = vld [vmem:[%s656_s30 + $0x78] sm:$0xff] }
  0xa9   : > { %447 = vst [vmem:[%s674_s7 + $0x28] sm:$0xff] %v431_v48  ;;  %v359_v0 = vadd.f32 %v339_v46, %v665_v63  ;;  %452 = vst [vmem:[%s674_s7 + $0x50] sm:$0xff] %v436_v51  ;;  %v402_v1 = vsel %vm370_vm10, %v354_v29, %v386_v53  ;;  %v403_v2 = vsel %vm371_vm11, %v355_v30, %v387_v54 }
  0xaa   : > { %453 = vst [vmem:[%s674_s7 + $0x58] sm:$0xff] %v437_v52  ;;  %v434_v3 = vadd.f32 %v418_v55, %v402_v1  ;;  %v435_v4 = vadd.f32 %v419_v56, %v403_v2  ;;  %vm376_vm12 = vcmp.gt.f32.partialorder %v360_v57, 0.0  ;;  %vm377_vm13 = vcmp.gt.f32.partialorder %v361_v58, 0.0 }
  0xab   : > { %v392_v5 = vmul.f32 0.1, %v360_v57  ;;  %v393_v62 = vmul.f32 0.1, %v361_v58  ;;  %vm374_vm14 = vcmp.gt.f32.partialorder %v358_v59, 0.0  ;;  %vm375_vm15 = vcmp.gt.f32.partialorder %v359_v0, 0.0 }
  0xac   : > { %450 = vst [vmem:[%s674_s7 + $0x40] sm:$0xff] %v434_v3  ;;  %451 = vst [vmem:[%s674_s7 + $0x48] sm:$0xff] %v435_v4  ;;  %v390_v63 = vmul.f32 0.1, %v358_v59  ;;  %v391_v6 = vmul.f32 0.1, %v359_v0 }
  0xad   : > { %v408_v9 = vsel %vm376_vm12, %v360_v57, %v392_v5  ;;  %v409_v10 = vsel %vm377_vm13, %v361_v58, %v393_v62 }
  0xae   : > { %v440_v11 = vadd.f32 %v424_v60, %v408_v9  ;;  %v441_v12 = vadd.f32 %v425_v61, %v409_v10  ;;  %v406_v13 = vsel %vm374_vm14, %v358_v59, %v390_v63  ;;  %v407_v14 = vsel %vm375_vm15, %v359_v0, %v391_v6 }
  0xaf   : > { %v438_v15 = vadd.f32 %v422_v7, %v406_v13  ;;  %v439_v16 = vadd.f32 %v423_v8, %v407_v14 }
  0xb0   : > { %456 = vst [vmem:[%s674_s7 + $0x70] sm:$0xff] %v440_v11  ;;  %457 = vst [vmem:[%s674_s7 + $0x78] sm:$0xff] %v441_v12 }
  0xb1   : > { %454 = vst [vmem:[%s674_s7 + $0x60] sm:$0xff] %v438_v15  ;;  %455 = vst [vmem:[%s674_s7 + $0x68] sm:$0xff] %v439_v16 }
  0xb2 PF: > { %s14_s15 = sadd.s32 1, %s558_s15  }
  0xb3   : > { %p11_p4 = scmp.ge.s32.totalorder %s14_s15, 4  }
  0xb5   :  { %13 = sbr.rel (!%p11_p4) target bundleno = 1 (0x1), region = 69 }

// kernel: _resblock_fwd.3
= control target key start
LH: loop header
LB: loop body
LE: loop exit
PB: predicated region body
PF: predicated region fallthrough
CT: control target
= control target key end

     0   :  { %s1113_s9 = smov 0   ;;  %s1518_s0 = inlined_call_operand.vmem [shape: f32[2,64,256], index: 0, kind: input, shape index: {}]   ;;  %s1519_s1 = inlined_call_operand.vmem [shape: f32[32,64], index: 1, kind: input, shape index: {}]   ;;  %s1520_s2 = inlined_call_operand.vmem [shape: f32[2,64,1], index: 2, kind: output, shape index: {}]  }
   0x1 LB: > { %s1067_s10 = sadd.s32 4294967295, %s1095_s9   ;;  %p1071_p0 = scmp.ge.s32.totalorder %s1095_s9, 1  ;;  %s1095_s9 = sphi %s1113_s9, %s12_s9  }
   0x2   : > { %p112_p1 = scmp.lt.s32.totalorder %s1095_s9, 3 }
   0x4   : > { %p113_p2 = pnand %p1071_p0, %p112_p1 }
   0x5   : > { %p134_p3 = scmp.lt.s32.totalorder (!%p113_p2), %s1067_s10, 1 }
   0x6   : > { %116 = sbr.rel (%p113_p2) target bundleno = 444 (0x1bc), region = 28 }
   0xb   : > { %v160_v0 = vld [vmem:[%s1519_s1] sm:$0xff]  ;;  %vm164_vm0 = vcmask 523264   ;;  %v161_v1 = vld [vmem:[%s1519_s1 + $0x8] sm:$0xff]  ;;  %v162_v2 = vld [vmem:[%s1519_s1 + $0x10] sm:$0xff]  ;;  %v1097_v3 = vmov 0.0   ;;  %s1538_s10 = smov (!%p134_p3, %s1067_s10), 1 }
   0xc   : > { %257 = vmatprep.mubr.f32.mxu0 %v1097_v3  ;;  %v166_v4 = vsel %vm164_vm0, %v160_v0, 0  ;;  %v169_v5 = vsel %vm164_vm0, %v161_v1, 0  ;;  %446 = vmatprep.mubr.f32.mxu1 %v1097_v3  ;;  %v172_v6 = vsel %vm164_vm0, %v162_v2, 0  ;;  %v163_v7 = vld [vmem:[%s1519_s1 + $0x18] sm:$0xff]  ;;  %s1078_s19 = sshll.u32 %s1538_s10, 7  ;;  %s1079_s23 = sshll.u32 %s1538_s10, 6 }
   0xd   : > { %v1137_v8 = vand.u32 4294901760, %v166_v4  ;;  %v1139_v9 = vand.u32 4294901760, %v169_v5  ;;  %v1141_v10 = vand.u32 4294901760, %v172_v6  ;;  %v175_v11 = vsel %vm164_vm0, %v163_v7, 0  ;;  %s1155_s22 = scalar_lea.vmem %s1518_s0, %s1078_s19  ;;  %s143_s26 = scalar_lea.vmem %s1520_s2, %s1079_s23 }
   0xe   : > { %v1143_v12 = vand.u32 4294901760, %v175_v11  ;;  %v159_v15 = vld [vmem:[%s1155_s22 + $0x78] sm:$0xff]  ;;  %v158_v16 = vld [vmem:[%s1155_s22 + $0x70] sm:$0xff]  ;;  %v157_v17 = vld [vmem:[%s1155_s22 + $0x68] sm:$0xff]  ;;  %vm1003_vm1 = vcmask 7168  }
   0xf   : > { %v1147_v13 = vsub.f32 %v166_v4, %v1137_v8  ;;  %v1150_v14 = vsub.f32 %v169_v5, %v1139_v9  ;;  %v1163_v20 = vsub.f32 %v172_v6, %v1141_v10  ;;  %v1165_v21 = vand.u32 4294901760, %v159_v15  ;;  %v156_v24 = vld [vmem:[%s1155_s22 + $0x60] sm:$0xff]  ;;  %v155_v25 = vld [vmem:[%s1155_s22 + $0x58] sm:$0xff]  ;;  %v154_v26 = vld [vmem:[%s1155_s22 + $0x50] sm:$0xff] }
  0x10   : > { %v1167_v22 = vand.u32 4294901760, %v158_v16  ;;  %v1169_v23 = vand.u32 4294901760, %v157_v17  ;;  %v1175_v27 = vsub.f32 %v175_v11, %v1143_v12  ;;  %v1177_v28 = vand.u32 4294901760, %v156_v24  ;;  %v153_v31 = vld [vmem:[%s1155_s22 + $0x48] sm:$0xff]  ;;  %v152_v32 = vld [vmem:[%s1155_s22 + $0x40] sm:$0xff]  ;;  %v151_v33 = vld [vmem:[%s1155_s22 + $0x38] sm:$0xff] }
  0x11   : > { %v1524_v18 = vand.u32 4294901760, %v1147_v13  ;;  %v1521_v19 = vand.u32 4294901760, %v1150_v14  ;;  %v1179_v29 = vand.u32 4294901760, %v155_v25  ;;  %v1181_v30 = vand.u32 4294901760, %v154_v26  ;;  %194 = vmatprep.subr.mxu0 %v1165_v21  ;;  %v150_v39 = vld [vmem:[%s1155_s22 + $0x30] sm:$0xff]  ;;  %v149_v40 = vld [vmem:[%s1155_s22 + $0x28] sm:$0xff] }
  0x12   : > { %v1192_v35 = vand.u32 4294901760, %v153_v31  ;;  %v1194_v36 = vand.u32 4294901760, %v152_v32  ;;  %v1196_v37 = vand.u32 4294901760, %v151_v33  ;;  %v1199_v38 = vsub.f32 %v159_v15, %v1165_v21  ;;  %v148_v41 = vld [vmem:[%s1155_s22 + $0x20] sm:$0xff]  ;;  %196 = vmatpush1.msra.mxu0 %v1167_v22  ;;  %v1216_v46 = vld [vmem:[%s1155_s22 + $0x18] sm:$0xff]  ;;  %v1219_v47 = vld [vmem:[%s1155_s22 + $0x10] sm:$0xff] }
  0x13   : > { %v1189_v34 = vsub.f32 %v1147_v13, %v1524_v18  ;;  %v1205_v42 = vand.u32 4294901760, %v150_v39  ;;  %v1208_v43 = vsub.f32 %v158_v16, %v1167_v22  ;;  %v1210_v44 = vand.u32 4294901760, %v149_v40  ;;  %v1222_v48 = vld [vmem:[%s1155_s22 + $0x8] sm:$0xff]  ;;  %198 = vmatprep.subr.mxu0 %v1169_v23  ;;  %v1244_v57 = vld [vmem:[%s1155_s22] sm:$0xff] }
  0x14   : > { %v1213_v45 = vsub.f32 %v157_v17, %v1169_v23  ;;  %v320_v49 = vand.u32 4294901760, %v1199_v38  ;;  %v1226_v50 = vand.u32 4294901760, %v148_v41  ;;  %v1229_v51 = vsub.f32 %v156_v24, %v1177_v28  ;;  %200 = vmatpush1.msra.mxu0 %v1177_v28 }
  0x15   : > { %v1232_v52 = vand.u32 4294901760, %v1216_v46  ;;  %v326_v53 = vand.u32 4294901760, %v1208_v43  ;;  %v1238_v55 = vsub.f32 %v155_v25, %v1179_v29  ;;  %v1241_v56 = vand.u32 4294901760, %v1219_v47  ;;  %202 = vmatprep.subr.mxu0 %v1179_v29 }
  0x16   : > { %v332_v54 = vand.u32 4294901760, %v1213_v45  ;;  %v321_v58 = vsub.f32 %v1199_v38, %v320_v49  ;;  %v338_v59 = vand.u32 4294901760, %v1229_v51  ;;  %v1252_v60 = vsub.f32 %v154_v26, %v1181_v30  ;;  %204 = vmatpush1.msra.mxu0 %v1181_v30 }
  0x17   : > { %v1255_v61 = vand.u32 4294901760, %v1222_v48  ;;  %v327_v62 = vsub.f32 %v1208_v43, %v326_v53  ;;  %v344_v0 = vand.u32 4294901760, %v1238_v55  ;;  %v1266_v1 = vsub.f32 %v153_v31, %v1192_v35  ;;  %206 = vmatprep.subr.mxu0 %v1192_v35 }
  0x18   : > { %v333_v63 = vsub.f32 %v1213_v45, %v332_v54  ;;  %v322_v2 = vand.u32 4294901760, %v321_v58  ;;  %v339_v4 = vsub.f32 %v1229_v51, %v338_v59  ;;  %v350_v5 = vand.u32 4294901760, %v1252_v60  ;;  %208 = vmatpush1.msra.mxu0 %v1194_v36 }
  0x19   : > { %v1274_v6 = vand.u32 4294901760, %v1244_v57  ;;  %v328_v7 = vand.u32 4294901760, %v327_v62  ;;  %v345_v15 = vsub.f32 %v1238_v55, %v344_v0  ;;  %v1528_v16 = vand.u32 4294901760, %v1266_v1  ;;  %210 = vmatprep.subr.mxu0 %v1196_v37 }
  0x1a   : > { %v334_v11 = vand.u32 4294901760, %v333_v63  ;;  %323 = vmatprep.subr.mxu1 %v322_v2  ;;  %v340_v17 = vand.u32 4294901760, %v339_v4  ;;  %v351_v24 = vsub.f32 %v1252_v60, %v350_v5  ;;  %v1286_v25 = vsub.f32 %v152_v32, %v1194_v36  ;;  %212 = vmatpush1.msra.mxu0 %v1205_v42 }
  0x1b   : > { %v262_v26 = vand.u32 4294901760, %v1189_v34  ;;  %329 = vmatpush1.msra.mxu1 %v328_v7  ;;  %v346_v31 = vand.u32 4294901760, %v345_v15  ;;  %v357_v58 = vsub.f32 %v1266_v1, %v1528_v16  ;;  %v1294_v62 = vsub.f32 %v151_v33, %v1196_v37  ;;  %214 = vmatprep.subr.mxu0 %v1210_v44 }
  0x1c   : > { %v1297_v63 = vsub.f32 %v150_v39, %v1205_v42  ;;  %335 = vmatprep.subr.mxu1 %v334_v11  ;;  %v352_v32 = vand.u32 4294901760, %v351_v24  ;;  %v1525_v34 = vand.u32 4294901760, %v1286_v25  ;;  %v1302_v2 = vsub.f32 %v149_v40, %v1210_v44  ;;  %216 = vmatpush1.msra.mxu0 %v1226_v50 }
  0x1d   : > { %v1305_v4 = vsub.f32 %v148_v41, %v1226_v50  ;;  %341 = vmatpush1.msra.mxu1 %v340_v17  ;;  %v358_v33 = vand.u32 4294901760, %v357_v58  ;;  %v1522_v7 = vand.u32 4294901760, %v1294_v62  ;;  %v272_v11 = vsub.f32 %v1150_v14, %v1521_v19  ;;  %218 = vmatprep.subr.mxu0 %v1232_v52 }
  0x1e   : > { %v1523_v39 = vand.u32 4294901760, %v1297_v63  ;;  %347 = vmatprep.subr.mxu1 %v346_v31  ;;  %v363_v40 = vsub.f32 %v1286_v25, %v1525_v34  ;;  %v1526_v41 = vand.u32 4294901760, %v1302_v2  ;;  %v1321_v17 = vsub.f32 %v1216_v46, %v1232_v52  ;;  %220 = vmatpush1.msra.mxu0 %v1241_v56 }
  0x1f   : > { %v1527_v15 = vand.u32 4294901760, %v1305_v4  ;;  %353 = vmatpush1.msra.mxu1 %v352_v32  ;;  %v369_v24 = vsub.f32 %v1294_v62, %v1522_v7  ;;  %v1332_v58 = vsub.f32 %v1219_v47, %v1241_v56  ;;  %v282_v19 = vand.u32 4294901760, %v1163_v20  ;;  %222 = vmatprep.subr.mxu0 %v1255_v61 }
  0x20   : > { %v375_v31 = vsub.f32 %v1297_v63, %v1523_v39  ;;  %359 = vmatprep.subr.mxu1 %v358_v33  ;;  %v364_v46 = vand.u32 4294901760, %v363_v40  ;;  %v381_v32 = vsub.f32 %v1302_v2, %v1526_v41  ;;  %v392_v39 = vand.u32 4294901760, %v1321_v17  ;;  %224 = vmatpush1.msra.mxu0 %v1274_v6 }
  0x21   : > { %v387_v7 = vsub.f32 %v1305_v4, %v1527_v15  ;;  %v370_v47 = vand.u32 4294901760, %v369_v24  ;;  %v398_v34 = vand.u32 4294901760, %v1332_v58  ;;  %v1347_v33 = vsub.f32 %v1222_v48, %v1255_v61  ;;  %263 = vmatmul.mubr.f32.vlgmr.msra.gmra.mxu0 %v262_v26  ;;  %493 = vmatprep.subr.mxu0 %v1199_v38 }
  0x22   : > { %v376_v18 = vand.u32 4294901760, %v375_v31  ;;  %365 = vmatpush1.msra.mxu1 %v364_v46  ;;  %v382_v40 = vand.u32 4294901760, %v381_v32  ;;  %v393_v15 = vsub.f32 %v1321_v17, %v392_v39  ;;  %v1354_v16 = vsub.f32 %v1244_v57, %v1274_v6  ;;  %496 = vmatpush1.msra.mxu0 %v1208_v43 }
  0x23   : > { %v388_v41 = vand.u32 4294901760, %v387_v7  ;;  %371 = vmatprep.subr.mxu1 %v370_v47  ;;  %v399_v48 = vsub.f32 %v1332_v58, %v398_v34  ;;  %v404_v24 = vand.u32 4294901760, %v1347_v33  ;;  %v273_v26 = vand.u32 4294901760, %v272_v11  ;;  %499 = vmatprep.subr.mxu0 %v1213_v45 }
  0x24   : > { %377 = vmatpush1.msra.mxu1 %v376_v18  ;;  %v394_v7 = vand.u32 4294901760, %v393_v15  ;;  %v410_v31 = vand.u32 4294901760, %v1354_v16  ;;  %v283_v32 = vsub.f32 %v1163_v20, %v282_v19  ;;  %268 = vmatprep.mubr.f32.mxu0 %v1097_v3  ;;  %v293_v11 = vand.u32 4294901760, %v1175_v27 }
  0x25   : > { %383 = vmatprep.subr.mxu1 %v382_v40  ;;  %v400_v57 = vand.u32 4294901760, %v399_v48  ;;  %v405_v46 = vsub.f32 %v1347_v33, %v404_v24  ;;  %502 = vmatpush1.msra.mxu0 %v1229_v51  ;;  %v1529_v38 = vand.u32 4294901760, %v1266_v1  ;;  %v1530_v43 = vand.u32 4294901760, %v1286_v25 }
  0x26   : > { %389 = vmatpush1.msra.mxu1 %v388_v41  ;;  %v411_v18 = vsub.f32 %v1354_v16, %v410_v31  ;;  %274 = vmatmul.mubr.f32.gmra.mxu0 %v273_v26  ;;  %v284_v40 = vand.u32 4294901760, %v283_v32  ;;  %v294_v41 = vsub.f32 %v1175_v27, %v293_v11  ;;  %v1531_v45 = vand.u32 4294901760, %v1147_v13 }
  0x27   : > { %395 = vmatprep.subr.mxu1 %v394_v7  ;;  %v406_v15 = vand.u32 4294901760, %v405_v46  ;;  %505 = vmatprep.subr.mxu0 %v1238_v55  ;;  %v1533_v51 = vand.u32 4294901760, %v1297_v63 }
  0x28   : > { %v412_v47 = vand.u32 4294901760, %v411_v18  ;;  %401 = vmatpush1.msra.mxu1 %v400_v57  ;;  %508 = vmatpush1.msra.mxu0 %v1252_v60  ;;  %v295_v48 = vand.u32 4294901760, %v294_v41 }
  0x29   : > { %407 = vmatprep.subr.mxu1 %v406_v15  ;;  %511 = vmatprep.subr.mxu0 %v1266_v1 }
  0x2a   : > { %279 = vmatprep.mubr.f32.mxu0 %v1097_v3  ;;  %413 = vmatpush1.msra.mxu1 %v412_v47 }
  0x2b   : > { %514 = vmatpush1.msra.mxu0 %v1286_v25  ;;  %448 = vmatmul.mubr.f32.vlgmr.msra.gmra.mxu1 %v1137_v8 }
  0x2c   : > { %285 = vmatmul.mubr.f32.gmra.mxu0 %v284_v40  ;;  %517 = vmatprep.subr.mxu0 %v1294_v62 }
  0x2d   : > { %621 = vmatprep.subr.mxu1 %v1165_v21  ;;  %520 = vmatpush1.msra.mxu0 %v1297_v63 }
  0x2e   : > { %623 = vmatpush1.msra.mxu1 %v1167_v22  ;;  %523 = vmatprep.subr.mxu0 %v1302_v2 }
  0x2f   : > { %625 = vmatprep.subr.mxu1 %v1169_v23  ;;  %290 = vmatprep.mubr.f32.mxu0 %v1097_v3 }
  0x30   : > { %453 = vmatprep.mubr.f32.mxu1 %v1097_v3  ;;  %526 = vmatpush1.msra.mxu0 %v1305_v4 }
  0x31   : > { %627 = vmatpush1.msra.mxu1 %v1177_v28  ;;  %296 = vmatmul.mubr.f32.gmra.mxu0 %v295_v48 }
  0x32   : > { %455 = vmatmul.mubr.f32.gmra.mxu1 %v1139_v9  ;;  %529 = vmatprep.subr.mxu0 %v1321_v17 }
  0x33   : > { %629 = vmatprep.subr.mxu1 %v1179_v29  ;;  %532 = vmatpush1.msra.mxu0 %v1332_v58 }
  0x34   : > { %631 = vmatpush1.msra.mxu1 %v1181_v30  ;;  %535 = vmatprep.subr.mxu0 %v1347_v33 }
  0x35   : > { %633 = vmatprep.subr.mxu1 %v1192_v35  ;;  %460 = vmatprep.mubr.f32.mxu1 %v1097_v3 }
  0x36   : > { %538 = vmatpush1.msra.mxu0 %v1354_v16  ;;  %571 = vmatprep.mubr.f32.mxu0 %v1097_v3 }
  0x37   : > { %635 = vmatpush1.msra.mxu1 %v1194_v36  ;;  %574 = vmatmul.mubr.f32.vlgmr.msra.gmra.mxu0 %v1147_v13  ;;  %v1535_v13 = vand.u32 4294901760, %v1305_v4 }
  0x38   : > { %462 = vmatmul.mubr.f32.gmra.mxu1 %v1141_v10  ;;  %637 = vmatprep.subr.mxu1 %v1196_v37 }
  0x39   : > { %740 = vmatprep.subr.mxu0 %v320_v49  ;;  %639 = vmatpush1.msra.mxu1 %v1205_v42  ;;  %v1532_v49 = vand.u32 4294901760, %v1294_v62 }
  0x3a   : > { %744 = vmatpush1.msra.mxu0 %v326_v53  ;;  %641 = vmatprep.subr.mxu1 %v1210_v44  ;;  %v1534_v53 = vand.u32 4294901760, %v1302_v2 }
  0x3b   : > { %748 = vmatprep.subr.mxu0 %v332_v54  ;;  %467 = vmatprep.mubr.f32.mxu1 %v1097_v3 }
  0x3c   : > { %579 = vmatprep.mubr.f32.mxu0 %v1097_v3  ;;  %643 = vmatpush1.msra.mxu1 %v1226_v50 }
  0x3d   : > { %752 = vmatpush1.msra.mxu0 %v338_v59  ;;  %469 = vmatmul.mubr.f32.gmra.mxu1 %v1143_v12 }
  0x3e   : > { %582 = vmatmul.mubr.f32.gmra.mxu0 %v1150_v14  ;;  %645 = vmatprep.subr.mxu1 %v1232_v52 }
  0x3f   : > { %756 = vmatprep.subr.mxu0 %v344_v0  ;;  %647 = vmatpush1.msra.mxu1 %v1241_v56 }
  0x40   : > { %760 = vmatpush1.msra.mxu0 %v350_v5  ;;  %649 = vmatprep.subr.mxu1 %v1255_v61 }
  0x41   : > { %764 = vmatprep.subr.mxu0 %v1529_v38  ;;  %587 = vmatprep.mubr.f32.mxu0 %v1097_v3 }
  0x42   : > { %651 = vmatpush1.msra.mxu1 %v1274_v6  ;;  %684 = vmatprep.mubr.f32.mxu1 %v1097_v3 }
  0x43   : > { %768 = vmatpush1.msra.mxu0 %v1530_v43  ;;  %688 = vmatmul.mubr.f32.vlgmr.msra.gmra.mxu1 %v1531_v45 }
  0x44   : > { %590 = vmatmul.mubr.f32.gmra.mxu0 %v1163_v20  ;;  %772 = vmatprep.subr.mxu0 %v1532_v49 }
  0x45   : > { %879 = vmatprep.subr.mxu1 %v1165_v21  ;;  %776 = vmatpush1.msra.mxu0 %v1533_v51  ;;  %v1536_v21 = vand.u32 4294901760, %v1150_v14 }
  0x46   : > { %881 = vmatpush1.msra.mxu1 %v1167_v22  ;;  %780 = vmatprep.subr.mxu0 %v1534_v53 }
  0x47   : > { %883 = vmatprep.subr.mxu1 %v1169_v23  ;;  %595 = vmatprep.mubr.f32.mxu0 %v1097_v3 }
  0x48   : > { %693 = vmatprep.mubr.f32.mxu1 %v1097_v3  ;;  %784 = vmatpush1.msra.mxu0 %v1535_v13 }
  0x49   : > { %885 = vmatpush1.msra.mxu1 %v1177_v28  ;;  %598 = vmatmul.mubr.f32.gmra.mxu0 %v1175_v27 }
  0x4a   : > { %697 = vmatmul.mubr.f32.gmra.mxu1 %v1536_v21  ;;  %788 = vmatprep.subr.mxu0 %v392_v39 }
  0x4b   : > { %887 = vmatprep.subr.mxu1 %v1179_v29  ;;  %792 = vmatpush1.msra.mxu0 %v398_v34 }
  0x4c   : > { %889 = vmatpush1.msra.mxu1 %v1181_v30  ;;  %796 = vmatprep.subr.mxu0 %v404_v24 }
  0x4d   : > { %891 = vmatprep.subr.mxu1 %v1192_v35  ;;  %702 = vmatprep.mubr.f32.mxu1 %v1097_v3 }
  0x4e   : > { %800 = vmatpush1.msra.mxu0 %v410_v31  ;;  %833 = vmatprep.mubr.f32.mxu0 %v1097_v3 }
  0x4f   : > { %893 = vmatpush1.msra.mxu1 %v1194_v36  ;;  %835 = vmatmul.mubr.f32.vlgmr.msra.gmra.mxu0 %v1137_v8 }
  0x50   : > { %706 = vmatmul.mubr.f32.gmra.mxu1 %v282_v19  ;;  %895 = vmatprep.subr.mxu1 %v1196_v37 }
  0x51   : > { %897 = vmatpush1.msra.mxu1 %v1205_v42  ;;  %711 = vmatprep.mubr.f32.mxu1 %v1097_v3 }
  0x52   : > { %899 = vmatprep.subr.mxu1 %v1210_v44  ;;  %840 = vmatprep.mubr.f32.mxu0 %v1097_v3 }
  0x53   : > { %901 = vmatpush1.msra.mxu1 %v1226_v50  ;;  %842 = vmatmul.mubr.f32.gmra.mxu0 %v1139_v9 }
  0x54   : > { %715 = vmatmul.mubr.f32.gmra.mxu1 %v293_v11  ;;  %903 = vmatprep.subr.mxu1 %v1232_v52 }
  0x55   : > { %905 = vmatpush1.msra.mxu1 %v1241_v56  ;;  %847 = vmatprep.mubr.f32.mxu0 %v1097_v3 }
  0x56   : > { %907 = vmatprep.subr.mxu1 %v1255_v61  ;;  %942 = vmatprep.mubr.f32.mxu1 %v1097_v3 }
  0x57   : > { %909 = vmatpush1.msra.mxu1 %v1274_v6  ;;  %849 = vmatmul.mubr.f32.gmra.mxu0 %v1141_v10 }
  0x58   : > { %944 = vmatmul.mubr.f32.vlgmr.msra.gmra.mxu1 %v1137_v8  ;;  %854 = vmatprep.mubr.f32.mxu0 %v1097_v3 }
  0x59   : > { %949 = vmatprep.mubr.f32.mxu1 %v1097_v3 }
  0x5b   : > { %856 = vmatmul.mubr.f32.gmra.mxu0 %v1143_v12 }
  0x5c   : > { %951 = vmatmul.mubr.f32.gmra.mxu1 %v1139_v9 }
  0x5d   : > { %956 = vmatprep.mubr.f32.mxu1 %v1097_v3 }
  0x60   : > { %958 = vmatmul.mubr.f32.gmra.mxu1 %v1141_v10 }
  0x61   : > { %963 = vmatprep.mubr.f32.mxu1 %v1097_v3 }
  0x64   : > { %965 = vmatmul.mubr.f32.gmra.mxu1 %v1143_v12 }
  0xe1   : > { %v264_v14 = vpop.f32.mrf.mxu0 }
  0xe3   : > { %v266_v19 = vpop.f32.mrf.mxu0 }
  0xe6   : > { %v275_v20 = vpop.f32.mrf.mxu0 }
  0xe8   : > { %v277_v8 = vpop.f32.mrf.mxu0 }
  0xeb   : > { %v449_v22 = vpop.f32.mrf.mxu1 }
  0xec   : > { %v286_v23 = vpop.f32.mrf.mxu0  ;;  %v450_v25 = vadd.f32 %v449_v22, %v264_v14 }
  0xed   : > { %v451_v28 = vpop.f32.mrf.mxu1 }
  0xee   : > { %v288_v27 = vpop.f32.mrf.mxu0  ;;  %v452_v62 = vadd.f32 %v451_v28, %v266_v19 }
  0xf1   : > { %v1500_v29 = vpop.f32.mrf.mxu0 }
  0xf2   : > { %v456_v30 = vpop.f32.mrf.mxu1 }
  0xf3   : > { %v299_v9 = vpop.f32.mrf.mxu0  ;;  %v457_v2 = vadd.f32 %v456_v30, %v275_v20 }
  0xf4   : > { %v458_v35 = vpop.f32.mrf.mxu1 }
  0xf5   : > { %v459_v33 = vadd.f32 %v458_v35, %v277_v8 }
  0xf7   : > { %v575_v36 = vpop.f32.mrf.mxu0 }
  0xf8   : > { %v463_v37 = vpop.f32.mrf.mxu1  ;;  %v576_v4 = vadd.f32 %v575_v36, %v450_v25 }
  0xf9   : > { %v577_v42 = vpop.f32.mrf.mxu0  ;;  %v464_v15 = vadd.f32 %v463_v37, %v286_v23 }
  0xfa   : > { %v465_v10 = vpop.f32.mrf.mxu1  ;;  %v578_v39 = vadd.f32 %v577_v42, %v452_v62 }
  0xfb   : > { %v466_v47 = vadd.f32 %v465_v10, %v288_v27 }
  0xfd   : > { %v470_v3 = vpop.f32.mrf.mxu1 }
  0xfe   : > { %v583_v44 = vpop.f32.mrf.mxu0  ;;  %v471_v35 = vadd.f32 %v470_v3, %v1500_v29 }
  0xff   : > { %v472_v12 = vpop.f32.mrf.mxu1  ;;  %v584_v24 = vadd.f32 %v583_v44, %v457_v2 }
 0x100   : > { %v585_v50 = vpop.f32.mrf.mxu0  ;;  %v473_v20 = vadd.f32 %v472_v12, %v299_v9 }
 0x101   : > { %v586_v46 = vadd.f32 %v585_v50, %v459_v33 }
 0x103   : > { %v689_v52 = vpop.f32.mrf.mxu1 }
 0x104   : > { %v591_v54 = vpop.f32.mrf.mxu0  ;;  %v690_v26 = vadd.f32 %v689_v52, %v576_v4 }
 0x105   : > { %v691_v56 = vpop.f32.mrf.mxu1  ;;  %v592_v49 = vadd.f32 %v591_v54, %v464_v15 }
 0x106   : > { %v593_v55 = vpop.f32.mrf.mxu0  ;;  %v692_v7 = vadd.f32 %v691_v56, %v578_v39 }
 0x107   : > { %v594_v51 = vadd.f32 %v593_v55, %v466_v47 }
 0x109   : > { %v599_v59 = vpop.f32.mrf.mxu0 }
 0x10a   : > { %v698_v60 = vpop.f32.mrf.mxu1  ;;  %v600_v54 = vadd.f32 %v599_v59, %v471_v35 }
 0x10b   : > { %v601_v61 = vpop.f32.mrf.mxu0  ;;  %v699_v32 = vadd.f32 %v698_v60, %v584_v24 }
 0x10c   : > { %v700_v0 = vpop.f32.mrf.mxu1  ;;  %v602_v36 = vadd.f32 %v601_v61, %v473_v20 }
 0x10d   : > { %v701_v48 = vadd.f32 %v700_v0, %v586_v46 }
 0x10f   : > { %v836_v1 = vpop.f32.mrf.mxu0 }
 0x110   : > { %v707_v5 = vpop.f32.mrf.mxu1  ;;  %v837_v18 = vadd.f32 %v836_v1, %v690_v26 }
 0x111   : > { %v838_v6 = vpop.f32.mrf.mxu0  ;;  %v708_v8 = vadd.f32 %v707_v5, %v592_v49 }
 0x112   : > { %v709_v16 = vpop.f32.mrf.mxu1  ;;  %v839_v11 = vadd.f32 %v838_v6, %v692_v7 }
 0x113   : > { %v843_v63 = vpop.f32.mrf.mxu0  ;;  %v710_v30 = vadd.f32 %v709_v16, %v594_v51 }
 0x114   : > { %v716_v34 = vpop.f32.mrf.mxu1  ;;  %v844_v38 = vadd.f32 %v843_v63, %v699_v32 }
 0x115   : > { %v845_v17 = vpop.f32.mrf.mxu0  ;;  %v717_v5 = vadd.f32 %v716_v34, %v600_v54 }
 0x116   : > { %v718_v58 = vpop.f32.mrf.mxu1  ;;  %v846_v13 = vadd.f32 %v845_v17, %v701_v48 }
 0x117   : > { %v850_v31 = vpop.f32.mrf.mxu0  ;;  %v719_v9 = vadd.f32 %v718_v58, %v602_v36 }
 0x118   : > { %v945_v57 = vpop.f32.mrf.mxu1  ;;  %v851_v37 = vadd.f32 %v850_v31, %v708_v8 }
 0x119   : > { %v852_v40 = vpop.f32.mrf.mxu0  ;;  %v946_v43 = vadd.f32 %v945_v57, %v837_v18 }
 0x11a   : > { %v947_v41 = vpop.f32.mrf.mxu1  ;;  %v853_v42 = vadd.f32 %v852_v40, %v710_v30 }
 0x11b   : > { %v948_v45 = vadd.f32 %v947_v41, %v839_v11  ;;  %v857_v22 = vpop.f32.mrf.mxu0  ;;  %v971_v23 = vmul.f32 %v946_v43, %v946_v43 }
 0x11c   : > { %v952_v53 = vpop.f32.mrf.mxu1  ;;  %v858_v61 = vadd.f32 %v857_v22, %v717_v5 }
 0x11d   : > { %v972_v21 = vmul.f32 %v948_v45, %v948_v45  ;;  %v953_v14 = vadd.f32 %v952_v53, %v844_v38  ;;  %v979_v19 = vadd.f32 %v948_v45, %v946_v43  ;;  %v859_v55 = vpop.f32.mrf.mxu0 }
 0x11e   : > { %v954_v28 = vpop.f32.mrf.mxu1  ;;  %v860_v6 = vadd.f32 %v859_v55, %v719_v9 }
 0x11f   : > { %v955_v27 = vadd.f32 %v954_v28, %v846_v13  ;;  %980 = vadd.xlane.f32.xlu0 %v979_v19  ;;  %v991_v44 = vadd.f32 %v972_v21, %v971_v23  ;;  %v973_v50 = vmul.f32 %v953_v14, %v953_v14 }
 0x120   : > { %v959_v10 = vpop.f32.mrf.mxu1 }
 0x121   : > { %v974_v52 = vmul.f32 %v955_v27, %v955_v27  ;;  %v960_v12 = vadd.f32 %v959_v10, %v851_v37  ;;  %v982_v29 = vadd.f32 %v955_v27, %v953_v14 }
 0x122   : > { %v961_v56 = vpop.f32.mrf.mxu1 }
 0x123   : > { %v962_v60 = vadd.f32 %v961_v56, %v853_v42  ;;  %992 = vadd.xlane.f32.xlu0 %v991_v44  ;;  %v994_v0 = vadd.f32 %v974_v52, %v973_v50  ;;  %v975_v25 = vmul.f32 %v960_v12, %v960_v12 }
 0x124   : > { %v966_v1 = vpop.f32.mrf.mxu1 }
 0x125   : > { %v976_v16 = vmul.f32 %v962_v60, %v962_v60  ;;  %995 = vadd.xlane.f32.xlu1 %v994_v0  ;;  %v985_v59 = vadd.f32 %v962_v60, %v960_v12  ;;  %v967_v63 = vadd.f32 %v966_v1, %v858_v61 }
 0x126   : > { %v968_v3 = vpop.f32.mrf.mxu1 }
 0x127   : > { %v969_v62 = vadd.f32 %v968_v3, %v860_v6  ;;  %983 = vadd.xlane.f32.xlu0 %v982_v29  ;;  %v997_v2 = vadd.f32 %v976_v16, %v975_v25  ;;  %v977_v17 = vmul.f32 %v967_v63, %v967_v63 }
 0x129   : > { %986 = vadd.xlane.f32.xlu1 %v985_v59  ;;  %v978_v4 = vmul.f32 %v969_v62, %v969_v62  ;;  %v988_v39 = vadd.f32 %v969_v62, %v967_v63 }
 0x12b   : > { %998 = vadd.xlane.f32.xlu0 %v997_v2  ;;  %v1000_v34 = vadd.f32 %v978_v4, %v977_v17 }
 0x12d   : > { %989 = vadd.xlane.f32.xlu1 %v988_v39 }
 0x131   : > { %1001 = vadd.xlane.f32.xlu1 %v1000_v34 }
 0x1a8   : > { %v981_v58 = vpop.xlane.xlu0 %980 }
 0x1a9   : > { %1004 = vst.msk [vmem:[%s143_s26] sm:$0xff] %vm1003_vm1, %v981_v58 }
 0x1ac   : > { %v993_v33 = vpop.xlane.xlu0 %992 }
 0x1ad   : > { %1008 = vst.msk [vmem:[%s143_s26 + $0x20] sm:$0xff] %vm1003_vm1, %v993_v33 }
 0x1ae   : > { %v996_v24 = vpop.xlane.xlu1 %995 }
 0x1af   : > { %1009 = vst.msk [vmem:[%s143_s26 + $0x28] sm:$0xff] %vm1003_vm1, %v996_v24 }
 0x1b0   : > { %v984_v26 = vpop.xlane.xlu0 %983 }
 0x1b1   : > { %1005 = vst.msk [vmem:[%s143_s26 + $0x8] sm:$0xff] %vm1003_vm1, %v984_v26 }
 0x1b2   : > { %v987_v7 = vpop.xlane.xlu1 %986 }
 0x1b3   : > { %1006 = vst.msk [vmem:[%s143_s26 + $0x10] sm:$0xff] %vm1003_vm1, %v987_v7 }
 0x1b4   : > { %v999_v31 = vpop.xlane.xlu0 %998 }
 0x1b5   : > { %1010 = vst.msk [vmem:[%s143_s26 + $0x30] sm:$0xff] %vm1003_vm1, %v999_v31 }
 0x1b6   : > { %v990_v57 = vpop.xlane.xlu1 %989 }
 0x1b7   : > { %1007 = vst.msk [vmem:[%s143_s26 + $0x18] sm:$0xff] %vm1003_vm1, %v990_v57 }
 0x1ba   : > { %v1002_v46 = vpop.xlane.xlu1 %1001 }
 0x1bb   : > { %1011 = vst.msk [vmem:[%s143_s26 + $0x38] sm:$0xff] %vm1003_vm1, %v1002_v46 }
 0x1bc PF: > { %s12_s9 = sadd.s32 1, %s1095_s9  }
 0x1bd   : > { %p9_p4 = scmp.ge.s32.totalorder %s12_s9, 4  }
 0x1bf   :  { %11 = sbr.rel (!%p9_p4) target bundleno = 1 (0x1), region = 58 }

// kernel: _resblock_fwd.4
= control target key start
LH: loop header
LB: loop body
LE: loop exit
PB: predicated region body
PF: predicated region fallthrough
CT: control target
= control target key end

     0   :  { %s10634_s27 = smov 0   ;;  %s15893_s0 = inlined_call_operand.vmem [shape: f32[2,64,256], index: 0, kind: input, shape index: {}]   ;;  %s15894_s1 = inlined_call_operand.vmem [shape: f32[32,64], index: 1, kind: input, shape index: {}]   ;;  %s15895_s2 = inlined_call_operand.vmem [shape: f32[32,1], index: 2, kind: input, shape index: {}]   ;;  %s15896_s3 = inlined_call_operand.vmem [shape: f32[32,1], index: 3, kind: input, shape index: {}]   ;;  %s15897_s4 = inlined_call_operand.vmem [shape: f32[9,64,32], index: 4, kind: input, shape index: {}]   ;;  %s15898_s5 = inlined_call_operand.vmem [shape: f32[1,256], index: 5, kind: input, shape index: {}]   ;;  %s15899_s6 = inlined_call_operand.vmem [shape: f32[1,256], index: 6, kind: input, shape index: {}]   ;;  %s15900_s7 = inlined_call_operand.vmem [shape: f32[2,64,256], index: 7, kind: output, shape index: {0}]   ;;  %s15901_s8 = inlined_call_operand.vmem [shape: f32[2,128,1], index: 8, kind: output, shape index: {1}]  }
   0x1 LB: > { %s10411_s28 = sadd.s32 4294967295, %s10571_s27   ;;  %p10415_p0 = scmp.ge.s32.totalorder %s10571_s27, 1  ;;  %s10571_s27 = sphi %s10634_s27, %s19_s27  }
   0x2   : > { %p265_p1 = scmp.lt.s32.totalorder %s10571_s27, 3 }
   0x4   : > { %p266_p2 = pnand %p10415_p0, %p265_p1 }
   0x6   : > { %269 = sbr.rel (%p266_p2) target bundleno = 1827 (0x723), region = 48 }
   0xb   : > { %p304_p3 = scmp.lt.s32.totalorder %s10411_s28, 1  ;;  %v335_v0 = vld [vmem:[%s15894_s1] sm:$0xff]  ;;  %vm339_vm0 = vcmask 523264   ;;  %v336_v1 = vld [vmem:[%s15894_s1 + $0x8] sm:$0xff]  ;;  %v337_v2 = vld [vmem:[%s15894_s1 + $0x10] sm:$0xff]  ;;  %v15939_v3 = vmov 0.0  }
   0xc   : > { %432 = vmatprep.mubr.f32.mxu0 %v15939_v3  ;;  %v341_v4 = vsel %vm339_vm0, %v335_v0, 0  ;;  %v344_v5 = vsel %vm339_vm0, %v336_v1, 0  ;;  %621 = vmatprep.mubr.f32.mxu1 %v15939_v3  ;;  %v347_v6 = vsel %vm339_vm0, %v337_v2, 0  ;;  %v338_v7 = vld [vmem:[%s15894_s1 + $0x18] sm:$0xff]  ;;  %v10574_v13 = vmov 0   ;;  %v1147_v18 = vld [vmem:[%s15895_s2 + $0x8] sm:$0xff] }
   0xd   : > { %v1181_v8 = vld [vmem:[%s15896_s3 + $0x18] sm:$0xff]  ;;  %s16448_s28 = smov (!%p304_p3, %s10411_s28), 1  ;;  %v10659_v9 = vand.u32 4294901760, %v341_v4  ;;  %v10661_v10 = vand.u32 4294901760, %v344_v5  ;;  %v10663_v11 = vand.u32 4294901760, %v347_v6  ;;  %v350_v12 = vsel %vm339_vm0, %v338_v7, 0  ;;  %10516 = vset.pattern.permute.xlu1 %v10574_v13  ;;  %10515 = vset.pattern.permute.xlu0 %v10574_v13 }
   0xe   : > { %v1149_v14 = vld [vmem:[%s15895_s2 + $0x18] sm:$0xff]  ;;  %v10668_v15 = vand.u32 4294901760, %v350_v12  ;;  %1199 = vperm.xlu1 %10516, %v1181_v8   ;;  %s10670_s19 = sshll.u32 %s16448_s28, 7  ;;  %v1148_v19 = vld [vmem:[%s15895_s2 + $0x10] sm:$0xff]  ;;  %v1146_v26 = vld [vmem:[%s15895_s2] sm:$0xff]  ;;  %vm1234_vm1 = vcmask 138240  }
   0xf   : > { %1167 = vperm.xlu0 %10515, %v1149_v14   ;;  %v10673_v16 = vsub.f32 %v341_v4, %v10659_v9  ;;  %v10676_v17 = vsub.f32 %v344_v5, %v10661_v10  ;;  %s10688_s26 = scalar_lea.vmem %s15893_s0, %s10670_s19  ;;  %v10696_v25 = vsub.f32 %v347_v6, %v10663_v11  ;;  %v1180_v34 = vld [vmem:[%s15896_s3 + $0x10] sm:$0xff]  ;;  %v1178_v1 = vld [vmem:[%s15896_s3] sm:$0xff]  ;;  %v1179_v7 = vld [vmem:[%s15896_s3 + $0x8] sm:$0xff]  ;;  %1237 = vst.msk [vmem:[#allocation2 + $0x30] sm:$0xff] %vm1234_vm1, %v15939_v3  ;;  %vm1239_vm2 = vcmask 277640   ;;  %s10575_s14 = smov 17  }
  0x10   : > { %v334_v20 = vld [vmem:[%s10688_s26 + $0x78] sm:$0xff]  ;;  %v333_v21 = vld [vmem:[%s10688_s26 + $0x70] sm:$0xff]  ;;  %v332_v22 = vld [vmem:[%s10688_s26 + $0x68] sm:$0xff]  ;;  %v10711_v33 = vsub.f32 %v350_v12, %v10668_v15  ;;  %1235 = vst.msk [vmem:[#allocation2] sm:$0xff] %vm1234_vm1, %v15939_v3  ;;  %vm1284_vm11 = vcmask 1047688   ;;  %s10576_s15 = smov 127   ;;  %s15856_s22 = scalar_lea.vmem %s15901_s8, %s10670_s19 }
  0x11   : > { %v15905_v23 = vand.u32 4294901760, %v10673_v16  ;;  %v15902_v24 = vand.u32 4294901760, %v10676_v17  ;;  %v10701_v27 = vand.u32 4294901760, %v334_v20  ;;  %v10703_v28 = vand.u32 4294901760, %v333_v21  ;;  %v331_v30 = vld [vmem:[%s10688_s26 + $0x60] sm:$0xff]  ;;  %v330_v31 = vld [vmem:[%s10688_s26 + $0x58] sm:$0xff] }
  0x12   : > { %v10705_v29 = vand.u32 4294901760, %v332_v22  ;;  %v329_v32 = vld [vmem:[%s10688_s26 + $0x50] sm:$0xff]  ;;  %1157 = vperm.xlu1 %10516, %v1147_v18   ;;  %v10716_v35 = vand.u32 4294901760, %v331_v30  ;;  %v10718_v36 = vand.u32 4294901760, %v330_v31  ;;  %v328_v38 = vld [vmem:[%s10688_s26 + $0x48] sm:$0xff]  ;;  %v327_v39 = vld [vmem:[%s10688_s26 + $0x40] sm:$0xff] }
  0x13   : > { %1162 = vperm.xlu0 %10515, %v1148_v19   ;;  %v10720_v37 = vand.u32 4294901760, %v329_v32  ;;  %v10725_v40 = vld [vmem:[%s10688_s26 + $0x38] sm:$0xff]  ;;  %v10730_v41 = vsub.f32 %v10673_v16, %v15905_v23  ;;  %369 = vmatprep.subr.mxu0 %v10701_v27  ;;  %v10733_v42 = vand.u32 4294901760, %v328_v38  ;;  %v10735_v43 = vand.u32 4294901760, %v327_v39  ;;  %v325_v46 = vld [vmem:[%s10688_s26 + $0x30] sm:$0xff]  ;;  %v10745_v47 = vld [vmem:[%s10688_s26 + $0x28] sm:$0xff] }
  0x14   : > { %v10738_v44 = vand.u32 4294901760, %v10725_v40  ;;  %v10741_v45 = vsub.f32 %v334_v20, %v10701_v27  ;;  %v10748_v48 = vld [vmem:[%s10688_s26 + $0x20] sm:$0xff]  ;;  %371 = vmatpush1.msra.mxu0 %v10703_v28  ;;  %v10751_v49 = vand.u32 4294901760, %v325_v46  ;;  %v10754_v50 = vsub.f32 %v333_v21, %v10703_v28  ;;  %v10763_v53 = vld [vmem:[%s10688_s26 + $0x18] sm:$0xff]  ;;  %v10766_v54 = vld [vmem:[%s10688_s26 + $0x10] sm:$0xff]  ;;  %1236 = vst.msk [vmem:[#allocation2 + $0x18] sm:$0xff] %vm1234_vm1, %v15939_v3 }
  0x15   : > { %v10757_v51 = vand.u32 4294901760, %v10745_v47  ;;  %v10760_v52 = vsub.f32 %v332_v22, %v10705_v29  ;;  %v10769_v55 = vld [vmem:[%s10688_s26 + $0x8] sm:$0xff]  ;;  %373 = vmatprep.subr.mxu0 %v10705_v29  ;;  %v10774_v57 = vand.u32 4294901760, %v10748_v48  ;;  %v10777_v58 = vsub.f32 %v331_v30, %v10716_v35  ;;  %v10792_v0 = vld [vmem:[%s10688_s26] sm:$0xff]  ;;  %1238 = vst.msk [vmem:[#allocation2 + $0x48] sm:$0xff] %vm1234_vm1, %v15939_v3  ;;  %s10577_s18 = smov 2  }
  0x16   : > { %v495_v56 = vand.u32 4294901760, %v10741_v45  ;;  %v10780_v59 = vand.u32 4294901760, %v10763_v53  ;;  %1152 = vperm.xlu1 %10516, %v1146_v26   ;;  %375 = vmatpush1.msra.mxu0 %v10716_v35  ;;  %v501_v60 = vand.u32 4294901760, %v10754_v50  ;;  %v10786_v62 = vsub.f32 %v330_v31, %v10718_v36  ;;  %1242 = vst.msk [vmem:[#allocation2 + $0x40] sm:$0xff] %vm1239_vm2, %v15939_v3  ;;  %1240 = vst.msk [vmem:[#allocation2 + $0x10] sm:$0xff] %vm1239_vm2, %v15939_v3  ;;  %s10578_s9 = smov 126  }
  0x17   : > { %v507_v61 = vand.u32 4294901760, %v10760_v52  ;;  %v10789_v63 = vand.u32 4294901760, %v10766_v54  ;;  %1194 = vperm.xlu0 %10515, %v1180_v34   ;;  %377 = vmatprep.subr.mxu0 %v10718_v36  ;;  %v513_v4 = vand.u32 4294901760, %v10777_v58  ;;  %v10803_v5 = vsub.f32 %v329_v32, %v10720_v37  ;;  %1241 = vst.msk [vmem:[#allocation2 + $0x28] sm:$0xff] %vm1239_vm2, %v15939_v3  ;;  %1243 = vst.msk [vmem:[#allocation2 + $0x58] sm:$0xff] %vm1239_vm2, %v15939_v3  ;;  %s10581_s16 = smov 111  }
  0x18   : > { %v496_v2 = vsub.f32 %v10741_v45, %v495_v56  ;;  %v10806_v6 = vand.u32 4294901760, %v10769_v55  ;;  %379 = vmatpush1.msra.mxu0 %v10720_v37  ;;  %v502_v8 = vsub.f32 %v10754_v50, %v501_v60  ;;  %v519_v13 = vand.u32 4294901760, %v10786_v62  ;;  %s10583_s10 = smov 110   ;;  %s10584_s11 = smov 32  }
  0x19   : > { %v508_v12 = vsub.f32 %v10760_v52, %v507_v61  ;;  %v10820_v14 = vsub.f32 %v328_v38, %v10733_v42  ;;  %381 = vmatprep.subr.mxu0 %v10733_v42  ;;  %v514_v19 = vsub.f32 %v10777_v58, %v513_v4  ;;  %v525_v20 = vand.u32 4294901760, %v10803_v5  ;;  %s10585_s30 = smov 96   ;;  %s10586_s17 = smov 95  }
  0x1a   : > { %v497_v18 = vand.u32 4294901760, %v496_v2  ;;  %v10828_v21 = vand.u32 4294901760, %v10792_v0  ;;  %1184 = vperm.xlu1 %10516, %v1178_v1   ;;  %383 = vmatpush1.msra.mxu0 %v10735_v43  ;;  %v503_v22 = vand.u32 4294901760, %v502_v8  ;;  %v520_v30 = vsub.f32 %v10786_v62, %v519_v13  ;;  %s10587_s28 = smov 34   ;;  %s10588_s24 = smov 94  }
  0x1b   : > { %v509_v26 = vand.u32 4294901760, %v508_v12  ;;  %v15909_v31 = vand.u32 4294901760, %v10820_v14  ;;  %1189 = vperm.xlu0 %10515, %v1179_v7   ;;  %385 = vmatprep.subr.mxu0 %v10738_v44  ;;  %v515_v32 = vand.u32 4294901760, %v514_v19  ;;  %v526_v34 = vsub.f32 %v10803_v5, %v525_v20 }
  0x1c   : > { %498 = vmatprep.subr.mxu1 %v497_v18  ;;  %v10840_v38 = vsub.f32 %v327_v39, %v10735_v43  ;;  %v437_v1 = vand.u32 4294901760, %v10730_v41  ;;  %387 = vmatpush1.msra.mxu0 %v10751_v49  ;;  %v521_v2 = vand.u32 4294901760, %v520_v30  ;;  %v10849_v8 = vsub.f32 %v10725_v40, %v10738_v44 }
  0x1d   : > { %504 = vmatpush1.msra.mxu1 %v503_v22  ;;  %v532_v7 = vsub.f32 %v10820_v14, %v15909_v31  ;;  %v10852_v12 = vsub.f32 %v325_v46, %v10751_v49  ;;  %389 = vmatprep.subr.mxu0 %v10757_v51  ;;  %v527_v39 = vand.u32 4294901760, %v526_v34  ;;  %v10858_v18 = vsub.f32 %v10745_v47, %v10757_v51 }
  0x1e   : > { %510 = vmatprep.subr.mxu1 %v509_v26  ;;  %v15906_v41 = vand.u32 4294901760, %v10840_v38  ;;  %v10862_v19 = vsub.f32 %v10748_v48, %v10774_v57  ;;  %391 = vmatpush1.msra.mxu0 %v10774_v57  ;;  %v15903_v46 = vand.u32 4294901760, %v10849_v8  ;;  %v447_v26 = vsub.f32 %v10676_v17, %v15902_v24 }
  0x1f   : > { %516 = vmatpush1.msra.mxu1 %v515_v32  ;;  %v533_v40 = vand.u32 4294901760, %v532_v7  ;;  %v15904_v22 = vand.u32 4294901760, %v10852_v12  ;;  %393 = vmatprep.subr.mxu0 %v10780_v59  ;;  %v15907_v48 = vand.u32 4294901760, %v10858_v18  ;;  %v10878_v32 = vsub.f32 %v10763_v53, %v10780_v59 }
  0x20   : > { %522 = vmatprep.subr.mxu1 %v521_v2  ;;  %v538_v47 = vsub.f32 %v10840_v38, %v15906_v41  ;;  %v15908_v30 = vand.u32 4294901760, %v10862_v19  ;;  %395 = vmatpush1.msra.mxu0 %v10789_v63  ;;  %v544_v34 = vsub.f32 %v10849_v8, %v15903_v46  ;;  %v10889_v7 = vsub.f32 %v10766_v54, %v10789_v63 }
  0x21   : > { %528 = vmatpush1.msra.mxu1 %v527_v39  ;;  %v550_v2 = vsub.f32 %v10852_v12, %v15904_v22  ;;  %v457_v24 = vand.u32 4294901760, %v10696_v25  ;;  %397 = vmatprep.subr.mxu0 %v10806_v6  ;;  %v556_v39 = vsub.f32 %v10858_v18, %v15907_v48  ;;  %v567_v22 = vand.u32 4294901760, %v10878_v32 }
  0x22   : > { %534 = vmatprep.subr.mxu1 %v533_v40  ;;  %v539_v53 = vand.u32 4294901760, %v538_v47  ;;  %v562_v46 = vsub.f32 %v10862_v19, %v15908_v30  ;;  %399 = vmatpush1.msra.mxu0 %v10828_v21  ;;  %v545_v54 = vand.u32 4294901760, %v544_v34  ;;  %v573_v41 = vand.u32 4294901760, %v10889_v7 }
  0x23   : > { %v551_v23 = vand.u32 4294901760, %v550_v2  ;;  %v10904_v40 = vsub.f32 %v10769_v55, %v10806_v6  ;;  %438 = vmatmul.mubr.f32.vlgmr.msra.gmra.mxu0 %v437_v1  ;;  %v557_v47 = vand.u32 4294901760, %v556_v39  ;;  %v568_v30 = vsub.f32 %v10878_v32, %v567_v22  ;;  %668 = vmatprep.subr.mxu0 %v10741_v45 }
  0x24   : > { %540 = vmatpush1.msra.mxu1 %v539_v53  ;;  %v563_v48 = vand.u32 4294901760, %v562_v46  ;;  %v10911_v31 = vsub.f32 %v10792_v0, %v10828_v21  ;;  %v574_v55 = vsub.f32 %v10889_v7, %v573_v41  ;;  %671 = vmatpush1.msra.mxu0 %v10754_v50  ;;  %v448_v1 = vand.u32 4294901760, %v447_v26 }
  0x25   : > { %546 = vmatprep.subr.mxu1 %v545_v54  ;;  %v579_v34 = vand.u32 4294901760, %v10904_v40  ;;  %v569_v46 = vand.u32 4294901760, %v568_v30  ;;  %674 = vmatprep.subr.mxu0 %v10760_v52  ;;  %v458_v39 = vsub.f32 %v10696_v25, %v457_v24  ;;  %v468_v26 = vand.u32 4294901760, %v10711_v33 }
  0x26   : > { %552 = vmatpush1.msra.mxu1 %v551_v23  ;;  %v585_v2 = vand.u32 4294901760, %v10911_v31  ;;  %v575_v0 = vand.u32 4294901760, %v574_v55  ;;  %443 = vmatprep.mubr.f32.mxu0 %v15939_v3  ;;  %v16050_v45 = vand.u32 4294901760, %v10820_v14  ;;  %v16051_v50 = vand.u32 4294901760, %v10840_v38 }
  0x27   : > { %558 = vmatprep.subr.mxu1 %v557_v47  ;;  %v580_v53 = vsub.f32 %v10904_v40, %v579_v34  ;;  %677 = vmatpush1.msra.mxu0 %v10777_v58  ;;  %v459_v47 = vand.u32 4294901760, %v458_v39  ;;  %v16052_v52 = vand.u32 4294901760, %v10673_v16  ;;  %v16054_v58 = vand.u32 4294901760, %v10852_v12 }
  0x28   : > { %564 = vmatpush1.msra.mxu1 %v563_v48  ;;  %v586_v23 = vsub.f32 %v10911_v31, %v585_v2  ;;  %449 = vmatmul.mubr.f32.gmra.mxu0 %v448_v1  ;;  %v469_v48 = vsub.f32 %v10711_v33, %v468_v26  ;;  %vm1400_vm12 = vcmask 261120   ;;  %vm1383_vm13 = vcmask 1039360  }
  0x29   : > { %570 = vmatprep.subr.mxu1 %v569_v46  ;;  %v581_v30 = vand.u32 4294901760, %v580_v53  ;;  %680 = vmatprep.subr.mxu0 %v10786_v62  ;;  %vm3234_vm14 = vcmask 15360   ;;  %vm3296_vm15 = vcmask 1031168   ;;  %vm4243_vm0 = vcmask 130048  }
  0x2a   : > { %v587_v54 = vand.u32 4294901760, %v586_v23  ;;  %576 = vmatpush1.msra.mxu1 %v575_v0  ;;  %683 = vmatpush1.msra.mxu0 %v10803_v5  ;;  %v470_v55 = vand.u32 4294901760, %v469_v48  ;;  %vm5281_vm2 = vcmask 908288  }
  0x2b   : > { %582 = vmatprep.subr.mxu1 %v581_v30  ;;  %686 = vmatprep.subr.mxu0 %v10820_v14 }
  0x2c   : > { %454 = vmatprep.mubr.f32.mxu0 %v15939_v3  ;;  %588 = vmatpush1.msra.mxu1 %v587_v54 }
  0x2d   : > { %689 = vmatpush1.msra.mxu0 %v10840_v38  ;;  %623 = vmatmul.mubr.f32.vlgmr.msra.gmra.mxu1 %v10659_v9 }
  0x2e   : > { %460 = vmatmul.mubr.f32.gmra.mxu0 %v459_v47  ;;  %692 = vmatprep.subr.mxu0 %v10849_v8 }
  0x2f   : > { %796 = vmatprep.subr.mxu1 %v10701_v27  ;;  %695 = vmatpush1.msra.mxu0 %v10852_v12 }
  0x30   : > { %798 = vmatpush1.msra.mxu1 %v10703_v28  ;;  %698 = vmatprep.subr.mxu0 %v10858_v18 }
  0x31   : > { %800 = vmatprep.subr.mxu1 %v10705_v29  ;;  %465 = vmatprep.mubr.f32.mxu0 %v15939_v3 }
  0x32   : > { %628 = vmatprep.mubr.f32.mxu1 %v15939_v3  ;;  %701 = vmatpush1.msra.mxu0 %v10862_v19 }
  0x33   : > { %802 = vmatpush1.msra.mxu1 %v10716_v35  ;;  %471 = vmatmul.mubr.f32.gmra.mxu0 %v470_v55 }
  0x34   : > { %630 = vmatmul.mubr.f32.gmra.mxu1 %v10661_v10  ;;  %704 = vmatprep.subr.mxu0 %v10878_v32 }
  0x35   : > { %804 = vmatprep.subr.mxu1 %v10718_v36  ;;  %707 = vmatpush1.msra.mxu0 %v10889_v7 }
  0x36   : > { %806 = vmatpush1.msra.mxu1 %v10720_v37  ;;  %710 = vmatprep.subr.mxu0 %v10904_v40 }
  0x37   : > { %808 = vmatprep.subr.mxu1 %v10733_v42  ;;  %635 = vmatprep.mubr.f32.mxu1 %v15939_v3 }
  0x38   : > { %713 = vmatpush1.msra.mxu0 %v10911_v31  ;;  %746 = vmatprep.mubr.f32.mxu0 %v15939_v3 }
  0x39   : > { %810 = vmatpush1.msra.mxu1 %v10735_v43  ;;  %749 = vmatmul.mubr.f32.vlgmr.msra.gmra.mxu0 %v10673_v16  ;;  %v16056_v16 = vand.u32 4294901760, %v10862_v19 }
  0x3a   : > { %637 = vmatmul.mubr.f32.gmra.mxu1 %v10663_v11  ;;  %812 = vmatprep.subr.mxu1 %v10738_v44 }
  0x3b   : > { %915 = vmatprep.subr.mxu0 %v495_v56  ;;  %814 = vmatpush1.msra.mxu1 %v10751_v49  ;;  %v16053_v56 = vand.u32 4294901760, %v10849_v8 }
  0x3c   : > { %919 = vmatpush1.msra.mxu0 %v501_v60  ;;  %816 = vmatprep.subr.mxu1 %v10757_v51  ;;  %v16055_v60 = vand.u32 4294901760, %v10858_v18 }
  0x3d   : > { %923 = vmatprep.subr.mxu0 %v507_v61  ;;  %642 = vmatprep.mubr.f32.mxu1 %v15939_v3 }
  0x3e   : > { %754 = vmatprep.mubr.f32.mxu0 %v15939_v3  ;;  %818 = vmatpush1.msra.mxu1 %v10774_v57 }
  0x3f   : > { %927 = vmatpush1.msra.mxu0 %v513_v4  ;;  %644 = vmatmul.mubr.f32.gmra.mxu1 %v10668_v15 }
  0x40   : > { %757 = vmatmul.mubr.f32.gmra.mxu0 %v10676_v17  ;;  %820 = vmatprep.subr.mxu1 %v10780_v59 }
  0x41   : > { %931 = vmatprep.subr.mxu0 %v519_v13  ;;  %822 = vmatpush1.msra.mxu1 %v10789_v63 }
  0x42   : > { %935 = vmatpush1.msra.mxu0 %v525_v20  ;;  %824 = vmatprep.subr.mxu1 %v10806_v6 }
  0x43   : > { %939 = vmatprep.subr.mxu0 %v16050_v45  ;;  %762 = vmatprep.mubr.f32.mxu0 %v15939_v3 }
  0x44   : > { %826 = vmatpush1.msra.mxu1 %v10828_v21  ;;  %859 = vmatprep.mubr.f32.mxu1 %v15939_v3 }
  0x45   : > { %943 = vmatpush1.msra.mxu0 %v16051_v50  ;;  %863 = vmatmul.mubr.f32.vlgmr.msra.gmra.mxu1 %v16052_v52 }
  0x46   : > { %765 = vmatmul.mubr.f32.gmra.mxu0 %v10696_v25  ;;  %947 = vmatprep.subr.mxu0 %v16053_v56 }
  0x47   : > { %1054 = vmatprep.subr.mxu1 %v10701_v27  ;;  %951 = vmatpush1.msra.mxu0 %v16054_v58  ;;  %v16057_v27 = vand.u32 4294901760, %v10676_v17 }
  0x48   : > { %1056 = vmatpush1.msra.mxu1 %v10703_v28  ;;  %955 = vmatprep.subr.mxu0 %v16055_v60 }
  0x49   : > { %1058 = vmatprep.subr.mxu1 %v10705_v29  ;;  %770 = vmatprep.mubr.f32.mxu0 %v15939_v3 }
  0x4a   : > { %868 = vmatprep.mubr.f32.mxu1 %v15939_v3  ;;  %959 = vmatpush1.msra.mxu0 %v16056_v16 }
  0x4b   : > { %1060 = vmatpush1.msra.mxu1 %v10716_v35  ;;  %773 = vmatmul.mubr.f32.gmra.mxu0 %v10711_v33 }
  0x4c   : > { %872 = vmatmul.mubr.f32.gmra.mxu1 %v16057_v27  ;;  %963 = vmatprep.subr.mxu0 %v567_v22 }
  0x4d   : > { %1062 = vmatprep.subr.mxu1 %v10718_v36  ;;  %967 = vmatpush1.msra.mxu0 %v573_v41 }
  0x4e   : > { %1064 = vmatpush1.msra.mxu1 %v10720_v37  ;;  %971 = vmatprep.subr.mxu0 %v579_v34 }
  0x4f   : > { %1066 = vmatprep.subr.mxu1 %v10733_v42  ;;  %877 = vmatprep.mubr.f32.mxu1 %v15939_v3 }
  0x50   : > { %975 = vmatpush1.msra.mxu0 %v585_v2  ;;  %1008 = vmatprep.mubr.f32.mxu0 %v15939_v3 }
  0x51   : > { %1068 = vmatpush1.msra.mxu1 %v10735_v43  ;;  %1010 = vmatmul.mubr.f32.vlgmr.msra.gmra.mxu0 %v10659_v9 }
  0x52   : > { %881 = vmatmul.mubr.f32.gmra.mxu1 %v457_v24  ;;  %1070 = vmatprep.subr.mxu1 %v10738_v44 }
  0x53   : > { %1072 = vmatpush1.msra.mxu1 %v10751_v49  ;;  %886 = vmatprep.mubr.f32.mxu1 %v15939_v3 }
  0x54   : > { %1074 = vmatprep.subr.mxu1 %v10757_v51  ;;  %1015 = vmatprep.mubr.f32.mxu0 %v15939_v3 }
  0x55   : > { %1076 = vmatpush1.msra.mxu1 %v10774_v57  ;;  %1017 = vmatmul.mubr.f32.gmra.mxu0 %v10661_v10 }
  0x56   : > { %890 = vmatmul.mubr.f32.gmra.mxu1 %v468_v26  ;;  %1078 = vmatprep.subr.mxu1 %v10780_v59 }
  0x57   : > { %1080 = vmatpush1.msra.mxu1 %v10789_v63  ;;  %1022 = vmatprep.mubr.f32.mxu0 %v15939_v3 }
  0x58   : > { %1082 = vmatprep.subr.mxu1 %v10806_v6  ;;  %1117 = vmatprep.mubr.f32.mxu1 %v15939_v3 }
  0x59   : > { %1084 = vmatpush1.msra.mxu1 %v10828_v21  ;;  %1024 = vmatmul.mubr.f32.gmra.mxu0 %v10663_v11 }
  0x5a   : > { %1119 = vmatmul.mubr.f32.vlgmr.msra.gmra.mxu1 %v10659_v9  ;;  %1029 = vmatprep.mubr.f32.mxu0 %v15939_v3 }
  0x5b   : > { %1124 = vmatprep.mubr.f32.mxu1 %v15939_v3 }
  0x5d   : > { %1031 = vmatmul.mubr.f32.gmra.mxu0 %v10668_v15 }
  0x5e   : > { %1126 = vmatmul.mubr.f32.gmra.mxu1 %v10661_v10  ;;  %1497 = vmatprep.mubr.f32.mxu0 %v15939_v3 }
  0x5f   : > { %1131 = vmatprep.mubr.f32.mxu1 %v15939_v3 }
  0x62   : > { %1133 = vmatmul.mubr.f32.gmra.mxu1 %v10663_v11 }
  0x63   : > { %1138 = vmatprep.mubr.f32.mxu1 %v15939_v3 }
  0x66   : > { %1140 = vmatmul.mubr.f32.gmra.mxu1 %v10668_v15 }
  0x67   : > { %1690 = vmatprep.mubr.f32.mxu1 %v15939_v3 }
  0x89   : > { %v11069_v40 = vpop.permute.xlu1 %1199 }
  0x8a   : > { %v11067_v19 = vpop.permute.xlu0 %1167 }
  0x8e   : > { %v1163_v45 = vpop.permute.xlu0 %1162 }
  0xe3   : > { %v439_v9 = vpop.f32.mrf.mxu0 }
  0xe5   : > { %v441_v10 = vpop.f32.mrf.mxu0 }
  0xe8   : > { %v450_v11 = vpop.f32.mrf.mxu0 }
  0xea   : > { %v452_v17 = vpop.f32.mrf.mxu0 }
  0xed   : > { %v624_v15 = vpop.f32.mrf.mxu1 }
  0xee   : > { %v461_v24 = vpop.f32.mrf.mxu0  ;;  %v625_v39 = vadd.f32 %v624_v15, %v439_v9 }
  0xef   : > { %v626_v28 = vpop.f32.mrf.mxu1 }
  0xf0   : > { %v463_v25 = vpop.f32.mrf.mxu0  ;;  %v627_v54 = vadd.f32 %v626_v28, %v441_v10 }
  0xf3   : > { %v472_v29 = vpop.f32.mrf.mxu0 }
  0xf4   : > { %v631_v33 = vpop.f32.mrf.mxu1 }
  0xf5   : > { %v474_v35 = vpop.f32.mrf.mxu0  ;;  %v632_v34 = vadd.f32 %v631_v33, %v450_v11 }
  0xf6   : > { %v633_v36 = vpop.f32.mrf.mxu1 }
  0xf7   : > { %v634_v1 = vadd.f32 %v633_v36, %v452_v17  ;;  %v1158_v17 = vpop.permute.xlu1 %1157 }
  0xf9   : > { %v750_v37 = vpop.f32.mrf.mxu0 }
  0xfa   : > { %v638_v42 = vpop.f32.mrf.mxu1  ;;  %v751_v50 = vadd.f32 %v750_v37, %v625_v39 }
  0xfb   : > { %v752_v44 = vpop.f32.mrf.mxu0  ;;  %v639_v7 = vadd.f32 %v638_v42, %v461_v24 }
  0xfc   : > { %v640_v43 = vpop.f32.mrf.mxu1  ;;  %v753_v9 = vadd.f32 %v752_v44, %v627_v54 }
  0xfd   : > { %v641_v0 = vadd.f32 %v640_v43, %v463_v25 }
  0xff   : > { %v645_v49 = vpop.f32.mrf.mxu1 }
 0x100   : > { %v758_v51 = vpop.f32.mrf.mxu0  ;;  %v646_v47 = vadd.f32 %v645_v49, %v472_v29 }
 0x101   : > { %v647_v57 = vpop.f32.mrf.mxu1  ;;  %v759_v23 = vadd.f32 %v758_v51, %v632_v34 }
 0x102   : > { %v760_v59 = vpop.f32.mrf.mxu0  ;;  %v648_v16 = vadd.f32 %v647_v57, %v474_v35 }
 0x103   : > { %v761_v26 = vadd.f32 %v760_v59, %v634_v1 }
 0x105   : > { %v864_v61 = vpop.f32.mrf.mxu1 }
 0x106   : > { %v766_v62 = vpop.f32.mrf.mxu0  ;;  %v865_v10 = vadd.f32 %v864_v61, %v751_v50 }
 0x107   : > { %v866_v4 = vpop.f32.mrf.mxu1  ;;  %v767_v53 = vadd.f32 %v766_v62, %v639_v7  ;;  %v1195_v62 = vpop.permute.xlu0 %1194 }
 0x108   : > { %v768_v63 = vpop.f32.mrf.mxu0  ;;  %v867_v37 = vadd.f32 %v866_v4, %v753_v9 }
 0x109   : > { %v769_v48 = vadd.f32 %v768_v63, %v641_v0 }
 0x10b   : > { %v774_v5 = vpop.f32.mrf.mxu0  ;;  %v1190_v0 = vpop.permute.xlu0 %1189 }
 0x10c   : > { %v873_v6 = vpop.f32.mrf.mxu1  ;;  %v775_v27 = vadd.f32 %v774_v5, %v646_v47 }
 0x10d   : > { %v776_v13 = vpop.f32.mrf.mxu0  ;;  %v874_v52 = vadd.f32 %v873_v6, %v759_v23 }
 0x10e   : > { %v875_v14 = vpop.f32.mrf.mxu1  ;;  %v777_v29 = vadd.f32 %v776_v13, %v648_v16 }
 0x10f   : > { %v876_v56 = vadd.f32 %v875_v14, %v761_v26 }
 0x111   : > { %v1011_v20 = vpop.f32.mrf.mxu0 }
 0x112   : > { %v882_v21 = vpop.f32.mrf.mxu1  ;;  %v1012_v42 = vadd.f32 %v1011_v20, %v865_v10 }
 0x113   : > { %v1013_v31 = vpop.f32.mrf.mxu0  ;;  %v883_v55 = vadd.f32 %v882_v21, %v767_v53  ;;  %v1153_v21 = vpop.permute.xlu1 %1152 }
 0x114   : > { %v884_v38 = vpop.f32.mrf.mxu1  ;;  %v1014_v44 = vadd.f32 %v1013_v31, %v867_v37 }
 0x115   : > { %v1018_v8 = vpop.f32.mrf.mxu0  ;;  %v885_v11 = vadd.f32 %v884_v38, %v769_v48 }
 0x116   : > { %v891_v12 = vpop.f32.mrf.mxu1  ;;  %v1019_v15 = vadd.f32 %v1018_v8, %v874_v52 }
 0x117   : > { %v1020_v41 = vpop.f32.mrf.mxu0  ;;  %v892_v33 = vadd.f32 %v891_v12, %v775_v27 }
 0x118   : > { %v893_v18 = vpop.f32.mrf.mxu1  ;;  %v1021_v25 = vadd.f32 %v1020_v41, %v876_v56 }
 0x119   : > { %v1025_v22 = vpop.f32.mrf.mxu0  ;;  %v894_v59 = vadd.f32 %v893_v18, %v777_v29 }
 0x11a   : > { %v1120_v32 = vpop.f32.mrf.mxu1  ;;  %v1026_v24 = vadd.f32 %v1025_v22, %v883_v55 }
 0x11b   : > { %v1027_v46 = vpop.f32.mrf.mxu0  ;;  %v1121_v61 = vadd.f32 %v1120_v32, %v1012_v42 }
 0x11c   : > { %v1122_v2 = vpop.f32.mrf.mxu1  ;;  %v1028_v35 = vadd.f32 %v1027_v46, %v885_v11 }
 0x11d   : > { %v1032_v58 = vpop.f32.mrf.mxu0  ;;  %v1123_v41 = vadd.f32 %v1122_v2, %v1014_v44  ;;  %v1170_v1 = vmul.f32 %v1153_v21, %v1121_v61 }
 0x11e   : > { %v1127_v30 = vpop.f32.mrf.mxu1  ;;  %v1033_v63 = vadd.f32 %v1032_v58, %v892_v33 }
 0x11f   : > { %v1128_v43 = vadd.f32 %v1127_v30, %v1019_v15  ;;  %v1034_v49 = vpop.f32.mrf.mxu0  ;;  %v1171_v39 = vmul.f32 %v1153_v21, %v1123_v41  ;;  %v1185_v30 = vpop.permute.xlu1 %1184  ;;  %v10422_v41 = vld [vmem:[%s15897_s4 + $0x40] sm:$0xff] }
 0x120   : > { %v1129_v60 = vpop.f32.mrf.mxu1  ;;  %v1035_v38 = vadd.f32 %v1034_v49, %v894_v59  ;;  %v1202_v50 = vadd.f32 %v1185_v30, %v1170_v1  ;;  %v1308_v59 = vlaneseq  ;;  %v10423_v1 = vld [vmem:[%s15897_s4 + $0x48] sm:$0xff] }
 0x121   : > { %v1130_v51 = vadd.f32 %v1129_v60, %v1021_v25  ;;  %v1172_v4 = vmul.f32 %v1158_v17, %v1128_v43  ;;  %v1203_v52 = vadd.f32 %v1185_v30, %v1171_v39  ;;  %v1405_v39 = vsel %vm1400_vm12, %v10423_v1, 0  ;;  %v10424_v30 = vld [vmem:[%s15897_s4 + $0x50] sm:$0xff] }
 0x122   : > { %v1134_v28 = vpop.f32.mrf.mxu1  ;;  %vm1210_vm9 = vcmp.gt.f32.partialorder %v1202_v50, 0.0 }
 0x123   : > { %v1135_v36 = vadd.f32 %v1134_v28, %v1026_v24  ;;  %v1173_v20 = vmul.f32 %v1158_v17, %v1130_v51  ;;  %v1204_v23 = vadd.f32 %v1190_v0, %v1172_v4  ;;  %v1219_v27 = vmul.f32 0.1, %v1203_v52 }
 0x124   : > { %v1136_v57 = vpop.f32.mrf.mxu1  ;;  %vm1211_vm10 = vcmp.gt.f32.partialorder %v1203_v52, 0.0 }
 0x125   : > { %v1174_v5 = vmul.f32 %v1163_v45, %v1135_v36  ;;  %v1137_v6 = vadd.f32 %v1136_v57, %v1028_v35  ;;  %v1205_v2 = vadd.f32 %v1190_v0, %v1173_v20  ;;  %vm1212_vm7 = vcmp.gt.f32.partialorder %v1204_v23, 0.0 }
 0x126   : > { %v1141_v14 = vpop.f32.mrf.mxu1  ;;  %v1227_v17 = vsel %vm1211_vm10, %v1203_v52, %v1219_v27  ;;  %v1402_v20 = vsel %vm1400_vm12, %v10422_v41, 0 }
 0x127   : > { %v1206_v13 = vadd.f32 %v1195_v62, %v1174_v5  ;;  %v1175_v8 = vmul.f32 %v1163_v45, %v1137_v6  ;;  %v1142_v12 = vadd.f32 %v1141_v14, %v1033_v63  ;;  %v1221_v58 = vmul.f32 0.1, %v1205_v2  ;;  %v1298_v5 = vld [vmem:[%s15899_s6] sm:$0x3] }
 0x128   : > { %v1143_v22 = vpop.f32.mrf.mxu1  ;;  %vm1213_vm8 = vcmp.gt.f32.partialorder %v1205_v2, 0.0  ;;  %v11129_v63 = vshrl.u32 %v1308_v59, 7 }
 0x129   : > { %v1207_v7 = vadd.f32 %v1195_v62, %v1175_v8  ;;  %v1176_v34 = vmul.f32 %v11067_v19, %v1142_v12  ;;  %v1144_v18 = vadd.f32 %v1143_v22, %v1035_v38  ;;  %vm1214_vm3 = vcmp.gt.f32.partialorder %v1206_v13, 0.0 }
 0x12a   : > { %v1222_v46 = vmul.f32 0.1, %v1206_v13  ;;  %v1229_v16 = vsel %vm1213_vm8, %v1205_v2, %v1221_v58  ;;  %v1310_v44 = vsub.s32 0, %v11129_v63  ;;  %v1314_v21 = vsub.s32 1, %v11129_v63 }
 0x12b   : > { %v1208_v31 = vadd.f32 %v11069_v40, %v1176_v34  ;;  %v1177_v32 = vmul.f32 %v11067_v19, %v1144_v18  ;;  %vm1215_vm4 = vcmp.gt.f32.partialorder %v1207_v7, 0.0  ;;  %v1223_v53 = vmul.f32 0.1, %v1207_v7 }
 0x12c   : > { %v1230_v26 = vsel %vm1214_vm3, %v1206_v13, %v1222_v46  ;;  %v1220_v19 = vmul.f32 0.1, %v1204_v23  ;;  %v11145_v14 = vrot.slane %v1298_v5, %v1310_v44  ;;  %v11157_v13 = vrot.slane %v1298_v5, %v1314_v21 }
 0x12d   : > { %v1209_v54 = vadd.f32 %v11069_v40, %v1177_v32  ;;  %1260 = vrot.lane.b32.xlu0 %v1230_v26, %s10575_s14  ;;  %v1231_v47 = vsel %vm1215_vm4, %v1207_v7, %v1223_v53  ;;  %vm1216_vm5 = vcmp.gt.f32.partialorder %v1208_v31, 0.0  ;;  %v1224_v48 = vmul.f32 0.1, %v1208_v31 }
 0x12e   : > { %1262 = vrot.lane.b32.xlu1 %v1231_v47, %s10575_s14  ;;  %v1228_v60 = vsel %vm1212_vm7, %v1204_v23, %v1220_v19  ;;  %v1218_v40 = vmul.f32 0.1, %v1202_v50  ;;  %16058 = vst [vmem:[#allocation3_spill] sm:$0xff] %v11145_v14  ;;  %16059 = vst [vmem:[#allocation4_spill] sm:$0xff] %v11157_v13  ;;  %v11164_v7 = vand.u32 4294901760, %v1402_v20  ;;  %v11193_v19 = vand.u32 4294901760, %v1405_v39 }
 0x12f   : > { %v1232_v55 = vsel %vm1216_vm5, %v1208_v31, %v1224_v48  ;;  %vm1217_vm6 = vcmp.gt.f32.partialorder %v1209_v54, 0.0  ;;  %v1225_v45 = vmul.f32 0.1, %v1209_v54  ;;  %vm6228_vm3 = vcmask 146432  }
 0x130   : > { %v1226_v11 = vsel %vm1210_vm9, %v1202_v50, %v1218_v40  ;;  %v11174_v32 = vsub.f32 %v1402_v20, %v11164_v7  ;;  %vm6290_vm4 = vcmask 900096   ;;  %vm7298_vm5 = vcmask 785408  }
 0x131   : > { %1264 = vrot.lane.b32.xlu0 %v1232_v55, %s10575_s14  ;;  %v1233_v56 = vsel %vm1217_vm6, %v1209_v54, %v1225_v45  ;;  %vm9221_vm6 = vcmask 277504   ;;  %vm8274_vm7 = vcmask 777216   ;;  %vm9283_vm8 = vcmask 769024  }
 0x132   : > { %1266 = vrot.lane.b32.xlu1 %v1233_v56, %s10575_s14  ;;  %v15910_v50 = vand.u32 4294901760, %v11174_v32  ;;  %vm10306_vm9 = vcmask 7168  }
 0x135   : > { %1256 = vrot.lane.b32.xlu0 %v1228_v60, %s10575_s14  ;;  %v1408_v60 = vsel %vm1400_vm12, %v10424_v30, 0 }
 0x136   : > { %1258 = vrot.lane.b32.xlu1 %v1229_v16, %s10575_s14 }
 0x139   : > { %1252 = vrot.lane.b32.xlu0 %v1226_v11, %s10575_s14 }
 0x13a   : > { %1254 = vrot.lane.b32.xlu1 %v1227_v17, %s10575_s14 }
 0x19f   : > { %v1261_v24 = vpop.permute.xlu0 %1260 }
 0x1a0   : > { %1291 = vst.msk [vmem:[#allocation2 + $0x30] sm:$0xff] %vm1284_vm11, %v1261_v24  ;;  %v1263_v9 = vpop.permute.xlu1 %1262 }
 0x1a1   : > { %v11081_v10 = vsel %vm1234_vm1, %v1261_v24, %v1263_v9  ;;  %1293 = vst.msk [vmem:[#allocation2 + $0x40] sm:$0xff] %vm1234_vm1, %v1263_v9  ;;  %v10425_v24 = vld [vmem:[%s15897_s4 + $0x58] sm:$0xff] }
 0x1a2   : > { %1292 = vst [vmem:[#allocation2 + $0x38] sm:$0xff] %v11081_v10  ;;  %v1411_v41 = vsel %vm1400_vm12, %v10425_v24, 0 }
 0x1a3   : > { %v1265_v15 = vpop.permute.xlu0 %1264 }
 0x1a4   : > { %1294 = vst.msk [vmem:[#allocation2 + $0x48] sm:$0xff] %vm1284_vm11, %v1265_v15  ;;  %v1267_v25 = vpop.permute.xlu1 %1266 }
 0x1a5   : > { %v11087_v28 = vsel %vm1234_vm1, %v1265_v15, %v1267_v25  ;;  %1296 = vst.msk [vmem:[#allocation2 + $0x58] sm:$0xff] %vm1234_vm1, %v1267_v25  ;;  %v1501_v15 = vsub.f32 %v11174_v32, %v15910_v50  ;;  %v11218_v25 = vsub.f32 %v1405_v39, %v11193_v19 }
 0x1a6   : > { %1295 = vst [vmem:[#allocation2 + $0x50] sm:$0xff] %v11087_v28 }
 0x1a7   : > { %v1257_v29 = vpop.permute.xlu0 %1256  ;;  %v11117_v57 = vld [vmem:[#allocation2 + $0x30] sm:$0xff]  ;;  %v1502_v1 = vand.u32 4294901760, %v1501_v15 }
 0x1a8   : > { %1288 = vst.msk [vmem:[#allocation2 + $0x18] sm:$0xff] %vm1284_vm11, %v1257_v29  ;;  %v1259_v33 = vpop.permute.xlu1 %1258  ;;  %v11104_v43 = vld [vmem:[#allocation2 + $0x40] sm:$0xff] }
 0x1a9   : > { %v11093_v35 = vsel %vm1234_vm1, %v1257_v29, %v1259_v33  ;;  %1290 = vst.msk [vmem:[#allocation2 + $0x28] sm:$0xff] %vm1234_vm1, %v1259_v33  ;;  %v11220_v29 = vand.u32 4294901760, %v1408_v60 }
 0x1aa   : > { %1289 = vst [vmem:[#allocation2 + $0x20] sm:$0xff] %v11093_v35  ;;  %1367 = vrot.lane.b32.xlu0 %v11093_v35, %s10576_s15 }
 0x1ab   : > { %v1253_v36 = vpop.permute.xlu0 %1252  ;;  %v11113_v51 = vld [vmem:[#allocation2 + $0x48] sm:$0xff] }
 0x1ac   : > { %1285 = vst.msk [vmem:[#allocation2] sm:$0xff] %vm1284_vm11, %v1253_v36  ;;  %v1255_v37 = vpop.permute.xlu1 %1254  ;;  %v11134_v6 = vld [vmem:[#allocation2 + $0x58] sm:$0xff] }
 0x1ad   : > { %v11101_v42 = vsel %vm1234_vm1, %v1253_v36, %v1255_v37  ;;  %1287 = vst.msk [vmem:[#allocation2 + $0x10] sm:$0xff] %vm1234_vm1, %v1255_v37  ;;  %vm4305_vm1 = vcmask 916480  }
 0x1ae   : > { %1286 = vst [vmem:[#allocation2 + $0x8] sm:$0xff] %v11101_v42  ;;  %1375 = vrot.lane.b32.xlu0 %v11104_v43, %s10576_s15 }
 0x1af   : > { %v11125_v62 = vld [vmem:[#allocation2 + $0x18] sm:$0xff] }
 0x1b0   : > { %v11109_v49 = vld [vmem:[#allocation2 + $0x28] sm:$0xff] }
 0x1b1   : > { %1369 = vrot.lane.b32.xlu1 %v11109_v49, %s10576_s15 }
 0x1b2   : > { %1377 = vrot.lane.b32.xlu0 %v11113_v51, %s10576_s15 }
 0x1b3   : > { %v11151_v38 = vld [vmem:[#allocation2] sm:$0xff] }
 0x1b4   : > { %v11139_v61 = vld [vmem:[#allocation2 + $0x10] sm:$0xff] }
 0x1b5   : > { %1371 = vrot.lane.b32.xlu1 %v11117_v57, %s10576_s15 }
 0x1b6   : > { %1379 = vrot.lane.b32.xlu0 %v11087_v28, %s10576_s15 }
 0x1b9   : > { %1373 = vrot.lane.b32.xlu1 %v11081_v10, %s10576_s15 }
 0x1ba   : > { %1365 = vrot.lane.b32.xlu0 %v11125_v62, %s10576_s15 }
 0x1bd   : > { %1381 = vrot.lane.b32.xlu1 %v11134_v6, %s10576_s15 }
 0x1be   : > { %1363 = vrot.lane.b32.xlu0 %v11139_v61, %s10576_s15 }
 0x1c1   : > { %1361 = vrot.lane.b32.xlu1 %v11101_v42, %s10576_s15 }
 0x1c2   : > { %3230 = vrot.lane.b32.xlu0 %v11145_v14, %s10577_s18 }
 0x1c5   : > { %1359 = vrot.lane.b32.xlu1 %v11151_v38, %s10576_s15  ;;  %s10580_s15 = smov 112  }
 0x1c9   : > { %3232 = vrot.lane.b32.xlu1 %v11157_v13, %s10577_s18  ;;  %s10579_s18 = smov 16  }
 0x21c   : > { %v1368_v8 = vpop.permute.xlu0 %1367 }
 0x220   : > { %v1376_v12 = vpop.permute.xlu0 %1375 }
 0x223   : > { %v1370_v4 = vpop.permute.xlu1 %1369 }
 0x224   : > { %v1378_v22 = vpop.permute.xlu0 %1377  ;;  %v1387_v0 = vsel %vm1383_vm13, %v1368_v8, %v1370_v4 }
 0x225   : > { %v11182_v54 = vand.u32 4294901760, %v1387_v0 }
 0x227   : > { %v1372_v34 = vpop.permute.xlu1 %1371  ;;  %v11206_v11 = vsub.f32 %v1387_v0, %v11182_v54  ;;  %v11249_v0 = vsub.f32 %v1408_v60, %v11220_v29  ;;  %v11271_v60 = vand.u32 4294901760, %v1411_v41 }
 0x228   : > { %v1380_v18 = vpop.permute.xlu0 %1379 }
 0x229   : > { %v1390_v46 = vsel %vm1383_vm13, %v1378_v22, %v1380_v18 }
 0x22a   : > { %v11171_v31 = vand.u32 4294901760, %v1390_v46 }
 0x22b   : > { %v1374_v53 = vpop.permute.xlu1 %1373 }
 0x22c   : > { %v1388_v23 = vsel %vm1383_vm13, %v1372_v34, %v1374_v53  ;;  %v1389_v2 = vsel %vm1383_vm13, %v1374_v53, %v1376_v12  ;;  %v1366_v26 = vpop.permute.xlu0 %1365  ;;  %v11190_v45 = vsub.f32 %v1390_v46, %v11171_v31  ;;  %v15911_v34 = vand.u32 4294901760, %v11206_v11  ;;  %v10426_v53 = vld [vmem:[%s15897_s4 + $0x60] sm:$0xff] }
 0x22d   : > { %v11184_v47 = vand.u32 4294901760, %v1389_v2  ;;  %v11186_v48 = vand.u32 4294901760, %v1388_v23  ;;  %v1386_v55 = vsel %vm1383_vm13, %v1366_v26, %v1368_v8  ;;  %v15912_v46 = vand.u32 4294901760, %v11218_v25 }
 0x22e   : > { %v11198_v58 = vand.u32 4294901760, %v1386_v55  ;;  %v1618_v9 = vand.u32 4294901760, %v11190_v45  ;;  %v1637_v24 = vsub.f32 %v11206_v11, %v15911_v34  ;;  %v1414_v15 = vsel %vm1400_vm12, %v10426_v53, 0 }
 0x22f   : > { %v11196_v52 = vsub.f32 %v1389_v2, %v11184_v47  ;;  %v1382_v56 = vpop.permute.xlu1 %1381  ;;  %v11202_v40 = vsub.f32 %v1388_v23, %v11186_v48  ;;  %v15916_v53 = vand.u32 4294901760, %v11249_v0 }
 0x230   : > { %v1391_v16 = vsel %vm1383_vm13, %v1380_v18, %v1382_v56  ;;  %v1364_v27 = vpop.permute.xlu0 %1363  ;;  %v11226_v37 = vsub.f32 %v1386_v55, %v11198_v58  ;;  %v1619_v18 = vsub.f32 %v11190_v45, %v1618_v9 }
 0x231   : > { %v11208_v17 = vand.u32 4294901760, %v1391_v16  ;;  %v15915_v59 = vand.u32 4294901760, %v11196_v52  ;;  %v15913_v5 = vand.u32 4294901760, %v11202_v40 }
 0x232   : > { %v15914_v39 = vand.u32 4294901760, %v11226_v37 }
 0x233   : > { %v11223_v33 = vsub.f32 %v1391_v16, %v11208_v17  ;;  %v1362_v36 = vpop.permute.xlu1 %1361  ;;  %1450 = vmatprep.subr.mxu0 %v11208_v17  ;;  %v1625_v30 = vsub.f32 %v11196_v52, %v15915_v59  ;;  %v1631_v56 = vsub.f32 %v11202_v40, %v15913_v5 }
 0x234   : > { %1452 = vmatpush1.msra.mxu0 %v11171_v31  ;;  %v1385_v8 = vsel %vm1383_vm13, %v1362_v36, %v1364_v27  ;;  %v11233_v12 = vpop.permute.xlu0 %3230 }
 0x235   : > { %1454 = vmatprep.subr.mxu0 %v11184_v47  ;;  %v11237_v4 = vand.u32 4294901760, %v1385_v8  ;;  %v1612_v20 = vand.u32 4294901760, %v11223_v33  ;;  %v3248_v22 = vmul.f32 %v11233_v12, %v11113_v51 }
 0x236   : > { %1456 = vmatpush1.msra.mxu0 %v11186_v48 }
 0x237   : > { %v1360_v23 = vpop.permute.xlu1 %1359  ;;  %v11256_v2 = vsub.f32 %v1385_v8, %v11237_v4  ;;  %1458 = vmatprep.subr.mxu0 %v11182_v54  ;;  %v1613_v26 = vsub.f32 %v11223_v33, %v1612_v20  ;;  %3290 = vrot.lane.b32.xlu0 %v3248_v22, %s10578_s9  ;;  %v1512_v8 = vsub.f32 %v11218_v25, %v15912_v46  ;;  %v1632_v46 = vand.u32 4294901760, %v1631_v56 }
 0x238   : > { %v1384_v55 = vsel %vm1383_vm13, %v1360_v23, %v1362_v36  ;;  %1460 = vmatpush1.msra.mxu0 %v11198_v58  ;;  %v1620_v36 = vand.u32 4294901760, %v1619_v18  ;;  %v10427_v23 = vld [vmem:[%s15897_s4 + $0x68] sm:$0xff]  ;;  %v1626_v18 = vand.u32 4294901760, %v1625_v30  ;;  %v1638_v30 = vand.u32 4294901760, %v1637_v24 }
 0x239   : > { %v11273_v16 = vand.u32 4294901760, %v1384_v55  ;;  %1462 = vmatprep.subr.mxu0 %v11237_v4  ;;  %v1614_v27 = vand.u32 4294901760, %v1613_v26  ;;  %v1648_v22 = vand.u32 4294901760, %v11256_v2  ;;  %v1643_v26 = vsub.f32 %v11226_v37, %v15914_v39 }
 0x23a   : > { %v11303_v39 = vsub.f32 %v1411_v41, %v11271_v60  ;;  %v1417_v56 = vsel %vm1400_vm12, %v10427_v23, 0 }
 0x23b   : > { %v11291_v50 = vsub.f32 %v1384_v55, %v11273_v16  ;;  %v11293_v34 = vpop.permute.xlu1 %3232  ;;  %1615 = vmatprep.subr.mxu1 %v1614_v27  ;;  %1464 = vmatpush1.msra.mxu0 %v11273_v16  ;;  %v11305_v55 = vand.u32 4294901760, %v1414_v15  ;;  %v1649_v41 = vsub.f32 %v11256_v2, %v1648_v22  ;;  %v1644_v24 = vand.u32 4294901760, %v1643_v26 }
 0x23c   : > { %1621 = vmatpush1.msra.mxu1 %v1620_v36  ;;  %1503 = vmatmul.mubr.f32.vlgmr.msra.gmra.mxu0 %v1502_v1  ;;  %v11300_v5 = vsel %vm3234_vm14, %v11233_v12, %v11293_v34  ;;  %v1513_v36 = vand.u32 4294901760, %v1512_v8  ;;  %v3247_v59 = vmul.f32 %v11293_v34, %v11104_v43  ;;  %v10428_v8 = vld [vmem:[%s15897_s4 + $0x70] sm:$0xff]  ;;  %v1533_v23 = vand.u32 4294901760, %v11303_v39 }
 0x23d   : > { %v15917_v27 = vand.u32 4294901760, %v11291_v50  ;;  %1627 = vmatprep.subr.mxu1 %v1626_v18  ;;  %1773 = vmatprep.subr.mxu0 %v11223_v33  ;;  %v3246_v1 = vmul.f32 %v11300_v5, %v11081_v10  ;;  %v11335_v43 = vsub.f32 %v1414_v15, %v11305_v55  ;;  %v1650_v26 = vand.u32 4294901760, %v1649_v41  ;;  %v10429_v15 = vld [vmem:[%s15897_s4 + $0x78] sm:$0xff] }
 0x23e   : > { %1633 = vmatpush1.msra.mxu1 %v1632_v46  ;;  %1776 = vmatpush1.msra.mxu0 %v11190_v45  ;;  %v1523_v46 = vsub.f32 %v11249_v0, %v15916_v53  ;;  %v16065_v45 = vand.u32 4294901760, %v11226_v37 }
 0x23f   : > { %v1655_v18 = vsub.f32 %v11291_v50, %v15917_v27  ;;  %1639 = vmatprep.subr.mxu1 %v1638_v30  ;;  %1779 = vmatprep.subr.mxu0 %v11196_v52  ;;  %v11331_v30 = vand.u32 4294901760, %v1417_v56  ;;  %v1420_v27 = vsel %vm1400_vm12, %v10428_v8, 0  ;;  %v3244_v8 = vmul.f32 %v11293_v34, %v11109_v49 }
 0x240   : > { %3286 = vrot.lane.b32.xlu1 %v3246_v1, %s10578_s9  ;;  %1508 = vmatprep.mubr.f32.mxu0 %v15939_v3  ;;  %v3245_v1 = vmul.f32 %v11233_v12, %v11117_v57  ;;  %v3249_v49 = vmul.f32 %v11300_v5, %v11087_v28 }
 0x241   : > { %1645 = vmatpush1.msra.mxu1 %v1644_v24  ;;  %1782 = vmatpush1.msra.mxu0 %v11202_v40  ;;  %v1656_v53 = vand.u32 4294901760, %v1655_v18  ;;  %v1524_v24 = vand.u32 4294901760, %v1523_v46  ;;  %v11351_v41 = vsub.f32 %v1417_v56, %v11331_v30  ;;  %v11356_v18 = vand.u32 4294901760, %v1420_v27 }
 0x242   : > { %1514 = vmatmul.mubr.f32.gmra.mxu0 %v1513_v36  ;;  %1785 = vmatprep.subr.mxu0 %v11206_v11  ;;  %v1534_v36 = vsub.f32 %v11303_v39, %v1533_v23  ;;  %v1423_v46 = vsel %vm1400_vm12, %v10429_v15, 0  ;;  %v3243_v56 = vmul.f32 %v11300_v5, %v11093_v35 }
 0x243   : > { %1788 = vmatpush1.msra.mxu0 %v11226_v37  ;;  %3288 = vrot.lane.b32.xlu0 %v3247_v59, %s10578_s9  ;;  %v1544_v59 = vand.u32 4294901760, %v11335_v43  ;;  %v11377_v15 = vand.u32 4294901760, %v1423_v46 }
 0x244   : > { %1651 = vmatprep.subr.mxu1 %v1650_v26  ;;  %1791 = vmatprep.subr.mxu0 %v11256_v2  ;;  %v1535_v26 = vand.u32 4294901760, %v1534_v36 }
 0x245   : > { %3284 = vrot.lane.b32.xlu1 %v3245_v1, %s10578_s9  ;;  %1519 = vmatprep.mubr.f32.mxu0 %v15939_v3  ;;  %v1545_v1 = vsub.f32 %v11335_v43, %v1544_v59 }
 0x246   : > { %1657 = vmatpush1.msra.mxu1 %v1656_v53  ;;  %1794 = vmatpush1.msra.mxu0 %v11291_v50  ;;  %v1555_v53 = vand.u32 4294901760, %v11351_v41 }
 0x247   : > { %1525 = vmatmul.mubr.f32.gmra.mxu0 %v1524_v24  ;;  %1692 = vmatmul.mubr.f32.vlgmr.msra.gmra.mxu1 %v11164_v7  ;;  %v11375_v24 = vsub.f32 %v1420_v27, %v11356_v18  ;;  %v1546_v27 = vand.u32 4294901760, %v1545_v1 }
 0x248   : > { %1917 = vmatprep.subr.mxu1 %v11208_v17  ;;  %2064 = vmatprep.subr.mxu0 %v1612_v20  ;;  %v1556_v33 = vsub.f32 %v11351_v41, %v1555_v53  ;;  %v3250_v20 = vmul.f32 %v11293_v34, %v11134_v6  ;;  %v3242_v6 = vmul.f32 %v11233_v12, %v11125_v62 }
 0x249   : > { %1919 = vmatpush1.msra.mxu1 %v11171_v31  ;;  %3280 = vrot.lane.b32.xlu0 %v3243_v56, %s10578_s9  ;;  %v1566_v36 = vand.u32 4294901760, %v11375_v24  ;;  %v11395_v56 = vsub.f32 %v1423_v46, %v11377_v15  ;;  %v3240_v46 = vmul.f32 %v11300_v5, %v11101_v42  ;;  %v3241_v5 = vmul.f32 %v11293_v34, %v11139_v61 }
 0x24a   : > { %1921 = vmatprep.subr.mxu1 %v11184_v47  ;;  %3282 = vrot.lane.b32.xlu1 %v3244_v8, %s10578_s9  ;;  %v1557_v8 = vand.u32 4294901760, %v1556_v33 }
 0x24b   : > { %1530 = vmatprep.mubr.f32.mxu0 %v15939_v3  ;;  %1697 = vmatprep.mubr.f32.mxu1 %v15939_v3  ;;  %v1577_v1 = vand.u32 4294901760, %v11395_v56 }
 0x24c   : > { %1923 = vmatpush1.msra.mxu1 %v11186_v48  ;;  %1536 = vmatmul.mubr.f32.gmra.mxu0 %v1535_v26  ;;  %v1567_v26 = vsub.f32 %v11375_v24, %v1566_v36 }
 0x24d   : > { %1699 = vmatmul.mubr.f32.gmra.mxu1 %v11193_v19  ;;  %1925 = vmatprep.subr.mxu1 %v11182_v54 }
 0x24e   : > { %1927 = vmatpush1.msra.mxu1 %v11198_v58  ;;  %3292 = vrot.lane.b32.xlu0 %v3249_v49, %s10578_s9  ;;  %v3239_v49 = vmul.f32 %v11233_v12, %v11151_v38  ;;  %v1568_v33 = vand.u32 4294901760, %v1567_v26 }
 0x24f   : > { %1929 = vmatprep.subr.mxu1 %v11237_v4  ;;  %3294 = vrot.lane.b32.xlu1 %v3250_v20, %s10578_s9  ;;  %v1297_v20 = vld [vmem:[%s15898_s5] sm:$0x3] }
 0x250   : > { %1541 = vmatprep.mubr.f32.mxu0 %v15939_v3  ;;  %1704 = vmatprep.mubr.f32.mxu1 %v15939_v3  ;;  %v11435_v61 = vrot.slane %v1297_v20, %v1314_v21  ;;  %v11439_v12 = vrot.slane %v1297_v20, %v1310_v44  ;;  %v16062_v44 = vand.u32 4294901760, %v11196_v52  ;;  %v16066_v52 = vand.u32 4294901760, %v11291_v50 }
 0x251   : > { %1931 = vmatpush1.msra.mxu1 %v11273_v16  ;;  %1547 = vmatmul.mubr.f32.gmra.mxu0 %v1546_v27 }
 0x252   : > { %1706 = vmatmul.mubr.f32.gmra.mxu1 %v11220_v29  ;;  %2207 = vmatprep.subr.mxu1 %v11208_v17  ;;  %v1578_v17 = vsub.f32 %v11395_v56, %v1577_v1  ;;  %16060 = vst [vmem:[#allocation5_spill] sm:$0xff] %v11435_v61  ;;  %16061 = vst [vmem:[#allocation6_spill] sm:$0xff] %v11439_v12  ;;  %v1325_v21 = vmul.f32 %v11435_v61, %v11087_v28  ;;  %v16063_v28 = vand.u32 4294901760, %v11202_v40 }
 0x253   : > { %3278 = vrot.lane.b32.xlu0 %v3242_v6, %s10578_s9  ;;  %3274 = vrot.lane.b32.xlu1 %v3240_v46, %s10578_s9  ;;  %v1318_v37 = vmul.f32 %v11439_v12, %v11151_v38 }
 0x254   : > { %1552 = vmatprep.mubr.f32.mxu0 %v15939_v3  ;;  %1711 = vmatprep.mubr.f32.mxu1 %v15939_v3  ;;  %v1579_v34 = vand.u32 4294901760, %v1578_v17  ;;  %v11451_v63 = vand.u32 4294901760, %v1325_v21 }
 0x255   : > { %1558 = vmatmul.mubr.f32.gmra.mxu0 %v1557_v8  ;;  %v16064_v8 = vand.u32 4294901760, %v11206_v11  ;;  %v16067_v11 = vand.u32 4294901760, %v11174_v32  ;;  %v11555_v2 = vand.u32 4294901760, %v1318_v37 }
 0x256   : > { %1713 = vmatmul.mubr.f32.gmra.mxu1 %v11271_v60  ;;  %1563 = vmatprep.mubr.f32.mxu0 %v15939_v3  ;;  %v11464_v27 = vsub.f32 %v1325_v21, %v11451_v63 }
 0x257   : > { %3276 = vrot.lane.b32.xlu0 %v3241_v5, %s10578_s9  ;;  %3272 = vrot.lane.b32.xlu1 %v3239_v49, %s10578_s9  ;;  %s10582_s9 = smov 18  }
 0x258   : > { %1718 = vmatprep.mubr.f32.mxu1 %v15939_v3  ;;  %v2522_v40 = vand.u32 4294901760, %v11464_v27 }
 0x259   : > { %1569 = vmatmul.mubr.f32.gmra.mxu0 %v1568_v33 }
 0x25a   : > { %1720 = vmatmul.mubr.f32.gmra.mxu1 %v11305_v55  ;;  %1574 = vmatprep.mubr.f32.mxu0 %v15939_v3  ;;  %v2523_v50 = vsub.f32 %v11464_v27, %v2522_v40 }
 0x25b   : > { %4239 = vrot.lane.b32.xlu0 %v11439_v12, %s10579_s18  ;;  %4241 = vrot.lane.b32.xlu1 %v11435_v61, %s10579_s18  ;;  %s15778_s18 = scalar_lea.vmem %s15900_s7, %s10670_s19 }
 0x25c   : > { %1725 = vmatprep.mubr.f32.mxu1 %v15939_v3 }
 0x25d   : > { %1580 = vmatmul.mubr.f32.gmra.mxu0 %v1579_v34 }
 0x25e   : > { %1727 = vmatmul.mubr.f32.gmra.mxu1 %v11331_v30  ;;  %1827 = vmatprep.mubr.f32.mxu0 %v15939_v3 }
 0x25f   : > { %1732 = vmatprep.mubr.f32.mxu1 %v15939_v3 }
 0x261   : > { %1830 = vmatmul.mubr.f32.vlgmr.msra.gmra.mxu0 %v11174_v32  ;;  %v16068_v32 = vand.u32 4294901760, %v11218_v25 }
 0x262   : > { %1734 = vmatmul.mubr.f32.gmra.mxu1 %v11356_v18  ;;  %2068 = vmatpush1.msra.mxu0 %v1618_v9  ;;  %v1321_v9 = vmul.f32 %v11435_v61, %v11093_v35 }
 0x263   : > { %2072 = vmatprep.subr.mxu0 %v16062_v44  ;;  %1739 = vmatprep.mubr.f32.mxu1 %v15939_v3 }
 0x264   : > { %2076 = vmatpush1.msra.mxu0 %v16063_v28  ;;  %1835 = vmatprep.mubr.f32.mxu0 %v15939_v3 }
 0x265   : > { %2080 = vmatprep.subr.mxu0 %v16064_v8  ;;  %1838 = vmatmul.mubr.f32.gmra.mxu0 %v11218_v25 }
 0x266   : > { %1741 = vmatmul.mubr.f32.gmra.mxu1 %v11377_v15  ;;  %2084 = vmatpush1.msra.mxu0 %v16065_v45 }
 0x267   : > { %2088 = vmatprep.subr.mxu0 %v1648_v22  ;;  %1843 = vmatprep.mubr.f32.mxu0 %v15939_v3 }
 0x268   : > { %2092 = vmatpush1.msra.mxu0 %v16066_v52  ;;  %1964 = vmatprep.mubr.f32.mxu1 %v15939_v3 }
 0x269   : > { %2360 = vmatprep.subr.mxu0 %v11451_v63  ;;  %1846 = vmatmul.mubr.f32.gmra.mxu0 %v11249_v0 }
 0x26a   : > { %1968 = vmatmul.mubr.f32.vlgmr.msra.gmra.mxu1 %v16067_v11  ;;  %1851 = vmatprep.mubr.f32.mxu0 %v15939_v3 }
 0x26b   : > { %2209 = vmatpush1.msra.mxu1 %v11171_v31  ;;  %1973 = vmatprep.mubr.f32.mxu1 %v15939_v3  ;;  %v2524_v31 = vand.u32 4294901760, %v2523_v50 }
 0x26c   : > { %2211 = vmatprep.subr.mxu1 %v11184_v47  ;;  %v16069_v47 = vand.u32 4294901760, %v11249_v0 }
 0x26d   : > { %2213 = vmatpush1.msra.mxu1 %v11186_v48  ;;  %1854 = vmatmul.mubr.f32.gmra.mxu0 %v11303_v39  ;;  %v1323_v48 = vmul.f32 %v11435_v61, %v11081_v10 }
 0x26e   : > { %2215 = vmatprep.subr.mxu1 %v11182_v54  ;;  %1977 = vmatmul.mubr.f32.gmra.mxu1 %v16068_v32  ;;  %v1324_v54 = vmul.f32 %v11439_v12, %v11113_v51  ;;  %v1320_v51 = vmul.f32 %v11439_v12, %v11125_v62 }
 0x26f   : > { %2217 = vmatpush1.msra.mxu1 %v11198_v58  ;;  %1859 = vmatprep.mubr.f32.mxu0 %v15939_v3  ;;  %v1322_v58 = vmul.f32 %v11439_v12, %v11117_v57  ;;  %v11526_v10 = vand.u32 4294901760, %v1323_v48  ;;  %v1319_v57 = vmul.f32 %v11435_v61, %v11101_v42 }
 0x270   : > { %2219 = vmatprep.subr.mxu1 %v11237_v4  ;;  %1982 = vmatprep.mubr.f32.mxu1 %v15939_v3  ;;  %v11519_v25 = vand.u32 4294901760, %v1324_v54  ;;  %v11535_v4 = vand.u32 4294901760, %v1321_v9  ;;  %v11541_v0 = vand.u32 4294901760, %v1320_v51 }
 0x271   : > { %2221 = vmatpush1.msra.mxu1 %v11273_v16  ;;  %1862 = vmatmul.mubr.f32.gmra.mxu0 %v11335_v43  ;;  %v11531_v35 = vand.u32 4294901760, %v1322_v58  ;;  %v11546_v42 = vand.u32 4294901760, %v1319_v57  ;;  %v11549_v39 = vsub.f32 %v1323_v48, %v11526_v10  ;;  %v1329_v48 = vld [vmem:[%s15897_s4 + $0x18] sm:$0xff] }
 0x272   : > { %2525 = vmatprep.subr.mxu1 %v2524_v31  ;;  %1986 = vmatmul.mubr.f32.gmra.mxu1 %v16069_v47  ;;  %v11539_v62 = vsub.f32 %v1324_v54, %v11519_v25  ;;  %v11558_v16 = vsub.f32 %v1321_v9, %v11535_v4  ;;  %v11562_v22 = vsub.f32 %v1320_v51, %v11541_v0  ;;  %v1328_v31 = vld [vmem:[%s15897_s4 + $0x10] sm:$0xff] }
 0x273   : > { %1867 = vmatprep.mubr.f32.mxu0 %v15939_v3  ;;  %1991 = vmatprep.mubr.f32.mxu1 %v15939_v3  ;;  %v11553_v38 = vsub.f32 %v1322_v58, %v11531_v35  ;;  %v2534_v43 = vand.u32 4294901760, %v11549_v39  ;;  %v2318_v54 = vsel %vm1400_vm12, %v1328_v31, 0 }
 0x274   : > { %v2552_v6 = vand.u32 4294901760, %v11562_v22  ;;  %v11655_v51 = vand.u32 4294901760, %v2318_v54 }
 0x275   : > { %1870 = vmatmul.mubr.f32.gmra.mxu0 %v11351_v41  ;;  %v11570_v41 = vsub.f32 %v1319_v57, %v11546_v42  ;;  %v2535_v46 = vsub.f32 %v11549_v39, %v2534_v43  ;;  %v1330_v57 = vld [vmem:[%s15897_s4 + $0x20] sm:$0xff] }
 0x276   : > { %1995 = vmatmul.mubr.f32.gmra.mxu1 %v1533_v23  ;;  %1875 = vmatprep.mubr.f32.mxu0 %v15939_v3  ;;  %v2528_v23 = vand.u32 4294901760, %v11539_v62  ;;  %v2553_v17 = vsub.f32 %v11562_v22, %v2552_v6 }
 0x277   : > { %2000 = vmatprep.mubr.f32.mxu1 %v15939_v3  ;;  %v2558_v26 = vand.u32 4294901760, %v11570_v41  ;;  %v2536_v20 = vand.u32 4294901760, %v2535_v46 }
 0x278   : > { %v2554_v45 = vand.u32 4294901760, %v2553_v17 }
 0x279   : > { %1878 = vmatmul.mubr.f32.gmra.mxu0 %v11375_v24  ;;  %v2546_v24 = vand.u32 4294901760, %v11558_v16  ;;  %v2559_v34 = vsub.f32 %v11570_v41, %v2558_v26 }
 0x27a   : > { %2004 = vmatmul.mubr.f32.gmra.mxu1 %v1544_v59  ;;  %1883 = vmatprep.mubr.f32.mxu0 %v15939_v3  ;;  %v11575_v59 = vsub.f32 %v1318_v37, %v11555_v2 }
 0x27b   : > { %2009 = vmatprep.mubr.f32.mxu1 %v15939_v3  ;;  %v2560_v11 = vand.u32 4294901760, %v2559_v34 }
 0x27c   : > { %v2564_v49 = vand.u32 4294901760, %v11575_v59 }
 0x27d   : > { %1886 = vmatmul.mubr.f32.gmra.mxu0 %v11395_v56  ;;  %v1326_v56 = vld [vmem:[%s15897_s4] sm:$0xff] }
 0x27e   : > { %2013 = vmatmul.mubr.f32.gmra.mxu1 %v1555_v53  ;;  %2125 = vmatprep.mubr.f32.mxu0 %v15939_v3  ;;  %v2540_v53 = vand.u32 4294901760, %v11553_v38  ;;  %v2312_v21 = vsel %vm1400_vm12, %v1326_v56, 0  ;;  %v2565_v28 = vsub.f32 %v11575_v59, %v2564_v49  ;;  %v1331_v56 = vld [vmem:[%s15897_s4 + $0x28] sm:$0xff] }
 0x27f   : > { %2018 = vmatprep.mubr.f32.mxu1 %v15939_v3  ;;  %v11627_v52 = vand.u32 4294901760, %v2312_v21  ;;  %v2327_v34 = vsel %vm1400_vm12, %v1331_v56, 0 }
 0x280   : > { %v2541_v5 = vsub.f32 %v11553_v38, %v2540_v53  ;;  %v2566_v32 = vand.u32 4294901760, %v2565_v28 }
 0x281   : > { %2127 = vmatmul.mubr.f32.vlgmr.msra.gmra.mxu0 %v11164_v7  ;;  %v11638_v47 = vsub.f32 %v2312_v21, %v11627_v52  ;;  %v1332_v21 = vld [vmem:[%s15897_s4 + $0x30] sm:$0xff] }
 0x282   : > { %2022 = vmatmul.mubr.f32.gmra.mxu1 %v1566_v36  ;;  %2362 = vmatpush1.msra.mxu0 %v11519_v25  ;;  %v2529_v36 = vsub.f32 %v11539_v62, %v2528_v23  ;;  %v2542_v44 = vand.u32 4294901760, %v2541_v5  ;;  %v2324_v5 = vsel %vm1400_vm12, %v1330_v57, 0 }
 0x283   : > { %2364 = vmatprep.subr.mxu0 %v11526_v10  ;;  %2027 = vmatprep.mubr.f32.mxu1 %v15939_v3  ;;  %v2410_v58 = vand.u32 4294901760, %v11638_v47 }
 0x284   : > { %2366 = vmatpush1.msra.mxu0 %v11531_v35  ;;  %2132 = vmatprep.mubr.f32.mxu0 %v15939_v3  ;;  %v2530_v33 = vand.u32 4294901760, %v2529_v36 }
 0x285   : > { %2368 = vmatprep.subr.mxu0 %v11535_v4  ;;  %2134 = vmatmul.mubr.f32.gmra.mxu0 %v11193_v19  ;;  %v2411_v36 = vsub.f32 %v11638_v47, %v2410_v58 }
 0x286   : > { %2031 = vmatmul.mubr.f32.gmra.mxu1 %v1577_v1  ;;  %2370 = vmatpush1.msra.mxu0 %v11541_v0  ;;  %v2547_v1 = vsub.f32 %v11558_v16, %v2546_v24 }
 0x287   : > { %2372 = vmatprep.subr.mxu0 %v11546_v42  ;;  %2139 = vmatprep.mubr.f32.mxu0 %v15939_v3 }
 0x288   : > { %2374 = vmatpush1.msra.mxu0 %v11555_v2  ;;  %2254 = vmatprep.mubr.f32.mxu1 %v15939_v3  ;;  %v2548_v8 = vand.u32 4294901760, %v2547_v1 }
 0x289   : > { %2683 = vmatprep.subr.mxu0 %v11464_v27  ;;  %2141 = vmatmul.mubr.f32.gmra.mxu0 %v11220_v29 }
 0x28a   : > { %2256 = vmatmul.mubr.f32.vlgmr.msra.gmra.mxu1 %v11164_v7  ;;  %2146 = vmatprep.mubr.f32.mxu0 %v15939_v3  ;;  %v1327_v7 = vld [vmem:[%s15897_s4 + $0x8] sm:$0xff] }
 0x28b   : > { %2531 = vmatpush1.msra.mxu1 %v2530_v33  ;;  %2261 = vmatprep.mubr.f32.mxu1 %v15939_v3  ;;  %v2315_v50 = vsel %vm1400_vm12, %v1327_v7, 0  ;;  %v2412_v33 = vand.u32 4294901760, %v2411_v36 }
 0x28c   : > { %2537 = vmatprep.subr.mxu1 %v2536_v20  ;;  %v11689_v20 = vand.u32 4294901760, %v2324_v5 }
 0x28d   : > { %2543 = vmatpush1.msra.mxu1 %v2542_v44  ;;  %2148 = vmatmul.mubr.f32.gmra.mxu0 %v11271_v60 }
 0x28e   : > { %2549 = vmatprep.subr.mxu1 %v2548_v8  ;;  %2263 = vmatmul.mubr.f32.gmra.mxu1 %v11193_v19  ;;  %v11640_v19 = vand.u32 4294901760, %v2315_v50  ;;  %v11705_v8 = vand.u32 4294901760, %v2327_v34 }
 0x28f   : > { %2555 = vmatpush1.msra.mxu1 %v2554_v45  ;;  %2153 = vmatprep.mubr.f32.mxu0 %v15939_v3  ;;  %v2330_v45 = vsel %vm1400_vm12, %v1332_v21, 0 }
 0x290   : > { %2561 = vmatprep.subr.mxu1 %v2560_v11  ;;  %2268 = vmatprep.mubr.f32.mxu1 %v15939_v3  ;;  %v11653_v9 = vsub.f32 %v2315_v50, %v11640_v19  ;;  %v1333_v11 = vld [vmem:[%s15897_s4 + $0x38] sm:$0xff]  ;;  %v11723_v31 = vsub.f32 %v2327_v34, %v11705_v8 }
 0x291   : > { %2567 = vmatpush1.msra.mxu1 %v2566_v32  ;;  %2155 = vmatmul.mubr.f32.gmra.mxu0 %v11305_v55 }
 0x292   : > { %2827 = vmatprep.subr.mxu1 %v11451_v63  ;;  %2270 = vmatmul.mubr.f32.gmra.mxu1 %v11220_v29  ;;  %v2321_v29 = vsel %vm1400_vm12, %v1329_v48, 0  ;;  %v2421_v46 = vand.u32 4294901760, %v11653_v9  ;;  %v2333_v48 = vsel %vm1400_vm12, %v1333_v11, 0  ;;  %v2465_v57 = vand.u32 4294901760, %v11723_v31 }
 0x293   : > { %2160 = vmatprep.mubr.f32.mxu0 %v15939_v3  ;;  %2275 = vmatprep.mubr.f32.mxu1 %v15939_v3  ;;  %v11664_v37 = vand.u32 4294901760, %v2321_v29 }
 0x295   : > { %2162 = vmatmul.mubr.f32.gmra.mxu0 %v11331_v30  ;;  %v11682_v1 = vsub.f32 %v2321_v29, %v11664_v37 }
 0x296   : > { %2277 = vmatmul.mubr.f32.gmra.mxu1 %v11271_v60  ;;  %2167 = vmatprep.mubr.f32.mxu0 %v15939_v3  ;;  %v11672_v60 = vsub.f32 %v2318_v54, %v11655_v51  ;;  %v11725_v54 = vand.u32 4294901760, %v2330_v45 }
 0x297   : > { %2282 = vmatprep.mubr.f32.mxu1 %v15939_v3  ;;  %v2443_v44 = vand.u32 4294901760, %v11682_v1 }
 0x298   : > { %v2432_v17 = vand.u32 4294901760, %v11672_v60  ;;  %v11741_v36 = vsub.f32 %v2330_v45, %v11725_v54 }
 0x299   : > { %2169 = vmatmul.mubr.f32.gmra.mxu0 %v11356_v18 }
 0x29a   : > { %2284 = vmatmul.mubr.f32.gmra.mxu1 %v11305_v55  ;;  %2174 = vmatprep.mubr.f32.mxu0 %v15939_v3  ;;  %v2422_v55 = vsub.f32 %v11653_v9, %v2421_v46  ;;  %v2433_v7 = vsub.f32 %v11672_v60, %v2432_v17  ;;  %v2476_v56 = vand.u32 4294901760, %v11741_v36 }
 0x29b   : > { %2289 = vmatprep.mubr.f32.mxu1 %v15939_v3 }
 0x29c   : > { %v2423_v28 = vand.u32 4294901760, %v2422_v55  ;;  %v2434_v50 = vand.u32 4294901760, %v2433_v7  ;;  %v2477_v21 = vsub.f32 %v11741_v36, %v2476_v56 }
 0x29d   : > { %2176 = vmatmul.mubr.f32.gmra.mxu0 %v11377_v15 }
 0x29e   : > { %2291 = vmatmul.mubr.f32.gmra.mxu1 %v11331_v30  ;;  %2407 = vmatprep.mubr.f32.mxu0 %v15939_v3  ;;  %v11703_v30 = vsub.f32 %v2324_v5, %v11689_v20  ;;  %v11743_v5 = vand.u32 4294901760, %v2333_v48  ;;  %v2478_v11 = vand.u32 4294901760, %v2477_v21 }
 0x29f   : > { %2296 = vmatprep.mubr.f32.mxu1 %v15939_v3 }
 0x2a0   : > { %v2454_v32 = vand.u32 4294901760, %v11703_v30 }
 0x2a1   : > { %2413 = vmatmul.mubr.f32.vlgmr.msra.gmra.mxu0 %v2412_v33  ;;  %v11756_v33 = vsub.f32 %v2333_v48, %v11743_v5 }
 0x2a2   : > { %2298 = vmatmul.mubr.f32.gmra.mxu1 %v11356_v18  ;;  %2686 = vmatpush1.msra.mxu0 %v11539_v62  ;;  %v2444_v18 = vsub.f32 %v11682_v1, %v2443_v44 }
 0x2a3   : > { %2689 = vmatprep.subr.mxu0 %v11549_v39  ;;  %2303 = vmatprep.mubr.f32.mxu1 %v15939_v3 }
 0x2a4   : > { %2692 = vmatpush1.msra.mxu0 %v11553_v38  ;;  %2418 = vmatprep.mubr.f32.mxu0 %v15939_v3  ;;  %v2445_v29 = vand.u32 4294901760, %v2444_v18 }
 0x2a5   : > { %2695 = vmatprep.subr.mxu0 %v11558_v16  ;;  %2424 = vmatmul.mubr.f32.gmra.mxu0 %v2423_v28  ;;  %v2487_v28 = vand.u32 4294901760, %v11756_v33 }
 0x2a6   : > { %2305 = vmatmul.mubr.f32.gmra.mxu1 %v11377_v15  ;;  %2698 = vmatpush1.msra.mxu0 %v11562_v22  ;;  %v2455_v15 = vsub.f32 %v11703_v30, %v2454_v32 }
 0x2a7   : > { %2701 = vmatprep.subr.mxu0 %v11570_v41  ;;  %2429 = vmatprep.mubr.f32.mxu0 %v15939_v3  ;;  %v2488_v18 = vsub.f32 %v11756_v33, %v2487_v28 }
 0x2a8   : > { %2704 = vmatpush1.msra.mxu0 %v11575_v59  ;;  %2600 = vmatprep.mubr.f32.mxu1 %v15939_v3  ;;  %v2456_v27 = vand.u32 4294901760, %v2455_v15  ;;  %v11861_v59 = vld [vmem:[#allocation2 + $0x58] sm:$0xff] }
 0x2a9   : > { %2974 = vmatprep.subr.mxu0 %v2522_v40  ;;  %2435 = vmatmul.mubr.f32.gmra.mxu0 %v2434_v50  ;;  %v2466_v40 = vsub.f32 %v11723_v31, %v2465_v57  ;;  %v11765_v55 = vpop.permute.xlu0 %3290  ;;  %v2489_v50 = vand.u32 4294901760, %v2488_v18 }
 0x2aa   : > { %2602 = vmatmul.mubr.f32.vlgmr.msra.gmra.mxu1 %v11627_v52  ;;  %2440 = vmatprep.mubr.f32.mxu0 %v15939_v3 }
 0x2ab   : > { %2829 = vmatpush1.msra.mxu1 %v11519_v25  ;;  %2607 = vmatprep.mubr.f32.mxu1 %v15939_v3  ;;  %v2467_v34 = vand.u32 4294901760, %v2466_v40 }
 0x2ac   : > { %2831 = vmatprep.subr.mxu1 %v11526_v10 }
 0x2ad   : > { %2833 = vmatpush1.msra.mxu1 %v11531_v35  ;;  %2446 = vmatmul.mubr.f32.gmra.mxu0 %v2445_v29 }
 0x2ae   : > { %2835 = vmatprep.subr.mxu1 %v11535_v4  ;;  %2609 = vmatmul.mubr.f32.gmra.mxu1 %v11640_v19 }
 0x2af   : > { %2837 = vmatpush1.msra.mxu1 %v11541_v0  ;;  %2451 = vmatprep.mubr.f32.mxu0 %v15939_v3 }
 0x2b0   : > { %2839 = vmatprep.subr.mxu1 %v11546_v42  ;;  %2614 = vmatprep.mubr.f32.mxu1 %v15939_v3 }
 0x2b1   : > { %2841 = vmatpush1.msra.mxu1 %v11555_v2  ;;  %2457 = vmatmul.mubr.f32.gmra.mxu0 %v2456_v27 }
 0x2b2   : > { %3117 = vmatprep.subr.mxu1 %v11451_v63  ;;  %2616 = vmatmul.mubr.f32.gmra.mxu1 %v11655_v51  ;;  %v11773_v7 = vpop.permute.xlu1 %3286 }
 0x2b3   : > { %2462 = vmatprep.mubr.f32.mxu0 %v15939_v3  ;;  %2621 = vmatprep.mubr.f32.mxu1 %v15939_v3 }
 0x2b5   : > { %2468 = vmatmul.mubr.f32.gmra.mxu0 %v2467_v34  ;;  %v11777_v45 = vpop.permute.xlu0 %3288 }
 0x2b6   : > { %2623 = vmatmul.mubr.f32.gmra.mxu1 %v11664_v37  ;;  %2473 = vmatprep.mubr.f32.mxu0 %v15939_v3 }
 0x2b7   : > { %2628 = vmatprep.mubr.f32.mxu1 %v15939_v3  ;;  %v11785_v63 = vpop.permute.xlu1 %3284 }
 0x2b9   : > { %2479 = vmatmul.mubr.f32.gmra.mxu0 %v2478_v11  ;;  %v11934_v11 = vld [vmem:[#allocation2 + $0x18] sm:$0xff] }
 0x2ba   : > { %2630 = vmatmul.mubr.f32.gmra.mxu1 %v11689_v20  ;;  %2484 = vmatprep.mubr.f32.mxu0 %v15939_v3 }
 0x2bb   : > { %2635 = vmatprep.mubr.f32.mxu1 %v15939_v3  ;;  %v11790_v48 = vpop.permute.xlu0 %3280 }
 0x2bc   : > { %v11792_v29 = vpop.permute.xlu1 %3282 }
 0x2bd   : > { %2490 = vmatmul.mubr.f32.gmra.mxu0 %v2489_v50 }
 0x2be   : > { %2637 = vmatmul.mubr.f32.gmra.mxu1 %v11705_v8  ;;  %2737 = vmatprep.mubr.f32.mxu0 %v15939_v3 }
 0x2bf   : > { %2642 = vmatprep.mubr.f32.mxu1 %v15939_v3 }
 0x2c0   : > { %v11797_v15 = vpop.permute.xlu0 %3292 }
 0x2c1   : > { %2740 = vmatmul.mubr.f32.vlgmr.msra.gmra.mxu0 %v11638_v47  ;;  %v3295_v27 = vpop.permute.xlu1 %3294 }
 0x2c2   : > { %2644 = vmatmul.mubr.f32.gmra.mxu1 %v11725_v54  ;;  %2978 = vmatpush1.msra.mxu0 %v2528_v23  ;;  %v3304_v40 = vsel %vm3296_vm15, %v11797_v15, %v3295_v27 }
 0x2c3   : > { %v11805_v34 = vand.u32 4294901760, %v3304_v40  ;;  %2982 = vmatprep.subr.mxu0 %v2534_v43  ;;  %2649 = vmatprep.mubr.f32.mxu1 %v15939_v3 }
 0x2c4   : > { %2986 = vmatpush1.msra.mxu0 %v2540_v53  ;;  %2745 = vmatprep.mubr.f32.mxu0 %v15939_v3  ;;  %v11869_v53 = vld [vmem:[#allocation2 + $0x40] sm:$0xff] }
 0x2c5   : > { %v11814_v21 = vsub.f32 %v3304_v40, %v11805_v34  ;;  %2990 = vmatprep.subr.mxu0 %v2546_v24  ;;  %v11818_v62 = vpop.permute.xlu0 %3278  ;;  %2748 = vmatmul.mubr.f32.gmra.mxu0 %v11653_v9  ;;  %v11821_v23 = vpop.permute.xlu1 %3274  ;;  %v3302_v9 = vsel %vm3296_vm15, %v11773_v7, %v11777_v45 }
 0x2c6   : > { %2651 = vmatmul.mubr.f32.gmra.mxu1 %v11743_v5  ;;  %2994 = vmatpush1.msra.mxu0 %v2552_v6  ;;  %v11888_v6 = vld [vmem:[#allocation2 + $0x20] sm:$0xff]  ;;  %v11925_v45 = vand.u32 4294901760, %v3302_v9 }
 0x2c7   : > { %2998 = vmatprep.subr.mxu0 %v2558_v26  ;;  %2753 = vmatprep.mubr.f32.mxu0 %v15939_v3  ;;  %v3524_v39 = vand.u32 4294901760, %v11814_v21 }
 0x2c8   : > { %3002 = vmatpush1.msra.mxu0 %v2564_v49  ;;  %2874 = vmatprep.mubr.f32.mxu1 %v15939_v3  ;;  %v11896_v49 = vld [vmem:[#allocation2 + $0x30] sm:$0xff]  ;;  %v11958_v40 = vsub.f32 %v3302_v9, %v11925_v45 }
 0x2c9   : > { %3362 = vmatprep.subr.mxu0 %v11805_v34  ;;  %v11834_v38 = vpop.permute.xlu0 %3276  ;;  %2756 = vmatmul.mubr.f32.gmra.mxu0 %v11672_v60  ;;  %v11837_v16 = vpop.permute.xlu1 %3272  ;;  %v3525_v22 = vsub.f32 %v11814_v21, %v3524_v39 }
 0x2ca   : > { %2878 = vmatmul.mubr.f32.vlgmr.msra.gmra.mxu1 %v2410_v58  ;;  %2761 = vmatprep.mubr.f32.mxu0 %v15939_v3  ;;  %v3303_v58 = vsel %vm3296_vm15, %v11765_v55, %v11797_v15  ;;  %v11921_v55 = vld [vmem:[#allocation2 + $0x28] sm:$0xff]  ;;  %v3298_v50 = vsel %vm3296_vm15, %v11821_v23, %v11834_v38 }
 0x2cb   : > { %3119 = vmatpush1.msra.mxu1 %v11519_v25  ;;  %2883 = vmatprep.mubr.f32.mxu1 %v15939_v3  ;;  %v11857_v25 = vld [vmem:[#allocation2 + $0x48] sm:$0xff] }
 0x2cc   : > { %3121 = vmatprep.subr.mxu1 %v11526_v10  ;;  %v11954_v15 = vld [vmem:[#allocation2 + $0x8] sm:$0xff] }
 0x2cd   : > { %3123 = vmatpush1.msra.mxu1 %v11531_v35  ;;  %v11849_v43 = vpop.permute.xlu0 %4239  ;;  %2764 = vmatmul.mubr.f32.gmra.mxu0 %v11682_v1  ;;  %v11852_v41 = vpop.permute.xlu1 %4241  ;;  %v3301_v1 = vsel %vm3296_vm15, %v11785_v63, %v11773_v7 }
 0x2ce   : > { %3125 = vmatprep.subr.mxu1 %v11535_v4  ;;  %2887 = vmatmul.mubr.f32.gmra.mxu1 %v2421_v46  ;;  %v4257_v10 = vmul.f32 %v11857_v25, %v11849_v43  ;;  %v4259_v35 = vmul.f32 %v11861_v59, %v11852_v41  ;;  %v3526_v4 = vand.u32 4294901760, %v3525_v22  ;;  %v4256_v24 = vmul.f32 %v11869_v53, %v11852_v41  ;;  %v10523_v46 = vld [vmem:[#allocation2 + $0x50] sm:$0xff] }
 0x2cf   : > { %3127 = vmatpush1.msra.mxu1 %v11541_v0  ;;  %2769 = vmatprep.mubr.f32.mxu0 %v15939_v3  ;;  %v4244_v0 = vsel %vm4243_vm0, %v11849_v43, %v11852_v41  ;;  %v4254_v47 = vmul.f32 %v11896_v49, %v11849_v43  ;;  %v4253_v7 = vmul.f32 %v11921_v55, %v11852_v41 }
 0x2d0   : > { %3129 = vmatprep.subr.mxu1 %v11546_v42  ;;  %4299 = vrot.lane.b32.xlu0 %v4257_v10, %s10580_s15  ;;  %v11883_v42 = vld [vmem:[#allocation2 + $0x38] sm:$0xff]  ;;  %v4252_v26 = vmul.f32 %v11888_v6, %v4244_v0  ;;  %v4258_v60 = vmul.f32 %v10523_v46, %v4244_v0  ;;  %v4251_v18 = vmul.f32 %v11934_v11, %v11849_v43 }
 0x2d1   : > { %3131 = vmatpush1.msra.mxu1 %v11555_v2  ;;  %2892 = vmatprep.mubr.f32.mxu1 %v15939_v3  ;;  %v4255_v2 = vmul.f32 %v11883_v42, %v4244_v0  ;;  %v4249_v27 = vmul.f32 %v11954_v15, %v4244_v0 }
 0x2d2   : > { %3527 = vmatprep.subr.mxu1 %v3526_v4  ;;  %4303 = vrot.lane.b32.xlu1 %v4259_v35, %s10580_s15 }
 0x2d3   : > { %2772 = vmatmul.mubr.f32.gmra.mxu0 %v11703_v30  ;;  %2896 = vmatmul.mubr.f32.gmra.mxu1 %v2432_v17  ;;  %v3300_v17 = vsel %vm3296_vm15, %v11790_v48, %v11792_v29  ;;  %v11928_v30 = vand.u32 4294901760, %v3301_v1  ;;  %v3297_v29 = vsel %vm3296_vm15, %v11837_v16, %v11821_v23  ;;  %v11969_v23 = vld [vmem:[#allocation2 + $0x10] sm:$0xff] }
 0x2d4   : > { %4297 = vrot.lane.b32.xlu0 %v4256_v24, %s10580_s15  ;;  %2777 = vmatprep.mubr.f32.mxu0 %v15939_v3  ;;  %v11938_v63 = vand.u32 4294901760, %v3300_v17  ;;  %v4250_v38 = vmul.f32 %v11969_v23, %v11852_v41  ;;  %v11976_v22 = vand.u32 4294901760, %v3297_v29  ;;  %v11989_v41 = vld [vmem:[#allocation2] sm:$0xff] }
 0x2d5   : > { %2901 = vmatprep.mubr.f32.mxu1 %v15939_v3 }
 0x2d6   : > { %4295 = vrot.lane.b32.xlu1 %v4255_v2, %s10580_s15  ;;  %v11974_v16 = vsub.f32 %v3300_v17, %v11938_v63  ;;  %v12001_v0 = vsub.f32 %v3297_v29, %v11976_v22  ;;  %v10430_v17 = vld [vmem:[%s15897_s4 + $0x80] sm:$0xff]  ;;  %v10431_v29 = vld [vmem:[%s15897_s4 + $0x88] sm:$0xff] }
 0x2d7   : > { %2780 = vmatmul.mubr.f32.gmra.mxu0 %v11723_v31  ;;  %2905 = vmatmul.mubr.f32.gmra.mxu1 %v2443_v44  ;;  %v11917_v44 = vand.u32 4294901760, %v3303_v58 }
 0x2d8   : > { %4289 = vrot.lane.b32.xlu0 %v4252_v26, %s10580_s15  ;;  %2785 = vmatprep.mubr.f32.mxu0 %v15939_v3 }
 0x2d9   : > { %2910 = vmatprep.mubr.f32.mxu1 %v15939_v3 }
 0x2da   : > { %4293 = vrot.lane.b32.xlu1 %v4254_v47, %s10580_s15 }
 0x2db   : > { %2788 = vmatmul.mubr.f32.gmra.mxu0 %v11741_v36  ;;  %2914 = vmatmul.mubr.f32.gmra.mxu1 %v2454_v32  ;;  %v3299_v32 = vsel %vm3296_vm15, %v11818_v62, %v11790_v48  ;;  %v11947_v48 = vsub.f32 %v3303_v58, %v11917_v44  ;;  %v11966_v62 = vand.u32 4294901760, %v3298_v50  ;;  %v4248_v36 = vmul.f32 %v11989_v41, %v11849_v43 }
 0x2dc   : > { %4301 = vrot.lane.b32.xlu0 %v4258_v60, %s10580_s15  ;;  %2793 = vmatprep.mubr.f32.mxu0 %v15939_v3  ;;  %v11960_v31 = vand.u32 4294901760, %v3299_v32  ;;  %v15929_v43 = vand.u32 4294901760, %v11974_v16  ;;  %v15924_v58 = vand.u32 4294901760, %v12001_v0 }
 0x2dd   : > { %2919 = vmatprep.mubr.f32.mxu1 %v15939_v3  ;;  %v3530_v10 = vand.u32 4294901760, %v11947_v48  ;;  %v11996_v24 = vsub.f32 %v3298_v50, %v11966_v62 }
 0x2de   : > { %4291 = vrot.lane.b32.xlu1 %v4253_v7, %s10580_s15  ;;  %v11985_v35 = vsub.f32 %v3299_v32, %v11960_v31  ;;  %v3549_v9 = vsub.f32 %v11974_v16, %v15929_v43  ;;  %v3567_v32 = vsub.f32 %v12001_v0, %v15924_v58 }
 0x2df   : > { %2796 = vmatmul.mubr.f32.gmra.mxu0 %v11756_v33  ;;  %2923 = vmatmul.mubr.f32.gmra.mxu1 %v2465_v57  ;;  %v11964_v57 = vsub.f32 %v3301_v1, %v11928_v30  ;;  %v3531_v2 = vsub.f32 %v11947_v48, %v3530_v10 }
 0x2e0   : > { %4287 = vrot.lane.b32.xlu0 %v4251_v18, %s10580_s15  ;;  %2928 = vmatprep.mubr.f32.mxu1 %v15939_v3  ;;  %v15927_v26 = vand.u32 4294901760, %v11985_v35  ;;  %v3314_v18 = vsel %vm1400_vm12, %v10430_v17, 0  ;;  %v10435_v17 = vld [vmem:[%s15897_s4 + $0xa8] sm:$0xff] }
 0x2e1   : > { %3035 = vmatprep.mubr.f32.mxu0 %v15939_v3  ;;  %v15930_v4 = vand.u32 4294901760, %v11964_v57 }
 0x2e2   : > { %4283 = vrot.lane.b32.xlu1 %v4249_v27, %s10580_s15  ;;  %v3555_v60 = vsub.f32 %v11985_v35, %v15927_v26  ;;  %v3568_v27 = vand.u32 4294901760, %v3567_v32 }
 0x2e3   : > { %2932 = vmatmul.mubr.f32.gmra.mxu1 %v2476_v56  ;;  %3037 = vmatmul.mubr.f32.vlgmr.msra.gmra.mxu0 %v11627_v52  ;;  %v15931_v56 = vand.u32 4294901760, %v11958_v40  ;;  %v3543_v33 = vsub.f32 %v11964_v57, %v15930_v4 }
 0x2e4   : > { %3364 = vmatpush1.msra.mxu0 %v11917_v44  ;;  %4285 = vrot.lane.b32.xlu0 %v4250_v38, %s10580_s15  ;;  %v12061_v38 = vand.u32 4294901760, %v3314_v18 }
 0x2e5   : > { %3366 = vmatprep.subr.mxu0 %v11925_v45  ;;  %2937 = vmatprep.mubr.f32.mxu1 %v15939_v3  ;;  %v3537_v47 = vsub.f32 %v11958_v40, %v15931_v56  ;;  %v3544_v7 = vand.u32 4294901760, %v3543_v33 }
 0x2e6   : > { %3368 = vmatpush1.msra.mxu0 %v11928_v30  ;;  %3042 = vmatprep.mubr.f32.mxu0 %v15939_v3 }
 0x2e7   : > { %3370 = vmatprep.subr.mxu0 %v11938_v63  ;;  %4281 = vrot.lane.b32.xlu1 %v4248_v36, %s10580_s15  ;;  %v3538_v1 = vand.u32 4294901760, %v3537_v47 }
 0x2e8   : > { %2941 = vmatmul.mubr.f32.gmra.mxu1 %v2487_v28  ;;  %3044 = vmatmul.mubr.f32.gmra.mxu0 %v11640_v19  ;;  %v15925_v28 = vand.u32 4294901760, %v11996_v24 }
 0x2e9   : > { %3372 = vmatpush1.msra.mxu0 %v11960_v31  ;;  %5277 = vrot.lane.b32.xlu0 %v10523_v46, %s10581_s16  ;;  %v3532_v46 = vand.u32 4294901760, %v3531_v2  ;;  %v10433_v2 = vld [vmem:[%s15897_s4 + $0x98] sm:$0xff] }
 0x2ea   : > { %3374 = vmatprep.subr.mxu0 %v11966_v62  ;;  %3049 = vmatprep.mubr.f32.mxu0 %v15939_v3 }
 0x2eb   : > { %3376 = vmatpush1.msra.mxu0 %v11976_v22  ;;  %3164 = vmatprep.mubr.f32.mxu1 %v15939_v3 }
 0x2ec   : > { %3685 = vmatprep.subr.mxu0 %v11814_v21  ;;  %5279 = vrot.lane.b32.xlu1 %v11861_v59, %s10581_s16  ;;  %v3561_v59 = vsub.f32 %v11996_v24, %v15925_v28 }
 0x2ed   : > { %3051 = vmatmul.mubr.f32.gmra.mxu0 %v11655_v51  ;;  %3166 = vmatmul.mubr.f32.vlgmr.msra.gmra.mxu1 %v11627_v52  ;;  %v3550_v52 = vand.u32 4294901760, %v3549_v9  ;;  %v3323_v9 = vsel %vm1400_vm12, %v10433_v2, 0 }
 0x2ee   : > { %3533 = vmatpush1.msra.mxu1 %v3532_v46  ;;  %5275 = vrot.lane.b32.xlu0 %v11857_v25, %s10581_s16  ;;  %v3556_v25 = vand.u32 4294901760, %v3555_v60  ;;  %v3562_v50 = vand.u32 4294901760, %v3561_v59  ;;  %v12112_v46 = vand.u32 4294901760, %v3323_v9 }
 0x2ef   : > { %3539 = vmatprep.subr.mxu1 %v3538_v1  ;;  %3056 = vmatprep.mubr.f32.mxu0 %v15939_v3 }
 0x2f0   : > { %3545 = vmatpush1.msra.mxu1 %v3544_v7  ;;  %3171 = vmatprep.mubr.f32.mxu1 %v15939_v3  ;;  %v12131_v7 = vsub.f32 %v3323_v9, %v12112_v46 }
 0x2f1   : > { %3551 = vmatprep.subr.mxu1 %v3550_v52  ;;  %5271 = vrot.lane.b32.xlu1 %v11883_v42, %s10581_s16  ;;  %v10432_v42 = vld [vmem:[%s15897_s4 + $0x90] sm:$0xff] }
 0x2f2   : > { %3058 = vmatmul.mubr.f32.gmra.mxu0 %v11664_v37  ;;  %3173 = vmatmul.mubr.f32.gmra.mxu1 %v11640_v19  ;;  %v3317_v19 = vsel %vm1400_vm12, %v10431_v29, 0  ;;  %v15918_v29 = vand.u32 4294901760, %v12131_v7 }
 0x2f3   : > { %3557 = vmatpush1.msra.mxu1 %v3556_v25  ;;  %5273 = vrot.lane.b32.xlu0 %v11869_v53, %s10581_s16  ;;  %v12075_v53 = vsub.f32 %v3314_v18, %v12061_v38  ;;  %v12080_v36 = vand.u32 4294901760, %v3317_v19  ;;  %v10436_v18 = vld [vmem:[%s15897_s4 + $0xb0] sm:$0xff] }
 0x2f4   : > { %3563 = vmatprep.subr.mxu1 %v3562_v50  ;;  %3063 = vmatprep.mubr.f32.mxu0 %v15939_v3 }
 0x2f5   : > { %3569 = vmatpush1.msra.mxu1 %v3568_v27  ;;  %3178 = vmatprep.mubr.f32.mxu1 %v15939_v3  ;;  %v12096_v47 = vsub.f32 %v3317_v19, %v12080_v36 }
 0x2f6   : > { %3829 = vmatprep.subr.mxu1 %v11805_v34  ;;  %5269 = vrot.lane.b32.xlu1 %v11896_v49, %s10581_s16  ;;  %v3320_v49 = vsel %vm1400_vm12, %v10432_v42, 0 }
 0x2f7   : > { %3065 = vmatmul.mubr.f32.gmra.mxu0 %v11689_v20  ;;  %3180 = vmatmul.mubr.f32.gmra.mxu1 %v11655_v51  ;;  %v15923_v51 = vand.u32 4294901760, %v12075_v53  ;;  %v12098_v33 = vand.u32 4294901760, %v3320_v49  ;;  %v15921_v60 = vand.u32 4294901760, %v12096_v47 }
 0x2f8   : > { %5265 = vrot.lane.b32.xlu0 %v11888_v6, %s10581_s16  ;;  %3070 = vmatprep.mubr.f32.mxu0 %v15939_v3 }
 0x2f9   : > { %3185 = vmatprep.mubr.f32.mxu1 %v15939_v3 }
 0x2fa   : > { %5267 = vrot.lane.b32.xlu1 %v11921_v55, %s10581_s16 }
 0x2fb   : > { %3072 = vmatmul.mubr.f32.gmra.mxu0 %v11705_v8  ;;  %3187 = vmatmul.mubr.f32.gmra.mxu1 %v11664_v37  ;;  %v10434_v37 = vld [vmem:[%s15897_s4 + $0xa0] sm:$0xff] }
 0x2fc   : > { %5263 = vrot.lane.b32.xlu0 %v11934_v11, %s10581_s16  ;;  %3077 = vmatprep.mubr.f32.mxu0 %v15939_v3  ;;  %v1504_v6 = vpop.f32.mrf.mxu0  ;;  %v3413_v11 = vsub.f32 %v12075_v53, %v15923_v51  ;;  %v3326_v1 = vsel %vm1400_vm12, %v10434_v37, 0  ;;  %v3332_v37 = vsel %vm1400_vm12, %v10436_v18, 0 }
 0x2fd   : > { %3192 = vmatprep.mubr.f32.mxu1 %v15939_v3  ;;  %v12133_v59 = vand.u32 4294901760, %v3326_v1  ;;  %v12180_v18 = vand.u32 4294901760, %v3332_v37 }
 0x2fe   : > { %5259 = vrot.lane.b32.xlu1 %v11954_v15, %s10581_s16  ;;  %v1506_v55 = vpop.f32.mrf.mxu0  ;;  %v12119_v15 = vsub.f32 %v3320_v49, %v12098_v33 }
 0x2ff   : > { %3079 = vmatmul.mubr.f32.gmra.mxu0 %v11725_v54  ;;  %3194 = vmatmul.mubr.f32.gmra.mxu1 %v11689_v20  ;;  %v12150_v27 = vsub.f32 %v3326_v1, %v12133_v59  ;;  %v3446_v1 = vsub.f32 %v12131_v7, %v15918_v29 }
 0x300   : > { %5261 = vrot.lane.b32.xlu0 %v11969_v23, %s10581_s16  ;;  %3084 = vmatprep.mubr.f32.mxu0 %v15939_v3  ;;  %v3414_v23 = vand.u32 4294901760, %v3413_v11  ;;  %v15919_v52 = vand.u32 4294901760, %v12119_v15 }
 0x301   : > { %3199 = vmatprep.mubr.f32.mxu1 %v15939_v3 }
 0x302   : > { %5257 = vrot.lane.b32.xlu1 %v11989_v41, %s10581_s16  ;;  %v1515_v20 = vpop.f32.mrf.mxu0  ;;  %v3424_v41 = vsub.f32 %v12096_v47, %v15921_v60  ;;  %v3435_v49 = vsub.f32 %v12119_v15, %v15919_v52 }
 0x303   : > { %3086 = vmatmul.mubr.f32.gmra.mxu0 %v11743_v5  ;;  %3201 = vmatmul.mubr.f32.gmra.mxu1 %v11705_v8  ;;  %v3329_v8 = vsel %vm1400_vm12, %v10435_v17, 0  ;;  %v15920_v17 = vand.u32 4294901760, %v12150_v27 }
 0x304   : > { %6224 = vrot.lane.b32.xlu0 %v11145_v14, %s10582_s9  ;;  %3206 = vmatprep.mubr.f32.mxu1 %v15939_v3  ;;  %v1517_v32 = vpop.f32.mrf.mxu0  ;;  %v3425_v19 = vand.u32 4294901760, %v3424_v41 }
 0x305   : > { %3409 = vmatprep.mubr.f32.mxu0 %v15939_v3  ;;  %v3457_v29 = vsub.f32 %v12150_v27, %v15920_v17 }
 0x306   : > { %6226 = vrot.lane.b32.xlu1 %v11157_v13, %s10582_s9 }
 0x307   : > { %3208 = vmatmul.mubr.f32.gmra.mxu1 %v11725_v54  ;;  %3415 = vmatmul.mubr.f32.vlgmr.msra.gmra.mxu0 %v3414_v23  ;;  %v1526_v25 = vpop.f32.mrf.mxu0  ;;  %v1693_v50 = vpop.f32.mrf.mxu1  ;;  %v12159_v54 = vand.u32 4294901760, %v3329_v8  ;;  %v3436_v23 = vand.u32 4294901760, %v3435_v49 }
 0x308   : > { %3688 = vmatpush1.msra.mxu0 %v11947_v48  ;;  %3213 = vmatprep.mubr.f32.mxu1 %v15939_v3  ;;  %v12154_v42 = vadd.f32 %v1693_v50, %v1504_v6  ;;  %v10437_v6 = vld [vmem:[%s15897_s4 + $0xb8] sm:$0xff] }
 0x309   : > { %3691 = vmatprep.subr.mxu0 %v11958_v40  ;;  %3420 = vmatprep.mubr.f32.mxu0 %v15939_v3  ;;  %v1528_v2 = vpop.f32.mrf.mxu0  ;;  %v1695_v9 = vpop.f32.mrf.mxu1  ;;  %v12178_v41 = vsub.f32 %v3329_v8, %v12159_v54  ;;  %v3335_v50 = vsel %vm1400_vm12, %v10437_v6, 0  ;;  %v3447_v8 = vand.u32 4294901760, %v3446_v1 }
 0x30a   : > { %3694 = vmatpush1.msra.mxu0 %v11964_v57  ;;  %v12165_v11 = vadd.f32 %v1695_v9, %v1506_v55  ;;  %v12201_v52 = vand.u32 4294901760, %v3335_v50 }
 0x30b   : > { %3697 = vmatprep.subr.mxu0 %v11974_v16  ;;  %3215 = vmatmul.mubr.f32.gmra.mxu1 %v11743_v5 }
 0x30c   : > { %3426 = vmatmul.mubr.f32.gmra.mxu0 %v3425_v19  ;;  %3602 = vmatprep.mubr.f32.mxu1 %v15939_v3  ;;  %v1537_v55 = vpop.f32.mrf.mxu0  ;;  %v12216_v60 = vsub.f32 %v3335_v50, %v12201_v52 }
 0x30d   : > { %3700 = vmatpush1.msra.mxu0 %v11985_v35  ;;  %3431 = vmatprep.mubr.f32.mxu0 %v15939_v3  ;;  %v1700_v5 = vpop.f32.mrf.mxu1 }
 0x30e   : > { %3703 = vmatprep.subr.mxu0 %v11996_v24  ;;  %v12186_v9 = vadd.f32 %v1700_v5, %v1515_v20  ;;  %v1539_v19 = vpop.f32.mrf.mxu0  ;;  %v15922_v20 = vand.u32 4294901760, %v12178_v41  ;;  %v12199_v5 = vsub.f32 %v3332_v37, %v12180_v18  ;;  %v3458_v37 = vand.u32 4294901760, %v3457_v29 }
 0x30f   : > { %3706 = vmatpush1.msra.mxu0 %v12001_v0  ;;  %3604 = vmatmul.mubr.f32.vlgmr.msra.gmra.mxu1 %v12061_v38  ;;  %v1702_v49 = vpop.f32.mrf.mxu1 }
 0x310   : > { %3976 = vmatprep.subr.mxu0 %v3524_v39  ;;  %3437 = vmatmul.mubr.f32.gmra.mxu0 %v3436_v23  ;;  %v12195_v6 = vadd.f32 %v1702_v49, %v1517_v32  ;;  %v3468_v49 = vsub.f32 %v12178_v41, %v15922_v20  ;;  %v15926_v17 = vand.u32 4294901760, %v12199_v5 }
 0x311   : > { %3831 = vmatpush1.msra.mxu1 %v11917_v44  ;;  %3442 = vmatprep.mubr.f32.mxu0 %v15939_v3  ;;  %v1548_v1 = vpop.f32.mrf.mxu0 }
 0x312   : > { %3833 = vmatprep.subr.mxu1 %v11925_v45  ;;  %3609 = vmatprep.mubr.f32.mxu1 %v15939_v3  ;;  %v1707_v21 = vpop.f32.mrf.mxu1  ;;  %v3469_v50 = vand.u32 4294901760, %v3468_v49 }
 0x313   : > { %3835 = vmatpush1.msra.mxu1 %v11928_v30  ;;  %v12208_v39 = vadd.f32 %v1707_v21, %v1526_v25  ;;  %v1550_v32 = vpop.f32.mrf.mxu0 }
 0x314   : > { %3837 = vmatprep.subr.mxu1 %v11938_v63  ;;  %3448 = vmatmul.mubr.f32.gmra.mxu0 %v3447_v8  ;;  %v1709_v23 = vpop.f32.mrf.mxu1 }
 0x315   : > { %3611 = vmatmul.mubr.f32.gmra.mxu1 %v12080_v36  ;;  %3453 = vmatprep.mubr.f32.mxu0 %v15939_v3  ;;  %v12220_v25 = vadd.f32 %v1709_v23, %v1528_v2  ;;  %v1559_v21 = vpop.f32.mrf.mxu0  ;;  %v3479_v2 = vsub.f32 %v12199_v5, %v15926_v17  ;;  %v15928_v23 = vand.u32 4294901760, %v12216_v60 }
 0x316   : > { %3839 = vmatpush1.msra.mxu1 %v11960_v31  ;;  %3616 = vmatprep.mubr.f32.mxu1 %v15939_v3  ;;  %v1714_v29 = vpop.f32.mrf.mxu1 }
 0x317   : > { %3841 = vmatprep.subr.mxu1 %v11966_v62  ;;  %v12225_v8 = vadd.f32 %v1714_v29, %v1537_v55  ;;  %v1561_v20 = vpop.f32.mrf.mxu0  ;;  %v3480_v28 = vand.u32 4294901760, %v3479_v2 }
 0x318   : > { %3843 = vmatpush1.msra.mxu1 %v11976_v22  ;;  %3459 = vmatmul.mubr.f32.gmra.mxu0 %v3458_v37  ;;  %v1716_v51 = vpop.f32.mrf.mxu1 }
 0x319   : > { %4119 = vmatprep.subr.mxu1 %v11805_v34  ;;  %3618 = vmatmul.mubr.f32.gmra.mxu1 %v12098_v33  ;;  %v12234_v58 = vadd.f32 %v1716_v51, %v1539_v19  ;;  %v1570_v55 = vpop.f32.mrf.mxu0  ;;  %v3490_v34 = vsub.f32 %v12216_v60, %v15928_v23 }
 0x31a   : > { %3464 = vmatprep.mubr.f32.mxu0 %v15939_v3  ;;  %3623 = vmatprep.mubr.f32.mxu1 %v15939_v3  ;;  %v1721_v37 = vpop.f32.mrf.mxu1 }
 0x31b   : > { %v12238_v49 = vadd.f32 %v1721_v37, %v1548_v1  ;;  %v1572_v29 = vpop.f32.mrf.mxu0 }
 0x31c   : > { %3470 = vmatmul.mubr.f32.gmra.mxu0 %v3469_v50  ;;  %v1723_v17 = vpop.f32.mrf.mxu1  ;;  %v3491_v50 = vand.u32 4294901760, %v3490_v34 }
 0x31d   : > { %3625 = vmatmul.mubr.f32.gmra.mxu1 %v12112_v46  ;;  %3475 = vmatprep.mubr.f32.mxu0 %v15939_v3  ;;  %v12245_v51 = vadd.f32 %v1723_v17, %v1550_v32  ;;  %v1581_v19 = vpop.f32.mrf.mxu0 }
 0x31e   : > { %3630 = vmatprep.mubr.f32.mxu1 %v15939_v3  ;;  %v1728_v26 = vpop.f32.mrf.mxu1 }
 0x31f   : > { %v12248_v1 = vadd.f32 %v1728_v26, %v1559_v21  ;;  %v1583_v37 = vpop.f32.mrf.mxu0 }
 0x320   : > { %3481 = vmatmul.mubr.f32.gmra.mxu0 %v3480_v28  ;;  %v1730_v2 = vpop.f32.mrf.mxu1 }
 0x321   : > { %3632 = vmatmul.mubr.f32.gmra.mxu1 %v12133_v59  ;;  %3486 = vmatprep.mubr.f32.mxu0 %v15939_v3  ;;  %v12252_v23 = vadd.f32 %v1730_v2, %v1561_v20  ;;  %v1831_v43 = vpop.f32.mrf.mxu0 }
 0x322   : > { %3637 = vmatprep.mubr.f32.mxu1 %v15939_v3  ;;  %v1735_v17 = vpop.f32.mrf.mxu1  ;;  %v1832_v32 = vadd.f32 %v1831_v43, %v12154_v42 }
 0x323   : > { %v12256_v4 = vadd.f32 %v1735_v17, %v1570_v55  ;;  %v1833_v26 = vpop.f32.mrf.mxu0  ;;  %v16070_v17 = vand.u32 4294901760, %v11958_v40 }
 0x324   : > { %3492 = vmatmul.mubr.f32.gmra.mxu0 %v3491_v50  ;;  %v1737_v21 = vpop.f32.mrf.mxu1  ;;  %v1834_v28 = vadd.f32 %v1833_v26, %v12165_v11  ;;  %v16071_v26 = vand.u32 4294901760, %v11964_v57 }
 0x325   : > { %3639 = vmatmul.mubr.f32.gmra.mxu1 %v12159_v54  ;;  %3739 = vmatprep.mubr.f32.mxu0 %v15939_v3  ;;  %v12261_v34 = vadd.f32 %v1737_v21, %v1572_v29  ;;  %v1839_v20 = vpop.f32.mrf.mxu0 }
 0x326   : > { %3644 = vmatprep.mubr.f32.mxu1 %v15939_v3  ;;  %v1742_v2 = vpop.f32.mrf.mxu1  ;;  %v1840_v56 = vadd.f32 %v1839_v20, %v12186_v9 }
 0x327   : > { %v12265_v43 = vadd.f32 %v1742_v2, %v1581_v19  ;;  %v1841_v42 = vpop.f32.mrf.mxu0  ;;  %v16075_v2 = vand.u32 4294901760, %v12001_v0 }
 0x328   : > { %3742 = vmatmul.mubr.f32.vlgmr.msra.gmra.mxu0 %v12075_v53  ;;  %v1744_v55 = vpop.f32.mrf.mxu1  ;;  %v1842_v11 = vadd.f32 %v1841_v42, %v12195_v6 }
 0x329   : > { %3646 = vmatmul.mubr.f32.gmra.mxu1 %v12180_v18  ;;  %3980 = vmatpush1.msra.mxu0 %v3530_v10  ;;  %v12272_v29 = vadd.f32 %v1744_v55, %v1583_v37  ;;  %v1847_v50 = vpop.f32.mrf.mxu0  ;;  %v16072_v10 = vand.u32 4294901760, %v11974_v16 }
 0x32a   : > { %3984 = vmatprep.subr.mxu0 %v16070_v17  ;;  %3651 = vmatprep.mubr.f32.mxu1 %v15939_v3  ;;  %v1848_v9 = vadd.f32 %v1847_v50, %v12208_v39  ;;  %v1969_v19 = vpop.f32.mrf.mxu1  ;;  %v16073_v39 = vand.u32 4294901760, %v11985_v35 }
 0x32b   : > { %3988 = vmatpush1.msra.mxu0 %v16071_v26  ;;  %3747 = vmatprep.mubr.f32.mxu0 %v15939_v3  ;;  %v12281_v6 = vadd.f32 %v1969_v19, %v1832_v32  ;;  %v1849_v48 = vpop.f32.mrf.mxu0  ;;  %v16074_v32 = vand.u32 4294901760, %v11996_v24  ;;  %v16076_v24 = vand.u32 4294901760, %v12075_v53 }
 0x32c   : > { %3992 = vmatprep.subr.mxu0 %v16072_v10  ;;  %3750 = vmatmul.mubr.f32.gmra.mxu0 %v12096_v47  ;;  %v1850_v40 = vadd.f32 %v1849_v48, %v12220_v25  ;;  %v1971_v37 = vpop.f32.mrf.mxu1 }
 0x32d   : > { %3653 = vmatmul.mubr.f32.gmra.mxu1 %v12201_v52  ;;  %3996 = vmatpush1.msra.mxu0 %v16073_v39  ;;  %v12290_v57 = vadd.f32 %v1971_v37, %v1834_v28  ;;  %v1855_v21 = vpop.f32.mrf.mxu0 }
 0x32e   : > { %4000 = vmatprep.subr.mxu0 %v16074_v32  ;;  %3755 = vmatprep.mubr.f32.mxu0 %v15939_v3  ;;  %v1856_v16 = vadd.f32 %v1855_v21, %v12225_v8  ;;  %v1978_v20 = vpop.f32.mrf.mxu1 }
 0x32f   : > { %4004 = vmatpush1.msra.mxu0 %v16075_v2  ;;  %3876 = vmatprep.mubr.f32.mxu1 %v15939_v3  ;;  %v12299_v25 = vadd.f32 %v1978_v20, %v1840_v56  ;;  %v1857_v35 = vpop.f32.mrf.mxu0  ;;  %v16080_v20 = vand.u32 4294901760, %v12150_v27 }
 0x330   : > { %3758 = vmatmul.mubr.f32.gmra.mxu0 %v12119_v15  ;;  %v1858_v28 = vadd.f32 %v1857_v35, %v12234_v58  ;;  %v1980_v42 = vpop.f32.mrf.mxu1 }
 0x331   : > { %3880 = vmatmul.mubr.f32.vlgmr.msra.gmra.mxu1 %v16076_v24  ;;  %3763 = vmatprep.mubr.f32.mxu0 %v15939_v3  ;;  %v12306_v8 = vadd.f32 %v1980_v42, %v1842_v11  ;;  %v1863_v55 = vpop.f32.mrf.mxu0 }
 0x332   : > { %4121 = vmatpush1.msra.mxu1 %v11917_v44  ;;  %3885 = vmatprep.mubr.f32.mxu1 %v15939_v3  ;;  %v1864_v56 = vadd.f32 %v1863_v55, %v12238_v49  ;;  %v1987_v0 = vpop.f32.mrf.mxu1  ;;  %v16077_v44 = vand.u32 4294901760, %v12096_v47 }
 0x333   : > { %4123 = vmatprep.subr.mxu1 %v11925_v45  ;;  %v12312_v50 = vadd.f32 %v1987_v0, %v1848_v9  ;;  %v1865_v58 = vpop.f32.mrf.mxu0 }
 0x334   : > { %4125 = vmatpush1.msra.mxu1 %v11928_v30  ;;  %3766 = vmatmul.mubr.f32.gmra.mxu0 %v12131_v7  ;;  %v1866_v53 = vadd.f32 %v1865_v58, %v12245_v51  ;;  %v1989_v11 = vpop.f32.mrf.mxu1  ;;  %v16081_v58 = vand.u32 4294901760, %v12178_v41 }
 0x335   : > { %4127 = vmatprep.subr.mxu1 %v11938_v63  ;;  %3889 = vmatmul.mubr.f32.gmra.mxu1 %v16077_v44  ;;  %v12320_v17 = vadd.f32 %v1989_v11, %v1850_v40  ;;  %v1871_v49 = vpop.f32.mrf.mxu0 }
 0x336   : > { %4129 = vmatpush1.msra.mxu1 %v11960_v31  ;;  %3771 = vmatprep.mubr.f32.mxu0 %v15939_v3  ;;  %v1872_v45 = vadd.f32 %v1871_v49, %v12248_v1  ;;  %v1996_v30 = vpop.f32.mrf.mxu1  ;;  %v16078_v31 = vand.u32 4294901760, %v12119_v15  ;;  %v16079_v15 = vand.u32 4294901760, %v12131_v7  ;;  %v10438_v7 = vld [vmem:[%s15897_s4 + $0xc0] sm:$0xff] }
 0x337   : > { %4131 = vmatprep.subr.mxu1 %v11966_v62  ;;  %3894 = vmatprep.mubr.f32.mxu1 %v15939_v3  ;;  %v12327_v51 = vadd.f32 %v1996_v30, %v1856_v16  ;;  %v1873_v63 = vpop.f32.mrf.mxu0  ;;  %v4323_v55 = vsel %vm1400_vm12, %v10438_v7, 0 }
 0x338   : > { %4133 = vmatpush1.msra.mxu1 %v11976_v22  ;;  %3774 = vmatmul.mubr.f32.gmra.mxu0 %v12150_v27  ;;  %v1874_v47 = vadd.f32 %v1873_v63, %v12252_v23  ;;  %v1998_v9 = vpop.f32.mrf.mxu1 }
 0x339   : > { %3898 = vmatmul.mubr.f32.gmra.mxu1 %v16078_v31  ;;  %3779 = vmatprep.mubr.f32.mxu0 %v15939_v3  ;;  %v12335_v1 = vadd.f32 %v1998_v9, %v1858_v28  ;;  %v1879_v62 = vpop.f32.mrf.mxu0  ;;  %v16083_v9 = vand.u32 4294901760, %v12199_v5 }
 0x33a   : > { %3903 = vmatprep.mubr.f32.mxu1 %v15939_v3  ;;  %v1880_v19 = vadd.f32 %v1879_v62, %v12256_v4  ;;  %v2005_v26 = vpop.f32.mrf.mxu1 }
 0x33b   : > { %v12339_v48 = vadd.f32 %v2005_v26, %v1864_v56  ;;  %v1881_v22 = vpop.f32.mrf.mxu0 }
 0x33c   : > { %3782 = vmatmul.mubr.f32.gmra.mxu0 %v12178_v41  ;;  %v1882_v23 = vadd.f32 %v1881_v22, %v12261_v34  ;;  %v2007_v10 = vpop.f32.mrf.mxu1 }
 0x33d   : > { %3907 = vmatmul.mubr.f32.gmra.mxu1 %v16079_v15  ;;  %3787 = vmatprep.mubr.f32.mxu0 %v15939_v3  ;;  %v12346_v40 = vadd.f32 %v2007_v10, %v1866_v53  ;;  %v1887_v37 = vpop.f32.mrf.mxu0 }
 0x33e   : > { %3912 = vmatprep.mubr.f32.mxu1 %v15939_v3  ;;  %v1888_v4 = vadd.f32 %v1887_v37, %v12265_v43  ;;  %v2014_v39 = vpop.f32.mrf.mxu1 }
 0x33f   : > { %v12350_v21 = vadd.f32 %v2014_v39, %v1872_v45  ;;  %v1889_v32 = vpop.f32.mrf.mxu0  ;;  %v12376_v45 = vand.u32 4294901760, %v4323_v55 }
 0x340   : > { %3790 = vmatmul.mubr.f32.gmra.mxu0 %v12199_v5  ;;  %v1890_v34 = vadd.f32 %v1889_v32, %v12272_v29  ;;  %v2016_v16 = vpop.f32.mrf.mxu1 }
 0x341   : > { %3916 = vmatmul.mubr.f32.gmra.mxu1 %v16080_v20  ;;  %3795 = vmatprep.mubr.f32.mxu0 %v15939_v3  ;;  %v12360_v2 = vadd.f32 %v2016_v16, %v1874_v47  ;;  %v2128_v43 = vpop.f32.mrf.mxu0  ;;  %16082 = vst [vmem:[#allocation7_spill] sm:$0xff] %v12376_v45  ;;  %v12394_v5 = vsub.f32 %v4323_v55, %v12376_v45 }
 0x342   : > { %3921 = vmatprep.mubr.f32.mxu1 %v15939_v3  ;;  %v2023_v35 = vpop.f32.mrf.mxu1  ;;  %v2129_v28 = vadd.f32 %v2128_v43, %v12281_v6  ;;  %v4300_v42 = vpop.permute.xlu0 %4299 }
 0x343   : > { %v12364_v29 = vadd.f32 %v2023_v35, %v1880_v19  ;;  %v2130_v24 = vpop.f32.mrf.mxu0  ;;  %v10439_v19 = vld [vmem:[%s15897_s4 + $0xc8] sm:$0xff] }
 0x344   : > { %3798 = vmatmul.mubr.f32.gmra.mxu0 %v12216_v60  ;;  %v4304_v27 = vpop.permute.xlu1 %4303  ;;  %v2025_v56 = vpop.f32.mrf.mxu1  ;;  %v2131_v0 = vadd.f32 %v2130_v24, %v12290_v57  ;;  %v4326_v32 = vsel %vm1400_vm12, %v10439_v19, 0 }
 0x345   : > { %3925 = vmatmul.mubr.f32.gmra.mxu1 %v16081_v58  ;;  %4037 = vmatprep.mubr.f32.mxu0 %v15939_v3  ;;  %v12372_v53 = vadd.f32 %v2025_v56, %v1882_v23  ;;  %v2135_v6 = vpop.f32.mrf.mxu0 }
 0x346   : > { %3930 = vmatprep.mubr.f32.mxu1 %v15939_v3  ;;  %v2032_v11 = vpop.f32.mrf.mxu1  ;;  %v2136_v44 = vadd.f32 %v2135_v6, %v12299_v25  ;;  %v4298_v49 = vpop.permute.xlu0 %4297 }
 0x347   : > { %v12378_v30 = vadd.f32 %v2032_v11, %v1888_v4  ;;  %v2137_v57 = vpop.f32.mrf.mxu0 }
 0x348   : > { %4039 = vmatmul.mubr.f32.vlgmr.msra.gmra.mxu0 %v12061_v38  ;;  %v4296_v41 = vpop.permute.xlu1 %4295  ;;  %v2034_v63 = vpop.f32.mrf.mxu1  ;;  %v2138_v47 = vadd.f32 %v2137_v57, %v12306_v8 }
 0x349   : > { %3934 = vmatmul.mubr.f32.gmra.mxu1 %v16083_v9  ;;  %4044 = vmatprep.mubr.f32.mxu0 %v15939_v3  ;;  %v4311_v25 = vsel %vm4305_vm1, %v4296_v41, %v4298_v49  ;;  %v12386_v31 = vadd.f32 %v2034_v63, %v1890_v34  ;;  %v2142_v62 = vpop.f32.mrf.mxu0 }
 0x34a   : > { %3939 = vmatprep.mubr.f32.mxu1 %v15939_v3  ;;  %v2143_v26 = vadd.f32 %v2142_v62, %v12312_v50  ;;  %v2257_v22 = vpop.f32.mrf.mxu1  ;;  %v4290_v8 = vpop.permute.xlu0 %4289  ;;  %v12399_v15 = vand.u32 4294901760, %v4311_v25  ;;  %v16084_v50 = vand.u32 4294901760, %v12216_v60 }
 0x34b   : > { %v12396_v23 = vadd.f32 %v2257_v22, %v2129_v28  ;;  %v2144_v10 = vpop.f32.mrf.mxu0  ;;  %v15932_v28 = vand.u32 4294901760, %v12394_v5 }
 0x34c   : > { %4046 = vmatmul.mubr.f32.gmra.mxu0 %v12080_v36  ;;  %v4294_v37 = vpop.permute.xlu1 %4293  ;;  %v2145_v4 = vadd.f32 %v2144_v10, %v12320_v17  ;;  %v2259_v39 = vpop.f32.mrf.mxu1  ;;  %v12421_v58 = vsub.f32 %v4311_v25, %v12399_v15 }
 0x34d   : > { %3943 = vmatmul.mubr.f32.gmra.mxu1 %v16084_v50  ;;  %4051 = vmatprep.mubr.f32.mxu0 %v15939_v3  ;;  %v4310_v34 = vsel %vm4305_vm1, %v4294_v37, %v4296_v41  ;;  %v12407_v16 = vadd.f32 %v2259_v39, %v2131_v0  ;;  %v2149_v7 = vpop.f32.mrf.mxu0  ;;  %v12418_v0 = vand.u32 4294901760, %v4326_v32  ;;  %v10440_v39 = vld [vmem:[%s15897_s4 + $0xd0] sm:$0xff] }
 0x34e   : > { %4166 = vmatprep.mubr.f32.mxu1 %v15939_v3  ;;  %v12410_v20 = vand.u32 4294901760, %v4310_v34  ;;  %v2150_v43 = vadd.f32 %v2149_v7, %v12327_v51  ;;  %v2264_v17 = vpop.f32.mrf.mxu1  ;;  %v4302_v35 = vpop.permute.xlu0 %4301 }
 0x34f   : > { %v12414_v24 = vadd.f32 %v2264_v17, %v2136_v44  ;;  %v4312_v60 = vsel %vm4305_vm1, %v4300_v42, %v4302_v35  ;;  %v4313_v55 = vsel %vm4305_vm1, %v4302_v35, %v4304_v27  ;;  %v2151_v56 = vpop.f32.mrf.mxu0  ;;  %16085 = vst [vmem:[#allocation8_spill] sm:$0xff] %v12418_v0  ;;  %v12458_v37 = vsub.f32 %v4326_v32, %v12418_v0 }
 0x350   : > { %4053 = vmatmul.mubr.f32.gmra.mxu0 %v12098_v33  ;;  %v12424_v6 = vand.u32 4294901760, %v4313_v55  ;;  %v12426_v51 = vand.u32 4294901760, %v4312_v60  ;;  %v4292_v11 = vpop.permute.xlu1 %4291  ;;  %v2152_v44 = vadd.f32 %v2151_v56, %v12335_v1  ;;  %v2266_v49 = vpop.f32.mrf.mxu1  ;;  %v12431_v42 = vsub.f32 %v4310_v34, %v12410_v20 }
 0x351   : > { %4168 = vmatmul.mubr.f32.vlgmr.msra.gmra.mxu1 %v12061_v38  ;;  %4058 = vmatprep.mubr.f32.mxu0 %v15939_v3  ;;  %v4309_v27 = vsel %vm4305_vm1, %v4290_v8, %v4292_v11  ;;  %v12435_v57 = vadd.f32 %v2266_v49, %v2138_v47  ;;  %v2156_v41 = vpop.f32.mrf.mxu0  ;;  %v12450_v47 = vsub.f32 %v12394_v5, %v15932_v28  ;;  %v15935_v32 = vand.u32 4294901760, %v12421_v58 }
 0x352   : > { %4173 = vmatprep.mubr.f32.mxu1 %v15939_v3  ;;  %v12439_v63 = vsub.f32 %v4313_v55, %v12424_v6  ;;  %v12442_v1 = vsub.f32 %v4312_v60, %v12426_v51  ;;  %v12444_v9 = vand.u32 4294901760, %v4309_v27  ;;  %v2271_v38 = vpop.f32.mrf.mxu1  ;;  %4371 = vmatprep.subr.mxu0 %v12424_v6  ;;  %v4288_v25 = vpop.permute.xlu0 %4287  ;;  %v2157_v62 = vadd.f32 %v2156_v41, %v12339_v48 }
 0x353   : > { %v12453_v19 = vadd.f32 %v2271_v38, %v2143_v26  ;;  %v4308_v22 = vsel %vm4305_vm1, %v4288_v25, %v4290_v8  ;;  %4373 = vmatpush1.msra.mxu0 %v12426_v51  ;;  %v2158_v10 = vpop.f32.mrf.mxu0  ;;  %v15934_v7 = vand.u32 4294901760, %v12431_v42  ;;  %v12491_v49 = vsel %vm1400_vm12, %v10440_v39, 0 }
 0x354   : > { %4060 = vmatmul.mubr.f32.gmra.mxu0 %v12112_v46  ;;  %v15933_v50 = vand.u32 4294901760, %v12442_v1  ;;  %v12466_v48 = vsub.f32 %v4309_v27, %v12444_v9  ;;  %v12468_v26 = vand.u32 4294901760, %v4308_v22  ;;  %v4284_v8 = vpop.permute.xlu1 %4283  ;;  %v2273_v34 = vpop.f32.mrf.mxu1  ;;  %4375 = vmatprep.subr.mxu0 %v12399_v15  ;;  %v2159_v17 = vadd.f32 %v2158_v10, %v12346_v40 }
 0x355   : > { %4175 = vmatmul.mubr.f32.gmra.mxu1 %v12080_v36  ;;  %4065 = vmatprep.mubr.f32.mxu0 %v15939_v3  ;;  %v12476_v35 = vadd.f32 %v2273_v34, %v2145_v4  ;;  %v2163_v60 = vpop.f32.mrf.mxu0  ;;  %v15936_v55 = vand.u32 4294901760, %v12439_v63 }
 0x356   : > { %v4540_v56 = vsub.f32 %v12442_v1, %v15933_v50  ;;  %4180 = vmatprep.mubr.f32.mxu1 %v15939_v3  ;;  %v12484_v11 = vsub.f32 %v4308_v22, %v12468_v26  ;;  %4377 = vmatpush1.msra.mxu0 %v12410_v20  ;;  %v12488_v36 = vadd.f32 %v2163_v60, %v12350_v21  ;;  %v2278_v40 = vpop.f32.mrf.mxu1  ;;  %v4286_v4 = vpop.permute.xlu0 %4285  ;;  %v15937_v22 = vand.u32 4294901760, %v12466_v48 }
 0x357   : > { %v12493_v27 = vadd.f32 %v2278_v40, %v2150_v43  ;;  %4379 = vmatprep.subr.mxu0 %v12444_v9  ;;  %v4307_v41 = vsel %vm4305_vm1, %v4284_v8, %v4286_v4  ;;  %v2165_v38 = vpop.f32.mrf.mxu0  ;;  %v4534_v25 = vsub.f32 %v12439_v63, %v15936_v55  ;;  %v4552_v60 = vsub.f32 %v12431_v42, %v15934_v7 }
 0x358   : > { %4067 = vmatmul.mubr.f32.gmra.mxu0 %v12133_v59  ;;  %v15938_v21 = vand.u32 4294901760, %v12484_v11  ;;  %v12503_v10 = vand.u32 4294901760, %v4307_v41  ;;  %v12506_v43 = vadd.f32 %v2165_v38, %v12360_v2  ;;  %v2280_v39 = vpop.f32.mrf.mxu1  ;;  %v4541_v34 = vand.u32 4294901760, %v4540_v56  ;;  %v10441_v56 = vld [vmem:[%s15897_s4 + $0xd8] sm:$0xff] }
 0x359   : > { %4182 = vmatmul.mubr.f32.gmra.mxu1 %v12098_v33  ;;  %4072 = vmatprep.mubr.f32.mxu0 %v15939_v3  ;;  %v4282_v40 = vpop.permute.xlu1 %4281  ;;  %v12513_v4 = vadd.f32 %v2280_v39, %v2152_v44  ;;  %v2170_v28 = vpop.f32.mrf.mxu0  ;;  %v4535_v50 = vand.u32 4294901760, %v4534_v25  ;;  %v4546_v2 = vsub.f32 %v12421_v58, %v15935_v32  ;;  %v4558_v25 = vsub.f32 %v12466_v48, %v15937_v22 }
 0x35a   : > { %4187 = vmatprep.mubr.f32.mxu1 %v15939_v3  ;;  %v12523_v38 = vsub.f32 %v4307_v41, %v12503_v10  ;;  %4381 = vmatpush1.msra.mxu0 %v12468_v26  ;;  %v4306_v33 = vsel %vm4305_vm1, %v4282_v40, %v4284_v8  ;;  %v2285_v44 = vpop.f32.mrf.mxu1  ;;  %v4564_v39 = vsub.f32 %v12484_v11, %v15938_v21  ;;  %v12547_v3 = vand.u32 4294901760, %v12491_v49 }
 0x35b   : > { %v12533_v7 = vand.u32 4294901760, %v4306_v33  ;;  %v2171_v32 = vadd.f32 %v2170_v28, %v12364_v29  ;;  %v12536_v41 = vadd.f32 %v2285_v44, %v2157_v62  ;;  %4536 = vmatprep.subr.mxu1 %v4535_v50  ;;  %v12538_v55 = vpop.permute.xlu0 %5277  ;;  %4383 = vmatprep.subr.mxu0 %v12503_v10  ;;  %v2172_v8 = vpop.f32.mrf.mxu0  ;;  %v4332_v29 = vsel %vm1400_vm12, %v10441_v56, 0 }
 0x35c   : > { %4074 = vmatmul.mubr.f32.gmra.mxu0 %v12159_v54  ;;  %4542 = vmatpush1.msra.mxu1 %v4541_v34  ;;  %v12543_v40 = vadd.f32 %v2172_v8, %v12372_v53  ;;  %v2287_v22 = vpop.f32.mrf.mxu1  ;;  %16086 = vst [vmem:[#allocation9_spill] sm:$0xff] %v12547_v3  ;;  %v16087_v62 = vmov 0.0   ;;  %v4547_v34 = vand.u32 4294901760, %v4546_v2  ;;  %v10442_v8 = vld [vmem:[%s15897_s4 + $0xe0] sm:$0xff]  ;;  %v4553_v56 = vand.u32 4294901760, %v4552_v60 }
 0x35d   : > { %4189 = vmatmul.mubr.f32.gmra.mxu1 %v12112_v46  ;;  %v12552_v28 = vsub.f32 %v4306_v33, %v12533_v7  ;;  %4079 = vmatprep.mubr.f32.mxu0 %v16087_v62  ;;  %v12555_v50 = vadd.f32 %v2287_v22, %v2159_v17  ;;  %v2177_v53 = vpop.f32.mrf.mxu0  ;;  %v4559_v17 = vand.u32 4294901760, %v4558_v25  ;;  %v16088_v22 = vand.u32 4294901760, %v12523_v38 }
 0x35e   : > { %4194 = vmatprep.mubr.f32.mxu1 %v16087_v62  ;;  %4385 = vmatpush1.msra.mxu0 %v12533_v7  ;;  %v12563_v46 = vpop.permute.xlu1 %5279  ;;  %v2178_v33 = vadd.f32 %v2177_v53, %v12378_v30  ;;  %v2292_v21 = vpop.f32.mrf.mxu1  ;;  %v4565_v14 = vand.u32 4294901760, %v4564_v39  ;;  %v12574_v12 = vand.u32 4294901760, %v4332_v29 }
 0x35f   : > { %v4570_v2 = vsub.f32 %v12523_v38, %v16088_v22  ;;  %v15945_v44 = vand.u32 4294901760, %v12552_v28  ;;  %4548 = vmatprep.subr.mxu1 %v4547_v34  ;;  %4694 = vmatprep.subr.mxu0 %v12439_v63  ;;  %v12572_v13 = vadd.f32 %v2292_v21, %v12488_v36  ;;  %v2179_v61 = vpop.f32.mrf.mxu0  ;;  %v12580_v34 = vsub.f32 %v12491_v49, %v12547_v3 }
 0x360   : > { %4081 = vmatmul.mubr.f32.gmra.mxu0 %v12180_v18  ;;  %4554 = vmatpush1.msra.mxu1 %v4553_v56  ;;  %v5276_v30 = vpop.permute.xlu0 %5275  ;;  %v2180_v60 = vadd.f32 %v2179_v61, %v12386_v31  ;;  %v2294_v25 = vpop.f32.mrf.mxu1  ;;  %v4335_v22 = vsel %vm1400_vm12, %v10442_v8, 0 }
 0x361   : > { %v4571_v53 = vand.u32 4294901760, %v4570_v2  ;;  %v4576_v36 = vsub.f32 %v12552_v28, %v15945_v44  ;;  %4196 = vmatmul.mubr.f32.gmra.mxu1 %v12133_v59  ;;  %4086 = vmatprep.mubr.f32.mxu0 %v16087_v62  ;;  %v12590_v21 = vsel %vm5281_vm2, %v5276_v30, %v12538_v55  ;;  %v12593_v61 = vadd.f32 %v2294_v25, %v12506_v43  ;;  %v2414_v31 = vpop.f32.mrf.mxu0  ;;  %v10443_v59 = vld [vmem:[%s15897_s4 + $0xe8] sm:$0xff] }
 0x362   : > { %16089 = vst [vmem:[#allocation10_spill] sm:$0xff] %v12590_v21  ;;  %4201 = vmatprep.mubr.f32.mxu1 %v16087_v62  ;;  %4560 = vmatprep.subr.mxu1 %v4559_v17  ;;  %v2299_v49 = vpop.f32.mrf.mxu1  ;;  %v2415_v39 = vadd.f32 %v2414_v31, %v12396_v23  ;;  %v12603_v43 = vsub.f32 %v4332_v29, %v12574_v12  ;;  %v12605_v25 = vand.u32 4294901760, %v4335_v22  ;;  %v4423_v17 = vand.u32 4294901760, %v12450_v47 }
 0x363   : > { %4566 = vmatpush1.msra.mxu1 %v4565_v14  ;;  %v5272_v8 = vpop.permute.xlu1 %5271  ;;  %v12600_v56 = vadd.f32 %v2299_v49, %v2171_v32  ;;  %v4577_v2 = vand.u32 4294901760, %v4576_v36  ;;  %v2416_v30 = vpop.f32.mrf.mxu0  ;;  %v16090_v14 = vand.u32 4294901760, %v12458_v37  ;;  %v4338_v47 = vsel %vm1400_vm12, %v10443_v59, 0 }
 0x364   : > { %4088 = vmatmul.mubr.f32.gmra.mxu0 %v12201_v52  ;;  %4572 = vmatprep.subr.mxu1 %v4571_v53  ;;  %v2301_v23 = vpop.f32.mrf.mxu1  ;;  %v2417_v31 = vadd.f32 %v2416_v30, %v12407_v16  ;;  %v15949_v59 = vand.u32 4294901760, %v12603_v43  ;;  %v12639_v21 = vand.u32 4294901760, %v4338_v47 }
 0x365   : > { %v4433_v32 = vsub.f32 %v12458_v37, %v16090_v14  ;;  %4203 = vmatmul.mubr.f32.gmra.mxu1 %v12159_v54  ;;  %4418 = vmatprep.mubr.f32.mxu0 %v16087_v62  ;;  %v5274_v29 = vpop.permute.xlu0 %5273  ;;  %v12617_v49 = vadd.f32 %v2301_v23, %v12543_v40  ;;  %v2425_v44 = vpop.f32.mrf.mxu0  ;;  %v10444_v54 = vld [vmem:[%s15897_s4 + $0xf0] sm:$0xff]  ;;  %v12633_v14 = vsub.f32 %v4335_v22, %v12605_v25 }
 0x366   : > { %4208 = vmatprep.mubr.f32.mxu1 %v16087_v62  ;;  %v12622_v16 = vsel %vm5281_vm2, %v5272_v8, %v5274_v29  ;;  %4578 = vmatpush1.msra.mxu1 %v4577_v2  ;;  %v2306_v53 = vpop.f32.mrf.mxu1  ;;  %v2426_v30 = vadd.f32 %v2425_v44, %v12414_v24  ;;  %v16092_v44 = vand.u32 4294901760, %v12580_v34 }
 0x367   : > { %16091 = vst [vmem:[#allocation11_spill] sm:$0xff] %v12622_v16  ;;  %4838 = vmatprep.subr.mxu1 %v12424_v6  ;;  %v12629_v40 = vadd.f32 %v2306_v53, %v2178_v33  ;;  %v2427_v23 = vpop.f32.mrf.mxu0  ;;  %v4434_v2 = vand.u32 4294901760, %v4433_v32  ;;  %v4341_v32 = vsel %vm1400_vm12, %v10444_v54, 0  ;;  %v15951_v54 = vand.u32 4294901760, %v12633_v14 }
 0x368   : > { %4424 = vmatmul.mubr.f32.vlgmr.msra.gmra.mxu0 %v4423_v17  ;;  %v5270_v29 = vpop.permute.xlu1 %5269  ;;  %v2308_v36 = vpop.f32.mrf.mxu1  ;;  %v2428_v24 = vadd.f32 %v2427_v23, %v12435_v57  ;;  %v4444_v16 = vsub.f32 %v12580_v34, %v16092_v44 }
 0x369   : > { %4210 = vmatmul.mubr.f32.gmra.mxu1 %v12180_v18  ;;  %4697 = vmatpush1.msra.mxu0 %v12442_v1  ;;  %v12644_v33 = vsel %vm5281_vm2, %v5270_v29, %v5272_v8  ;;  %v12646_v22 = vadd.f32 %v2308_v36, %v2180_v60  ;;  %v2436_v17 = vpop.f32.mrf.mxu0  ;;  %v10445_v18 = vld [vmem:[%s15897_s4 + $0xf8] sm:$0xff]  ;;  %v4455_v36 = vsub.f32 %v12603_v43, %v15949_v59 }
 0x36a   : > { %16093 = vst [vmem:[#allocation12_spill] sm:$0xff] %v12644_v33  ;;  %4700 = vmatprep.subr.mxu0 %v12421_v58  ;;  %4215 = vmatprep.mubr.f32.mxu1 %v16087_v62  ;;  %v12651_v57 = vpop.permute.xlu0 %5265  ;;  %v2437_v53 = vadd.f32 %v2436_v17, %v12453_v19  ;;  %v2603_v23 = vpop.f32.mrf.mxu1  ;;  %v4445_v29 = vand.u32 4294901760, %v4444_v16  ;;  %v12670_v33 = vsub.f32 %v4338_v47, %v12639_v21 }
 0x36b   : > { %16094 = vst [vmem:[#allocation13_spill] sm:$0xff] %v12651_v57  ;;  %4703 = vmatpush1.msra.mxu0 %v12431_v42  ;;  %4429 = vmatprep.mubr.f32.mxu0 %v16087_v62  ;;  %v12659_v60 = vadd.f32 %v2603_v23, %v2415_v39  ;;  %v2438_v8 = vpop.f32.mrf.mxu0  ;;  %v12672_v39 = vand.u32 4294901760, %v4341_v32 }
 0x36c   : > { %4706 = vmatprep.subr.mxu0 %v12466_v48  ;;  %4435 = vmatmul.mubr.f32.gmra.mxu0 %v4434_v2  ;;  %v12666_v19 = vpop.permute.xlu1 %5267  ;;  %v2439_v44 = vadd.f32 %v2438_v8, %v12476_v35  ;;  %v2605_v17 = vpop.f32.mrf.mxu1  ;;  %v4344_v2 = vsel %vm1400_vm12, %v10445_v18, 0  ;;  %v4466_v18 = vsub.f32 %v12633_v14, %v15951_v54 }
 0x36d   : > { %4217 = vmatmul.mubr.f32.gmra.mxu1 %v12201_v52  ;;  %4709 = vmatpush1.msra.mxu0 %v12484_v11  ;;  %v12676_v23 = vadd.f32 %v2605_v17, %v2417_v31  ;;  %v2447_v59 = vpop.f32.mrf.mxu0  ;;  %v4456_v31 = vand.u32 4294901760, %v4455_v36  ;;  %v16096_v17 = vand.u32 4294901760, %v12439_v63  ;;  %v12700_v36 = vand.u32 4294901760, %v4344_v2 }
 0x36e   : > { %4712 = vmatprep.subr.mxu0 %v12523_v38  ;;  %4440 = vmatprep.mubr.f32.mxu0 %v16087_v62  ;;  %v12681_v35 = vpop.permute.xlu0 %5263  ;;  %v2448_v47 = vadd.f32 %v2447_v59, %v12493_v27  ;;  %v2610_v16 = vpop.f32.mrf.mxu1 }
 0x36f   : > { %16095 = vst [vmem:[#allocation14_spill] sm:$0xff] %v12681_v35  ;;  %4715 = vmatpush1.msra.mxu0 %v12552_v28  ;;  %4611 = vmatprep.mubr.f32.mxu1 %v16087_v62  ;;  %v12686_v52 = vadd.f32 %v2610_v16, %v2426_v30  ;;  %v2449_v8 = vpop.f32.mrf.mxu0  ;;  %v12698_v30 = vsub.f32 %v4341_v32, %v12672_v39 }
 0x370   : > { %4985 = vmatprep.subr.mxu0 %v16096_v17  ;;  %4446 = vmatmul.mubr.f32.gmra.mxu0 %v4445_v29  ;;  %v12693_v35 = vpop.permute.xlu1 %5259  ;;  %v2450_v27 = vadd.f32 %v2449_v8, %v12513_v4  ;;  %v2612_v59 = vpop.f32.mrf.mxu1  ;;  %v4467_v17 = vand.u32 4294901760, %v4466_v18 }
 0x371   : > { %16097 = vst [vmem:[#allocation15_spill] sm:$0xff] %v12693_v35  ;;  %4613 = vmatmul.mubr.f32.vlgmr.msra.gmra.mxu1 %v12376_v45  ;;  %4451 = vmatprep.mubr.f32.mxu0 %v16087_v62  ;;  %v12704_v16 = vadd.f32 %v2612_v59, %v2428_v24  ;;  %v2458_v63 = vpop.f32.mrf.mxu0  ;;  %v16100_v45 = vand.u32 4294901760, %v12670_v33 }
 0x372   : > { %4840 = vmatpush1.msra.mxu1 %v12426_v51  ;;  %4618 = vmatprep.mubr.f32.mxu1 %v16087_v62  ;;  %v12708_v4 = vpop.permute.xlu0 %5261  ;;  %v2459_v29 = vadd.f32 %v2458_v63, %v12536_v41  ;;  %v2617_v8 = vpop.f32.mrf.mxu1  ;;  %v12723_v63 = vsub.f32 %v4344_v2, %v12700_v36  ;;  %v10529_v2 = vld [vmem:[#allocation2 + $0x48] sm:$0xff] }
 0x373   : > { %16098 = vst [vmem:[#allocation16_spill] sm:$0xff] %v12708_v4  ;;  %4842 = vmatprep.subr.mxu1 %v12399_v15  ;;  %v12712_v32 = vadd.f32 %v2617_v8, %v2437_v53  ;;  %v2460_v54 = vpop.f32.mrf.mxu0  ;;  %v4477_v35 = vsub.f32 %v12670_v33, %v16100_v45 }
 0x374   : > { %4844 = vmatpush1.msra.mxu1 %v12410_v20  ;;  %4457 = vmatmul.mubr.f32.gmra.mxu0 %v4456_v31  ;;  %v12715_v24 = vpop.permute.xlu1 %5257  ;;  %v2461_v59 = vadd.f32 %v2460_v54, %v12555_v50  ;;  %v2619_v57 = vpop.f32.mrf.mxu1  ;;  %v15959_v4 = vand.u32 4294901760, %v12723_v63 }
 0x375   : > { %16099 = vst [vmem:[#allocation17_spill] sm:$0xff] %v12715_v24  ;;  %4846 = vmatprep.subr.mxu1 %v12444_v9  ;;  %4620 = vmatmul.mubr.f32.gmra.mxu1 %v12418_v0  ;;  %v12727_v53 = vadd.f32 %v2619_v57, %v2439_v44  ;;  %v2469_v31 = vpop.f32.mrf.mxu0  ;;  %v4478_v41 = vand.u32 4294901760, %v4477_v35  ;;  %v16101_v0 = vand.u32 4294901760, %v12698_v30 }
 0x376   : > { %4848 = vmatpush1.msra.mxu1 %v12468_v26  ;;  %4462 = vmatprep.mubr.f32.mxu0 %v16087_v62  ;;  %v12731_v50 = vpop.permute.xlu0 %6224  ;;  %v2470_v45 = vadd.f32 %v2469_v31, %v12572_v13  ;;  %v2624_v54 = vpop.f32.mrf.mxu1 }
 0x377   : > { %4850 = vmatprep.subr.mxu1 %v12503_v10  ;;  %4625 = vmatprep.mubr.f32.mxu1 %v16087_v62  ;;  %v6242_v18 = vmul.f32 %v10529_v2, %v12731_v50  ;;  %v12737_v8 = vadd.f32 %v2624_v54, %v2448_v47  ;;  %v2471_v57 = vpop.f32.mrf.mxu0  ;;  %v4488_v24 = vsub.f32 %v12698_v30, %v16101_v0  ;;  %v10530_v47 = vld [vmem:[#allocation2 + $0x58] sm:$0xff] }
 0x378   : > { %4852 = vmatpush1.msra.mxu1 %v12533_v7  ;;  %4468 = vmatmul.mubr.f32.gmra.mxu0 %v4467_v17  ;;  %v12740_v44 = vpop.permute.xlu1 %6226  ;;  %v2472_v13 = vadd.f32 %v2471_v57, %v12593_v61  ;;  %v2626_v31 = vpop.f32.mrf.mxu1  ;;  %v10531_v61 = vld [vmem:[#allocation2 + $0x40] sm:$0xff] }
 0x379   : > { %5128 = vmatprep.subr.mxu1 %v12424_v6  ;;  %4627 = vmatmul.mubr.f32.gmra.mxu1 %v12547_v3  ;;  %v6244_v54 = vmul.f32 %v10530_v47, %v12740_v44  ;;  %v12750_v17 = vadd.f32 %v2626_v31, %v2450_v27  ;;  %v2480_v2 = vpop.f32.mrf.mxu0  ;;  %v6241_v0 = vmul.f32 %v10531_v61, %v12740_v44  ;;  %v4489_v31 = vand.u32 4294901760, %v4488_v24 }
 0x37a   : > { %6284 = vrot.lane.b32.xlu0 %v6242_v18, %s10583_s10  ;;  %4473 = vmatprep.mubr.f32.mxu0 %v16087_v62  ;;  %v2481_v35 = vadd.f32 %v2480_v2, %v12600_v56  ;;  %v2631_v57 = vpop.f32.mrf.mxu1  ;;  %v12759_v6 = vsel %vm6228_vm3, %v12731_v50, %v12740_v44  ;;  %v4499_v56 = vsub.f32 %v12723_v63, %v15959_v4  ;;  %v10532_v2 = vld [vmem:[#allocation2 + $0x38] sm:$0xff] }
 0x37b   : > { %4632 = vmatprep.mubr.f32.mxu1 %v16087_v62  ;;  %6288 = vrot.lane.b32.xlu1 %v6244_v54, %s10583_s10  ;;  %v12763_v27 = vadd.f32 %v2631_v57, %v2459_v29  ;;  %v2482_v18 = vpop.f32.mrf.mxu0  ;;  %v6240_v3 = vmul.f32 %v10532_v2, %v12759_v6 }
 0x37c   : > { %4479 = vmatmul.mubr.f32.gmra.mxu0 %v4478_v41  ;;  %v2483_v47 = vadd.f32 %v2482_v18, %v12617_v49  ;;  %v2633_v61 = vpop.f32.mrf.mxu1  ;;  %v10533_v18 = vld [vmem:[#allocation2 + $0x20] sm:$0xff]  ;;  %v4500_v2 = vand.u32 4294901760, %v4499_v56 }
 0x37d   : > { %4634 = vmatmul.mubr.f32.gmra.mxu1 %v12574_v12  ;;  %4484 = vmatprep.mubr.f32.mxu0 %v16087_v62  ;;  %v12772_v54 = vadd.f32 %v2633_v61, %v2461_v59  ;;  %v2491_v29 = vpop.f32.mrf.mxu0  ;;  %v6237_v4 = vmul.f32 %v10533_v18, %v12759_v6 }
 0x37e   : > { %4639 = vmatprep.mubr.f32.mxu1 %v16087_v62  ;;  %6282 = vrot.lane.b32.xlu0 %v6241_v0, %s10583_s10  ;;  %v2492_v49 = vadd.f32 %v2491_v29, %v12629_v40  ;;  %v2638_v24 = vpop.f32.mrf.mxu1  ;;  %v10534_v0 = vld [vmem:[#allocation2 + $0x30] sm:$0xff] }
 0x37f   : > { %6280 = vrot.lane.b32.xlu1 %v6240_v3, %s10583_s10  ;;  %v12778_v41 = vadd.f32 %v2638_v24, %v2470_v45  ;;  %v2493_v57 = vpop.f32.mrf.mxu0  ;;  %v6239_v40 = vmul.f32 %v10534_v0, %v12731_v50  ;;  %v10535_v24 = vld [vmem:[#allocation2 + $0x50] sm:$0xff] }
 0x380   : > { %4490 = vmatmul.mubr.f32.gmra.mxu0 %v4489_v31  ;;  %v2494_v59 = vadd.f32 %v2493_v57, %v12646_v22  ;;  %v2640_v61 = vpop.f32.mrf.mxu1  ;;  %v6243_v57 = vmul.f32 %v10535_v24, %v12759_v6  ;;  %v16103_v24 = vand.u32 4294901760, %v12421_v58  ;;  %v10538_v58 = vld [vmem:[#allocation2 + $0x8] sm:$0xff] }
 0x381   : > { %4641 = vmatmul.mubr.f32.gmra.mxu1 %v12605_v25  ;;  %4495 = vmatprep.mubr.f32.mxu0 %v16087_v62  ;;  %v12785_v29 = vadd.f32 %v2640_v61, %v2472_v13  ;;  %v2741_v3 = vpop.f32.mrf.mxu0 }
 0x382   : > { %4646 = vmatprep.mubr.f32.mxu1 %v16087_v62  ;;  %6274 = vrot.lane.b32.xlu0 %v6237_v4, %s10583_s10  ;;  %v2645_v45 = vpop.f32.mrf.mxu1  ;;  %v2742_v31 = vadd.f32 %v2741_v3, %v12659_v60  ;;  %v10536_v4 = vld [vmem:[#allocation2 + $0x28] sm:$0xff] }
 0x383   : > { %6278 = vrot.lane.b32.xlu1 %v6239_v40, %s10583_s10  ;;  %v12791_v22 = vadd.f32 %v2645_v45, %v2481_v35  ;;  %v2743_v56 = vpop.f32.mrf.mxu0  ;;  %v6238_v61 = vmul.f32 %v10536_v4, %v12740_v44  ;;  %v5289_v35 = vsel %vm5281_vm2, %v12538_v55, %v12563_v46  ;;  %v16102_v55 = vand.u32 4294901760, %v12442_v1 }
 0x384   : > { %4501 = vmatmul.mubr.f32.gmra.mxu0 %v4500_v2  ;;  %v2647_v18 = vpop.f32.mrf.mxu1  ;;  %v2744_v13 = vadd.f32 %v2743_v56, %v12676_v23  ;;  %v12811_v56 = vand.u32 4294901760, %v5289_v35  ;;  %v16104_v4 = vand.u32 4294901760, %v12431_v42 }
 0x385   : > { %4648 = vmatmul.mubr.f32.gmra.mxu1 %v12639_v21  ;;  %4748 = vmatprep.mubr.f32.mxu0 %v16087_v62  ;;  %v12798_v60 = vadd.f32 %v2647_v18, %v2483_v47  ;;  %v2749_v0 = vpop.f32.mrf.mxu0 }
 0x386   : > { %4653 = vmatprep.mubr.f32.mxu1 %v16087_v62  ;;  %6286 = vrot.lane.b32.xlu0 %v6243_v57, %s10583_s10  ;;  %v2652_v2 = vpop.f32.mrf.mxu1  ;;  %v2750_v23 = vadd.f32 %v2749_v0, %v12686_v52  ;;  %v6234_v0 = vmul.f32 %v10538_v58, %v12759_v6 }
 0x387   : > { %6276 = vrot.lane.b32.xlu1 %v6238_v61, %s10583_s10  ;;  %v12807_v40 = vadd.f32 %v2652_v2, %v2492_v49  ;;  %v2751_v3 = vpop.f32.mrf.mxu0  ;;  %v10537_v49 = vld [vmem:[#allocation2 + $0x18] sm:$0xff]  ;;  %v16105_v61 = vand.u32 4294901760, %v12466_v48  ;;  %v16106_v48 = vand.u32 4294901760, %v12484_v11 }
 0x388   : > { %4751 = vmatmul.mubr.f32.vlgmr.msra.gmra.mxu0 %v12394_v5  ;;  %v2654_v47 = vpop.f32.mrf.mxu1  ;;  %v2752_v45 = vadd.f32 %v2751_v3, %v12704_v16  ;;  %v6236_v57 = vmul.f32 %v10537_v49, %v12731_v50  ;;  %v12834_v3 = vsub.f32 %v5289_v35, %v12811_v56  ;;  %v10539_v35 = vld [vmem:[#allocation2 + $0x10] sm:$0xff] }
 0x389   : > { %4655 = vmatmul.mubr.f32.gmra.mxu1 %v12672_v39  ;;  %4989 = vmatpush1.msra.mxu0 %v16102_v55  ;;  %v12816_v46 = vadd.f32 %v2654_v47, %v2494_v59  ;;  %v2757_v52 = vpop.f32.mrf.mxu0  ;;  %v6235_v55 = vmul.f32 %v10539_v35, %v12740_v44 }
 0x38a   : > { %4993 = vmatprep.subr.mxu0 %v16103_v24  ;;  %4660 = vmatprep.mubr.f32.mxu1 %v16087_v62  ;;  %v2758_v16 = vadd.f32 %v2757_v52, %v12712_v32  ;;  %v2879_v18 = vpop.f32.mrf.mxu1  ;;  %v16108_v24 = vand.u32 4294901760, %v12552_v28  ;;  %v5509_v44 = vand.u32 4294901760, %v12834_v3  ;;  %v16109_v28 = vand.u32 4294901760, %v12394_v5 }
 0x38b   : > { %4997 = vmatpush1.msra.mxu0 %v16104_v4  ;;  %4756 = vmatprep.mubr.f32.mxu0 %v16087_v62  ;;  %v12826_v1 = vadd.f32 %v2879_v18, %v2742_v31  ;;  %v2759_v59 = vpop.f32.mrf.mxu0 }
 0x38c   : > { %5001 = vmatprep.subr.mxu0 %v16105_v61  ;;  %6272 = vrot.lane.b32.xlu0 %v6236_v57, %s10583_s10  ;;  %v2760_v2 = vadd.f32 %v2759_v59, %v12727_v53  ;;  %v2881_v32 = vpop.f32.mrf.mxu1  ;;  %v16107_v53 = vand.u32 4294901760, %v12523_v38  ;;  %v10540_v38 = vld [vmem:[#allocation2] sm:$0xff]  ;;  %v5510_v5 = vsub.f32 %v12834_v3, %v5509_v44  ;;  %v16112_v61 = vld [vmem:[#allocation5_spill] sm:$0xff] }
 0x38d   : > { %4662 = vmatmul.mubr.f32.gmra.mxu1 %v12700_v36  ;;  %4759 = vmatmul.mubr.f32.gmra.mxu0 %v12458_v37  ;;  %v12838_v42 = vadd.f32 %v2881_v32, %v2744_v13  ;;  %v2765_v31 = vpop.f32.mrf.mxu0  ;;  %v6233_v49 = vmul.f32 %v10540_v38, %v12731_v50 }
 0x38e   : > { %5005 = vmatpush1.msra.mxu0 %v16106_v48  ;;  %6268 = vrot.lane.b32.xlu1 %v6234_v0, %s10583_s10  ;;  %v2766_v6 = vadd.f32 %v2765_v31, %v12737_v8  ;;  %v2888_v47 = vpop.f32.mrf.mxu1 }
 0x38f   : > { %5009 = vmatprep.subr.mxu0 %v16107_v53  ;;  %4764 = vmatprep.mubr.f32.mxu0 %v16087_v62  ;;  %v12848_v52 = vadd.f32 %v2888_v47, %v2750_v23  ;;  %v2767_v13 = vpop.f32.mrf.mxu0 }
 0x390   : > { %5013 = vmatpush1.msra.mxu0 %v16108_v24  ;;  %4885 = vmatprep.mubr.f32.mxu1 %v16087_v62  ;;  %v2768_v11 = vadd.f32 %v2767_v13, %v12750_v17  ;;  %v2890_v8 = vpop.f32.mrf.mxu1 }
 0x391   : > { %5347 = vmatprep.subr.mxu0 %v12811_v56  ;;  %6270 = vrot.lane.b32.xlu0 %v6235_v55, %s10583_s10  ;;  %v12857_v57 = vadd.f32 %v2890_v8, %v2752_v45  ;;  %v16115_v8 = vld [vmem:[#allocation10_spill] sm:$0xff] }
 0x392   : > { %4767 = vmatmul.mubr.f32.gmra.mxu0 %v12580_v34  ;;  %4889 = vmatmul.mubr.f32.vlgmr.msra.gmra.mxu1 %v16109_v28  ;;  %v12918_v38 = vand.u32 4294901760, %v16115_v8 }
 0x393   : > { %5130 = vmatpush1.msra.mxu1 %v12426_v51  ;;  %6266 = vrot.lane.b32.xlu1 %v6233_v49, %s10583_s10  ;;  %v2773_v17 = vpop.f32.mrf.mxu0  ;;  %v2897_v23 = vpop.f32.mrf.mxu1 }
 0x394   : > { %5132 = vmatprep.subr.mxu1 %v12399_v15  ;;  %4772 = vmatprep.mubr.f32.mxu0 %v16087_v62  ;;  %v2774_v50 = vadd.f32 %v2773_v17, %v12763_v27  ;;  %v12868_v45 = vadd.f32 %v2897_v23, %v2758_v16  ;;  %v16110_v15 = vld [vmem:[#allocation6_spill] sm:$0xff]  ;;  %v16117_v17 = vld [vmem:[#allocation11_spill] sm:$0xff] }
 0x395   : > { %5134 = vmatpush1.msra.mxu1 %v12410_v20  ;;  %4894 = vmatprep.mubr.f32.mxu1 %v16087_v62  ;;  %v2775_v51 = vpop.f32.mrf.mxu0  ;;  %v2899_v18 = vpop.f32.mrf.mxu1  ;;  %v16111_v20 = vand.u32 4294901760, %v12458_v37  ;;  %v12925_v23 = vand.u32 4294901760, %v16117_v17 }
 0x396   : > { %5136 = vmatprep.subr.mxu1 %v12444_v9  ;;  %7233 = vrot.lane.b32.xlu0 %v16110_v15, %s10584_s11  ;;  %v2776_v4 = vadd.f32 %v2775_v51, %v12772_v54  ;;  %v12878_v27 = vadd.f32 %v2899_v18, %v2760_v2  ;;  %v5511_v54 = vand.u32 4294901760, %v5510_v5  ;;  %v16119_v5 = vand.u32 4294901760, %v12633_v14  ;;  %v16120_v18 = vld [vmem:[#allocation12_spill] sm:$0xff] }
 0x397   : > { %4775 = vmatmul.mubr.f32.gmra.mxu0 %v12603_v43  ;;  %4898 = vmatmul.mubr.f32.gmra.mxu1 %v16111_v20  ;;  %v2781_v16 = vpop.f32.mrf.mxu0  ;;  %v2906_v59 = vpop.f32.mrf.mxu1  ;;  %v12937_v15 = vand.u32 4294901760, %v16120_v18  ;;  %v16122_v20 = vld [vmem:[#allocation15_spill] sm:$0xff] }
 0x398   : > { %5138 = vmatpush1.msra.mxu1 %v12468_v26  ;;  %7235 = vrot.lane.b32.xlu1 %v16112_v61, %s10584_s11  ;;  %v2782_v9 = vadd.f32 %v2781_v16, %v12778_v41  ;;  %v12886_v58 = vadd.f32 %v2906_v59, %v2766_v6 }
 0x399   : > { %5140 = vmatprep.subr.mxu1 %v12503_v10  ;;  %4780 = vmatprep.mubr.f32.mxu0 %v16087_v62  ;;  %v2783_v0 = vpop.f32.mrf.mxu0  ;;  %v2908_v2 = vpop.f32.mrf.mxu1  ;;  %v16113_v10 = vand.u32 4294901760, %v12580_v34  ;;  %v16114_v34 = vand.u32 4294901760, %v12603_v43  ;;  %v16116_v43 = vld [vmem:[#allocation13_spill] sm:$0xff] }
 0x39a   : > { %5142 = vmatpush1.msra.mxu1 %v12533_v7  ;;  %4903 = vmatprep.mubr.f32.mxu1 %v16087_v62  ;;  %v2784_v37 = vadd.f32 %v2783_v0, %v12785_v29  ;;  %v12893_v26 = vadd.f32 %v2908_v2, %v2768_v11  ;;  %v5285_v49 = vsel %vm5281_vm2, %v16116_v43, %v12666_v19 }
 0x39b   : > { %5512 = vmatprep.subr.mxu1 %v5511_v54  ;;  %4783 = vmatmul.mubr.f32.gmra.mxu0 %v12633_v14  ;;  %v2789_v41 = vpop.f32.mrf.mxu0  ;;  %v2915_v32 = vpop.f32.mrf.mxu1  ;;  %v16123_v14 = vld [vmem:[#allocation17_spill] sm:$0xff]  ;;  %v12953_v2 = vsub.f32 %v16115_v8, %v12918_v38  ;;  %v16125_v8 = vld [vmem:[#allocation7_spill] sm:$0xff] }
 0x39c   : > { %4907 = vmatmul.mubr.f32.gmra.mxu1 %v16113_v10  ;;  %4788 = vmatprep.mubr.f32.mxu0 %v16087_v62  ;;  %v2790_v31 = vadd.f32 %v2789_v41, %v12791_v22  ;;  %v12900_v48 = vadd.f32 %v2915_v32, %v2774_v50  ;;  %v16118_v50 = vld [vmem:[#allocation14_spill] sm:$0xff]  ;;  %v5282_v54 = vsel %vm5281_vm2, %v16123_v14, %v16122_v20  ;;  %v16124_v10 = vand.u32 4294901760, %v12670_v33 }
 0x39d   : > { %4912 = vmatprep.mubr.f32.mxu1 %v16087_v62  ;;  %v2791_v7 = vpop.f32.mrf.mxu0  ;;  %v2917_v29 = vpop.f32.mrf.mxu1  ;;  %v12960_v41 = vsub.f32 %v16117_v17, %v12925_v23 }
 0x39e   : > { %v2792_v6 = vadd.f32 %v2791_v7, %v12798_v60  ;;  %v12904_v47 = vadd.f32 %v2917_v29, %v2776_v4  ;;  %v16121_v4 = vld [vmem:[#allocation16_spill] sm:$0xff]  ;;  %v12969_v7 = vsub.f32 %v16120_v18, %v12937_v15  ;;  %v12971_v29 = vand.u32 4294901760, %v5282_v54 }
 0x39f   : > { %4791 = vmatmul.mubr.f32.gmra.mxu0 %v12670_v33  ;;  %v2797_v53 = vpop.f32.mrf.mxu0  ;;  %v2924_v35 = vpop.f32.mrf.mxu1  ;;  %v5283_v16 = vsel %vm5281_vm2, %v16122_v20, %v16121_v4  ;;  %v16127_v4 = vld [vmem:[#allocation8_spill] sm:$0xff] }
 0x3a0   : > { %4916 = vmatmul.mubr.f32.gmra.mxu1 %v16114_v34  ;;  %4796 = vmatprep.mubr.f32.mxu0 %v16087_v62  ;;  %v2798_v22 = vadd.f32 %v2797_v53, %v12807_v40  ;;  %v12911_v55 = vadd.f32 %v2924_v35, %v2782_v9  ;;  %v12943_v9 = vand.u32 4294901760, %v5285_v49  ;;  %v12962_v32 = vand.u32 4294901760, %v5283_v16 }
 0x3a1   : > { %4921 = vmatprep.mubr.f32.mxu1 %v16087_v62  ;;  %v2799_v13 = vpop.f32.mrf.mxu0  ;;  %v2926_v24 = vpop.f32.mrf.mxu1  ;;  %v12997_v17 = vsub.f32 %v5282_v54, %v12971_v29 }
 0x3a2   : > { %v2800_v60 = vadd.f32 %v2799_v13, %v12816_v46  ;;  %v12915_v11 = vadd.f32 %v2926_v24, %v2784_v37  ;;  %v5284_v46 = vsel %vm5281_vm2, %v16118_v50, %v16116_v43  ;;  %v12978_v35 = vsub.f32 %v5285_v49, %v12943_v9 }
 0x3a3   : > { %4799 = vmatmul.mubr.f32.gmra.mxu0 %v12698_v30  ;;  %v2933_v40 = vpop.f32.mrf.mxu1  ;;  %v3038_v28 = vpop.f32.mrf.mxu0  ;;  %v12955_v37 = vand.u32 4294901760, %v5284_v46  ;;  %v15969_v13 = vand.u32 4294901760, %v12953_v2  ;;  %v15968_v49 = vand.u32 4294901760, %v12960_v41 }
 0x3a4   : > { %4925 = vmatmul.mubr.f32.gmra.mxu1 %v16119_v5  ;;  %4804 = vmatprep.mubr.f32.mxu0 %v16087_v62  ;;  %v12933_v51 = vadd.f32 %v2933_v40, %v2790_v31  ;;  %v3039_v19 = vadd.f32 %v3038_v28, %v12826_v1  ;;  %v15967_v28 = vand.u32 4294901760, %v12969_v7 }
 0x3a5   : > { %4930 = vmatprep.mubr.f32.mxu1 %v16087_v62  ;;  %v2935_v59 = vpop.f32.mrf.mxu1  ;;  %v3040_v61 = vpop.f32.mrf.mxu0  ;;  %v12982_v24 = vsub.f32 %v5284_v46, %v12955_v37  ;;  %v15965_v46 = vand.u32 4294901760, %v12978_v35  ;;  %v5516_v5 = vsub.f32 %v12953_v2, %v15969_v13 }
 0x3a6   : > { %v12948_v0 = vadd.f32 %v2935_v59, %v2792_v6  ;;  %v3041_v1 = vadd.f32 %v3040_v61, %v12838_v42  ;;  %v5522_v59 = vsub.f32 %v12960_v41, %v15968_v49 }
 0x3a7   : > { %4807 = vmatmul.mubr.f32.gmra.mxu0 %v12723_v63  ;;  %v15960_v18 = vand.u32 4294901760, %v12982_v24 }
 0x3a8   : > { %4934 = vmatmul.mubr.f32.gmra.mxu1 %v16124_v10  ;;  %5046 = vmatprep.mubr.f32.mxu0 %v16087_v62  ;;  %v2942_v42 = vpop.f32.mrf.mxu1  ;;  %v3045_v31 = vpop.f32.mrf.mxu0  ;;  %v5528_v10 = vsub.f32 %v12969_v7, %v15967_v28 }
 0x3a9   : > { %4939 = vmatprep.mubr.f32.mxu1 %v16087_v62  ;;  %v12974_v6 = vadd.f32 %v2942_v42, %v2798_v22  ;;  %v3046_v53 = vadd.f32 %v3045_v31, %v12848_v52  ;;  %v12989_v22 = vsub.f32 %v5283_v16, %v12962_v32  ;;  %v16126_v52 = vand.u32 4294901760, %v12698_v30 }
 0x3aa   : > { %v2944_v33 = vpop.f32.mrf.mxu1  ;;  %v3047_v34 = vpop.f32.mrf.mxu0  ;;  %v15962_v42 = vand.u32 4294901760, %v12997_v17 }
 0x3ab   : > { %5048 = vmatmul.mubr.f32.vlgmr.msra.gmra.mxu0 %v16125_v8  ;;  %v12985_v43 = vadd.f32 %v2944_v33, %v2800_v60  ;;  %v3048_v40 = vadd.f32 %v3047_v34, %v12857_v57  ;;  %v15963_v54 = vand.u32 4294901760, %v12989_v22  ;;  %v5540_v33 = vsub.f32 %v12982_v24, %v15960_v18  ;;  %v16129_v34 = vld [vmem:[#allocation9_spill] sm:$0xff] }
 0x3ac   : > { %4943 = vmatmul.mubr.f32.gmra.mxu1 %v16126_v52  ;;  %5349 = vmatpush1.msra.mxu0 %v12918_v38  ;;  %v5517_v52 = vand.u32 4294901760, %v5516_v5  ;;  %v5552_v18 = vsub.f32 %v12997_v17, %v15962_v42  ;;  %v5529_v5 = vand.u32 4294901760, %v5528_v10 }
 0x3ad   : > { %5351 = vmatprep.subr.mxu0 %v12925_v23  ;;  %4948 = vmatprep.mubr.f32.mxu1 %v16087_v62  ;;  %v3052_v57 = vpop.f32.mrf.mxu0  ;;  %v3167_v60 = vpop.f32.mrf.mxu1 }
 0x3ae   : > { %5353 = vmatpush1.msra.mxu0 %v12937_v15  ;;  %5053 = vmatprep.mubr.f32.mxu0 %v16087_v62  ;;  %v3053_v30 = vadd.f32 %v3052_v57, %v12868_v45  ;;  %v13004_v50 = vadd.f32 %v3167_v60, %v3039_v19  ;;  %v10446_v45 = vld [vmem:[%s15897_s4 + $0x100] sm:$0xff]  ;;  %v16128_v19 = vand.u32 4294901760, %v12723_v63  ;;  %v5534_v63 = vsub.f32 %v12978_v35, %v15965_v46 }
 0x3af   : > { %5355 = vmatprep.subr.mxu0 %v12943_v9  ;;  %5055 = vmatmul.mubr.f32.gmra.mxu0 %v16127_v4  ;;  %v3054_v20 = vpop.f32.mrf.mxu0  ;;  %v3169_v16 = vpop.f32.mrf.mxu1  ;;  %v5299_v31 = vsel %vm1400_vm12, %v10446_v45, 0 }
 0x3b0   : > { %4952 = vmatmul.mubr.f32.gmra.mxu1 %v16128_v19  ;;  %5357 = vmatpush1.msra.mxu0 %v12955_v37  ;;  %v3055_v61 = vadd.f32 %v3054_v20, %v12878_v27  ;;  %v13023_v14 = vadd.f32 %v3169_v16, %v3041_v1  ;;  %v5523_v20 = vand.u32 4294901760, %v5522_v59  ;;  %v5546_v16 = vsub.f32 %v12989_v22, %v15963_v54 }
 0x3b1   : > { %5359 = vmatprep.subr.mxu0 %v12962_v32  ;;  %5060 = vmatprep.mubr.f32.mxu0 %v16087_v62  ;;  %v5535_v59 = vand.u32 4294901760, %v5534_v63  ;;  %v5553_v63 = vand.u32 4294901760, %v5552_v18 }
 0x3b2   : > { %5361 = vmatpush1.msra.mxu0 %v12971_v29  ;;  %5175 = vmatprep.mubr.f32.mxu1 %v16087_v62  ;;  %v3059_v27 = vpop.f32.mrf.mxu0  ;;  %v3174_v1 = vpop.f32.mrf.mxu1 }
 0x3b3   : > { %5670 = vmatprep.subr.mxu0 %v12834_v3  ;;  %5062 = vmatmul.mubr.f32.gmra.mxu0 %v16129_v34  ;;  %v3060_v57 = vadd.f32 %v3059_v27, %v12886_v58  ;;  %v13044_v60 = vadd.f32 %v3174_v1, %v3046_v53  ;;  %v13061_v27 = vand.u32 4294901760, %v5299_v31  ;;  %v5541_v1 = vand.u32 4294901760, %v5540_v33  ;;  %v10448_v33 = vld [vmem:[%s15897_s4 + $0x110] sm:$0xff] }
 0x3b4   : > { %5177 = vmatmul.mubr.f32.vlgmr.msra.gmra.mxu1 %v16125_v8  ;;  %5067 = vmatprep.mubr.f32.mxu0 %v16087_v62  ;;  %v3061_v45 = vpop.f32.mrf.mxu0  ;;  %v3176_v19 = vpop.f32.mrf.mxu1  ;;  %v10447_v8 = vld [vmem:[%s15897_s4 + $0x108] sm:$0xff] }
 0x3b5   : > { %5518 = vmatpush1.msra.mxu1 %v5517_v52  ;;  %5182 = vmatprep.mubr.f32.mxu1 %v16087_v62  ;;  %v3062_v58 = vadd.f32 %v3061_v45, %v12893_v26  ;;  %v13056_v53 = vadd.f32 %v3176_v19, %v3048_v40  ;;  %v5547_v26 = vand.u32 4294901760, %v5546_v16  ;;  %v5302_v19 = vsel %vm1400_vm12, %v10447_v8, 0 }
 0x3b6   : > { %5524 = vmatprep.subr.mxu1 %v5523_v20  ;;  %v13081_v8 = vand.u32 4294901760, %v5302_v19 }
 0x3b7   : > { %5530 = vmatpush1.msra.mxu1 %v5529_v5  ;;  %5069 = vmatmul.mubr.f32.gmra.mxu0 %v12574_v12  ;;  %v3066_v52 = vpop.f32.mrf.mxu0  ;;  %v3181_v10 = vpop.f32.mrf.mxu1 }
 0x3b8   : > { %5536 = vmatprep.subr.mxu1 %v5535_v59  ;;  %5184 = vmatmul.mubr.f32.gmra.mxu1 %v16127_v4  ;;  %v3067_v40 = vadd.f32 %v3066_v52, %v12900_v48  ;;  %v13066_v45 = vadd.f32 %v3181_v10, %v3053_v30  ;;  %v13078_v30 = vsub.f32 %v5299_v31, %v13061_v27  ;;  %v10449_v52 = vld [vmem:[%s15897_s4 + $0x118] sm:$0xff] }
 0x3b9   : > { %5542 = vmatpush1.msra.mxu1 %v5541_v1  ;;  %5074 = vmatprep.mubr.f32.mxu0 %v16087_v62  ;;  %v3068_v20 = vpop.f32.mrf.mxu0  ;;  %v3183_v5 = vpop.f32.mrf.mxu1 }
 0x3ba   : > { %5548 = vmatprep.subr.mxu1 %v5547_v26  ;;  %5189 = vmatprep.mubr.f32.mxu1 %v16087_v62  ;;  %v3069_v4 = vadd.f32 %v3068_v20, %v12904_v47  ;;  %v13075_v48 = vadd.f32 %v3183_v5, %v3055_v61  ;;  %v5305_v47 = vsel %vm1400_vm12, %v10448_v33, 0  ;;  %v10450_v33 = vld [vmem:[%s15897_s4 + $0x120] sm:$0xff] }
 0x3bb   : > { %5554 = vmatpush1.msra.mxu1 %v5553_v63  ;;  %5076 = vmatmul.mubr.f32.gmra.mxu0 %v12605_v25  ;;  %v3073_v18 = vpop.f32.mrf.mxu0  ;;  %v3188_v16 = vpop.f32.mrf.mxu1  ;;  %v13100_v63 = vsub.f32 %v5302_v19, %v13081_v8  ;;  %v13102_v20 = vand.u32 4294901760, %v5305_v47 }
 0x3bc   : > { %5814 = vmatprep.subr.mxu1 %v12811_v56  ;;  %5191 = vmatmul.mubr.f32.gmra.mxu1 %v16129_v34  ;;  %v3074_v59 = vadd.f32 %v3073_v18, %v12911_v55  ;;  %v13086_v1 = vadd.f32 %v3188_v16, %v3060_v57  ;;  %v15961_v55 = vand.u32 4294901760, %v13078_v30 }
 0x3bd   : > { %5081 = vmatprep.mubr.f32.mxu0 %v16087_v62  ;;  %5196 = vmatprep.mubr.f32.mxu1 %v16087_v62  ;;  %v3075_v61 = vpop.f32.mrf.mxu0  ;;  %v3190_v31 = vpop.f32.mrf.mxu1 }
 0x3be   : > { %v3076_v10 = vadd.f32 %v3075_v61, %v12915_v11  ;;  %v13095_v26 = vadd.f32 %v3190_v31, %v3062_v58  ;;  %v5308_v58 = vsel %vm1400_vm12, %v10449_v52, 0  ;;  %v15964_v31 = vand.u32 4294901760, %v13100_v63 }
 0x3bf   : > { %5083 = vmatmul.mubr.f32.gmra.mxu0 %v12639_v21  ;;  %v3080_v34 = vpop.f32.mrf.mxu0  ;;  %v3195_v57 = vpop.f32.mrf.mxu1  ;;  %v13123_v52 = vsub.f32 %v5305_v47, %v13102_v20  ;;  %v10451_v47 = vld [vmem:[%s15897_s4 + $0x128] sm:$0xff] }
 0x3c0   : > { %16130 = vst [vmem:[#allocation6_spill] sm:$0xff] %v13095_v26  ;;  %5198 = vmatmul.mubr.f32.gmra.mxu1 %v12574_v12  ;;  %5088 = vmatprep.mubr.f32.mxu0 %v16087_v62  ;;  %v3081_v5 = vadd.f32 %v3080_v34, %v12933_v51  ;;  %v13107_v11 = vadd.f32 %v3195_v57, %v3067_v40  ;;  %v13125_v34 = vand.u32 4294901760, %v5308_v58  ;;  %v5311_v57 = vsel %vm1400_vm12, %v10450_v33, 0 }
 0x3c1   : > { %5203 = vmatprep.mubr.f32.mxu1 %v16087_v62  ;;  %v3082_v19 = vpop.f32.mrf.mxu0  ;;  %v3197_v18 = vpop.f32.mrf.mxu1  ;;  %v5398_v12 = vsub.f32 %v13078_v30, %v15961_v55  ;;  %v13140_v33 = vand.u32 4294901760, %v5311_v57 }
 0x3c2   : > { %16131 = vst [vmem:[#allocation5_spill] sm:$0xff] %v13107_v11  ;;  %v3083_v16 = vadd.f32 %v3082_v19, %v12948_v0  ;;  %v13115_v61 = vadd.f32 %v3197_v18, %v3069_v4  ;;  %v13148_v54 = vsub.f32 %v5308_v58, %v13125_v34 }
 0x3c3   : > { %5090 = vmatmul.mubr.f32.gmra.mxu0 %v12672_v39  ;;  %v3087_v51 = vpop.f32.mrf.mxu0  ;;  %v3202_v40 = vpop.f32.mrf.mxu1  ;;  %v13162_v58 = vsub.f32 %v5311_v57, %v13140_v33 }
 0x3c4   : > { %16132 = vst [vmem:[#allocation10_spill] sm:$0xff] %v13115_v61  ;;  %5205 = vmatmul.mubr.f32.gmra.mxu1 %v12605_v25  ;;  %5095 = vmatprep.mubr.f32.mxu0 %v16087_v62  ;;  %v3088_v0 = vadd.f32 %v3087_v51, %v12974_v6  ;;  %v13131_v4 = vadd.f32 %v3202_v40, %v3074_v59  ;;  %v5399_v59 = vand.u32 4294901760, %v5398_v12  ;;  %v15966_v40 = vand.u32 4294901760, %v13123_v52 }
 0x3c5   : > { %5210 = vmatprep.mubr.f32.mxu1 %v16087_v62  ;;  %v3089_v19 = vpop.f32.mrf.mxu0  ;;  %v3204_v18 = vpop.f32.mrf.mxu1  ;;  %v5409_v51 = vsub.f32 %v13100_v63, %v15964_v31 }
 0x3c6   : > { %16133 = vst [vmem:[#allocation13_spill] sm:$0xff] %v13131_v4  ;;  %v3090_v55 = vadd.f32 %v3089_v19, %v12985_v43  ;;  %v13138_v42 = vadd.f32 %v3204_v18, %v3076_v10  ;;  %v5314_v10 = vsel %vm1400_vm12, %v10451_v47, 0  ;;  %v10452_v18 = vld [vmem:[%s15897_s4 + $0x130] sm:$0xff]  ;;  %v15970_v47 = vand.u32 4294901760, %v13148_v54 }
 0x3c7   : > { %5097 = vmatmul.mubr.f32.gmra.mxu0 %v12700_v36  ;;  %v3209_v25 = vpop.f32.mrf.mxu1  ;;  %v3416_v6 = vpop.f32.mrf.mxu0  ;;  %v5410_v46 = vand.u32 4294901760, %v5409_v51  ;;  %v5317_v57 = vsel %vm1400_vm12, %v10452_v18, 0  ;;  %v10453_v51 = vld [vmem:[%s15897_s4 + $0x138] sm:$0xff] }
 0x3c8   : > { %16134 = vst [vmem:[#allocation11_spill] sm:$0xff] %v13138_v42  ;;  %5212 = vmatmul.mubr.f32.gmra.mxu1 %v12639_v21  ;;  %5394 = vmatprep.mubr.f32.mxu0 %v16087_v62  ;;  %v13152_v43 = vadd.f32 %v3209_v25, %v3081_v5  ;;  %v5420_v5 = vsub.f32 %v13123_v52, %v15966_v40  ;;  %v13168_v25 = vand.u32 4294901760, %v5314_v10  ;;  %v13192_v13 = vand.u32 4294901760, %v5317_v57 }
 0x3c9   : > { %5217 = vmatprep.mubr.f32.mxu1 %v16087_v62  ;;  %v3211_v12 = vpop.f32.mrf.mxu1  ;;  %v3418_v19 = vpop.f32.mrf.mxu0  ;;  %v5431_v28 = vsub.f32 %v13148_v54, %v15970_v47 }
 0x3ca   : > { %16135 = vst [vmem:[#allocation14_spill] sm:$0xff] %v13152_v43  ;;  %v13159_v31 = vadd.f32 %v3211_v12, %v3083_v16  ;;  %16137 = vst [vmem:[#allocation16_spill] sm:$0xff] %v13168_v25  ;;  %v5421_v40 = vand.u32 4294901760, %v5420_v5  ;;  %v13190_v49 = vsub.f32 %v5314_v10, %v13168_v25 }
 0x3cb   : > { %5400 = vmatmul.mubr.f32.vlgmr.msra.gmra.mxu0 %v5399_v59  ;;  %v3216_v21 = vpop.f32.mrf.mxu1 }
 0x3cc   : > { %16136 = vst [vmem:[#allocation12_spill] sm:$0xff] %v13159_v31  ;;  %5219 = vmatmul.mubr.f32.gmra.mxu1 %v12672_v39  ;;  %5673 = vmatpush1.msra.mxu0 %v12953_v2  ;;  %v13172_v16 = vadd.f32 %v3216_v21, %v3088_v0  ;;  %v3427_v12 = vpop.f32.mrf.mxu0  ;;  %v15971_v21 = vand.u32 4294901760, %v13162_v58 }
 0x3cd   : > { %5676 = vmatprep.subr.mxu0 %v12960_v41  ;;  %5224 = vmatprep.mubr.f32.mxu1 %v16087_v62  ;;  %v3218_v59 = vpop.f32.mrf.mxu1 }
 0x3ce   : > { %16138 = vst [vmem:[#allocation15_spill] sm:$0xff] %v13172_v16  ;;  %5679 = vmatpush1.msra.mxu0 %v12969_v7  ;;  %5405 = vmatprep.mubr.f32.mxu0 %v16087_v62  ;;  %v13182_v39 = vadd.f32 %v3218_v59, %v3090_v55  ;;  %v3429_v0 = vpop.f32.mrf.mxu0 }
 0x3cf   : > { %5682 = vmatprep.subr.mxu0 %v12978_v35  ;;  %5411 = vmatmul.mubr.f32.gmra.mxu0 %v5410_v46  ;;  %v3605_v18 = vpop.f32.mrf.mxu1  ;;  %v5320_v46 = vsel %vm1400_vm12, %v10453_v51, 0  ;;  %v15972_v51 = vand.u32 4294901760, %v13190_v49 }
 0x3d0   : > { %16139 = vst [vmem:[#allocation17_spill] sm:$0xff] %v13182_v39  ;;  %5226 = vmatmul.mubr.f32.gmra.mxu1 %v12700_v36  ;;  %5685 = vmatpush1.msra.mxu0 %v12982_v24  ;;  %v3438_v55 = vpop.f32.mrf.mxu0  ;;  %v13196_v59 = vadd.f32 %v3605_v18, %v3416_v6  ;;  %v5442_v36 = vsub.f32 %v13162_v58, %v15971_v21  ;;  %v5432_v6 = vand.u32 4294901760, %v5431_v28  ;;  %v13214_v39 = vand.u32 4294901760, %v5320_v46 }
 0x3d1   : > { %5688 = vmatprep.subr.mxu0 %v12989_v22  ;;  %5416 = vmatprep.mubr.f32.mxu0 %v16087_v62  ;;  %v3607_v5 = vpop.f32.mrf.mxu1  ;;  %v13212_v18 = vsub.f32 %v5317_v57, %v13192_v13 }
 0x3d2   : > { %5691 = vmatpush1.msra.mxu0 %v12997_v17  ;;  %5587 = vmatprep.mubr.f32.mxu1 %v16087_v62  ;;  %v3440_v10 = vpop.f32.mrf.mxu0  ;;  %v13203_v47 = vadd.f32 %v3607_v5, %v3418_v19  ;;  %v5443_v57 = vand.u32 4294901760, %v5442_v36  ;;  %v5453_v5 = vsub.f32 %v13190_v49, %v15972_v51  ;;  %v13229_v16 = vsub.f32 %v5320_v46, %v13214_v39 }
 0x3d3   : > { %5961 = vmatprep.subr.mxu0 %v5509_v44  ;;  %5422 = vmatmul.mubr.f32.gmra.mxu0 %v5421_v40 }
 0x3d4   : > { %5589 = vmatmul.mubr.f32.vlgmr.msra.gmra.mxu1 %v13061_v27  ;;  %5427 = vmatprep.mubr.f32.mxu0 %v16087_v62  ;;  %v3449_v19 = vpop.f32.mrf.mxu0  ;;  %v5454_v21 = vand.u32 4294901760, %v5453_v5  ;;  %v15973_v31 = vand.u32 4294901760, %v13229_v16 }
 0x3d5   : > { %5816 = vmatpush1.msra.mxu1 %v12918_v38  ;;  %5594 = vmatprep.mubr.f32.mxu1 %v16087_v62  ;;  %v3612_v3 = vpop.f32.mrf.mxu1 }
 0x3d6   : > { %5818 = vmatprep.subr.mxu1 %v12925_v23  ;;  %v13221_v44 = vadd.f32 %v3612_v3, %v3427_v12  ;;  %v3451_v28 = vpop.f32.mrf.mxu0 }
 0x3d7   : > { %5820 = vmatpush1.msra.mxu1 %v12937_v15  ;;  %5433 = vmatmul.mubr.f32.gmra.mxu0 %v5432_v6  ;;  %v3614_v40 = vpop.f32.mrf.mxu1 }
 0x3d8   : > { %5822 = vmatprep.subr.mxu1 %v12943_v9  ;;  %5596 = vmatmul.mubr.f32.gmra.mxu1 %v13081_v8  ;;  %v13233_v12 = vadd.f32 %v3614_v40, %v3429_v0  ;;  %v3460_v3 = vpop.f32.mrf.mxu0  ;;  %v16140_v0 = vand.u32 4294901760, %v13212_v18 }
 0x3d9   : > { %5824 = vmatpush1.msra.mxu1 %v12955_v37  ;;  %5438 = vmatprep.mubr.f32.mxu0 %v16087_v62  ;;  %v3619_v36 = vpop.f32.mrf.mxu1 }
 0x3da   : > { %5826 = vmatprep.subr.mxu1 %v12962_v32  ;;  %5601 = vmatprep.mubr.f32.mxu1 %v16087_v62  ;;  %v13239_v6 = vadd.f32 %v3619_v36, %v3438_v55  ;;  %v3462_v46 = vpop.f32.mrf.mxu0  ;;  %v5464_v40 = vsub.f32 %v13212_v18, %v16140_v0 }
 0x3db   : > { %5828 = vmatpush1.msra.mxu1 %v12971_v29  ;;  %5444 = vmatmul.mubr.f32.gmra.mxu0 %v5443_v57  ;;  %v3621_v51 = vpop.f32.mrf.mxu1 }
 0x3dc   : > { %6104 = vmatprep.subr.mxu1 %v12811_v56  ;;  %5603 = vmatmul.mubr.f32.gmra.mxu1 %v13102_v20  ;;  %v13248_v43 = vadd.f32 %v3621_v51, %v3440_v10  ;;  %v3471_v55 = vpop.f32.mrf.mxu0  ;;  %v5465_v0 = vand.u32 4294901760, %v5464_v40  ;;  %v5475_v56 = vsub.f32 %v13229_v16, %v15973_v31 }
 0x3dd   : > { %5449 = vmatprep.mubr.f32.mxu0 %v16087_v62  ;;  %5608 = vmatprep.mubr.f32.mxu1 %v16087_v62  ;;  %v3626_v57 = vpop.f32.mrf.mxu1 }
 0x3de   : > { %v13252_v36 = vadd.f32 %v3626_v57, %v3449_v19  ;;  %v3473_v5 = vpop.f32.mrf.mxu0  ;;  %v5476_v40 = vand.u32 4294901760, %v5475_v56 }
 0x3df   : > { %5455 = vmatmul.mubr.f32.gmra.mxu0 %v5454_v21  ;;  %v3628_v42 = vpop.f32.mrf.mxu1 }
 0x3e0   : > { %5610 = vmatmul.mubr.f32.gmra.mxu1 %v13125_v34  ;;  %v13258_v10 = vadd.f32 %v3628_v42, %v3451_v28  ;;  %5460 = vmatprep.mubr.f32.mxu0 %v16087_v62  ;;  %v3482_v51 = vpop.f32.mrf.mxu0 }
 0x3e1   : > { %5615 = vmatprep.mubr.f32.mxu1 %v16087_v62  ;;  %v3633_v4 = vpop.f32.mrf.mxu1 }
 0x3e2   : > { %v13262_v19 = vadd.f32 %v3633_v4, %v3460_v3  ;;  %v3484_v57 = vpop.f32.mrf.mxu0 }
 0x3e3   : > { %5466 = vmatmul.mubr.f32.gmra.mxu0 %v5465_v0  ;;  %v3635_v21 = vpop.f32.mrf.mxu1 }
 0x3e4   : > { %5617 = vmatmul.mubr.f32.gmra.mxu1 %v13140_v33  ;;  %v13265_v61 = vadd.f32 %v3635_v21, %v3462_v46  ;;  %5471 = vmatprep.mubr.f32.mxu0 %v16087_v62  ;;  %v3493_v42 = vpop.f32.mrf.mxu0 }
 0x3e5   : > { %5622 = vmatprep.mubr.f32.mxu1 %v16087_v62  ;;  %v3640_v28 = vpop.f32.mrf.mxu1 }
 0x3e6   : > { %v13269_v31 = vadd.f32 %v3640_v28, %v3471_v55  ;;  %v3495_v11 = vpop.f32.mrf.mxu0 }
 0x3e7   : > { %5477 = vmatmul.mubr.f32.gmra.mxu0 %v5476_v40  ;;  %v3642_v4 = vpop.f32.mrf.mxu1 }
 0x3e8   : > { %5624 = vmatmul.mubr.f32.gmra.mxu1 %v13168_v25  ;;  %v13272_v3 = vadd.f32 %v3642_v4, %v3473_v5  ;;  %5724 = vmatprep.mubr.f32.mxu0 %v16087_v62  ;;  %v3743_v0 = vpop.f32.mrf.mxu0  ;;  %v16141_v5 = vand.u32 4294901760, %v12953_v2 }
 0x3e9   : > { %5629 = vmatprep.mubr.f32.mxu1 %v16087_v62  ;;  %v3647_v46 = vpop.f32.mrf.mxu1  ;;  %v3744_v56 = vadd.f32 %v3743_v0, %v13196_v59  ;;  %v16142_v59 = vand.u32 4294901760, %v12960_v41 }
 0x3ea   : > { %v13277_v21 = vadd.f32 %v3647_v46, %v3482_v51  ;;  %v3745_v26 = vpop.f32.mrf.mxu0 }
 0x3eb   : > { %5727 = vmatmul.mubr.f32.vlgmr.msra.gmra.mxu0 %v13078_v30  ;;  %v3649_v55 = vpop.f32.mrf.mxu1  ;;  %v3746_v40 = vadd.f32 %v3745_v26, %v13203_v47  ;;  %v16143_v26 = vand.u32 4294901760, %v12969_v7 }
 0x3ec   : > { %5631 = vmatmul.mubr.f32.gmra.mxu1 %v13192_v13  ;;  %5965 = vmatpush1.msra.mxu0 %v16141_v5  ;;  %v13284_v28 = vadd.f32 %v3649_v55, %v3484_v57  ;;  %v3751_v4 = vpop.f32.mrf.mxu0  ;;  %v13286_v25 = vpop.permute.xlu0 %6284  ;;  %v16144_v57 = vand.u32 4294901760, %v12978_v35 }
 0x3ed   : > { %5969 = vmatprep.subr.mxu0 %v16142_v59  ;;  %5636 = vmatprep.mubr.f32.mxu1 %v16087_v62  ;;  %v3654_v51 = vpop.f32.mrf.mxu1  ;;  %v3752_v0 = vadd.f32 %v3751_v4, %v13221_v44  ;;  %v6289_v46 = vpop.permute.xlu1 %6288  ;;  %v16145_v44 = vand.u32 4294901760, %v12982_v24 }
 0x3ee   : > { %5973 = vmatpush1.msra.mxu0 %v16143_v26  ;;  %5732 = vmatprep.mubr.f32.mxu0 %v16087_v62  ;;  %v13295_v2 = vadd.f32 %v3654_v51, %v3493_v42  ;;  %v3753_v47 = vpop.f32.mrf.mxu0  ;;  %v16146_v42 = vand.u32 4294901760, %v12989_v22 }
 0x3ef   : > { %5977 = vmatprep.subr.mxu0 %v16144_v57  ;;  %5735 = vmatmul.mubr.f32.gmra.mxu0 %v13100_v63  ;;  %v3656_v41 = vpop.f32.mrf.mxu1  ;;  %v3754_v55 = vadd.f32 %v3753_v47, %v13233_v12  ;;  %v16147_v12 = vand.u32 4294901760, %v12997_v17  ;;  %v16148_v47 = vand.u32 4294901760, %v13078_v30 }
 0x3f0   : > { %5638 = vmatmul.mubr.f32.gmra.mxu1 %v13214_v39  ;;  %5981 = vmatpush1.msra.mxu0 %v16145_v44  ;;  %v13304_v7 = vadd.f32 %v3656_v41, %v3495_v11  ;;  %v3759_v5 = vpop.f32.mrf.mxu0  ;;  %v13306_v4 = vpop.permute.xlu0 %6282 }
 0x3f1   : > { %5985 = vmatprep.subr.mxu0 %v16146_v42  ;;  %5740 = vmatprep.mubr.f32.mxu0 %v16087_v62  ;;  %v3760_v35 = vadd.f32 %v3759_v5, %v13239_v6  ;;  %v3881_v59 = vpop.f32.mrf.mxu1  ;;  %v13312_v51 = vpop.permute.xlu1 %6280 }
 0x3f2   : > { %5989 = vmatpush1.msra.mxu0 %v16147_v12  ;;  %5861 = vmatprep.mubr.f32.mxu1 %v16087_v62  ;;  %v13317_v24 = vadd.f32 %v3881_v59, %v3744_v56  ;;  %v3761_v11 = vpop.f32.mrf.mxu0  ;;  %v16150_v12 = vand.u32 4294901760, %v13123_v52 }
 0x3f3   : > { %5743 = vmatmul.mubr.f32.gmra.mxu0 %v13123_v52  ;;  %v3762_v22 = vadd.f32 %v3761_v11, %v13248_v43  ;;  %v3883_v26 = vpop.f32.mrf.mxu1 }
 0x3f4   : > { %5865 = vmatmul.mubr.f32.vlgmr.msra.gmra.mxu1 %v16148_v47  ;;  %v13323_v6 = vadd.f32 %v3883_v26, %v3746_v40  ;;  %5748 = vmatprep.mubr.f32.mxu0 %v16087_v62  ;;  %v3767_v57 = vpop.f32.mrf.mxu0  ;;  %v13326_v17 = vpop.permute.xlu0 %6274 }
 0x3f5   : > { %6106 = vmatpush1.msra.mxu1 %v12918_v38  ;;  %5870 = vmatprep.mubr.f32.mxu1 %v16087_v62  ;;  %v3768_v56 = vadd.f32 %v3767_v57, %v13252_v36  ;;  %v3890_v41 = vpop.f32.mrf.mxu1  ;;  %v6279_v44 = vpop.permute.xlu1 %6278  ;;  %v16149_v38 = vand.u32 4294901760, %v13100_v63 }
 0x3f6   : > { %6108 = vmatprep.subr.mxu1 %v12925_v23  ;;  %v13332_v43 = vadd.f32 %v3890_v41, %v3752_v0  ;;  %v3769_v30 = vpop.f32.mrf.mxu0  ;;  %v16151_v41 = vand.u32 4294901760, %v13148_v54 }
 0x3f7   : > { %6110 = vmatpush1.msra.mxu1 %v12937_v15  ;;  %5751 = vmatmul.mubr.f32.gmra.mxu0 %v13148_v54  ;;  %v3770_v40 = vadd.f32 %v3769_v30, %v13258_v10  ;;  %v3892_v5 = vpop.f32.mrf.mxu1  ;;  %v6296_v54 = vsel %vm6290_vm4, %v13312_v51, %v13306_v4  ;;  %v16152_v4 = vand.u32 4294901760, %v13162_v58 }
 0x3f8   : > { %6112 = vmatprep.subr.mxu1 %v12943_v9  ;;  %5874 = vmatmul.mubr.f32.gmra.mxu1 %v16149_v38  ;;  %v13340_v36 = vadd.f32 %v3892_v5, %v3754_v55  ;;  %v3775_v42 = vpop.f32.mrf.mxu0  ;;  %v6287_v59 = vpop.permute.xlu0 %6286 }
 0x3f9   : > { %6114 = vmatpush1.msra.mxu1 %v12955_v37  ;;  %5756 = vmatprep.mubr.f32.mxu0 %v16087_v62  ;;  %v3776_v23 = vadd.f32 %v3775_v42, %v13262_v19  ;;  %v3899_v15 = vpop.f32.mrf.mxu1  ;;  %v6298_v63 = vsel %vm6290_vm4, %v6287_v59, %v6289_v46  ;;  %v6277_v0 = vpop.permute.xlu1 %6276  ;;  %v6297_v5 = vsel %vm6290_vm4, %v13286_v25, %v6287_v59 }
 0x3fa   : > { %6116 = vmatprep.subr.mxu1 %v12962_v32  ;;  %5879 = vmatprep.mubr.f32.mxu1 %v16087_v62  ;;  %v13347_v9 = vadd.f32 %v3899_v15, %v3760_v35  ;;  %v3777_v10 = vpop.f32.mrf.mxu0  ;;  %v13352_v37 = vand.u32 4294901760, %v6298_v63 }
 0x3fb   : > { %6118 = vmatpush1.msra.mxu1 %v12971_v29  ;;  %5759 = vmatmul.mubr.f32.gmra.mxu0 %v13162_v58  ;;  %v3778_v55 = vadd.f32 %v3777_v10, %v13265_v61  ;;  %v3901_v19 = vpop.f32.mrf.mxu1 }
 0x3fc   : > { %5883 = vmatmul.mubr.f32.gmra.mxu1 %v16150_v12  ;;  %v13357_v32 = vadd.f32 %v3901_v19, %v3762_v22  ;;  %5764 = vmatprep.mubr.f32.mxu0 %v16087_v62  ;;  %v3783_v35 = vpop.f32.mrf.mxu0  ;;  %v13361_v46 = vsub.f32 %v6298_v63, %v13352_v37  ;;  %v6295_v63 = vsel %vm6290_vm4, %v6279_v44, %v13312_v51  ;;  %v13392_v19 = vand.u32 4294901760, %v6297_v5 }
 0x3fd   : > { %5888 = vmatprep.mubr.f32.mxu1 %v16087_v62  ;;  %v3784_v29 = vadd.f32 %v3783_v35, %v13269_v31  ;;  %v3908_v11 = vpop.f32.mrf.mxu1  ;;  %6356 = vmatprep.subr.mxu0 %v13352_v37  ;;  %v6294_v12 = vsel %vm6290_vm4, %v13326_v17, %v6277_v0  ;;  %v13401_v44 = vand.u32 4294901760, %v6296_v54  ;;  %v13407_v0 = vand.u32 4294901760, %v6295_v63 }
 0x3fe   : > { %v13365_v26 = vadd.f32 %v3908_v11, %v3768_v56  ;;  %v6273_v61 = vpop.permute.xlu0 %6272  ;;  %v3785_v52 = vpop.f32.mrf.mxu0  ;;  %v15976_v57 = vand.u32 4294901760, %v13361_v46 }
 0x3ff   : > { %5767 = vmatmul.mubr.f32.gmra.mxu0 %v13190_v49  ;;  %v3786_v22 = vadd.f32 %v3785_v52, %v13272_v3  ;;  %v3910_v47 = vpop.f32.mrf.mxu1  ;;  %16153 = vst [vmem:[#allocation7_spill] sm:$0xff] %v13401_v44  ;;  %16154 = vst [vmem:[#allocation8_spill] sm:$0xff] %v13407_v0 }
 0x400   : > { %5892 = vmatmul.mubr.f32.gmra.mxu1 %v16151_v41  ;;  %v13373_v30 = vadd.f32 %v3910_v47, %v3770_v40  ;;  %v6269_v31 = vpop.permute.xlu1 %6268  ;;  %5772 = vmatprep.mubr.f32.mxu0 %v16087_v62  ;;  %v3791_v56 = vpop.f32.mrf.mxu0  ;;  %v6519_v42 = vsub.f32 %v13361_v46, %v15976_v57  ;;  %v13411_v47 = vand.u32 4294901760, %v6294_v12 }
 0x401   : > { %5897 = vmatprep.mubr.f32.mxu1 %v16087_v62  ;;  %v3792_v38 = vadd.f32 %v3791_v56, %v13277_v21  ;;  %v3917_v3 = vpop.f32.mrf.mxu1  ;;  %v13417_v56 = vsub.f32 %v6297_v5, %v13392_v19 }
 0x402   : > { %v13386_v40 = vadd.f32 %v3917_v3, %v3776_v23  ;;  %v3793_v15 = vpop.f32.mrf.mxu0  ;;  %v6520_v10 = vand.u32 4294901760, %v6519_v42  ;;  %16155 = vst [vmem:[#allocation9_spill] sm:$0xff] %v13411_v47 }
 0x403   : > { %5775 = vmatmul.mubr.f32.gmra.mxu0 %v13212_v18  ;;  %v6271_v25 = vpop.permute.xlu0 %6270  ;;  %v3794_v21 = vadd.f32 %v3793_v15, %v13284_v28  ;;  %v3919_v59 = vpop.f32.mrf.mxu1  ;;  %v6293_v28 = vsel %vm6290_vm4, %v6273_v61, %v13326_v17 }
 0x404   : > { %5901 = vmatmul.mubr.f32.gmra.mxu1 %v16152_v4  ;;  %v13398_v23 = vadd.f32 %v3919_v59, %v3778_v55  ;;  %5780 = vmatprep.mubr.f32.mxu0 %v16087_v62  ;;  %v3799_v51 = vpop.f32.mrf.mxu0  ;;  %v6292_v41 = vsel %vm6290_vm4, %v6269_v31, %v6271_v25 }
 0x405   : > { %v6267_v35 = vpop.permute.xlu1 %6266  ;;  %5906 = vmatprep.mubr.f32.mxu1 %v16087_v62  ;;  %v3800_v11 = vadd.f32 %v3799_v51, %v13295_v2  ;;  %v3926_v52 = vpop.f32.mrf.mxu1  ;;  %6521 = vmatprep.subr.mxu1 %v6520_v10  ;;  %v13419_v2 = vand.u32 4294901760, %v6293_v28  ;;  %v13434_v10 = vld [vmem:[#allocation2 + $0x48] sm:$0xff] }
 0x406   : > { %v13409_v58 = vadd.f32 %v3926_v52, %v3784_v29  ;;  %v3801_v55 = vpop.f32.mrf.mxu0  ;;  %v6291_v3 = vsel %vm6290_vm4, %v6267_v35, %v6269_v31  ;;  %v16157_v29 = vand.u32 4294901760, %v13190_v49  ;;  %v13439_v31 = vsub.f32 %v6295_v63, %v13407_v0 }
 0x407   : > { %5783 = vmatmul.mubr.f32.gmra.mxu0 %v13229_v16  ;;  %v3802_v17 = vadd.f32 %v3801_v55, %v13304_v7  ;;  %v3928_v61 = vpop.f32.mrf.mxu1  ;;  %16156 = vst [vmem:[#allocation18_spill] sm:$0xff] %v13419_v2  ;;  %v13430_v7 = vsub.f32 %v6296_v54, %v13401_v44  ;;  %v13448_v35 = vsub.f32 %v6294_v12, %v13411_v47  ;;  %v13450_v52 = vand.u32 4294901760, %v6291_v3 }
 0x408   : > { %5910 = vmatmul.mubr.f32.gmra.mxu1 %v16157_v29  ;;  %v13424_v42 = vpop.permute.xlu0 %7233  ;;  %v13426_v15 = vadd.f32 %v3928_v61, %v3786_v22  ;;  %6022 = vmatprep.mubr.f32.mxu0 %v16087_v62  ;;  %v4040_v25 = vpop.f32.mrf.mxu0  ;;  %v13441_v22 = vand.u32 4294901760, %v6292_v41  ;;  %v15981_v61 = vand.u32 4294901760, %v13417_v56  ;;  %v13461_v12 = vsub.f32 %v6293_v28, %v13419_v2 }
 0x409   : > { %5915 = vmatprep.mubr.f32.mxu1 %v16087_v62  ;;  %v3935_v5 = vpop.f32.mrf.mxu1  ;;  %v4041_v59 = vadd.f32 %v4040_v25, %v13317_v24  ;;  %v7250_v49 = vmul.f32 %v13434_v10, %v13424_v42  ;;  %16159 = vst [vmem:[#allocation20_spill] sm:$0xff] %v13450_v52  ;;  %v13454_v24 = vld [vmem:[#allocation2 + $0x58] sm:$0xff]  ;;  %v16160_v29 = vand.u32 4294901760, %v13212_v18 }
 0x40a   : > { %16158 = vst [vmem:[#allocation19_spill] sm:$0xff] %v13441_v22  ;;  %v13443_v4 = vpop.permute.xlu1 %7235  ;;  %v13445_v51 = vadd.f32 %v3935_v5, %v3792_v38  ;;  %v4042_v54 = vpop.f32.mrf.mxu0 }
 0x40b   : > { %6024 = vmatmul.mubr.f32.vlgmr.msra.gmra.mxu0 %v13061_v27  ;;  %7292 = vrot.lane.b32.xlu0 %v7250_v49, %s10585_s30  ;;  %v7252_v63 = vmul.f32 %v13454_v24, %v13443_v4  ;;  %v3937_v55 = vpop.f32.mrf.mxu1  ;;  %v4043_v38 = vadd.f32 %v4042_v54, %v13323_v6  ;;  %v13473_v54 = vld [vmem:[#allocation2 + $0x40] sm:$0xff]  ;;  %v13480_v18 = vsel %vm1400_vm12, %v13424_v42, %v13443_v4 }
 0x40c   : > { %5919 = vmatmul.mubr.f32.gmra.mxu1 %v16160_v29  ;;  %6358 = vmatpush1.msra.mxu0 %v13392_v19  ;;  %v13466_v25 = vadd.f32 %v3937_v55, %v3794_v21  ;;  %v4047_v5 = vpop.f32.mrf.mxu0  ;;  %v7249_v28 = vmul.f32 %v13473_v54, %v13443_v4  ;;  %v6525_v21 = vsub.f32 %v13417_v56, %v15981_v61 }
 0x40d   : > { %6360 = vmatprep.subr.mxu0 %v13401_v44  ;;  %7296 = vrot.lane.b32.xlu1 %v7252_v63, %s10585_s30  ;;  %v3944_v49 = vpop.f32.mrf.mxu1  ;;  %v13471_v6 = vadd.f32 %v4047_v5, %v13332_v43  ;;  %v13485_v63 = vsub.f32 %v6292_v41, %v13441_v22  ;;  %v13492_v5 = vsub.f32 %v6291_v3, %v13450_v52  ;;  %v13504_v3 = vld [vmem:[#allocation2 + $0x38] sm:$0xff]  ;;  %v16163_v41 = vand.u32 4294901760, %v13439_v31 }
 0x40e   : > { %6362 = vmatpush1.msra.mxu0 %v13407_v0  ;;  %5924 = vmatprep.mubr.f32.mxu1 %v16087_v62  ;;  %v13489_v43 = vadd.f32 %v3944_v49, %v3800_v11  ;;  %v4049_v29 = vpop.f32.mrf.mxu0  ;;  %v16161_v11 = vand.u32 4294901760, %v13229_v16  ;;  %v7248_v49 = vmul.f32 %v13504_v3, %v13480_v18 }
 0x40f   : > { %6029 = vmatprep.mubr.f32.mxu0 %v16087_v62  ;;  %6364 = vmatprep.subr.mxu0 %v13411_v47  ;;  %v3946_v57 = vpop.f32.mrf.mxu1  ;;  %v4050_v55 = vadd.f32 %v4049_v29, %v13340_v36 }
 0x410   : > { %5928 = vmatmul.mubr.f32.gmra.mxu1 %v16161_v11  ;;  %6031 = vmatmul.mubr.f32.gmra.mxu0 %v13081_v8  ;;  %v13508_v47 = vadd.f32 %v3946_v57, %v3802_v17  ;;  %v4054_v0 = vpop.f32.mrf.mxu0  ;;  %v16162_v11 = vand.u32 4294901760, %v13430_v7  ;;  %v6537_v57 = vsub.f32 %v13439_v31, %v16163_v41  ;;  %v16164_v41 = vand.u32 4294901760, %v13448_v35 }
 0x411   : > { %6366 = vmatpush1.msra.mxu0 %v13419_v2  ;;  %7290 = vrot.lane.b32.xlu0 %v7249_v28, %s10585_s30  ;;  %v13514_v29 = vadd.f32 %v4054_v0, %v13347_v9  ;;  %v4169_v16 = vpop.f32.mrf.mxu1  ;;  %v16166_v28 = vand.u32 4294901760, %v13461_v12  ;;  %v13548_v2 = vld [vmem:[#allocation2 + $0x30] sm:$0xff] }
 0x412   : > { %v6531_v61 = vsub.f32 %v13430_v7, %v16162_v11  ;;  %6368 = vmatprep.subr.mxu0 %v13441_v22  ;;  %7288 = vrot.lane.b32.xlu1 %v7248_v49, %s10585_s30  ;;  %v4170_v17 = vadd.f32 %v4169_v16, %v4041_v59  ;;  %v4056_v36 = vpop.f32.mrf.mxu0  ;;  %v6543_v22 = vsub.f32 %v13448_v35, %v16164_v41  ;;  %v6526_v49 = vand.u32 4294901760, %v6525_v21  ;;  %v13539_v16 = vld [vmem:[#allocation2 + $0x20] sm:$0xff] }
 0x413   : > { %6370 = vmatpush1.msra.mxu0 %v13450_v52  ;;  %6036 = vmatprep.mubr.f32.mxu0 %v16087_v62  ;;  %v13529_v0 = vadd.f32 %v4056_v36, %v13357_v32  ;;  %v4171_v11 = vpop.f32.mrf.mxu1  ;;  %v7245_v9 = vmul.f32 %v13539_v16, %v13480_v18  ;;  %v6549_v52 = vsub.f32 %v13461_v12, %v16166_v28 }
 0x414   : > { %6151 = vmatprep.mubr.f32.mxu1 %v16087_v62  ;;  %6679 = vmatprep.subr.mxu0 %v13361_v46  ;;  %v13537_v59 = vadd.f32 %v4170_v17, %v13004_v50  ;;  %v4172_v32 = vadd.f32 %v4171_v11, %v4043_v38  ;;  %v4061_v36 = vpop.f32.mrf.mxu0  ;;  %v6532_v41 = vand.u32 4294901760, %v6531_v61  ;;  %v7247_v50 = vmul.f32 %v13548_v2, %v13424_v42  ;;  %v10454_v38 = vld [vmem:[%s15897_s4 + $0x140] sm:$0xff] }
 0x415   : > { %6038 = vmatmul.mubr.f32.gmra.mxu0 %v13102_v20  ;;  %6153 = vmatmul.mubr.f32.vlgmr.msra.gmra.mxu1 %v13061_v27  ;;  %v4062_v21 = vadd.f32 %v4061_v36, %v13365_v26  ;;  %v4176_v17 = vpop.f32.mrf.mxu1  ;;  %v6538_v27 = vand.u32 4294901760, %v6537_v57  ;;  %v16167_v11 = vand.u32 4294901760, %v13485_v63  ;;  %v16168_v26 = vand.u32 4294901760, %v13492_v5 }
 0x416   : > { %16165 = vst [vmem:[#allocation21_spill] sm:$0xff] %v13537_v59  ;;  %6527 = vmatpush1.msra.mxu1 %v6526_v49  ;;  %7282 = vrot.lane.b32.xlu0 %v7245_v9, %s10585_s30  ;;  %v13558_v28 = vadd.f32 %v4172_v32, %v13023_v14  ;;  %v4177_v61 = vadd.f32 %v4176_v17, %v13471_v6  ;;  %v4063_v44 = vpop.f32.mrf.mxu0  ;;  %v6544_v49 = vand.u32 4294901760, %v6543_v22  ;;  %v6308_v17 = vsel %vm1400_vm12, %v10454_v38, 0 }
 0x417   : > { %v6555_v59 = vsub.f32 %v13485_v63, %v16167_v11  ;;  %v6561_v36 = vsub.f32 %v13492_v5, %v16168_v26  ;;  %6533 = vmatprep.subr.mxu1 %v6532_v41  ;;  %7286 = vrot.lane.b32.xlu1 %v7247_v50, %s10585_s30  ;;  %v4064_v9 = vadd.f32 %v4063_v44, %v13373_v30  ;;  %v4178_v14 = vpop.f32.mrf.mxu1  ;;  %v6550_v41 = vand.u32 4294901760, %v6549_v52  ;;  %v13575_v11 = vld [vmem:[#allocation2 + $0x50] sm:$0xff] }
 0x418   : > { %6539 = vmatpush1.msra.mxu1 %v6538_v27  ;;  %6043 = vmatprep.mubr.f32.mxu0 %v16087_v62  ;;  %v13571_v6 = vadd.f32 %v4177_v61, %v13044_v60  ;;  %v4179_v57 = vadd.f32 %v4178_v14, %v4050_v55  ;;  %v4068_v32 = vpop.f32.mrf.mxu0  ;;  %v7251_v30 = vmul.f32 %v13575_v11, %v13480_v18  ;;  %v13582_v55 = vld [vmem:[#allocation2 + $0x28] sm:$0xff]  ;;  %v13595_v26 = vand.u32 4294901760, %v6308_v17  ;;  %v13603_v14 = vld [vmem:[#allocation2 + $0x18] sm:$0xff] }
 0x419   : > { %6158 = vmatprep.mubr.f32.mxu1 %v16087_v62  ;;  %6545 = vmatprep.subr.mxu1 %v6544_v49  ;;  %v4069_v44 = vadd.f32 %v4068_v32, %v13386_v40  ;;  %v4183_v22 = vpop.f32.mrf.mxu1  ;;  %v6556_v60 = vand.u32 4294901760, %v6555_v59  ;;  %v7246_v50 = vmul.f32 %v13582_v55, %v13443_v4  ;;  %v10455_v40 = vld [vmem:[%s15897_s4 + $0x148] sm:$0xff] }
 0x41a   : > { %6045 = vmatmul.mubr.f32.gmra.mxu0 %v13125_v34  ;;  %6160 = vmatmul.mubr.f32.gmra.mxu1 %v13081_v8  ;;  %v13587_v52 = vadd.f32 %v4179_v57, %v13056_v53  ;;  %v4184_v38 = vadd.f32 %v4183_v22, %v13514_v29  ;;  %v4070_v27 = vpop.f32.mrf.mxu0  ;;  %v6562_v8 = vand.u32 4294901760, %v6561_v36  ;;  %v6311_v32 = vsel %vm1400_vm12, %v10455_v40, 0  ;;  %v13638_v40 = vld [vmem:[#allocation2 + $0x10] sm:$0xff] }
 0x41b   : > { %6551 = vmatpush1.msra.mxu1 %v6550_v41  ;;  %7294 = vrot.lane.b32.xlu0 %v7251_v30, %s10585_s30  ;;  %v4071_v59 = vadd.f32 %v4070_v27, %v13398_v23  ;;  %v4185_v61 = vpop.f32.mrf.mxu1  ;;  %v7244_v23 = vmul.f32 %v13603_v14, %v13424_v42  ;;  %v13632_v27 = vand.u32 4294901760, %v6311_v32 }
 0x41c   : > { %6557 = vmatprep.subr.mxu1 %v6556_v60  ;;  %7284 = vrot.lane.b32.xlu1 %v7246_v50, %s10585_s30  ;;  %v13599_v53 = vadd.f32 %v4184_v38, %v13066_v45  ;;  %v4186_v29 = vadd.f32 %v4185_v61, %v13529_v0  ;;  %v4075_v49 = vpop.f32.mrf.mxu0  ;;  %v13611_v45 = vld [vmem:[#allocation2 + $0x8] sm:$0xff]  ;;  %v13625_v38 = vsub.f32 %v6308_v17, %v13595_v26  ;;  %v16171_v61 = vld [vmem:[#allocation6_spill] sm:$0xff] }
 0x41d   : > { %6563 = vmatpush1.msra.mxu1 %v6562_v8  ;;  %6050 = vmatprep.mubr.f32.mxu0 %v16087_v62  ;;  %v4076_v36 = vadd.f32 %v4075_v49, %v13409_v58  ;;  %v4190_v57 = vpop.f32.mrf.mxu1  ;;  %v7242_v0 = vmul.f32 %v13611_v45, %v13480_v18  ;;  %v10456_v58 = vld [vmem:[%s15897_s4 + $0x150] sm:$0xff]  ;;  %v7243_v8 = vmul.f32 %v13638_v40, %v13443_v4 }
 0x41e   : > { %6165 = vmatprep.mubr.f32.mxu1 %v16087_v62  ;;  %6823 = vmatprep.subr.mxu1 %v13352_v37  ;;  %v13616_v41 = vadd.f32 %v4186_v29, %v13075_v48  ;;  %v4191_v30 = vadd.f32 %v4190_v57, %v4062_v21  ;;  %v4077_v22 = vpop.f32.mrf.mxu0  ;;  %v6314_v17 = vsel %vm1400_vm12, %v10456_v58, 0  ;;  %v16173_v57 = vld [vmem:[#allocation16_spill] sm:$0xff]  ;;  %v16174_v4 = vld [vmem:[#allocation5_spill] sm:$0xff] }
 0x41f   : > { %6052 = vmatmul.mubr.f32.gmra.mxu0 %v13140_v33  ;;  %6167 = vmatmul.mubr.f32.gmra.mxu1 %v13102_v20  ;;  %v4078_v60 = vadd.f32 %v4077_v22, %v13426_v15  ;;  %v4192_v50 = vpop.f32.mrf.mxu1 }
 0x420   : > { %16169 = vst [vmem:[#allocation22_spill] sm:$0xff] %v13616_v41  ;;  %7280 = vrot.lane.b32.xlu0 %v7244_v23, %s10585_s30  ;;  %7276 = vrot.lane.b32.xlu1 %v7242_v0, %s10585_s30  ;;  %v13630_v48 = vadd.f32 %v4191_v30, %v13086_v1  ;;  %v4193_v18 = vadd.f32 %v4192_v50, %v4064_v9  ;;  %v4082_v21 = vpop.f32.mrf.mxu0  ;;  %v13642_v1 = vld [vmem:[#allocation2] sm:$0xff]  ;;  %v15993_v30 = vand.u32 4294901760, %v13625_v38 }
 0x421   : > { %6057 = vmatprep.mubr.f32.mxu0 %v16087_v62  ;;  %6172 = vmatprep.mubr.f32.mxu1 %v16087_v62  ;;  %v4083_v20 = vadd.f32 %v4082_v21, %v13445_v51  ;;  %v4197_v15 = vpop.f32.mrf.mxu1  ;;  %v7241_v9 = vmul.f32 %v13642_v1, %v13424_v42  ;;  %v16176_v21 = vld [vmem:[#allocation10_spill] sm:$0xff] }
 0x422   : > { %16170 = vst [vmem:[#allocation23_spill] sm:$0xff] %v13630_v48  ;;  %v13647_v29 = vadd.f32 %v4193_v18, %v16171_v61  ;;  %v4198_v49 = vadd.f32 %v4197_v15, %v4069_v44  ;;  %v4084_v23 = vpop.f32.mrf.mxu0  ;;  %v13659_v44 = vsub.f32 %v6311_v32, %v13632_v27  ;;  %v13667_v18 = vand.u32 4294901760, %v6314_v17 }
 0x423   : > { %6059 = vmatmul.mubr.f32.gmra.mxu0 %v16173_v57  ;;  %6174 = vmatmul.mubr.f32.gmra.mxu1 %v13125_v34  ;;  %v4085_v51 = vadd.f32 %v4084_v23, %v13466_v25  ;;  %v4199_v0 = vpop.f32.mrf.mxu1  ;;  %v10457_v34 = vld [vmem:[%s15897_s4 + $0x158] sm:$0xff]  ;;  %v6407_v61 = vsub.f32 %v13625_v38, %v15993_v30 }
 0x424   : > { %16172 = vst [vmem:[#allocation6_spill] sm:$0xff] %v13647_v29  ;;  %7278 = vrot.lane.b32.xlu0 %v7243_v8, %s10585_s30  ;;  %7274 = vrot.lane.b32.xlu1 %v7241_v9, %s10585_s30  ;;  %v13656_v42 = vadd.f32 %v4198_v49, %v16174_v4  ;;  %v4200_v22 = vadd.f32 %v4199_v0, %v4071_v59  ;;  %v4089_v58 = vpop.f32.mrf.mxu0 }
 0x425   : > { %6064 = vmatprep.mubr.f32.mxu0 %v16087_v62  ;;  %6179 = vmatprep.mubr.f32.mxu1 %v16087_v62  ;;  %v4090_v25 = vadd.f32 %v4089_v58, %v13489_v43  ;;  %v4204_v50 = vpop.f32.mrf.mxu1  ;;  %v6317_v43 = vsel %vm1400_vm12, %v10457_v34, 0  ;;  %v13690_v4 = vsub.f32 %v6314_v17, %v13667_v18  ;;  %v16183_v17 = vld [vmem:[#allocation14_spill] sm:$0xff] }
 0x426   : > { %16175 = vst [vmem:[#allocation16_spill] sm:$0xff] %v13656_v42  ;;  %v13670_v15 = vadd.f32 %v4200_v22, %v16176_v21  ;;  %v4205_v59 = vadd.f32 %v4204_v50, %v4076_v36  ;;  %v4091_v8 = vpop.f32.mrf.mxu0  ;;  %v16178_v36 = vld [vmem:[#allocation13_spill] sm:$0xff]  ;;  %v13698_v34 = vand.u32 4294901760, %v6317_v43  ;;  %v6408_v50 = vand.u32 4294901760, %v6407_v61  ;;  %v16185_v61 = vld [vmem:[#allocation12_spill] sm:$0xff] }
 0x427   : > { %6066 = vmatmul.mubr.f32.gmra.mxu0 %v13192_v13  ;;  %6181 = vmatmul.mubr.f32.gmra.mxu1 %v13140_v33  ;;  %v4092_v32 = vadd.f32 %v4091_v8, %v13508_v47  ;;  %v4206_v9 = vpop.f32.mrf.mxu1  ;;  %v15992_v47 = vand.u32 4294901760, %v13659_v44  ;;  %v16202_v42 = vld [vmem:[#allocation4_spill] sm:$0xff] }
 0x428   : > { %16177 = vst [vmem:[#allocation5_spill] sm:$0xff] %v13670_v15  ;;  %8270 = vrot.lane.b32.xlu0 %v13575_v11, %s10586_s17  ;;  %8272 = vrot.lane.b32.xlu1 %v13454_v24, %s10586_s17  ;;  %v13684_v49 = vadd.f32 %v4205_v59, %v16178_v36  ;;  %v4207_v33 = vadd.f32 %v4206_v9, %v4078_v60  ;;  %v4425_v23 = vpop.f32.mrf.mxu0  ;;  %v10458_v11 = vld [vmem:[%s15897_s4 + $0x160] sm:$0xff] }
 0x429   : > { %6071 = vmatprep.mubr.f32.mxu0 %v16087_v62  ;;  %6186 = vmatprep.mubr.f32.mxu1 %v16087_v62  ;;  %v4211_v0 = vpop.f32.mrf.mxu1  ;;  %v16180_v24 = vld [vmem:[#allocation11_spill] sm:$0xff]  ;;  %v6418_v9 = vsub.f32 %v13659_v44, %v15992_v47  ;;  %v6320_v36 = vsel %vm1400_vm12, %v10458_v11, 0 }
 0x42a   : > { %16179 = vst [vmem:[#allocation10_spill] sm:$0xff] %v13684_v49  ;;  %v13696_v22 = vadd.f32 %v4207_v33, %v16180_v24  ;;  %v4212_v58 = vadd.f32 %v4211_v0, %v4083_v20  ;;  %v4427_v60 = vpop.f32.mrf.mxu0  ;;  %16182 = vst [vmem:[#allocation11_spill] sm:$0xff] %v13698_v34  ;;  %v13723_v24 = vsub.f32 %v6317_v43, %v13698_v34  ;;  %v16201_v15 = vld [vmem:[#allocation3_spill] sm:$0xff] }
 0x42b   : > { %6073 = vmatmul.mubr.f32.gmra.mxu0 %v13214_v39  ;;  %6188 = vmatmul.mubr.f32.gmra.mxu1 %v16173_v57  ;;  %v4213_v21 = vpop.f32.mrf.mxu1 }
 0x42c   : > { %16181 = vst [vmem:[#allocation13_spill] sm:$0xff] %v13696_v22  ;;  %8268 = vrot.lane.b32.xlu0 %v13434_v10, %s10586_s17  ;;  %8264 = vrot.lane.b32.xlu1 %v13504_v3, %s10586_s17  ;;  %v13707_v59 = vadd.f32 %v4212_v58, %v16183_v17  ;;  %v4214_v8 = vadd.f32 %v4213_v21, %v4085_v51  ;;  %v4436_v20 = vpop.f32.mrf.mxu0  ;;  %v15990_v10 = vand.u32 4294901760, %v13690_v4  ;;  %v10459_v3 = vld [vmem:[%s15897_s4 + $0x168] sm:$0xff]  ;;  %v13726_v58 = vand.u32 4294901760, %v6320_v36  ;;  %v16187_v21 = vld [vmem:[#allocation15_spill] sm:$0xff] }
 0x42d   : > { %6193 = vmatprep.mubr.f32.mxu1 %v16087_v62  ;;  %6403 = vmatprep.mubr.f32.mxu0 %v16087_v62  ;;  %v4218_v57 = vpop.f32.mrf.mxu1  ;;  %v6323_v43 = vsel %vm1400_vm12, %v10459_v3, 0  ;;  %v16198_v22 = vld [vmem:[#allocation19_spill] sm:$0xff] }
 0x42e   : > { %16184 = vst [vmem:[#allocation14_spill] sm:$0xff] %v13707_v59  ;;  %v13720_v51 = vadd.f32 %v4214_v8, %v16185_v61  ;;  %v4219_v33 = vadd.f32 %v4218_v57, %v4090_v25  ;;  %v4438_v0 = vpop.f32.mrf.mxu0  ;;  %v6419_v8 = vand.u32 4294901760, %v6418_v9 }
 0x42f   : > { %6195 = vmatmul.mubr.f32.gmra.mxu1 %v13192_v13  ;;  %6409 = vmatmul.mubr.f32.vlgmr.msra.gmra.mxu0 %v6408_v50  ;;  %v4220_v11 = vpop.f32.mrf.mxu1  ;;  %v6429_v50 = vsub.f32 %v13690_v4, %v15990_v10 }
 0x430   : > { %16186 = vst [vmem:[#allocation12_spill] sm:$0xff] %v13720_v51  ;;  %6682 = vmatpush1.msra.mxu0 %v13417_v56  ;;  %8266 = vrot.lane.b32.xlu0 %v13473_v54, %s10586_s17  ;;  %v13732_v17 = vadd.f32 %v4219_v33, %v16187_v21  ;;  %v4221_v25 = vadd.f32 %v4220_v11, %v4092_v32  ;;  %v4447_v57 = vpop.f32.mrf.mxu0  ;;  %v10460_v54 = vld [vmem:[%s15897_s4 + $0x170] sm:$0xff]  ;;  %v13757_v21 = vand.u32 4294901760, %v6323_v43 }
 0x431   : > { %6685 = vmatprep.subr.mxu0 %v13430_v7  ;;  %8262 = vrot.lane.b32.xlu1 %v13548_v2, %s10586_s17  ;;  %v4614_v13 = vpop.f32.mrf.mxu1  ;;  %v16189_v32 = vld [vmem:[#allocation17_spill] sm:$0xff]  ;;  %v15991_v2 = vand.u32 4294901760, %v13723_v24  ;;  %v13755_v11 = vsub.f32 %v6320_v36, %v13726_v58  ;;  %v10461_v36 = vld [vmem:[%s15897_s4 + $0x178] sm:$0xff] }
 0x432   : > { %16188 = vst [vmem:[#allocation15_spill] sm:$0xff] %v13732_v17  ;;  %6688 = vmatpush1.msra.mxu0 %v13439_v31  ;;  %6200 = vmatprep.mubr.f32.mxu1 %v16087_v62  ;;  %v13747_v9 = vadd.f32 %v4221_v25, %v16189_v32  ;;  %v13749_v3 = vadd.f32 %v4614_v13, %v4425_v23  ;;  %v4449_v61 = vpop.f32.mrf.mxu0  ;;  %v6326_v13 = vsel %vm1400_vm12, %v10460_v54, 0  ;;  %v6430_v32 = vand.u32 4294901760, %v6429_v50 }
 0x433   : > { %6414 = vmatprep.mubr.f32.mxu0 %v16087_v62  ;;  %6691 = vmatprep.subr.mxu0 %v13448_v35  ;;  %v4616_v33 = vpop.f32.mrf.mxu1  ;;  %v13781_v54 = vsub.f32 %v6323_v43, %v13757_v21 }
 0x434   : > { %16190 = vst [vmem:[#allocation17_spill] sm:$0xff] %v13747_v9  ;;  %6202 = vmatmul.mubr.f32.gmra.mxu1 %v13214_v39  ;;  %6420 = vmatmul.mubr.f32.gmra.mxu0 %v6419_v8  ;;  %v13760_v25 = vadd.f32 %v4616_v33, %v4427_v60  ;;  %v4458_v23 = vpop.f32.mrf.mxu0  ;;  %v6440_v60 = vsub.f32 %v13723_v24, %v15991_v2  ;;  %v13783_v33 = vand.u32 4294901760, %v6326_v13  ;;  %v6329_v2 = vsel %vm1400_vm12, %v10461_v36, 0  ;;  %v16196_v9 = vld [vmem:[#allocation18_spill] sm:$0xff] }
 0x435   : > { %6694 = vmatpush1.msra.mxu0 %v13461_v12  ;;  %8258 = vrot.lane.b32.xlu0 %v13539_v16, %s10586_s17  ;;  %v4621_v10 = vpop.f32.mrf.mxu1 }
 0x436   : > { %6697 = vmatprep.subr.mxu0 %v13485_v63  ;;  %8260 = vrot.lane.b32.xlu1 %v13582_v55, %s10586_s17  ;;  %v13772_v39 = vadd.f32 %v4621_v10, %v4436_v20  ;;  %v4460_v8 = vpop.f32.mrf.mxu0  ;;  %v16191_v55 = vand.u32 4294901760, %v13361_v46  ;;  %v6441_v43 = vand.u32 4294901760, %v6440_v60  ;;  %v16192_v46 = vld [vmem:[#allocation7_spill] sm:$0xff] }
 0x437   : > { %6700 = vmatpush1.msra.mxu0 %v13492_v5  ;;  %6425 = vmatprep.mubr.f32.mxu0 %v16087_v62  ;;  %v4623_v16 = vpop.f32.mrf.mxu1 }
 0x438   : > { %6596 = vmatprep.mubr.f32.mxu1 %v16087_v62  ;;  %6970 = vmatprep.subr.mxu0 %v16191_v55  ;;  %v13788_v20 = vadd.f32 %v4623_v16, %v4438_v0  ;;  %v4469_v10 = vpop.f32.mrf.mxu0  ;;  %v16193_v0 = vand.u32 4294901760, %v13755_v11  ;;  %v13805_v55 = vsub.f32 %v6326_v13, %v13783_v33 }
 0x439   : > { %6431 = vmatmul.mubr.f32.gmra.mxu0 %v6430_v32  ;;  %6598 = vmatmul.mubr.f32.vlgmr.msra.gmra.mxu1 %v13595_v26  ;;  %v4628_v47 = vpop.f32.mrf.mxu1 }
 0x43a   : > { %6825 = vmatpush1.msra.mxu1 %v13392_v19  ;;  %8256 = vrot.lane.b32.xlu0 %v13603_v14, %s10586_s17  ;;  %v13795_v30 = vadd.f32 %v4628_v47, %v4447_v57  ;;  %v4471_v50 = vpop.f32.mrf.mxu0  ;;  %v6451_v32 = vsub.f32 %v13755_v11, %v16193_v0  ;;  %v13807_v14 = vand.u32 4294901760, %v6329_v2  ;;  %v16194_v47 = vld [vmem:[#allocation8_spill] sm:$0xff] }
 0x43b   : > { %6827 = vmatprep.subr.mxu1 %v16192_v46  ;;  %8252 = vrot.lane.b32.xlu1 %v13611_v45, %s10586_s17  ;;  %v4630_v36 = vpop.f32.mrf.mxu1  ;;  %v16195_v45 = vld [vmem:[#allocation9_spill] sm:$0xff] }
 0x43c   : > { %6829 = vmatpush1.msra.mxu1 %v16194_v47  ;;  %6436 = vmatprep.mubr.f32.mxu0 %v16087_v62  ;;  %v13811_v57 = vadd.f32 %v4630_v36, %v4449_v61  ;;  %v4480_v60 = vpop.f32.mrf.mxu0  ;;  %v6452_v17 = vand.u32 4294901760, %v6451_v32  ;;  %v16197_v61 = vand.u32 4294901760, %v13781_v54 }
 0x43d   : > { %6603 = vmatprep.mubr.f32.mxu1 %v16087_v62  ;;  %6831 = vmatprep.subr.mxu1 %v16195_v45  ;;  %v4635_v0 = vpop.f32.mrf.mxu1 }
 0x43e   : > { %6442 = vmatmul.mubr.f32.gmra.mxu0 %v6441_v43  ;;  %6605 = vmatmul.mubr.f32.gmra.mxu1 %v13632_v27  ;;  %v13816_v16 = vadd.f32 %v4635_v0, %v4458_v23  ;;  %v4482_v13 = vpop.f32.mrf.mxu0  ;;  %v6462_v36 = vsub.f32 %v13781_v54, %v16197_v61  ;;  %v13826_v43 = vsub.f32 %v6329_v2, %v13807_v14 }
 0x43f   : > { %6833 = vmatpush1.msra.mxu1 %v16196_v9  ;;  %8254 = vrot.lane.b32.xlu0 %v13638_v40, %s10586_s17  ;;  %v4637_v51 = vpop.f32.mrf.mxu1  ;;  %v16199_v40 = vld [vmem:[#allocation20_spill] sm:$0xff] }
 0x440   : > { %6835 = vmatprep.subr.mxu1 %v16198_v22  ;;  %8250 = vrot.lane.b32.xlu1 %v13642_v1, %s10586_s17  ;;  %v13831_v23 = vadd.f32 %v4637_v51, %v4460_v8  ;;  %v4491_v0 = vpop.f32.mrf.mxu0  ;;  %v6463_v59 = vand.u32 4294901760, %v6462_v36  ;;  %v16200_v1 = vand.u32 4294901760, %v13805_v55  ;;  %v15994_v49 = vand.u32 4294901760, %v13826_v43 }
 0x441   : > { %6837 = vmatpush1.msra.mxu1 %v16199_v40  ;;  %6447 = vmatprep.mubr.f32.mxu0 %v16087_v62  ;;  %v4642_v32 = vpop.f32.mrf.mxu1 }
 0x442   : > { %6610 = vmatprep.mubr.f32.mxu1 %v16087_v62  ;;  %7113 = vmatprep.subr.mxu1 %v13352_v37  ;;  %v13837_v61 = vadd.f32 %v4642_v32, %v4469_v10  ;;  %v4493_v2 = vpop.f32.mrf.mxu0  ;;  %v6473_v51 = vsub.f32 %v13805_v55, %v16200_v1 }
 0x443   : > { %6453 = vmatmul.mubr.f32.gmra.mxu0 %v6452_v17  ;;  %6612 = vmatmul.mubr.f32.gmra.mxu1 %v13667_v18  ;;  %v4644_v8 = vpop.f32.mrf.mxu1 }
 0x444   : > { %9217 = vrot.lane.b32.xlu0 %v16201_v15, %s10587_s28  ;;  %9219 = vrot.lane.b32.xlu1 %v16202_v42, %s10587_s28  ;;  %v13846_v37 = vadd.f32 %v4644_v8, %v4471_v50  ;;  %v4502_v10 = vpop.f32.mrf.mxu0  ;;  %v6474_v1 = vand.u32 4294901760, %v6473_v51  ;;  %v6484_v15 = vsub.f32 %v13826_v43, %v15994_v49 }
 0x445   : > { %6458 = vmatprep.mubr.f32.mxu0 %v16087_v62  ;;  %6617 = vmatprep.mubr.f32.mxu1 %v16087_v62  ;;  %v4649_v17 = vpop.f32.mrf.mxu1 }
 0x446   : > { %v13850_v36 = vadd.f32 %v4649_v17, %v4480_v60  ;;  %v4504_v32 = vpop.f32.mrf.mxu0  ;;  %v6485_v51 = vand.u32 4294901760, %v6484_v15 }
 0x447   : > { %6464 = vmatmul.mubr.f32.gmra.mxu0 %v6463_v59  ;;  %6619 = vmatmul.mubr.f32.gmra.mxu1 %v13698_v34  ;;  %v4651_v42 = vpop.f32.mrf.mxu1 }
 0x448   : > { %6469 = vmatprep.mubr.f32.mxu0 %v16087_v62  ;;  %6624 = vmatprep.mubr.f32.mxu1 %v16087_v62  ;;  %v13858_v50 = vadd.f32 %v4651_v42, %v4482_v13  ;;  %v4752_v8 = vpop.f32.mrf.mxu0 }
 0x449   : > { %v4656_v29 = vpop.f32.mrf.mxu1  ;;  %v4753_v60 = vadd.f32 %v4752_v8, %v13749_v3  ;;  %v16204_v8 = vand.u32 4294901760, %v13430_v7 }
 0x44a   : > { %v13861_v17 = vadd.f32 %v4656_v29, %v4491_v0  ;;  %v4754_v59 = vpop.f32.mrf.mxu0 }
 0x44b   : > { %6475 = vmatmul.mubr.f32.gmra.mxu0 %v6474_v1  ;;  %6626 = vmatmul.mubr.f32.gmra.mxu1 %v13726_v58  ;;  %v4658_v48 = vpop.f32.mrf.mxu1  ;;  %v4755_v49 = vadd.f32 %v4754_v59, %v13760_v25 }
 0x44c   : > { %6480 = vmatprep.mubr.f32.mxu0 %v16087_v62  ;;  %6631 = vmatprep.mubr.f32.mxu1 %v16087_v62  ;;  %v13867_v13 = vadd.f32 %v4658_v48, %v4493_v2 }
 0x44d   : > { %v4663_v42 = vpop.f32.mrf.mxu1  ;;  %v4760_v41 = vpop.f32.mrf.mxu0 }
 0x44e   : > { %v13869_v34 = vadd.f32 %v4663_v42, %v4502_v10  ;;  %v4761_v29 = vadd.f32 %v4760_v41, %v13772_v39  ;;  %v16203_v10 = vand.u32 4294901760, %v13417_v56 }
 0x44f   : > { %6486 = vmatmul.mubr.f32.gmra.mxu0 %v6485_v51  ;;  %6633 = vmatmul.mubr.f32.gmra.mxu1 %v13757_v21  ;;  %v4665_v3 = vpop.f32.mrf.mxu1  ;;  %v4762_v0 = vpop.f32.mrf.mxu0 }
 0x450   : > { %6638 = vmatprep.mubr.f32.mxu1 %v16087_v62  ;;  %6733 = vmatprep.mubr.f32.mxu0 %v16087_v62  ;;  %v13875_v25 = vadd.f32 %v4665_v3, %v4504_v32  ;;  %v4763_v48 = vadd.f32 %v4762_v0, %v13788_v20 }
 0x452   : > { %v4768_v2 = vpop.f32.mrf.mxu0  ;;  %v4890_v1 = vpop.f32.mrf.mxu1 }
 0x453   : > { %6640 = vmatmul.mubr.f32.gmra.mxu1 %v13783_v33  ;;  %6736 = vmatmul.mubr.f32.vlgmr.msra.gmra.mxu0 %v13625_v38  ;;  %v4769_v41 = vadd.f32 %v4768_v2, %v13795_v30  ;;  %v13881_v39 = vadd.f32 %v4890_v1, %v4753_v60  ;;  %v16205_v30 = vand.u32 4294901760, %v13439_v31  ;;  %v16206_v60 = vand.u32 4294901760, %v13448_v35 }
 0x454   : > { %6974 = vmatpush1.msra.mxu0 %v16203_v10  ;;  %6645 = vmatprep.mubr.f32.mxu1 %v16087_v62  ;;  %v4770_v15 = vpop.f32.mrf.mxu0  ;;  %v4892_v32 = vpop.f32.mrf.mxu1  ;;  %v16209_v2 = vand.u32 4294901760, %v13492_v5  ;;  %v16212_v10 = vand.u32 4294901760, %v13690_v4 }
 0x455   : > { %6978 = vmatprep.subr.mxu0 %v16204_v8  ;;  %6741 = vmatprep.mubr.f32.mxu0 %v16087_v62  ;;  %v4771_v20 = vadd.f32 %v4770_v15, %v13811_v57  ;;  %v13890_v59 = vadd.f32 %v4892_v32, %v4755_v49  ;;  %v16207_v49 = vand.u32 4294901760, %v13461_v12  ;;  %v16208_v57 = vand.u32 4294901760, %v13485_v63 }
 0x456   : > { %6982 = vmatpush1.msra.mxu0 %v16205_v30 }
 0x457   : > { %6986 = vmatprep.subr.mxu0 %v16206_v60  ;;  %6647 = vmatmul.mubr.f32.gmra.mxu1 %v13807_v14  ;;  %v4776_v56 = vpop.f32.mrf.mxu0  ;;  %v4899_v51 = vpop.f32.mrf.mxu1 }
 0x458   : > { %6744 = vmatmul.mubr.f32.gmra.mxu0 %v13659_v44  ;;  %6870 = vmatprep.mubr.f32.mxu1 %v16087_v62  ;;  %v4777_v7 = vadd.f32 %v4776_v56, %v13816_v16  ;;  %v13900_v42 = vadd.f32 %v4899_v51, %v4761_v29  ;;  %v16210_v16 = vand.u32 4294901760, %v13625_v38 }
 0x459   : > { %6990 = vmatpush1.msra.mxu0 %v16207_v49  ;;  %6749 = vmatprep.mubr.f32.mxu0 %v16087_v62  ;;  %v4778_v31 = vpop.f32.mrf.mxu0  ;;  %v4901_v35 = vpop.f32.mrf.mxu1 }
 0x45a   : > { %6994 = vmatprep.subr.mxu0 %v16208_v57  ;;  %v4779_v3 = vadd.f32 %v4778_v31, %v13831_v23  ;;  %v13908_v0 = vadd.f32 %v4901_v35, %v4763_v48 }
 0x45b   : > { %6998 = vmatpush1.msra.mxu0 %v16209_v2  ;;  %6874 = vmatmul.mubr.f32.vlgmr.msra.gmra.mxu1 %v16210_v16  ;;  %v4784_v29 = vpop.f32.mrf.mxu0 }
 0x45c   : > { %6752 = vmatmul.mubr.f32.gmra.mxu0 %v13690_v4  ;;  %7115 = vmatpush1.msra.mxu1 %v13392_v19  ;;  %v4785_v12 = vadd.f32 %v4784_v29, %v13837_v61  ;;  %v4908_v1 = vpop.f32.mrf.mxu1  ;;  %v16211_v19 = vand.u32 4294901760, %v13659_v44  ;;  %v16213_v4 = vand.u32 4294901760, %v13723_v24 }
 0x45d   : > { %7117 = vmatprep.subr.mxu1 %v16192_v46  ;;  %6757 = vmatprep.mubr.f32.mxu0 %v16087_v62  ;;  %v13919_v63 = vadd.f32 %v4908_v1, %v4769_v41  ;;  %v4786_v23 = vpop.f32.mrf.mxu0 }
 0x45e   : > { %7119 = vmatpush1.msra.mxu1 %v16194_v47  ;;  %6879 = vmatprep.mubr.f32.mxu1 %v16087_v62  ;;  %v4787_v5 = vadd.f32 %v4786_v23, %v13846_v37  ;;  %v4910_v38 = vpop.f32.mrf.mxu1 }
 0x45f   : > { %7121 = vmatprep.subr.mxu1 %v16195_v45  ;;  %6883 = vmatmul.mubr.f32.gmra.mxu1 %v16211_v19  ;;  %v13927_v61 = vadd.f32 %v4910_v38, %v4771_v20  ;;  %v4792_v46 = vpop.f32.mrf.mxu0 }
 0x460   : > { %6760 = vmatmul.mubr.f32.gmra.mxu0 %v13723_v24  ;;  %7123 = vmatpush1.msra.mxu1 %v16196_v9  ;;  %v4793_v48 = vadd.f32 %v4792_v46, %v13850_v36  ;;  %v4917_v47 = vpop.f32.mrf.mxu1  ;;  %v16214_v24 = vand.u32 4294901760, %v13755_v11 }
 0x461   : > { %7125 = vmatprep.subr.mxu1 %v16198_v22  ;;  %6765 = vmatprep.mubr.f32.mxu0 %v16087_v62  ;;  %v13934_v37 = vadd.f32 %v4917_v47, %v4777_v7  ;;  %v4794_v45 = vpop.f32.mrf.mxu0 }
 0x462   : > { %7127 = vmatpush1.msra.mxu1 %v16199_v40  ;;  %6888 = vmatprep.mubr.f32.mxu1 %v16087_v62  ;;  %v4795_v44 = vadd.f32 %v4794_v45, %v13858_v50  ;;  %v4919_v41 = vpop.f32.mrf.mxu1 }
 0x463   : > { %6892 = vmatmul.mubr.f32.gmra.mxu1 %v16212_v10  ;;  %v13941_v9 = vadd.f32 %v4919_v41, %v4779_v3  ;;  %v4800_v36 = vpop.f32.mrf.mxu0 }
 0x464   : > { %6768 = vmatmul.mubr.f32.gmra.mxu0 %v13755_v11  ;;  %6897 = vmatprep.mubr.f32.mxu1 %v16087_v62  ;;  %v4801_v22 = vadd.f32 %v4800_v36, %v13861_v17  ;;  %v4926_v15 = vpop.f32.mrf.mxu1  ;;  %v16215_v11 = vand.u32 4294901760, %v13781_v54 }
 0x465   : > { %6773 = vmatprep.mubr.f32.mxu0 %v16087_v62  ;;  %v13947_v40 = vadd.f32 %v4926_v15, %v4785_v12  ;;  %v4802_v32 = vpop.f32.mrf.mxu0 }
 0x466   : > { %v4803_v50 = vadd.f32 %v4802_v32, %v13867_v13  ;;  %v4928_v8 = vpop.f32.mrf.mxu1 }
 0x467   : > { %6901 = vmatmul.mubr.f32.gmra.mxu1 %v16213_v4  ;;  %v13952_v20 = vadd.f32 %v4928_v8, %v4787_v5  ;;  %v4808_v30 = vpop.f32.mrf.mxu0 }
 0x468   : > { %6776 = vmatmul.mubr.f32.gmra.mxu0 %v13781_v54  ;;  %6906 = vmatprep.mubr.f32.mxu1 %v16087_v62  ;;  %v4809_v17 = vadd.f32 %v4808_v30, %v13869_v34  ;;  %v4935_v60 = vpop.f32.mrf.mxu1  ;;  %v16216_v54 = vand.u32 4294901760, %v13805_v55 }
 0x469   : > { %6781 = vmatprep.mubr.f32.mxu0 %v16087_v62  ;;  %v13958_v56 = vadd.f32 %v4935_v60, %v4793_v48  ;;  %v4810_v51 = vpop.f32.mrf.mxu0 }
 0x46a   : > { %v4811_v13 = vadd.f32 %v4810_v51, %v13875_v25  ;;  %v4937_v7 = vpop.f32.mrf.mxu1 }
 0x46b   : > { %6910 = vmatmul.mubr.f32.gmra.mxu1 %v16214_v24  ;;  %v13963_v49 = vadd.f32 %v4937_v7, %v4795_v44  ;;  %v5049_v31 = vpop.f32.mrf.mxu0  ;;  %v16218_v44 = vld [vmem:[#allocation21_spill] sm:$0xff] }
 0x46c   : > { %6784 = vmatmul.mubr.f32.gmra.mxu0 %v13805_v55  ;;  %6915 = vmatprep.mubr.f32.mxu1 %v16087_v62  ;;  %v4944_v34 = vpop.f32.mrf.mxu1  ;;  %v5050_v35 = vadd.f32 %v5049_v31, %v13881_v39  ;;  %v16217_v55 = vand.u32 4294901760, %v13826_v43 }
 0x46d   : > { %6789 = vmatprep.mubr.f32.mxu0 %v16087_v62  ;;  %v13969_v57 = vadd.f32 %v4944_v34, %v4801_v22  ;;  %v5051_v3 = vpop.f32.mrf.mxu0 }
 0x46e   : > { %v4946_v25 = vpop.f32.mrf.mxu1  ;;  %v5052_v2 = vadd.f32 %v5051_v3, %v13890_v59 }
 0x46f   : > { %6919 = vmatmul.mubr.f32.gmra.mxu1 %v16215_v11  ;;  %v13974_v16 = vadd.f32 %v4946_v25, %v4803_v50  ;;  %v5056_v29 = vpop.f32.mrf.mxu0 }
 0x470   : > { %6792 = vmatmul.mubr.f32.gmra.mxu0 %v13826_v43  ;;  %6924 = vmatprep.mubr.f32.mxu1 %v16087_v62  ;;  %v4953_v12 = vpop.f32.mrf.mxu1  ;;  %v5057_v39 = vadd.f32 %v5056_v29, %v13900_v42 }
 0x471   : > { %7031 = vmatprep.mubr.f32.mxu0 %v16087_v62  ;;  %v13980_v1 = vadd.f32 %v4953_v12, %v4809_v17  ;;  %v5058_v23 = vpop.f32.mrf.mxu0 }
 0x472   : > { %v4955_v5 = vpop.f32.mrf.mxu1  ;;  %v5059_v59 = vadd.f32 %v5058_v23, %v13908_v0 }
 0x473   : > { %6928 = vmatmul.mubr.f32.gmra.mxu1 %v16216_v54  ;;  %v13985_v38 = vadd.f32 %v4955_v5, %v4811_v13  ;;  %v5063_v19 = vpop.f32.mrf.mxu0 }
 0x474   : > { %7033 = vmatmul.mubr.f32.vlgmr.msra.gmra.mxu0 %v13595_v26  ;;  %6933 = vmatprep.mubr.f32.mxu1 %v16087_v62  ;;  %v5064_v42 = vadd.f32 %v5063_v19, %v13919_v63  ;;  %v5178_v46 = vpop.f32.mrf.mxu1  ;;  %v10462_v63 = vld [vmem:[%s15897_s4 + $0x180] sm:$0xff] }
 0x475   : > { %7038 = vmatprep.mubr.f32.mxu0 %v16087_v62  ;;  %v5179_v48 = vadd.f32 %v5178_v46, %v5050_v35  ;;  %v5065_v47 = vpop.f32.mrf.mxu0  ;;  %v7316_v4 = vsel %vm1400_vm12, %v10462_v63, 0  ;;  %v16233_v63 = vld [vmem:[#allocation16_spill] sm:$0xff] }
 0x476   : > { %v5066_v45 = vadd.f32 %v5065_v47, %v13927_v61  ;;  %v5180_v0 = vpop.f32.mrf.mxu1 }
 0x477   : > { %6937 = vmatmul.mubr.f32.gmra.mxu1 %v16217_v55  ;;  %v13995_v41 = vadd.f32 %v5179_v48, %v16218_v44  ;;  %v5181_v10 = vadd.f32 %v5180_v0, %v5052_v2  ;;  %v5070_v36 = vpop.f32.mrf.mxu0  ;;  %v16230_v48 = vld [vmem:[#allocation6_spill] sm:$0xff] }
 0x478   : > { %7040 = vmatmul.mubr.f32.gmra.mxu0 %v13632_v27  ;;  %7160 = vmatprep.mubr.f32.mxu1 %v16087_v62  ;;  %v5071_v22 = vadd.f32 %v5070_v36, %v13934_v37  ;;  %v5185_v61 = vpop.f32.mrf.mxu1 }
 0x479   : > { %16219 = vst [vmem:[#allocation7_spill] sm:$0xff] %v13995_v41  ;;  %7045 = vmatprep.mubr.f32.mxu0 %v16087_v62  ;;  %v14005_v43 = vadd.f32 %v5181_v10, %v13558_v28  ;;  %v5186_v15 = vadd.f32 %v5185_v61, %v5057_v39  ;;  %v5072_v32 = vpop.f32.mrf.mxu0 }
 0x47a   : > { %v5073_v50 = vadd.f32 %v5072_v32, %v13941_v9  ;;  %v5187_v8 = vpop.f32.mrf.mxu1 }
 0x47b   : > { %16220 = vst [vmem:[#allocation8_spill] sm:$0xff] %v14005_v43  ;;  %7162 = vmatmul.mubr.f32.vlgmr.msra.gmra.mxu1 %v13595_v26  ;;  %v14011_v30 = vadd.f32 %v5186_v15, %v13571_v6  ;;  %v5188_v17 = vadd.f32 %v5187_v8, %v5059_v59  ;;  %v5077_v37 = vpop.f32.mrf.mxu0  ;;  %v14022_v6 = vand.u32 4294901760, %v7316_v4 }
 0x47c   : > { %7047 = vmatmul.mubr.f32.gmra.mxu0 %v13667_v18  ;;  %7167 = vmatprep.mubr.f32.mxu1 %v16087_v62  ;;  %v5078_v28 = vadd.f32 %v5077_v37, %v13947_v40  ;;  %v5192_v60 = vpop.f32.mrf.mxu1  ;;  %v16235_v37 = vld [vmem:[#allocation5_spill] sm:$0xff] }
 0x47d   : > { %16221 = vst [vmem:[#allocation9_spill] sm:$0xff] %v14011_v30  ;;  %7052 = vmatprep.mubr.f32.mxu0 %v16087_v62  ;;  %v14018_v9 = vadd.f32 %v5188_v17, %v13587_v52  ;;  %v5193_v51 = vadd.f32 %v5192_v60, %v5064_v42  ;;  %v5079_v13 = vpop.f32.mrf.mxu0  ;;  %v14020_v26 = vpop.permute.xlu0 %7292  ;;  %16223 = vst [vmem:[#allocation19_spill] sm:$0xff] %v14022_v6  ;;  %v16225_v52 = vld [vmem:[#allocation11_spill] sm:$0xff]  ;;  %v14042_v29 = vsub.f32 %v7316_v4, %v14022_v6  ;;  %v10465_v17 = vld [vmem:[%s15897_s4 + $0x198] sm:$0xff] }
 0x47e   : > { %v5080_v7 = vadd.f32 %v5079_v13, %v13952_v20  ;;  %v5194_v24 = vpop.f32.mrf.mxu1  ;;  %v10463_v20 = vld [vmem:[%s15897_s4 + $0x188] sm:$0xff] }
 0x47f   : > { %16222 = vst [vmem:[#allocation18_spill] sm:$0xff] %v14018_v9  ;;  %7169 = vmatmul.mubr.f32.gmra.mxu1 %v13632_v27  ;;  %v14027_v31 = vadd.f32 %v5193_v51, %v13599_v53  ;;  %v5195_v40 = vadd.f32 %v5194_v24, %v5066_v45  ;;  %v14029_v34 = vpop.permute.xlu1 %7296  ;;  %v5084_v35 = vpop.f32.mrf.mxu0  ;;  %v16226_v27 = vld [vmem:[#allocation22_spill] sm:$0xff]  ;;  %v7319_v19 = vsel %vm1400_vm12, %v10463_v20, 0  ;;  %v15997_v44 = vand.u32 4294901760, %v14042_v29 }
 0x480   : > { %7054 = vmatmul.mubr.f32.gmra.mxu0 %v16225_v52  ;;  %7174 = vmatprep.mubr.f32.mxu1 %v16087_v62  ;;  %v5085_v3 = vadd.f32 %v5084_v35, %v13958_v56  ;;  %v5199_v25 = vpop.f32.mrf.mxu1  ;;  %v16228_v56 = vld [vmem:[#allocation23_spill] sm:$0xff] }
 0x481   : > { %16224 = vst [vmem:[#allocation20_spill] sm:$0xff] %v14027_v31  ;;  %7059 = vmatprep.mubr.f32.mxu0 %v16087_v62  ;;  %v14039_v53 = vadd.f32 %v5195_v40, %v16226_v27  ;;  %v5200_v2 = vadd.f32 %v5199_v25, %v5071_v22  ;;  %v5086_v11 = vpop.f32.mrf.mxu0  ;;  %v16238_v25 = vld [vmem:[#allocation10_spill] sm:$0xff] }
 0x482   : > { %v5087_v12 = vadd.f32 %v5086_v11, %v13963_v49  ;;  %v5201_v39 = vpop.f32.mrf.mxu1  ;;  %v7325_v11 = vsel %vm1400_vm12, %v10465_v17, 0 }
 0x483   : > { %16227 = vst [vmem:[#allocation3_spill] sm:$0xff] %v14039_v53  ;;  %7176 = vmatmul.mubr.f32.gmra.mxu1 %v13667_v18  ;;  %v14047_v23 = vadd.f32 %v5200_v2, %v16228_v56  ;;  %v5202_v5 = vadd.f32 %v5201_v39, %v5073_v50  ;;  %v7291_v59 = vpop.permute.xlu0 %7290  ;;  %v5091_v54 = vpop.f32.mrf.mxu0  ;;  %v10464_v18 = vld [vmem:[%s15897_s4 + $0x190] sm:$0xff] }
 0x484   : > { %7061 = vmatmul.mubr.f32.gmra.mxu0 %v13726_v58  ;;  %7181 = vmatprep.mubr.f32.mxu1 %v16087_v62  ;;  %v7289_v42 = vpop.permute.xlu1 %7288  ;;  %v5092_v46 = vadd.f32 %v5091_v54, %v13969_v57  ;;  %v5206_v49 = vpop.f32.mrf.mxu1  ;;  %v14063_v57 = vand.u32 4294901760, %v7319_v19  ;;  %v7322_v32 = vsel %vm1400_vm12, %v10464_v18, 0  ;;  %v16240_v56 = vld [vmem:[#allocation13_spill] sm:$0xff] }
 0x485   : > { %16229 = vst [vmem:[#allocation4_spill] sm:$0xff] %v14047_v23  ;;  %7066 = vmatprep.mubr.f32.mxu0 %v16087_v62  ;;  %v14058_v47 = vadd.f32 %v5202_v5, %v16230_v48  ;;  %v7304_v45 = vsel %vm7298_vm5, %v7289_v42, %v7291_v59  ;;  %v5207_v0 = vadd.f32 %v5206_v49, %v5078_v28  ;;  %v5093_v55 = vpop.f32.mrf.mxu0 }
 0x486   : > { %v5094_v10 = vadd.f32 %v5093_v55, %v13974_v16  ;;  %v5208_v36 = vpop.f32.mrf.mxu1  ;;  %16232 = vst [vmem:[#allocation11_spill] sm:$0xff] %v14063_v57  ;;  %v14072_v50 = vand.u32 4294901760, %v7304_v45  ;;  %v14094_v35 = vsub.f32 %v7319_v19, %v14063_v57 }
 0x487   : > { %16231 = vst [vmem:[#allocation21_spill] sm:$0xff] %v14058_v47  ;;  %7183 = vmatmul.mubr.f32.gmra.mxu1 %v16225_v52  ;;  %v14067_v22 = vadd.f32 %v5207_v0, %v16233_v63  ;;  %v5209_v61 = vadd.f32 %v5208_v36, %v5080_v7  ;;  %v5098_v15 = vpop.f32.mrf.mxu0  ;;  %v14087_v7 = vsub.f32 %v14042_v29, %v15997_v44  ;;  %v14096_v52 = vand.u32 4294901760, %v7322_v32 }
 0x488   : > { %7068 = vmatmul.mubr.f32.gmra.mxu0 %v13757_v21  ;;  %7188 = vmatprep.mubr.f32.mxu1 %v16087_v62  ;;  %v14074_v8 = vpop.permute.xlu0 %7282  ;;  %v5099_v16 = vadd.f32 %v5098_v15, %v13980_v1  ;;  %v5213_v4 = vpop.f32.mrf.mxu1  ;;  %v14129_v0 = vand.u32 4294901760, %v7325_v11 }
 0x489   : > { %16234 = vst [vmem:[#allocation22_spill] sm:$0xff] %v14067_v22  ;;  %7073 = vmatprep.mubr.f32.mxu0 %v16087_v62  ;;  %v14082_v28 = vadd.f32 %v5209_v61, %v16235_v37  ;;  %v7287_v60 = vpop.permute.xlu1 %7286  ;;  %v5214_v51 = vadd.f32 %v5213_v4, %v5085_v3  ;;  %v5100_v13 = vpop.f32.mrf.mxu0  ;;  %16237 = vst [vmem:[#allocation6_spill] sm:$0xff] %v14096_v52  ;;  %v16243_v61 = vld [vmem:[#allocation14_spill] sm:$0xff] }
 0x48a   : > { %v7303_v1 = vsel %vm7298_vm5, %v7287_v60, %v7289_v42  ;;  %v14091_v24 = vadd.f32 %v5100_v13, %v13985_v38  ;;  %v5215_v40 = vpop.f32.mrf.mxu1  ;;  %v14108_v38 = vsub.f32 %v7304_v45, %v14072_v50  ;;  %v14127_v45 = vsub.f32 %v7322_v32, %v14096_v52  ;;  %16242 = vst [vmem:[#allocation10_spill] sm:$0xff] %v14129_v0 }
 0x48b   : > { %16236 = vst [vmem:[#allocation23_spill] sm:$0xff] %v14082_v28  ;;  %7190 = vmatmul.mubr.f32.gmra.mxu1 %v13726_v58  ;;  %v14099_v3 = vand.u32 4294901760, %v7303_v1  ;;  %v14102_v20 = vadd.f32 %v5214_v51, %v16238_v25  ;;  %v5216_v27 = vadd.f32 %v5215_v40, %v5087_v12  ;;  %v14104_v2 = vpop.f32.mrf.mxu0  ;;  %v16245_v40 = vld [vmem:[#allocation12_spill] sm:$0xff] }
 0x48c   : > { %7075 = vmatmul.mubr.f32.gmra.mxu0 %v13783_v33  ;;  %7195 = vmatprep.mubr.f32.mxu1 %v16087_v62  ;;  %v5220_v39 = vpop.f32.mrf.mxu1  ;;  %v16001_v4 = vand.u32 4294901760, %v14108_v38 }
 0x48d   : > { %16239 = vst [vmem:[#allocation16_spill] sm:$0xff] %v14102_v20  ;;  %7080 = vmatprep.mubr.f32.mxu0 %v16087_v62  ;;  %v14114_v58 = vsub.f32 %v7303_v1, %v14099_v3  ;;  %v14117_v5 = vadd.f32 %v5216_v27, %v16240_v56  ;;  %v7295_v12 = vpop.permute.xlu0 %7294  ;;  %v5221_v59 = vadd.f32 %v5220_v39, %v5092_v46  ;;  %v14119_v54 = vpop.f32.mrf.mxu0  ;;  %v16255_v20 = vand.u32 4294901760, %v14087_v7 }
 0x48e   : > { %v7305_v42 = vsel %vm7298_vm5, %v14020_v26, %v7295_v12  ;;  %v7306_v49 = vsel %vm7298_vm5, %v7295_v12, %v14029_v34  ;;  %v7285_v18 = vpop.permute.xlu1 %7284  ;;  %v5222_v48 = vpop.f32.mrf.mxu1  ;;  %v14172_v56 = vsub.f32 %v7325_v11, %v14129_v0 }
 0x48f   : > { %16241 = vst [vmem:[#allocation5_spill] sm:$0xff] %v14117_v5  ;;  %7197 = vmatmul.mubr.f32.gmra.mxu1 %v13757_v21  ;;  %v14132_v46 = vand.u32 4294901760, %v7306_v49  ;;  %v14134_v55 = vand.u32 4294901760, %v7305_v42  ;;  %v7302_v36 = vsel %vm7298_vm5, %v14074_v8, %v7285_v18  ;;  %v14138_v26 = vpop.f32.mrf.mxu0  ;;  %v14146_v15 = vadd.f32 %v5221_v59, %v16243_v61 }
 0x490   : > { %7082 = vmatmul.mubr.f32.gmra.mxu0 %v13807_v14  ;;  %7202 = vmatprep.mubr.f32.mxu1 %v16087_v62  ;;  %v14143_v63 = vand.u32 4294901760, %v7302_v36  ;;  %v5223_v21 = vadd.f32 %v5222_v48, %v5094_v10  ;;  %v5227_v32 = vpop.f32.mrf.mxu1  ;;  %v15998_v17 = vand.u32 4294901760, %v14114_v58  ;;  %v10466_v10 = vld [vmem:[%s15897_s4 + $0x1a0] sm:$0xff] }
 0x491   : > { %16244 = vst [vmem:[#allocation13_spill] sm:$0xff] %v14146_v15  ;;  %v14151_v37 = vsub.f32 %v7306_v49, %v14132_v46  ;;  %v14154_v60 = vsub.f32 %v7305_v42, %v14134_v55  ;;  %7364 = vmatprep.subr.mxu0 %v14132_v46  ;;  %v5228_v51 = vadd.f32 %v5227_v32, %v5099_v16  ;;  %v14157_v13 = vpop.f32.mrf.mxu0  ;;  %v16247_v42 = vld [vmem:[#allocation15_spill] sm:$0xff]  ;;  %v14192_v11 = vsel %vm1400_vm12, %v10466_v10, 0 }
 0x492   : > { %v14163_v1 = vsub.f32 %v7302_v36, %v14143_v63  ;;  %v14166_v25 = vadd.f32 %v5223_v21, %v16245_v40  ;;  %v7281_v27 = vpop.permute.xlu0 %7280  ;;  %7366 = vmatpush1.msra.mxu0 %v14134_v55  ;;  %v7277_v39 = vpop.permute.xlu1 %7276  ;;  %7411 = vmatprep.mubr.f32.mxu0 %v16087_v62  ;;  %v7545_v21 = vsub.f32 %v14114_v58, %v15998_v17 }
 0x493   : > { %v15999_v12 = vand.u32 4294901760, %v14154_v60  ;;  %7204 = vmatmul.mubr.f32.gmra.mxu1 %v13783_v33  ;;  %v7301_v59 = vsel %vm7298_vm5, %v7281_v27, %v14074_v8  ;;  %v14179_v49 = vadd.f32 %v5228_v51, %v16247_v42  ;;  %7368 = vmatprep.subr.mxu0 %v14072_v50  ;;  %v5229_v18 = vpop.f32.mrf.mxu1  ;;  %v14182_v48 = vpop.f32.mrf.mxu0  ;;  %v16000_v36 = vand.u32 4294901760, %v14151_v37  ;;  %v16249_v42 = vld [vmem:[#allocation17_spill] sm:$0xff] }
 0x494   : > { %16246 = vst [vmem:[#allocation14_spill] sm:$0xff] %v14166_v25  ;;  %v14185_v61 = vand.u32 4294901760, %v7301_v59  ;;  %7209 = vmatprep.mubr.f32.mxu1 %v16087_v62  ;;  %7370 = vmatpush1.msra.mxu0 %v14099_v3  ;;  %v5230_v33 = vadd.f32 %v5229_v18, %v14091_v24  ;;  %v16002_v8 = vand.u32 4294901760, %v14163_v1  ;;  %v7539_v10 = vsub.f32 %v14108_v38, %v16001_v4  ;;  %v10467_v4 = vld [vmem:[%s15897_s4 + $0x1a8] sm:$0xff] }
 0x495   : > { %16248 = vst [vmem:[#allocation12_spill] sm:$0xff] %v14179_v49  ;;  %v7533_v32 = vsub.f32 %v14154_v60, %v15999_v12  ;;  %7372 = vmatprep.subr.mxu0 %v14143_v63  ;;  %v5590_v51 = vpop.f32.mrf.mxu1  ;;  %v14201_v40 = vpop.f32.mrf.mxu0  ;;  %v7527_v24 = vsub.f32 %v14151_v37, %v16000_v36 }
 0x496   : > { %v14210_v27 = vsub.f32 %v7301_v59, %v14185_v61  ;;  %v14213_v18 = vadd.f32 %v5230_v33, %v16249_v42  ;;  %v7279_v44 = vpop.permute.xlu0 %7278  ;;  %7374 = vmatpush1.msra.mxu0 %v14185_v61  ;;  %v7275_v17 = vpop.permute.xlu1 %7274  ;;  %v14217_v12 = vadd.f32 %v5590_v51, %v14104_v2  ;;  %v7551_v36 = vsub.f32 %v14163_v1, %v16002_v8 }
 0x497   : > { %7211 = vmatmul.mubr.f32.gmra.mxu1 %v13807_v14  ;;  %v7300_v59 = vsel %vm7298_vm5, %v7277_v39, %v7279_v44  ;;  %v7299_v33 = vsel %vm7298_vm5, %v7275_v17, %v7277_v39  ;;  %v5592_v42 = vpop.f32.mrf.mxu1  ;;  %v7528_v19 = vand.u32 4294901760, %v7527_v24  ;;  %v7534_v16 = vand.u32 4294901760, %v7533_v32  ;;  %v14228_v34 = vpop.f32.mrf.mxu0 }
 0x498   : > { %16250 = vst [vmem:[#allocation15_spill] sm:$0xff] %v14213_v18  ;;  %v14231_v51 = vand.u32 4294901760, %v7300_v59  ;;  %v14233_v8 = vand.u32 4294901760, %v7299_v33  ;;  %v14236_v18 = vadd.f32 %v5592_v42, %v14119_v54  ;;  %7604 = vmatprep.mubr.f32.mxu1 %v16087_v62  ;;  %v7540_v44 = vand.u32 4294901760, %v7539_v10 }
 0x499   : > { %7529 = vmatprep.subr.mxu1 %v7528_v19  ;;  %v5597_v14 = vpop.f32.mrf.mxu1  ;;  %v14239_v17 = vpop.f32.mrf.mxu0  ;;  %v16251_v39 = vand.u32 4294901760, %v14094_v35  ;;  %v14245_v24 = vand.u32 4294901760, %v14192_v11  ;;  %v7331_v2 = vsel %vm1400_vm12, %v10467_v4, 0  ;;  %v16253_v49 = vand.u32 4294901760, %v14210_v27 }
 0x49a   : > { %v14252_v42 = vsub.f32 %v7300_v59, %v14231_v51  ;;  %v14255_v19 = vsub.f32 %v7299_v33, %v14233_v8  ;;  %v14257_v10 = vpop.permute.xlu0 %8270  ;;  %7376 = vmatprep.subr.mxu0 %v14231_v51  ;;  %7535 = vmatpush1.msra.mxu1 %v7534_v16  ;;  %v7552_v25 = vand.u32 4294901760, %v7551_v36  ;;  %v14264_v4 = vadd.f32 %v5597_v14, %v14138_v26  ;;  %v10468_v16 = vld [vmem:[%s15897_s4 + $0x1b0] sm:$0xff] }
 0x49b   : > { %v7426_v32 = vsub.f32 %v14094_v35, %v16251_v39  ;;  %16252 = vst [vmem:[#allocation17_spill] sm:$0xff] %v14245_v24  ;;  %v7557_v54 = vsub.f32 %v14210_v27, %v16253_v49  ;;  %v14260_v39 = vpop.permute.xlu1 %8272  ;;  %7378 = vmatpush1.msra.mxu0 %v14233_v8  ;;  %7541 = vmatprep.subr.mxu1 %v7540_v44  ;;  %v7546_v49 = vand.u32 4294901760, %v7545_v21  ;;  %v5599_v59 = vpop.f32.mrf.mxu1  ;;  %v16254_v33 = vand.u32 4294901760, %v14127_v45 }
 0x49c   : > { %v14266_v15 = vpop.f32.mrf.mxu0  ;;  %v16003_v36 = vand.u32 4294901760, %v14255_v19  ;;  %7417 = vmatmul.mubr.f32.vlgmr.msra.gmra.mxu0 %v16255_v20  ;;  %7687 = vmatprep.subr.mxu0 %v14151_v37  ;;  %v14279_v26 = vadd.f32 %v5599_v59, %v14157_v13  ;;  %v16004_v22 = vand.u32 4294901760, %v14252_v42  ;;  %v14286_v7 = vsub.f32 %v14192_v11, %v14245_v24 }
 0x49d   : > { %v7437_v5 = vsub.f32 %v14127_v45, %v16254_v33  ;;  %v7558_v21 = vand.u32 4294901760, %v7557_v54  ;;  %7547 = vmatpush1.msra.mxu1 %v7546_v49  ;;  %7690 = vmatpush1.msra.mxu0 %v14154_v60  ;;  %v5604_v44 = vpop.f32.mrf.mxu1  ;;  %v7427_v33 = vand.u32 4294901760, %v7426_v32  ;;  %v14288_v20 = vand.u32 4294901760, %v7331_v2 }
 0x49e   : > { %v5447_v28 = vpop.f32.mrf.mxu0  ;;  %v7569_v13 = vsub.f32 %v14255_v19, %v16003_v36  ;;  %7553 = vmatprep.subr.mxu1 %v7552_v25  ;;  %v14293_v54 = vpop.permute.xlu0 %8268  ;;  %7693 = vmatprep.subr.mxu0 %v14108_v38  ;;  %v14299_v32 = vadd.f32 %v5604_v44, %v14182_v48  ;;  %v7334_v59 = vsel %vm1400_vm12, %v10468_v16, 0  ;;  %v7563_v36 = vsub.f32 %v14252_v42, %v16004_v22 }
 0x49f   : > { %v14296_v49 = vpop.permute.xlu1 %8264  ;;  %7422 = vmatprep.mubr.f32.mxu0 %v16087_v62  ;;  %7559 = vmatpush1.msra.mxu1 %v7558_v21  ;;  %v5606_v11 = vpop.f32.mrf.mxu1  ;;  %v7438_v23 = vand.u32 4294901760, %v7437_v5  ;;  %v16256_v48 = vand.u32 4294901760, %v14172_v56  ;;  %v10469_v21 = vld [vmem:[%s15897_s4 + $0x1b8] sm:$0xff]  ;;  %v14321_v5 = vand.u32 4294901760, %v7334_v59 }
 0x4a0   : > { %v5456_v25 = vpop.f32.mrf.mxu0  ;;  %7696 = vmatpush1.msra.mxu0 %v14114_v58  ;;  %v14308_v14 = vadd.f32 %v5606_v11, %v14201_v40  ;;  %v7570_v47 = vand.u32 4294901760, %v7569_v13  ;;  %v7564_v44 = vand.u32 4294901760, %v7563_v36  ;;  %v14319_v40 = vsub.f32 %v7331_v2, %v14288_v20 }
 0x4a1   : > { %v7448_v16 = vsub.f32 %v14172_v56, %v16256_v48  ;;  %7428 = vmatmul.mubr.f32.gmra.mxu0 %v7427_v33  ;;  %7699 = vmatprep.subr.mxu0 %v14163_v1  ;;  %v5611_v22 = vpop.f32.mrf.mxu1  ;;  %v7337_v2 = vsel %vm1400_vm12, %v10469_v21, 0  ;;  %v14344_v21 = vsub.f32 %v7334_v59, %v14321_v5 }
 0x4a2   : > { %v5458_v53 = vpop.f32.mrf.mxu0  ;;  %7702 = vmatpush1.msra.mxu0 %v14210_v27  ;;  %v14324_v13 = vpop.permute.xlu0 %8266  ;;  %7433 = vmatprep.mubr.f32.mxu0 %v16087_v62  ;;  %v14328_v33 = vadd.f32 %v5611_v22, %v14228_v34  ;;  %v16008_v30 = vand.u32 4294901760, %v14319_v40 }
 0x4a3   : > { %7565 = vmatprep.subr.mxu1 %v7564_v44  ;;  %7705 = vmatprep.subr.mxu0 %v14252_v42  ;;  %v14331_v36 = vpop.permute.xlu1 %8262  ;;  %v5613_v11 = vpop.f32.mrf.mxu1  ;;  %v7449_v34 = vand.u32 4294901760, %v7448_v16  ;;  %v16257_v44 = vand.u32 4294901760, %v14286_v7 }
 0x4a4   : > { %7571 = vmatpush1.msra.mxu1 %v7570_v47  ;;  %7708 = vmatpush1.msra.mxu0 %v14255_v19  ;;  %v14336_v48 = vadd.f32 %v5613_v11, %v14239_v17  ;;  %v5467_v31 = vpop.f32.mrf.mxu0  ;;  %v16258_v47 = vand.u32 4294901760, %v14151_v37  ;;  %v14352_v11 = vand.u32 4294901760, %v7337_v2 }
 0x4a5   : > { %7439 = vmatmul.mubr.f32.gmra.mxu0 %v7438_v23  ;;  %7606 = vmatmul.mubr.f32.vlgmr.msra.gmra.mxu1 %v14022_v6  ;;  %v5618_v22 = vpop.f32.mrf.mxu1  ;;  %v7459_v9 = vsub.f32 %v14286_v7, %v16257_v44  ;;  %v7470_v6 = vsub.f32 %v14319_v40, %v16008_v30 }
 0x4a6   : > { %7831 = vmatprep.subr.mxu1 %v14132_v46  ;;  %7978 = vmatprep.subr.mxu0 %v16258_v47  ;;  %v14350_v23 = vadd.f32 %v5618_v22, %v14266_v15  ;;  %v5469_v17 = vpop.f32.mrf.mxu0 }
 0x4a7   : > { %7833 = vmatpush1.msra.mxu1 %v14134_v55  ;;  %v14355_v16 = vpop.permute.xlu0 %8258  ;;  %7444 = vmatprep.mubr.f32.mxu0 %v16087_v62  ;;  %v5620_v44 = vpop.f32.mrf.mxu1  ;;  %v7460_v47 = vand.u32 4294901760, %v7459_v9 }
 0x4a8   : > { %16259 = vst [vmem:[#allocation24_spill] sm:$0xff] %v14355_v16  ;;  %7835 = vmatprep.subr.mxu1 %v14072_v50  ;;  %7611 = vmatprep.mubr.f32.mxu1 %v16087_v62  ;;  %v14360_v59 = vpop.permute.xlu1 %8260  ;;  %v14362_v37 = vadd.f32 %v5620_v44, %v5447_v28  ;;  %v5478_v15 = vpop.f32.mrf.mxu0  ;;  %v14374_v44 = vsub.f32 %v7337_v2, %v14352_v11 }
 0x4a9   : > { %16260 = vst [vmem:[#allocation25_spill] sm:$0xff] %v14360_v59  ;;  %7837 = vmatpush1.msra.mxu1 %v14099_v3  ;;  %7450 = vmatmul.mubr.f32.gmra.mxu0 %v7449_v34  ;;  %v5625_v22 = vpop.f32.mrf.mxu1  ;;  %v16264_v59 = vand.u32 4294901760, %v14344_v21 }
 0x4aa   : > { %7613 = vmatmul.mubr.f32.gmra.mxu1 %v14063_v57  ;;  %7839 = vmatprep.subr.mxu1 %v14143_v63  ;;  %v14371_v16 = vadd.f32 %v5625_v22, %v5456_v25  ;;  %v5480_v28 = vpop.f32.mrf.mxu0  ;;  %16261 = vst [vmem:[#allocation26_spill] sm:$0xff] %v14374_v44  ;;  %v7471_v57 = vand.u32 4294901760, %v7470_v6 }
 0x4ab   : > { %7841 = vmatpush1.msra.mxu1 %v14185_v61  ;;  %7455 = vmatprep.mubr.f32.mxu0 %v16087_v62  ;;  %v5627_v9 = vpop.f32.mrf.mxu1 }
 0x4ac   : > { %v14378_v34 = vpop.permute.xlu0 %8256  ;;  %7843 = vmatprep.subr.mxu1 %v14231_v51  ;;  %7618 = vmatprep.mubr.f32.mxu1 %v16087_v62  ;;  %v14382_v30 = vadd.f32 %v5627_v9, %v5458_v53  ;;  %v5728_v43 = vpop.f32.mrf.mxu0 }
 0x4ad   : > { %16262 = vst [vmem:[#allocation27_spill] sm:$0xff] %v14378_v34  ;;  %7845 = vmatpush1.msra.mxu1 %v14233_v8  ;;  %v14385_v25 = vpop.permute.xlu1 %8252  ;;  %7461 = vmatmul.mubr.f32.gmra.mxu0 %v7460_v47  ;;  %v5632_v2 = vpop.f32.mrf.mxu1  ;;  %v5729_v22 = vadd.f32 %v5728_v43, %v14217_v12  ;;  %v7481_v34 = vsub.f32 %v14344_v21, %v16264_v59 }
 0x4ae   : > { %16263 = vst [vmem:[#allocation28_spill] sm:$0xff] %v14385_v25  ;;  %7620 = vmatmul.mubr.f32.gmra.mxu1 %v14096_v52  ;;  %8121 = vmatprep.subr.mxu1 %v14132_v46  ;;  %v14393_v53 = vadd.f32 %v5632_v2, %v5467_v31  ;;  %v5730_v9 = vpop.f32.mrf.mxu0 }
 0x4af   : > { %7466 = vmatprep.mubr.f32.mxu0 %v16087_v62  ;;  %7625 = vmatprep.mubr.f32.mxu1 %v16087_v62  ;;  %v5634_v47 = vpop.f32.mrf.mxu1  ;;  %v5731_v43 = vadd.f32 %v5730_v9, %v14236_v18  ;;  %v7482_v46 = vand.u32 4294901760, %v7481_v34  ;;  %v16266_v18 = vand.u32 4294901760, %v14374_v44 }
 0x4b0   : > { %v14399_v6 = vadd.f32 %v5634_v47, %v5469_v17  ;;  %v5736_v12 = vpop.f32.mrf.mxu0 }
 0x4b1   : > { %v14401_v59 = vpop.permute.xlu0 %8254  ;;  %7472 = vmatmul.mubr.f32.gmra.mxu0 %v7471_v57  ;;  %v5639_v52 = vpop.f32.mrf.mxu1  ;;  %v5737_v31 = vadd.f32 %v5736_v12, %v14264_v4  ;;  %v7492_v17 = vsub.f32 %v14374_v44, %v16266_v18 }
 0x4b2   : > { %v14404_v2 = vpop.permute.xlu1 %8250  ;;  %7627 = vmatmul.mubr.f32.gmra.mxu1 %v14129_v0  ;;  %7477 = vmatprep.mubr.f32.mxu0 %v16087_v62  ;;  %v14408_v41 = vadd.f32 %v5639_v52, %v5478_v15  ;;  %v5738_v25 = vpop.f32.mrf.mxu0 }
 0x4b3   : > { %16265 = vst [vmem:[#allocation29_spill] sm:$0xff] %v14404_v2  ;;  %7632 = vmatprep.mubr.f32.mxu1 %v16087_v62  ;;  %v5641_v57 = vpop.f32.mrf.mxu1  ;;  %v5739_v9 = vadd.f32 %v5738_v25, %v14279_v26  ;;  %v7493_v0 = vand.u32 4294901760, %v7492_v17  ;;  %v10553_v26 = vld [vmem:[#allocation2 + $0x48] sm:$0xff]  ;;  %v10554_v25 = vld [vmem:[#allocation2 + $0x58] sm:$0xff]  ;;  %v10555_v17 = vld [vmem:[#allocation2 + $0x40] sm:$0xff] }
 0x4b4   : > { %v14415_v4 = vadd.f32 %v5641_v57, %v5480_v28  ;;  %v5744_v34 = vpop.f32.mrf.mxu0 }
 0x4b5   : > { %7483 = vmatmul.mubr.f32.gmra.mxu0 %v7482_v46  ;;  %v5745_v47 = vadd.f32 %v5744_v34, %v14299_v32  ;;  %v5866_v12 = vpop.f32.mrf.mxu1 }
 0x4b6   : > { %v14418_v52 = vpop.permute.xlu0 %9217  ;;  %v14420_v15 = vpop.permute.xlu1 %9219  ;;  %7634 = vmatmul.mubr.f32.gmra.mxu1 %v14245_v24  ;;  %7488 = vmatprep.mubr.f32.mxu0 %v16087_v62  ;;  %v14424_v18 = vadd.f32 %v5866_v12, %v5729_v22 }
 0x4b7   : > { %v9235_v28 = vmul.f32 %v10553_v26, %v14418_v52  ;;  %v9237_v46 = vmul.f32 %v10554_v25, %v14420_v15  ;;  %7639 = vmatprep.mubr.f32.mxu1 %v16087_v62  ;;  %v5746_v32 = vpop.f32.mrf.mxu0  ;;  %v5868_v57 = vpop.f32.mrf.mxu1  ;;  %v14432_v34 = vsel %vm9221_vm6, %v14418_v52, %v14420_v15  ;;  %v9234_v12 = vmul.f32 %v10555_v17, %v14420_v15 }
 0x4b8   : > { %v5747_v24 = vadd.f32 %v5746_v32, %v14308_v14  ;;  %v14435_v22 = vadd.f32 %v5868_v57, %v5731_v43  ;;  %v10556_v14 = vld [vmem:[#allocation2 + $0x38] sm:$0xff]  ;;  %v8282_v32 = vsel %vm8274_vm7, %v14257_v10, %v14260_v39  ;;  %v16267_v39 = vand.u32 4294901760, %v14154_v60 }
 0x4b9   : > { %9277 = vrot.lane.b32.xlu0 %v9235_v28, %s10588_s24  ;;  %9281 = vrot.lane.b32.xlu1 %v9237_v46, %s10588_s24  ;;  %v5752_v26 = vpop.f32.mrf.mxu0  ;;  %v5875_v25 = vpop.f32.mrf.mxu1  ;;  %v9233_v43 = vmul.f32 %v10556_v14, %v14432_v34  ;;  %v16269_v60 = vand.u32 4294901760, %v14114_v58  ;;  %v10559_v58 = vld [vmem:[#allocation2 + $0x50] sm:$0xff] }
 0x4ba   : > { %7494 = vmatmul.mubr.f32.gmra.mxu0 %v7493_v0  ;;  %7641 = vmatmul.mubr.f32.gmra.mxu1 %v14288_v20  ;;  %v5753_v44 = vadd.f32 %v5752_v26, %v14328_v33  ;;  %v14442_v2 = vadd.f32 %v5875_v25, %v5737_v31  ;;  %v14460_v25 = vand.u32 4294901760, %v8282_v32 }
 0x4bb   : > { %7646 = vmatprep.mubr.f32.mxu1 %v16087_v62  ;;  %7741 = vmatprep.mubr.f32.mxu0 %v16087_v62  ;;  %v5754_v28 = vpop.f32.mrf.mxu0  ;;  %v5877_v46 = vpop.f32.mrf.mxu1 }
 0x4bc   : > { %v5755_v0 = vadd.f32 %v5754_v28, %v14336_v48  ;;  %v14451_v57 = vadd.f32 %v5877_v46, %v5739_v9  ;;  %v10557_v48 = vld [vmem:[#allocation2 + $0x20] sm:$0xff]  ;;  %v10558_v28 = vld [vmem:[#allocation2 + $0x30] sm:$0xff] }
 0x4bd   : > { %9275 = vrot.lane.b32.xlu0 %v9234_v12, %s10588_s24  ;;  %9273 = vrot.lane.b32.xlu1 %v9233_v43, %s10588_s24  ;;  %v5760_v33 = vpop.f32.mrf.mxu0  ;;  %v5884_v31 = vpop.f32.mrf.mxu1  ;;  %v9230_v9 = vmul.f32 %v10557_v48, %v14432_v34  ;;  %v16268_v43 = vand.u32 4294901760, %v14108_v38  ;;  %v16270_v38 = vand.u32 4294901760, %v14163_v1  ;;  %v10560_v1 = vld [vmem:[#allocation2 + $0x28] sm:$0xff] }
 0x4be   : > { %7648 = vmatmul.mubr.f32.gmra.mxu1 %v14321_v5  ;;  %7744 = vmatmul.mubr.f32.vlgmr.msra.gmra.mxu0 %v14042_v29  ;;  %v5761_v17 = vadd.f32 %v5760_v33, %v14350_v23  ;;  %v14458_v26 = vadd.f32 %v5884_v31, %v5745_v47  ;;  %v9232_v23 = vmul.f32 %v10558_v28, %v14418_v52 }
 0x4bf   : > { %7982 = vmatpush1.msra.mxu0 %v16267_v39  ;;  %7653 = vmatprep.mubr.f32.mxu1 %v16087_v62  ;;  %v5762_v12 = vpop.f32.mrf.mxu0  ;;  %v5886_v14 = vpop.f32.mrf.mxu1 }
 0x4c0   : > { %7986 = vmatprep.subr.mxu0 %v16268_v43  ;;  %7749 = vmatprep.mubr.f32.mxu0 %v16087_v62  ;;  %v5763_v47 = vadd.f32 %v5762_v12, %v14362_v37  ;;  %v14471_v46 = vadd.f32 %v5886_v14, %v5747_v24  ;;  %v14483_v37 = vsub.f32 %v8282_v32, %v14460_v25  ;;  %v16271_v14 = vand.u32 4294901760, %v14210_v27 }
 0x4c1   : > { %9267 = vrot.lane.b32.xlu0 %v9230_v9, %s10588_s24  ;;  %7990 = vmatpush1.msra.mxu0 %v16269_v60  ;;  %v5768_v33 = vpop.f32.mrf.mxu0  ;;  %v5893_v31 = vpop.f32.mrf.mxu1  ;;  %v9236_v24 = vmul.f32 %v10559_v58, %v14432_v34  ;;  %v16272_v43 = vand.u32 4294901760, %v14252_v42  ;;  %v16273_v60 = vand.u32 4294901760, %v14255_v19  ;;  %v16274_v19 = vand.u32 4294901760, %v14042_v29  ;;  %v10562_v58 = vld [vmem:[#allocation2 + $0x8] sm:$0xff] }
 0x4c2   : > { %9271 = vrot.lane.b32.xlu1 %v9232_v23, %s10588_s24  ;;  %7994 = vmatprep.subr.mxu0 %v16270_v38  ;;  %v5769_v39 = vadd.f32 %v5768_v33, %v14371_v16  ;;  %v14480_v48 = vadd.f32 %v5893_v31, %v5753_v44  ;;  %v9231_v16 = vmul.f32 %v10560_v1, %v14420_v15  ;;  %v16029_v38 = vand.u32 4294901760, %v14483_v37  ;;  %v10564_v1 = vld [vmem:[#allocation2] sm:$0xff] }
 0x4c3   : > { %7655 = vmatmul.mubr.f32.gmra.mxu1 %v14352_v11  ;;  %7752 = vmatmul.mubr.f32.gmra.mxu0 %v14094_v35  ;;  %v5770_v9 = vpop.f32.mrf.mxu0  ;;  %v5895_v12 = vpop.f32.mrf.mxu1 }
 0x4c4   : > { %7998 = vmatpush1.msra.mxu0 %v16271_v14  ;;  %7757 = vmatprep.mubr.f32.mxu0 %v16087_v62  ;;  %v5771_v44 = vadd.f32 %v5770_v9, %v14382_v30  ;;  %v14493_v32 = vadd.f32 %v5895_v12, %v5755_v0  ;;  %v10561_v30 = vld [vmem:[#allocation2 + $0x18] sm:$0xff] }
 0x4c5   : > { %8002 = vmatprep.subr.mxu0 %v16272_v43  ;;  %9279 = vrot.lane.b32.xlu0 %v9236_v24, %s10588_s24  ;;  %v5776_v28 = vpop.f32.mrf.mxu0  ;;  %v5902_v23 = vpop.f32.mrf.mxu1  ;;  %v9229_v42 = vmul.f32 %v10561_v30, %v14418_v52  ;;  %v8281_v30 = vsel %vm8274_vm7, %v14293_v54, %v14257_v10  ;;  %v8280_v10 = vsel %vm8274_vm7, %v14296_v49, %v14324_v13  ;;  %v16280_v13 = vld [vmem:[#allocation24_spill] sm:$0xff] }
 0x4c6   : > { %8006 = vmatpush1.msra.mxu0 %v16273_v60  ;;  %9269 = vrot.lane.b32.xlu1 %v9231_v16, %s10588_s24  ;;  %v5777_v27 = vadd.f32 %v5776_v28, %v14393_v53  ;;  %v14502_v33 = vadd.f32 %v5902_v23, %v5761_v17  ;;  %v9227_v53 = vmul.f32 %v10562_v58, %v14432_v34 }
 0x4c7   : > { %7878 = vmatprep.mubr.f32.mxu1 %v16087_v62  ;;  %8340 = vmatprep.subr.mxu0 %v14460_v25  ;;  %v5778_v0 = vpop.f32.mrf.mxu0  ;;  %v5904_v31 = vpop.f32.mrf.mxu1  ;;  %v9226_v16 = vmul.f32 %v10564_v1, %v14418_v52 }
 0x4c8   : > { %7760 = vmatmul.mubr.f32.gmra.mxu0 %v14127_v45  ;;  %7882 = vmatmul.mubr.f32.vlgmr.msra.gmra.mxu1 %v16274_v19  ;;  %v5779_v17 = vadd.f32 %v5778_v0, %v14399_v6  ;;  %v14513_v24 = vadd.f32 %v5904_v31, %v5763_v47 }
 0x4c9   : > { %8123 = vmatpush1.msra.mxu1 %v14134_v55  ;;  %9265 = vrot.lane.b32.xlu0 %v9229_v42, %s10588_s24  ;;  %v5784_v9 = vpop.f32.mrf.mxu0  ;;  %v5911_v12 = vpop.f32.mrf.mxu1  ;;  %v8503_v55 = vsub.f32 %v14483_v37, %v16029_v38 }
 0x4ca   : > { %8125 = vmatprep.subr.mxu1 %v14072_v50  ;;  %9261 = vrot.lane.b32.xlu1 %v9227_v53, %s10588_s24  ;;  %v5785_v29 = vadd.f32 %v5784_v9, %v14408_v41  ;;  %v14520_v14 = vadd.f32 %v5911_v12, %v5769_v39  ;;  %v10563_v50 = vld [vmem:[#allocation2 + $0x10] sm:$0xff]  ;;  %v14568_v53 = vand.u32 4294901760, %v8281_v30 }
 0x4cb   : > { %8127 = vmatpush1.msra.mxu1 %v14099_v3  ;;  %7765 = vmatprep.mubr.f32.mxu0 %v16087_v62  ;;  %v5786_v6 = vpop.f32.mrf.mxu0  ;;  %v5913_v34 = vpop.f32.mrf.mxu1  ;;  %v9228_v47 = vmul.f32 %v10563_v50, %v14420_v15  ;;  %v16275_v3 = vand.u32 4294901760, %v14094_v35  ;;  %v8504_v15 = vand.u32 4294901760, %v8503_v55  ;;  %v16279_v55 = vld [vmem:[#allocation25_spill] sm:$0xff]  ;;  %v16282_v50 = vld [vmem:[#allocation8_spill] sm:$0xff] }
 0x4cc   : > { %7887 = vmatprep.mubr.f32.mxu1 %v16087_v62  ;;  %8129 = vmatprep.subr.mxu1 %v14143_v63  ;;  %v5787_v41 = vadd.f32 %v5786_v6, %v14415_v4  ;;  %v14531_v39 = vadd.f32 %v5913_v34, %v5771_v44  ;;  %v8278_v6 = vsel %vm8274_vm7, %v16280_v13, %v16279_v55  ;;  %v16281_v34 = vand.u32 4294901760, %v14286_v7  ;;  %v16291_v55 = vld [vmem:[#allocation19_spill] sm:$0xff] }
 0x4cd   : > { %7768 = vmatmul.mubr.f32.gmra.mxu0 %v14172_v56  ;;  %7891 = vmatmul.mubr.f32.gmra.mxu1 %v16275_v3  ;;  %v5920_v43 = vpop.f32.mrf.mxu1  ;;  %v6025_v28 = vpop.f32.mrf.mxu0  ;;  %v14599_v1 = vsub.f32 %v8281_v30, %v14568_v53 }
 0x4ce   : > { %8131 = vmatpush1.msra.mxu1 %v14185_v61  ;;  %9263 = vrot.lane.b32.xlu0 %v9228_v47, %s10588_s24  ;;  %v14539_v63 = vadd.f32 %v5920_v43, %v5777_v27  ;;  %v6026_v4 = vadd.f32 %v6025_v28, %v14424_v18  ;;  %v16284_v43 = vld [vmem:[#allocation28_spill] sm:$0xff] }
 0x4cf   : > { %8133 = vmatprep.subr.mxu1 %v14231_v51  ;;  %9259 = vrot.lane.b32.xlu1 %v9226_v16, %s10588_s24  ;;  %v5922_v35 = vpop.f32.mrf.mxu1  ;;  %v6027_v44 = vpop.f32.mrf.mxu0  ;;  %v16276_v51 = vand.u32 4294901760, %v14127_v45  ;;  %v8276_v28 = vsel %vm8274_vm7, %v16284_v43, %v14401_v59  ;;  %v16288_v59 = vand.u32 4294901760, %v14319_v40 }
 0x4d0   : > { %8135 = vmatpush1.msra.mxu1 %v14233_v8  ;;  %7773 = vmatprep.mubr.f32.mxu0 %v16087_v62  ;;  %v14546_v52 = vadd.f32 %v5922_v35, %v5779_v17  ;;  %v6028_v61 = vadd.f32 %v6027_v44, %v14435_v22  ;;  %v16278_v17 = vld [vmem:[#allocation7_spill] sm:$0xff]  ;;  %v14607_v35 = vand.u32 4294901760, %v8278_v6  ;;  %v16285_v44 = vld [vmem:[#allocation9_spill] sm:$0xff] }
 0x4d1   : > { %7896 = vmatprep.mubr.f32.mxu1 %v16087_v62  ;;  %8505 = vmatprep.subr.mxu1 %v8504_v15  ;;  %v5929_v23 = vpop.f32.mrf.mxu1  ;;  %v6032_v18 = vpop.f32.mrf.mxu0 }
 0x4d2   : > { %7776 = vmatmul.mubr.f32.gmra.mxu0 %v14286_v7  ;;  %7900 = vmatmul.mubr.f32.gmra.mxu1 %v16276_v51  ;;  %v14553_v60 = vadd.f32 %v5929_v23, %v5785_v29  ;;  %v6033_v8 = vadd.f32 %v6032_v18, %v14442_v2  ;;  %v16277_v2 = vand.u32 4294901760, %v14172_v56  ;;  %v8279_v56 = vsel %vm8274_vm7, %v14331_v36, %v14296_v49  ;;  %v16283_v7 = vld [vmem:[#allocation27_spill] sm:$0xff]  ;;  %v16286_v51 = vld [vmem:[#allocation29_spill] sm:$0xff] }
 0x4d3   : > { %7781 = vmatprep.mubr.f32.mxu0 %v16087_v62  ;;  %7905 = vmatprep.mubr.f32.mxu1 %v16087_v62  ;;  %v5931_v27 = vpop.f32.mrf.mxu1  ;;  %v6034_v22 = vpop.f32.mrf.mxu0  ;;  %v14582_v29 = vand.u32 4294901760, %v8280_v10  ;;  %v8277_v16 = vsel %vm8274_vm7, %v16283_v7, %v16280_v13  ;;  %v16292_v13 = vld [vmem:[#allocation20_spill] sm:$0xff] }
 0x4d4   : > { %v14561_v42 = vadd.f32 %v5931_v27, %v5787_v41  ;;  %v6035_v0 = vadd.f32 %v6034_v22, %v14451_v57  ;;  %v14593_v41 = vand.u32 4294901760, %v8279_v56  ;;  %v16287_v27 = vld [vmem:[#allocation26_spill] sm:$0xff]  ;;  %v14625_v30 = vand.u32 4294901760, %v8277_v16 }
 0x4d5   : > { %v6039_v45 = vpop.f32.mrf.mxu0  ;;  %v6154_v31 = vpop.f32.mrf.mxu1  ;;  %v14614_v18 = vsub.f32 %v8280_v10, %v14582_v29  ;;  %v16027_v10 = vand.u32 4294901760, %v14599_v1 }
 0x4d6   : > { %7784 = vmatmul.mubr.f32.gmra.mxu0 %v14319_v40  ;;  %7909 = vmatmul.mubr.f32.gmra.mxu1 %v16277_v2  ;;  %v6040_v19 = vadd.f32 %v6039_v45, %v14458_v26  ;;  %v6155_v58 = vadd.f32 %v6154_v31, %v6026_v4  ;;  %v14623_v22 = vsub.f32 %v8279_v56, %v14593_v41  ;;  %v14627_v45 = vand.u32 4294901760, %v8276_v28 }
 0x4d7   : > { %7789 = vmatprep.mubr.f32.mxu0 %v16087_v62  ;;  %7914 = vmatprep.mubr.f32.mxu1 %v16087_v62  ;;  %v6041_v54 = vpop.f32.mrf.mxu0  ;;  %v6156_v57 = vpop.f32.mrf.mxu1 }
 0x4d8   : > { %v14579_v9 = vadd.f32 %v6155_v58, %v16278_v17  ;;  %v6042_v26 = vadd.f32 %v6041_v54, %v14471_v46  ;;  %v6157_v12 = vadd.f32 %v6156_v57, %v6028_v61  ;;  %v14637_v54 = vsub.f32 %v8278_v6, %v14607_v35 }
 0x4d9   : > { %v14650_v6 = vsub.f32 %v8277_v16, %v14625_v30 }
 0x4da   : > { %7792 = vmatmul.mubr.f32.gmra.mxu0 %v14344_v21  ;;  %7918 = vmatmul.mubr.f32.gmra.mxu1 %v16281_v34  ;;  %v14591_v47 = vadd.f32 %v6157_v12, %v16282_v50  ;;  %v6046_v49 = vpop.f32.mrf.mxu0  ;;  %v6161_v36 = vpop.f32.mrf.mxu1  ;;  %v16290_v12 = vand.u32 4294901760, %v14344_v21  ;;  %v16025_v50 = vand.u32 4294901760, %v14623_v22 }
 0x4db   : > { %7797 = vmatprep.mubr.f32.mxu0 %v16087_v62  ;;  %7923 = vmatprep.mubr.f32.mxu1 %v16087_v62  ;;  %v6047_v46 = vadd.f32 %v6046_v49, %v14480_v48  ;;  %v6162_v3 = vadd.f32 %v6161_v36, %v6033_v8  ;;  %v8275_v8 = vsel %vm8274_vm7, %v16286_v51, %v16284_v43 }
 0x4dc   : > { %v6048_v4 = vpop.f32.mrf.mxu0  ;;  %v6163_v15 = vpop.f32.mrf.mxu1  ;;  %v14639_v57 = vand.u32 4294901760, %v8275_v8  ;;  %v14653_v49 = vsub.f32 %v8276_v28, %v14627_v45  ;;  %v8509_v43 = vsub.f32 %v14599_v1, %v16027_v10 }
 0x4dd   : > { %v14610_v61 = vadd.f32 %v6162_v3, %v16285_v44  ;;  %v6049_v48 = vadd.f32 %v6048_v4, %v14493_v32  ;;  %v6164_v23 = vadd.f32 %v6163_v15, %v6035_v0  ;;  %v16289_v32 = vld [vmem:[#allocation18_spill] sm:$0xff]  ;;  %v16026_v3 = vand.u32 4294901760, %v14614_v18 }
 0x4de   : > { %7800 = vmatmul.mubr.f32.gmra.mxu0 %v16287_v27  ;;  %7927 = vmatmul.mubr.f32.gmra.mxu1 %v16288_v59  ;;  %v14668_v28 = vsub.f32 %v8275_v8, %v14639_v57  ;;  %v16024_v44 = vand.u32 4294901760, %v14637_v54  ;;  %v8521_v8 = vsub.f32 %v14623_v22, %v16025_v50 }
 0x4df   : > { %7932 = vmatprep.mubr.f32.mxu1 %v16087_v62  ;;  %8039 = vmatprep.mubr.f32.mxu0 %v16087_v62  ;;  %v14632_v0 = vadd.f32 %v6164_v23, %v16289_v32  ;;  %v6053_v31 = vpop.f32.mrf.mxu0  ;;  %v6168_v2 = vpop.f32.mrf.mxu1  ;;  %v16295_v23 = vand.u32 4294901760, %v16287_v27  ;;  %v16022_v32 = vand.u32 4294901760, %v14650_v6  ;;  %v8515_v27 = vsub.f32 %v14614_v18, %v16026_v3 }
 0x4e0   : > { %v6054_v58 = vadd.f32 %v6053_v31, %v14502_v33  ;;  %v6169_v40 = vadd.f32 %v6168_v2, %v6040_v19  ;;  %v16298_v31 = vld [vmem:[#allocation11_spill] sm:$0xff] }
 0x4e1   : > { %v6055_v56 = vpop.f32.mrf.mxu0  ;;  %v6170_v17 = vpop.f32.mrf.mxu1 }
 0x4e2   : > { %7936 = vmatmul.mubr.f32.gmra.mxu1 %v16290_v12  ;;  %8041 = vmatmul.mubr.f32.vlgmr.msra.gmra.mxu0 %v16291_v55  ;;  %v14645_v34 = vadd.f32 %v6169_v40, %v16292_v13  ;;  %v6056_v33 = vadd.f32 %v6055_v56, %v14513_v24  ;;  %v6171_v19 = vadd.f32 %v6170_v17, %v6042_v26  ;;  %v16293_v24 = vld [vmem:[#allocation3_spill] sm:$0xff]  ;;  %v16021_v56 = vand.u32 4294901760, %v14653_v49 }
 0x4e3   : > { %8342 = vmatpush1.msra.mxu0 %v14568_v53  ;;  %7941 = vmatprep.mubr.f32.mxu1 %v16087_v62  ;;  %v6060_v21 = vpop.f32.mrf.mxu0  ;;  %v6175_v36 = vpop.f32.mrf.mxu1  ;;  %v10470_v13 = vld [vmem:[%s15897_s4 + $0x1c0] sm:$0xff] }
 0x4e4   : > { %8344 = vmatprep.subr.mxu0 %v14582_v29  ;;  %8046 = vmatprep.mubr.f32.mxu0 %v16087_v62  ;;  %v14661_v26 = vadd.f32 %v6171_v19, %v16293_v24  ;;  %v6061_v7 = vadd.f32 %v6060_v21, %v14520_v14  ;;  %v6176_v16 = vadd.f32 %v6175_v36, %v6047_v46  ;;  %v16296_v14 = vld [vmem:[#allocation4_spill] sm:$0xff]  ;;  %v16020_v19 = vand.u32 4294901760, %v14668_v28 }
 0x4e5   : > { %8346 = vmatpush1.msra.mxu0 %v14593_v41  ;;  %v6062_v4 = vpop.f32.mrf.mxu0  ;;  %v6177_v15 = vpop.f32.mrf.mxu1  ;;  %v8527_v21 = vsub.f32 %v14637_v54, %v16024_v44 }
 0x4e6   : > { %16294 = vst [vmem:[#allocation7_spill] sm:$0xff] %v14661_v26  ;;  %8348 = vmatprep.subr.mxu0 %v14607_v35  ;;  %7945 = vmatmul.mubr.f32.gmra.mxu1 %v16295_v23  ;;  %v14676_v46 = vadd.f32 %v6176_v16, %v16296_v14  ;;  %v6063_v51 = vadd.f32 %v6062_v4, %v14531_v39  ;;  %v16299_v39 = vld [vmem:[#allocation21_spill] sm:$0xff]  ;;  %v16303_v14 = vld [vmem:[#allocation6_spill] sm:$0xff] }
 0x4e7   : > { %v6178_v59 = vadd.f32 %v6177_v15, %v6049_v48  ;;  %8048 = vmatmul.mubr.f32.gmra.mxu0 %v16298_v31  ;;  %8168 = vmatprep.mubr.f32.mxu1 %v16087_v62  ;;  %v6067_v2 = vpop.f32.mrf.mxu0  ;;  %v6182_v40 = vpop.f32.mrf.mxu1  ;;  %v8533_v23 = vsub.f32 %v14650_v6, %v16022_v32 }
 0x4e8   : > { %16297 = vst [vmem:[#allocation25_spill] sm:$0xff] %v14676_v46  ;;  %8350 = vmatpush1.msra.mxu0 %v14625_v30  ;;  %8053 = vmatprep.mubr.f32.mxu0 %v16087_v62  ;;  %v6068_v17 = vadd.f32 %v6067_v2, %v14539_v63  ;;  %v6183_v12 = vadd.f32 %v6182_v40, %v6054_v58  ;;  %v8510_v63 = vand.u32 4294901760, %v8509_v43  ;;  %v16301_v58 = vld [vmem:[#allocation22_spill] sm:$0xff]  ;;  %v8292_v40 = vsel %vm1400_vm12, %v10470_v13, 0 }
 0x4e9   : > { %v14692_v48 = vadd.f32 %v6178_v59, %v16299_v39  ;;  %8352 = vmatprep.subr.mxu0 %v14627_v45  ;;  %v6069_v36 = vpop.f32.mrf.mxu0  ;;  %v6184_v24 = vpop.f32.mrf.mxu1  ;;  %v8516_v59 = vand.u32 4294901760, %v8515_v27  ;;  %v10471_v27 = vld [vmem:[%s15897_s4 + $0x1c8] sm:$0xff] }
 0x4ea   : > { %8354 = vmatpush1.msra.mxu0 %v14639_v57  ;;  %8170 = vmatmul.mubr.f32.vlgmr.msra.gmra.mxu1 %v16291_v55  ;;  %v14706_v16 = vadd.f32 %v6183_v12, %v16301_v58  ;;  %v6070_v4 = vadd.f32 %v6069_v36, %v14546_v52  ;;  %v6185_v15 = vadd.f32 %v6184_v24, %v6056_v33  ;;  %v8522_v52 = vand.u32 4294901760, %v8521_v8  ;;  %v16304_v33 = vld [vmem:[#allocation23_spill] sm:$0xff]  ;;  %v16306_v58 = vld [vmem:[#allocation16_spill] sm:$0xff] }
 0x4eb   : > { %16300 = vst [vmem:[#allocation24_spill] sm:$0xff] %v14692_v48  ;;  %8663 = vmatprep.subr.mxu0 %v14483_v37  ;;  %8055 = vmatmul.mubr.f32.gmra.mxu0 %v16303_v14  ;;  %v8539_v55 = vsub.f32 %v14653_v49, %v16021_v56  ;;  %v6074_v43 = vpop.f32.mrf.mxu0  ;;  %v6189_v2 = vpop.f32.mrf.mxu1  ;;  %v8545_v24 = vsub.f32 %v14668_v28, %v16020_v19  ;;  %v8528_v8 = vand.u32 4294901760, %v8527_v21  ;;  %v8295_v56 = vsel %vm1400_vm12, %v10471_v27, 0  ;;  %v16311_v27 = vld [vmem:[#allocation13_spill] sm:$0xff] }
 0x4ec   : > { %16302 = vst [vmem:[#allocation8_spill] sm:$0xff] %v14706_v16  ;;  %8511 = vmatpush1.msra.mxu1 %v8510_v63  ;;  %8060 = vmatprep.mubr.f32.mxu0 %v16087_v62  ;;  %v14720_v39 = vadd.f32 %v6185_v15, %v16304_v33  ;;  %v6075_v12 = vadd.f32 %v6074_v43, %v14553_v60  ;;  %v14734_v43 = vand.u32 4294901760, %v8292_v40  ;;  %v8534_v33 = vand.u32 4294901760, %v8533_v23  ;;  %v10472_v23 = vld [vmem:[%s15897_s4 + $0x1d0] sm:$0xff] }
 0x4ed   : > { %v6190_v36 = vadd.f32 %v6189_v2, %v6061_v7  ;;  %8517 = vmatprep.subr.mxu1 %v8516_v59  ;;  %8175 = vmatprep.mubr.f32.mxu1 %v16087_v62  ;;  %v6076_v13 = vpop.f32.mrf.mxu0  ;;  %v6191_v63 = vpop.f32.mrf.mxu1  ;;  %v16308_v2 = vld [vmem:[#allocation10_spill] sm:$0xff]  ;;  %v8540_v21 = vand.u32 4294901760, %v8539_v55 }
 0x4ee   : > { %16305 = vst [vmem:[#allocation27_spill] sm:$0xff] %v14720_v39  ;;  %8523 = vmatpush1.msra.mxu1 %v8522_v52  ;;  %v6077_v60 = vadd.f32 %v6076_v13, %v14561_v42  ;;  %v6192_v7 = vadd.f32 %v6191_v63, %v6063_v51  ;;  %v16309_v52 = vld [vmem:[#allocation5_spill] sm:$0xff]  ;;  %v8546_v51 = vand.u32 4294901760, %v8545_v24  ;;  %v14751_v63 = vsub.f32 %v8292_v40, %v14734_v43 }
 0x4ef   : > { %v14731_v15 = vadd.f32 %v6190_v36, %v16306_v58  ;;  %8529 = vmatprep.subr.mxu1 %v8528_v8  ;;  %8062 = vmatmul.mubr.f32.gmra.mxu0 %v16308_v2  ;;  %v6196_v19 = vpop.f32.mrf.mxu1  ;;  %v6410_v59 = vpop.f32.mrf.mxu0  ;;  %v14753_v58 = vand.u32 4294901760, %v8295_v56 }
 0x4f0   : > { %8177 = vmatmul.mubr.f32.gmra.mxu1 %v16298_v31  ;;  %8067 = vmatprep.mubr.f32.mxu0 %v16087_v62  ;;  %v14741_v36 = vadd.f32 %v6192_v7, %v16309_v52  ;;  %v6197_v42 = vadd.f32 %v6196_v19, %v6068_v17  ;;  %v16314_v17 = vld [vmem:[#allocation17_spill] sm:$0xff]  ;;  %v16315_v19 = vld [vmem:[#allocation14_spill] sm:$0xff] }
 0x4f1   : > { %16307 = vst [vmem:[#allocation28_spill] sm:$0xff] %v14731_v15  ;;  %8535 = vmatpush1.msra.mxu1 %v8534_v33  ;;  %8182 = vmatprep.mubr.f32.mxu1 %v16087_v62  ;;  %v6198_v8 = vpop.f32.mrf.mxu1  ;;  %v6412_v13 = vpop.f32.mrf.mxu0  ;;  %16313 = vst [vmem:[#allocation26_spill] sm:$0xff] %v14753_v58 }
 0x4f2   : > { %16310 = vst [vmem:[#allocation9_spill] sm:$0xff] %v14741_v36  ;;  %8541 = vmatprep.subr.mxu1 %v8540_v21  ;;  %v14748_v31 = vadd.f32 %v6197_v42, %v16311_v27  ;;  %v6199_v55 = vadd.f32 %v6198_v8, %v6070_v4  ;;  %v8298_v21 = vsel %vm1400_vm12, %v10472_v23, 0  ;;  %v10473_v4 = vld [vmem:[%s15897_s4 + $0x1d8] sm:$0xff]  ;;  %v16317_v8 = vld [vmem:[#allocation12_spill] sm:$0xff] }
 0x4f3   : > { %8547 = vmatpush1.msra.mxu1 %v8546_v51  ;;  %8069 = vmatmul.mubr.f32.gmra.mxu0 %v16314_v17  ;;  %v14769_v51 = vsub.f32 %v8295_v56, %v14753_v58 }
 0x4f4   : > { %16312 = vst [vmem:[#allocation29_spill] sm:$0xff] %v14748_v31  ;;  %8807 = vmatprep.subr.mxu1 %v14460_v25  ;;  %8184 = vmatmul.mubr.f32.gmra.mxu1 %v16303_v14  ;;  %v14759_v24 = vadd.f32 %v6199_v55, %v16315_v19  ;;  %v6203_v7 = vpop.f32.mrf.mxu1  ;;  %v6421_v33 = vpop.f32.mrf.mxu0  ;;  %v16023_v14 = vand.u32 4294901760, %v14751_v63  ;;  %v14775_v55 = vand.u32 4294901760, %v8298_v21  ;;  %v8301_v19 = vsel %vm1400_vm12, %v10473_v4, 0 }
 0x4f5   : > { %8074 = vmatprep.mubr.f32.mxu0 %v16087_v62  ;;  %8189 = vmatprep.mubr.f32.mxu1 %v16087_v62  ;;  %v6204_v40 = vadd.f32 %v6203_v7, %v6075_v12  ;;  %v16319_v12 = vld [vmem:[#allocation15_spill] sm:$0xff] }
 0x4f6   : > { %16316 = vst [vmem:[#allocation18_spill] sm:$0xff] %v14759_v24  ;;  %v6205_v52 = vpop.f32.mrf.mxu1  ;;  %v6423_v42 = vpop.f32.mrf.mxu0  ;;  %v8391_v4 = vsub.f32 %v14751_v63, %v16023_v14  ;;  %v10475_v14 = vld [vmem:[%s15897_s4 + $0x1e8] sm:$0xff] }
 0x4f7   : > { %8076 = vmatmul.mubr.f32.gmra.mxu0 %v14288_v20  ;;  %v14773_v23 = vadd.f32 %v6204_v40, %v16317_v8  ;;  %v6206_v27 = vadd.f32 %v6205_v52, %v6077_v60  ;;  %v10474_v40 = vld [vmem:[%s15897_s4 + $0x1e0] sm:$0xff] }
 0x4f8   : > { %8191 = vmatmul.mubr.f32.gmra.mxu1 %v16308_v2  ;;  %8081 = vmatprep.mubr.f32.mxu0 %v16087_v62  ;;  %v14792_v2 = vand.u32 4294901760, %v8301_v19  ;;  %v8392_v3 = vand.u32 4294901760, %v8391_v4 }
 0x4f9   : > { %16318 = vst [vmem:[#allocation19_spill] sm:$0xff] %v14773_v23  ;;  %8196 = vmatprep.mubr.f32.mxu1 %v16087_v62  ;;  %v14782_v7 = vadd.f32 %v6206_v27, %v16319_v12  ;;  %v6432_v56 = vpop.f32.mrf.mxu0  ;;  %v6599_v32 = vpop.f32.mrf.mxu1  ;;  %v16028_v27 = vand.u32 4294901760, %v14769_v51  ;;  %v14797_v12 = vsub.f32 %v8298_v21, %v14775_v55 }
 0x4fa   : > { %v14787_v60 = vadd.f32 %v6599_v32, %v6410_v59  ;;  %v8304_v59 = vsel %vm1400_vm12, %v10474_v40, 0  ;;  %v14809_v21 = vsub.f32 %v8301_v19, %v14792_v2  ;;  %v8307_v19 = vsel %vm1400_vm12, %v10475_v14, 0 }
 0x4fb   : > { %16320 = vst [vmem:[#allocation20_spill] sm:$0xff] %v14782_v7  ;;  %8083 = vmatmul.mubr.f32.gmra.mxu0 %v14321_v5  ;;  %v6434_v52 = vpop.f32.mrf.mxu0  ;;  %v6601_v8 = vpop.f32.mrf.mxu1  ;;  %v16321_v7 = vand.u32 4294901760, %v14797_v12  ;;  %v14836_v24 = vand.u32 4294901760, %v8307_v19 }
 0x4fc   : > { %8198 = vmatmul.mubr.f32.gmra.mxu1 %v16314_v17  ;;  %8088 = vmatprep.mubr.f32.mxu0 %v16087_v62  ;;  %v14801_v32 = vadd.f32 %v6601_v8, %v6412_v13  ;;  %v8402_v13 = vsub.f32 %v14769_v51, %v16028_v27  ;;  %v14818_v8 = vand.u32 4294901760, %v8304_v59  ;;  %v16030_v27 = vand.u32 4294901760, %v14809_v21 }
 0x4fd   : > { %8203 = vmatprep.mubr.f32.mxu1 %v16087_v62  ;;  %v8413_v23 = vsub.f32 %v14797_v12, %v16321_v7  ;;  %v10477_v7 = vld [vmem:[%s15897_s4 + $0x1f8] sm:$0xff]  ;;  %v14858_v36 = vsub.f32 %v8307_v19, %v14836_v24 }
 0x4fe   : > { %v6443_v44 = vpop.f32.mrf.mxu0  ;;  %v6606_v50 = vpop.f32.mrf.mxu1  ;;  %v14834_v14 = vsub.f32 %v8304_v59, %v14818_v8 }
 0x4ff   : > { %8090 = vmatmul.mubr.f32.gmra.mxu0 %v14352_v11  ;;  %v14812_v17 = vadd.f32 %v6606_v50, %v6421_v33  ;;  %v10476_v33 = vld [vmem:[%s15897_s4 + $0x1f0] sm:$0xff]  ;;  %v16032_v39 = vand.u32 4294901760, %v14858_v36 }
 0x500   : > { %8205 = vmatmul.mubr.f32.gmra.mxu1 %v14288_v20  ;;  %8387 = vmatprep.mubr.f32.mxu0 %v16087_v62  ;;  %v6445_v4 = vpop.f32.mrf.mxu0  ;;  %v6608_v10 = vpop.f32.mrf.mxu1  ;;  %v8403_v20 = vand.u32 4294901760, %v8402_v13  ;;  %v16031_v31 = vand.u32 4294901760, %v14834_v14 }
 0x501   : > { %8210 = vmatprep.mubr.f32.mxu1 %v16087_v62  ;;  %v14824_v50 = vadd.f32 %v6608_v10, %v6423_v42 }
 0x503   : > { %8393 = vmatmul.mubr.f32.vlgmr.msra.gmra.mxu0 %v8392_v3  ;;  %v6454_v38 = vpop.f32.mrf.mxu0  ;;  %v6613_v40 = vpop.f32.mrf.mxu1  ;;  %v8310_v3 = vsel %vm1400_vm12, %v10476_v33, 0  ;;  %v8414_v33 = vand.u32 4294901760, %v8413_v23 }
 0x504   : > { %8212 = vmatmul.mubr.f32.gmra.mxu1 %v14321_v5  ;;  %8666 = vmatpush1.msra.mxu0 %v14599_v1  ;;  %v14840_v10 = vadd.f32 %v6613_v40, %v6432_v56  ;;  %v8424_v56 = vsub.f32 %v14809_v21, %v16030_v27  ;;  %v14860_v15 = vand.u32 4294901760, %v8310_v3 }
 0x505   : > { %8669 = vmatprep.subr.mxu0 %v14614_v18  ;;  %8217 = vmatprep.mubr.f32.mxu1 %v16087_v62  ;;  %v6456_v42 = vpop.f32.mrf.mxu0  ;;  %v6615_v13 = vpop.f32.mrf.mxu1 }
 0x506   : > { %8672 = vmatpush1.msra.mxu0 %v14623_v22  ;;  %8398 = vmatprep.mubr.f32.mxu0 %v16087_v62  ;;  %v14850_v5 = vadd.f32 %v6615_v13, %v6434_v52  ;;  %v8313_v13 = vsel %vm1400_vm12, %v10477_v7, 0  ;;  %v8425_v27 = vand.u32 4294901760, %v8424_v56  ;;  %v8435_v7 = vsub.f32 %v14834_v14, %v16031_v31 }
 0x507   : > { %8675 = vmatprep.subr.mxu0 %v14637_v54  ;;  %8404 = vmatmul.mubr.f32.gmra.mxu0 %v8403_v20  ;;  %v6465_v59 = vpop.f32.mrf.mxu0  ;;  %v6620_v40 = vpop.f32.mrf.mxu1  ;;  %v14880_v16 = vsub.f32 %v8310_v3, %v14860_v15  ;;  %v14882_v48 = vand.u32 4294901760, %v8313_v13 }
 0x508   : > { %8219 = vmatmul.mubr.f32.gmra.mxu1 %v14352_v11  ;;  %8678 = vmatpush1.msra.mxu0 %v14650_v6  ;;  %v14864_v52 = vadd.f32 %v6620_v40, %v6443_v44  ;;  %v16322_v11 = vand.u32 4294901760, %v14483_v37 }
 0x509   : > { %8681 = vmatprep.subr.mxu0 %v14653_v49  ;;  %8409 = vmatprep.mubr.f32.mxu0 %v16087_v62  ;;  %v6467_v23 = vpop.f32.mrf.mxu0  ;;  %v6622_v20 = vpop.f32.mrf.mxu1  ;;  %v14899_v31 = vsub.f32 %v8313_v13, %v14882_v48 }
 0x50a   : > { %8684 = vmatpush1.msra.mxu0 %v14668_v28  ;;  %8580 = vmatprep.mubr.f32.mxu1 %v16087_v62  ;;  %v14871_v19 = vadd.f32 %v6622_v20, %v6445_v4 }
 0x50b   : > { %8954 = vmatprep.subr.mxu0 %v16322_v11  ;;  %8415 = vmatmul.mubr.f32.gmra.mxu0 %v8414_v33  ;;  %v6476_v44 = vpop.f32.mrf.mxu0  ;;  %v6627_v40 = vpop.f32.mrf.mxu1  ;;  %v8436_v11 = vand.u32 4294901760, %v8435_v7 }
 0x50c   : > { %8582 = vmatmul.mubr.f32.vlgmr.msra.gmra.mxu1 %v14734_v43  ;;  %8420 = vmatprep.mubr.f32.mxu0 %v16087_v62  ;;  %v14886_v37 = vadd.f32 %v6627_v40, %v6454_v38  ;;  %v8446_v38 = vsub.f32 %v14858_v36, %v16032_v39 }
 0x50d   : > { %8809 = vmatpush1.msra.mxu1 %v14568_v53  ;;  %8587 = vmatprep.mubr.f32.mxu1 %v16087_v62  ;;  %v6478_v4 = vpop.f32.mrf.mxu0  ;;  %v6629_v56 = vpop.f32.mrf.mxu1 }
 0x50e   : > { %8811 = vmatprep.subr.mxu1 %v14582_v29  ;;  %v14891_v33 = vadd.f32 %v6629_v56, %v6456_v42  ;;  %v8447_v40 = vand.u32 4294901760, %v8446_v38 }
 0x50f   : > { %8813 = vmatpush1.msra.mxu1 %v14593_v41  ;;  %8426 = vmatmul.mubr.f32.gmra.mxu0 %v8425_v27  ;;  %v6487_v3 = vpop.f32.mrf.mxu0  ;;  %v6634_v20 = vpop.f32.mrf.mxu1 }
 0x510   : > { %8815 = vmatprep.subr.mxu1 %v14607_v35  ;;  %8589 = vmatmul.mubr.f32.gmra.mxu1 %v14753_v58  ;;  %v14903_v42 = vadd.f32 %v6634_v20, %v6465_v59  ;;  %v16323_v59 = vand.u32 4294901760, %v14880_v16 }
 0x511   : > { %8817 = vmatpush1.msra.mxu1 %v14625_v30  ;;  %8431 = vmatprep.mubr.f32.mxu0 %v16087_v62  ;;  %v6489_v27 = vpop.f32.mrf.mxu0  ;;  %v6636_v7 = vpop.f32.mrf.mxu1 }
 0x512   : > { %8819 = vmatprep.subr.mxu1 %v14627_v45  ;;  %8594 = vmatprep.mubr.f32.mxu1 %v16087_v62  ;;  %v14909_v56 = vadd.f32 %v6636_v7, %v6467_v23  ;;  %v8457_v20 = vsub.f32 %v14880_v16, %v16323_v59 }
 0x513   : > { %8821 = vmatpush1.msra.mxu1 %v14639_v57  ;;  %8437 = vmatmul.mubr.f32.gmra.mxu0 %v8436_v11  ;;  %v6641_v13 = vpop.f32.mrf.mxu1  ;;  %v6737_v39 = vpop.f32.mrf.mxu0 }
 0x514   : > { %9097 = vmatprep.subr.mxu1 %v14460_v25  ;;  %8596 = vmatmul.mubr.f32.gmra.mxu1 %v14775_v55  ;;  %v14918_v26 = vadd.f32 %v6641_v13, %v6476_v44  ;;  %v6738_v23 = vadd.f32 %v6737_v39, %v14787_v60  ;;  %v8458_v58 = vand.u32 4294901760, %v8457_v20  ;;  %v16324_v25 = vand.u32 4294901760, %v14899_v31 }
 0x515   : > { %8442 = vmatprep.mubr.f32.mxu0 %v16087_v62  ;;  %8601 = vmatprep.mubr.f32.mxu1 %v16087_v62  ;;  %v6643_v11 = vpop.f32.mrf.mxu1  ;;  %v6739_v38 = vpop.f32.mrf.mxu0 }
 0x516   : > { %v14923_v7 = vadd.f32 %v6643_v11, %v6478_v4  ;;  %v6740_v59 = vadd.f32 %v6739_v38, %v14801_v32  ;;  %v8468_v44 = vsub.f32 %v14899_v31, %v16324_v25 }
 0x517   : > { %8448 = vmatmul.mubr.f32.gmra.mxu0 %v8447_v40  ;;  %v6648_v46 = vpop.f32.mrf.mxu1 }
 0x518   : > { %8603 = vmatmul.mubr.f32.gmra.mxu1 %v14792_v2  ;;  %8453 = vmatprep.mubr.f32.mxu0 %v16087_v62  ;;  %v14931_v39 = vadd.f32 %v6648_v46, %v6487_v3  ;;  %v6745_v60 = vpop.f32.mrf.mxu0  ;;  %v8469_v38 = vand.u32 4294901760, %v8468_v44 }
 0x519   : > { %8608 = vmatprep.mubr.f32.mxu1 %v16087_v62  ;;  %v6746_v4 = vadd.f32 %v6745_v60, %v14812_v17  ;;  %v6650_v13 = vpop.f32.mrf.mxu1 }
 0x51a   : > { %v14935_v32 = vadd.f32 %v6650_v13, %v6489_v27  ;;  %v6747_v40 = vpop.f32.mrf.mxu0 }
 0x51b   : > { %8459 = vmatmul.mubr.f32.gmra.mxu0 %v8458_v58  ;;  %v6748_v20 = vadd.f32 %v6747_v40, %v14824_v50  ;;  %v6875_v11 = vpop.f32.mrf.mxu1 }
 0x51c   : > { %8610 = vmatmul.mubr.f32.gmra.mxu1 %v14818_v8  ;;  %8464 = vmatprep.mubr.f32.mxu0 %v16087_v62  ;;  %v6753_v46 = vpop.f32.mrf.mxu0  ;;  %v14940_v3 = vadd.f32 %v6875_v11, %v6738_v23 }
 0x51d   : > { %8615 = vmatprep.mubr.f32.mxu1 %v16087_v62  ;;  %v6754_v17 = vadd.f32 %v6753_v46, %v14840_v10  ;;  %v6877_v25 = vpop.f32.mrf.mxu1 }
 0x51e   : > { %v6755_v27 = vpop.f32.mrf.mxu0  ;;  %v14944_v60 = vadd.f32 %v6877_v25, %v6740_v59  ;;  %v16326_v25 = vand.u32 4294901760, %v14614_v18 }
 0x51f   : > { %8470 = vmatmul.mubr.f32.gmra.mxu0 %v8469_v38  ;;  %v6756_v58 = vadd.f32 %v6755_v27, %v14850_v5  ;;  %v6884_v50 = vpop.f32.mrf.mxu1  ;;  %v16325_v38 = vand.u32 4294901760, %v14599_v1  ;;  %v16327_v27 = vand.u32 4294901760, %v14623_v22  ;;  %v16328_v1 = vand.u32 4294901760, %v14637_v54 }
 0x520   : > { %8617 = vmatmul.mubr.f32.gmra.mxu1 %v14836_v24  ;;  %8717 = vmatprep.mubr.f32.mxu0 %v16087_v62  ;;  %v6761_v44 = vpop.f32.mrf.mxu0  ;;  %v14949_v13 = vadd.f32 %v6884_v50, %v6746_v4 }
 0x521   : > { %8622 = vmatprep.mubr.f32.mxu1 %v16087_v62  ;;  %v6762_v23 = vadd.f32 %v6761_v44, %v14864_v52  ;;  %v6886_v10 = vpop.f32.mrf.mxu1 }
 0x522   : > { %v6763_v40 = vpop.f32.mrf.mxu0  ;;  %v14953_v11 = vadd.f32 %v6886_v10, %v6748_v20  ;;  %v16330_v10 = vand.u32 4294901760, %v14653_v49 }
 0x523   : > { %8720 = vmatmul.mubr.f32.vlgmr.msra.gmra.mxu0 %v14751_v63  ;;  %v6764_v5 = vadd.f32 %v6763_v40, %v14871_v19  ;;  %v6893_v59 = vpop.f32.mrf.mxu1  ;;  %v16331_v40 = vand.u32 4294901760, %v14668_v28 }
 0x524   : > { %8624 = vmatmul.mubr.f32.gmra.mxu1 %v14860_v15  ;;  %8958 = vmatpush1.msra.mxu0 %v16325_v38  ;;  %v6769_v4 = vpop.f32.mrf.mxu0  ;;  %v14960_v46 = vadd.f32 %v6893_v59, %v6754_v17  ;;  %v16332_v38 = vand.u32 4294901760, %v14751_v63 }
 0x525   : > { %8962 = vmatprep.subr.mxu0 %v16326_v25  ;;  %8629 = vmatprep.mubr.f32.mxu1 %v16087_v62  ;;  %v6770_v52 = vadd.f32 %v6769_v4, %v14886_v37  ;;  %v6895_v20 = vpop.f32.mrf.mxu1  ;;  %v16329_v37 = vand.u32 4294901760, %v14650_v6 }
 0x526   : > { %8966 = vmatpush1.msra.mxu0 %v16327_v27  ;;  %8725 = vmatprep.mubr.f32.mxu0 %v16087_v62  ;;  %v6771_v19 = vpop.f32.mrf.mxu0  ;;  %v14969_v50 = vadd.f32 %v6895_v20, %v6756_v58 }
 0x527   : > { %8970 = vmatprep.subr.mxu0 %v16328_v1  ;;  %8728 = vmatmul.mubr.f32.gmra.mxu0 %v14769_v51  ;;  %v6772_v18 = vadd.f32 %v6771_v19, %v14891_v33  ;;  %v6902_v17 = vpop.f32.mrf.mxu1 }
 0x528   : > { %8631 = vmatmul.mubr.f32.gmra.mxu1 %v14882_v48  ;;  %8974 = vmatpush1.msra.mxu0 %v16329_v37  ;;  %v6777_v22 = vpop.f32.mrf.mxu0  ;;  %v14978_v44 = vadd.f32 %v6902_v17, %v6762_v23  ;;  %v16334_v17 = vand.u32 4294901760, %v14797_v12 }
 0x529   : > { %8978 = vmatprep.subr.mxu0 %v16330_v10  ;;  %8733 = vmatprep.mubr.f32.mxu0 %v16087_v62  ;;  %v6778_v54 = vadd.f32 %v6777_v22, %v14903_v42  ;;  %v6904_v58 = vpop.f32.mrf.mxu1 }
 0x52a   : > { %8982 = vmatpush1.msra.mxu0 %v16331_v40  ;;  %8854 = vmatprep.mubr.f32.mxu1 %v16087_v62  ;;  %v6779_v33 = vpop.f32.mrf.mxu0  ;;  %v14987_v59 = vadd.f32 %v6904_v58, %v6764_v5  ;;  %v16335_v40 = vand.u32 4294901760, %v14809_v21 }
 0x52b   : > { %8736 = vmatmul.mubr.f32.gmra.mxu0 %v14797_v12  ;;  %v6780_v6 = vadd.f32 %v6779_v33, %v14909_v56  ;;  %v9278_v23 = vpop.permute.xlu0 %9277  ;;  %v6911_v49 = vpop.f32.mrf.mxu1 }
 0x52c   : > { %8858 = vmatmul.mubr.f32.vlgmr.msra.gmra.mxu1 %v16332_v38  ;;  %8741 = vmatprep.mubr.f32.mxu0 %v16087_v62  ;;  %v6785_v42 = vpop.f32.mrf.mxu0  ;;  %v14994_v4 = vadd.f32 %v6911_v49, %v6770_v52  ;;  %v9282_v28 = vpop.permute.xlu1 %9281 }
 0x52d   : > { %9099 = vmatpush1.msra.mxu1 %v14568_v53  ;;  %8863 = vmatprep.mubr.f32.mxu1 %v16087_v62  ;;  %v6786_v5 = vadd.f32 %v6785_v42, %v14918_v26  ;;  %v6913_v25 = vpop.f32.mrf.mxu1  ;;  %v16333_v53 = vand.u32 4294901760, %v14769_v51 }
 0x52e   : > { %9101 = vmatprep.subr.mxu1 %v14582_v29  ;;  %v6787_v56 = vpop.f32.mrf.mxu0  ;;  %v15000_v20 = vadd.f32 %v6913_v25, %v6772_v18 }
 0x52f   : > { %9103 = vmatpush1.msra.mxu1 %v14593_v41  ;;  %8744 = vmatmul.mubr.f32.gmra.mxu0 %v14809_v21  ;;  %v6788_v63 = vadd.f32 %v6787_v56, %v14923_v7  ;;  %v9276_v52 = vpop.permute.xlu0 %9275  ;;  %v6920_v27 = vpop.f32.mrf.mxu1 }
 0x530   : > { %9105 = vmatprep.subr.mxu1 %v14607_v35  ;;  %8867 = vmatmul.mubr.f32.gmra.mxu1 %v16333_v53  ;;  %v6793_v26 = vpop.f32.mrf.mxu0  ;;  %v15008_v19 = vadd.f32 %v6920_v27, %v6778_v54  ;;  %v9274_v29 = vpop.permute.xlu1 %9273 }
 0x531   : > { %9107 = vmatpush1.msra.mxu1 %v14625_v30  ;;  %8749 = vmatprep.mubr.f32.mxu0 %v16087_v62  ;;  %v6794_v41 = vadd.f32 %v6793_v26, %v14931_v39  ;;  %v6922_v1 = vpop.f32.mrf.mxu1  ;;  %v9289_v21 = vsel %vm9283_vm8, %v9274_v29, %v9276_v52  ;;  %v16336_v52 = vand.u32 4294901760, %v14834_v14 }
 0x532   : > { %9109 = vmatprep.subr.mxu1 %v14627_v45  ;;  %8872 = vmatprep.mubr.f32.mxu1 %v16087_v62  ;;  %v6795_v7 = vpop.f32.mrf.mxu0  ;;  %v15015_v35 = vadd.f32 %v6922_v1, %v6780_v6 }
 0x533   : > { %9111 = vmatpush1.msra.mxu1 %v14639_v57  ;;  %8752 = vmatmul.mubr.f32.gmra.mxu0 %v14834_v14  ;;  %v6796_v51 = vadd.f32 %v6795_v7, %v14935_v32  ;;  %v9268_v18 = vpop.permute.xlu0 %9267  ;;  %v6929_v30 = vpop.f32.mrf.mxu1  ;;  %v15058_v7 = vand.u32 4294901760, %v9289_v21 }
 0x534   : > { %8876 = vmatmul.mubr.f32.gmra.mxu1 %v16334_v17  ;;  %8757 = vmatprep.mubr.f32.mxu0 %v16087_v62  ;;  %v15023_v39 = vadd.f32 %v6929_v30, %v6786_v5  ;;  %v7034_v45 = vpop.f32.mrf.mxu0  ;;  %v9272_v37 = vpop.permute.xlu1 %9271 }
 0x535   : > { %8881 = vmatprep.mubr.f32.mxu1 %v16087_v62  ;;  %v7035_v22 = vadd.f32 %v7034_v45, %v14940_v3  ;;  %v6931_v57 = vpop.f32.mrf.mxu1  ;;  %v9288_v25 = vsel %vm9283_vm8, %v9272_v37, %v9274_v29 }
 0x536   : > { %v15027_v10 = vadd.f32 %v6931_v57, %v6788_v63  ;;  %v7036_v54 = vpop.f32.mrf.mxu0 }
 0x537   : > { %8760 = vmatmul.mubr.f32.gmra.mxu0 %v14858_v36  ;;  %v7037_v12 = vadd.f32 %v7036_v54, %v14944_v60  ;;  %v9280_v32 = vpop.permute.xlu0 %9279  ;;  %v6938_v58 = vpop.f32.mrf.mxu1 }
 0x538   : > { %8885 = vmatmul.mubr.f32.gmra.mxu1 %v16335_v40  ;;  %8765 = vmatprep.mubr.f32.mxu0 %v16087_v62  ;;  %v9290_v33 = vsel %vm9283_vm8, %v9278_v23, %v9280_v32  ;;  %v9291_v3 = vsel %vm9283_vm8, %v9280_v32, %v9282_v28  ;;  %v7041_v6 = vpop.f32.mrf.mxu0  ;;  %v9270_v49 = vpop.permute.xlu1 %9269  ;;  %v15039_v42 = vadd.f32 %v6938_v58, %v6794_v41 }
 0x539   : > { %8890 = vmatprep.mubr.f32.mxu1 %v16087_v62  ;;  %v15037_v38 = vand.u32 4294901760, %v9291_v3  ;;  %v7042_v60 = vadd.f32 %v7041_v6, %v14949_v13  ;;  %v6940_v5 = vpop.f32.mrf.mxu1  ;;  %v15046_v63 = vand.u32 4294901760, %v9290_v33  ;;  %v9287_v26 = vsel %vm9283_vm8, %v9268_v18, %v9270_v49 }
 0x53a   : > { %v15044_v56 = vadd.f32 %v6940_v5, %v6796_v51  ;;  %v7043_v23 = vpop.f32.mrf.mxu0  ;;  %v15060_v51 = vand.u32 4294901760, %v9288_v25  ;;  %v15072_v54 = vand.u32 4294901760, %v9287_v26 }
 0x53b   : > { %v15049_v28 = vsub.f32 %v9291_v3, %v15037_v38  ;;  %8768 = vmatmul.mubr.f32.gmra.mxu0 %v14880_v16  ;;  %v7044_v27 = vadd.f32 %v7043_v23, %v14953_v11  ;;  %9349 = vmatprep.subr.mxu0 %v15037_v38  ;;  %v9266_v13 = vpop.permute.xlu0 %9265  ;;  %v7163_v53 = vpop.f32.mrf.mxu1 }
 0x53c   : > { %8894 = vmatmul.mubr.f32.gmra.mxu1 %v16336_v52  ;;  %8773 = vmatprep.mubr.f32.mxu0 %v16087_v62  ;;  %v7048_v29 = vpop.f32.mrf.mxu0  ;;  %v7164_v41 = vadd.f32 %v7163_v53, %v7035_v22  ;;  %v9262_v1 = vpop.permute.xlu1 %9261  ;;  %v9286_v11 = vsel %vm9283_vm8, %v9266_v13, %v9268_v18  ;;  %v15070_v22 = vsub.f32 %v9290_v33, %v15046_v63 }
 0x53d   : > { %8899 = vmatprep.mubr.f32.mxu1 %v16087_v62  ;;  %v7049_v30 = vadd.f32 %v7048_v29, %v14960_v46  ;;  %v7165_v17 = vpop.f32.mrf.mxu1  ;;  %v16045_v57 = vand.u32 4294901760, %v15049_v28  ;;  %v15076_v58 = vand.u32 4294901760, %v9286_v11  ;;  %v16337_v46 = vand.u32 4294901760, %v14858_v36 }
 0x53e   : > { %v15066_v14 = vadd.f32 %v7164_v41, %v14579_v9  ;;  %v7050_v45 = vpop.f32.mrf.mxu0  ;;  %v7166_v37 = vadd.f32 %v7165_v17, %v7037_v12  ;;  %v15091_v6 = vsub.f32 %v9288_v25, %v15060_v51  ;;  %v15103_v25 = vsub.f32 %v9287_v26, %v15072_v54 }
 0x53f   : > { %8776 = vmatmul.mubr.f32.gmra.mxu0 %v14899_v31  ;;  %v7051_v32 = vadd.f32 %v7050_v45, %v14969_v50  ;;  %v7170_v18 = vpop.f32.mrf.mxu1  ;;  %v9512_v3 = vsub.f32 %v15049_v28, %v16045_v57  ;;  %v15088_v50 = vsub.f32 %v9289_v21, %v15058_v7  ;;  %v16044_v17 = vand.u32 4294901760, %v15070_v22 }
 0x540   : > { %8903 = vmatmul.mubr.f32.gmra.mxu1 %v16337_v46  ;;  %v15081_v9 = vadd.f32 %v7166_v37, %v14591_v47  ;;  %9015 = vmatprep.mubr.f32.mxu0 %v16087_v62  ;;  %v9264_v12 = vpop.permute.xlu0 %9263  ;;  %v7055_v40 = vpop.f32.mrf.mxu0  ;;  %v7171_v33 = vadd.f32 %v7170_v18, %v7042_v60  ;;  %v16041_v18 = vand.u32 4294901760, %v15091_v6 }
 0x541   : > { %8908 = vmatprep.mubr.f32.mxu1 %v16087_v62  ;;  %v9285_v47 = vsel %vm9283_vm8, %v9262_v1, %v9264_v12  ;;  %v7056_v36 = vadd.f32 %v7055_v40, %v14978_v44  ;;  %v9260_v49 = vpop.permute.xlu1 %9259  ;;  %v7172_v5 = vpop.f32.mrf.mxu1  ;;  %v9513_v29 = vand.u32 4294901760, %v9512_v3  ;;  %v9518_v3 = vsub.f32 %v15070_v22, %v16044_v17 }
 0x542   : > { %v15096_v23 = vand.u32 4294901760, %v9285_v47  ;;  %v15099_v60 = vadd.f32 %v7171_v33, %v14610_v61  ;;  %v9284_v13 = vsel %vm9283_vm8, %v9260_v49, %v9262_v1  ;;  %v7057_v21 = vpop.f32.mrf.mxu0  ;;  %v7173_v53 = vadd.f32 %v7172_v5, %v7044_v27 }
 0x543   : > { %9017 = vmatmul.mubr.f32.vlgmr.msra.gmra.mxu0 %v14734_v43  ;;  %v15106_v52 = vand.u32 4294901760, %v9284_v13  ;;  %v7058_v44 = vadd.f32 %v7057_v21, %v14987_v59  ;;  %v7177_v41 = vpop.f32.mrf.mxu1  ;;  %v15111_v61 = vsub.f32 %v9286_v11, %v15076_v58  ;;  %v16338_v1 = vand.u32 4294901760, %v14880_v16  ;;  %9514 = vmatprep.subr.mxu1 %v9513_v29 }
 0x544   : > { %9351 = vmatpush1.msra.mxu0 %v15046_v63  ;;  %v15117_v27 = vadd.f32 %v7173_v53, %v14632_v0  ;;  %v7062_v26 = vpop.f32.mrf.mxu0  ;;  %v7178_v45 = vadd.f32 %v7177_v41, %v7049_v30  ;;  %v15120_v37 = vsub.f32 %v9285_v47, %v15096_v23  ;;  %v16042_v16 = vand.u32 4294901760, %v15088_v50  ;;  %9022 = vmatprep.mubr.f32.mxu0 %v16087_v62 }
 0x545   : > { %8912 = vmatmul.mubr.f32.gmra.mxu1 %v16338_v1  ;;  %9353 = vmatprep.subr.mxu0 %v15058_v7  ;;  %v7063_v59 = vadd.f32 %v7062_v26, %v14994_v4  ;;  %v7179_v11 = vpop.f32.mrf.mxu1  ;;  %v15128_v46 = vsub.f32 %v9284_v13, %v15106_v52  ;;  %v16037_v33 = vand.u32 4294901760, %v15103_v25  ;;  %v16035_v47 = vand.u32 4294901760, %v15111_v61  ;;  %v16342_v26 = vld [vmem:[#allocation25_spill] sm:$0xff] }
 0x546   : > { %8917 = vmatprep.mubr.f32.mxu1 %v16087_v62  ;;  %9355 = vmatpush1.msra.mxu0 %v15060_v51  ;;  %v15133_v0 = vadd.f32 %v7178_v45, %v14645_v34  ;;  %v7064_v30 = vpop.f32.mrf.mxu0  ;;  %v7180_v12 = vadd.f32 %v7179_v11, %v7051_v32  ;;  %v16339_v49 = vand.u32 4294901760, %v14899_v31  ;;  %v16340_v34 = vld [vmem:[#allocation26_spill] sm:$0xff]  ;;  %v16341_v32 = vld [vmem:[#allocation7_spill] sm:$0xff]  ;;  %v9524_v31 = vsub.f32 %v15088_v50, %v16042_v16 }
 0x547   : > { %9357 = vmatprep.subr.mxu0 %v15072_v54  ;;  %v7065_v4 = vadd.f32 %v7064_v30, %v15000_v20  ;;  %v7184_v40 = vpop.f32.mrf.mxu1  ;;  %9024 = vmatmul.mubr.f32.gmra.mxu0 %v16340_v34  ;;  %v10478_v20 = vld [vmem:[%s15897_s4 + $0x200] sm:$0xff]  ;;  %v16036_v41 = vand.u32 4294901760, %v15120_v37  ;;  %v16040_v1 = vand.u32 4294901760, %v15128_v46 }
 0x548   : > { %v15146_v5 = vadd.f32 %v7180_v12, %v16341_v32  ;;  %v7069_v13 = vpop.f32.mrf.mxu0  ;;  %v7185_v21 = vadd.f32 %v7184_v40, %v7056_v36  ;;  %9359 = vmatpush1.msra.mxu0 %v15076_v58  ;;  %9029 = vmatprep.mubr.f32.mxu0 %v16087_v62  ;;  %v9530_v36 = vsub.f32 %v15091_v6, %v16041_v18 }
 0x549   : > { %8921 = vmatmul.mubr.f32.gmra.mxu1 %v16339_v49  ;;  %v7070_v53 = vadd.f32 %v7069_v13, %v15008_v19  ;;  %v7186_v29 = vpop.f32.mrf.mxu1  ;;  %9361 = vmatprep.subr.mxu0 %v15096_v23  ;;  %v9536_v12 = vsub.f32 %v15103_v25, %v16037_v33  ;;  %v9301_v49 = vsel %vm1400_vm12, %v10478_v20, 0  ;;  %v9542_v32 = vsub.f32 %v15111_v61, %v16035_v47  ;;  %v16344_v13 = vld [vmem:[#allocation24_spill] sm:$0xff] }
 0x54a   : > { %9144 = vmatprep.mubr.f32.mxu1 %v16087_v62  ;;  %v15165_v45 = vadd.f32 %v7185_v21, %v16342_v26  ;;  %v7071_v19 = vpop.f32.mrf.mxu0  ;;  %v7187_v11 = vadd.f32 %v7186_v29, %v7058_v44  ;;  %9363 = vmatpush1.msra.mxu0 %v15106_v52  ;;  %v9519_v44 = vand.u32 4294901760, %v9518_v3  ;;  %v9525_v26 = vand.u32 4294901760, %v9524_v31 }
 0x54b   : > { %v7072_v30 = vadd.f32 %v7071_v19, %v15015_v35  ;;  %v7191_v40 = vpop.f32.mrf.mxu1  ;;  %9672 = vmatprep.subr.mxu0 %v15049_v28  ;;  %9031 = vmatmul.mubr.f32.gmra.mxu0 %v14775_v55  ;;  %v9548_v19 = vsub.f32 %v15120_v37, %v16036_v41  ;;  %v9554_v3 = vsub.f32 %v15128_v46, %v16040_v1  ;;  %v15198_v33 = vand.u32 4294901760, %v9301_v49 }
 0x54c   : > { %16343 = vst [vmem:[#allocation3_spill] sm:$0xff] %v15165_v45  ;;  %v15179_v21 = vadd.f32 %v7187_v11, %v16344_v13  ;;  %v7076_v35 = vpop.f32.mrf.mxu0  ;;  %v7192_v29 = vadd.f32 %v7191_v40, %v7063_v59  ;;  %9036 = vmatprep.mubr.f32.mxu0 %v16087_v62  ;;  %v9531_v11 = vand.u32 4294901760, %v9530_v36  ;;  %v16346_v59 = vld [vmem:[#allocation8_spill] sm:$0xff]  ;;  %v9537_v13 = vand.u32 4294901760, %v9536_v12 }
 0x54d   : > { %9146 = vmatmul.mubr.f32.vlgmr.msra.gmra.mxu1 %v14734_v43  ;;  %v7077_v20 = vadd.f32 %v7076_v35, %v15023_v39  ;;  %v7193_v47 = vpop.f32.mrf.mxu1  ;;  %v10479_v39 = vld [vmem:[%s15897_s4 + $0x208] sm:$0xff]  ;;  %v9543_v36 = vand.u32 4294901760, %v9542_v32  ;;  %v9555_v32 = vand.u32 4294901760, %v9554_v3  ;;  %v16352_v3 = vld [vmem:[#allocation9_spill] sm:$0xff] }
 0x54e   : > { %16345 = vst [vmem:[#allocation4_spill] sm:$0xff] %v15179_v21  ;;  %9520 = vmatpush1.msra.mxu1 %v9519_v44  ;;  %9151 = vmatprep.mubr.f32.mxu1 %v16087_v62  ;;  %v15192_v43 = vadd.f32 %v7192_v29, %v16346_v59  ;;  %v7078_v31 = vpop.f32.mrf.mxu0  ;;  %v7194_v40 = vadd.f32 %v7193_v47, %v7065_v4  ;;  %v16348_v44 = vld [vmem:[#allocation27_spill] sm:$0xff]  ;;  %v9549_v47 = vand.u32 4294901760, %v9548_v19 }
 0x54f   : > { %9526 = vmatprep.subr.mxu1 %v9525_v26  ;;  %v7079_v35 = vadd.f32 %v7078_v31, %v15027_v10  ;;  %v7198_v41 = vpop.f32.mrf.mxu1  ;;  %9038 = vmatmul.mubr.f32.gmra.mxu0 %v14792_v2  ;;  %v9304_v10 = vsel %vm1400_vm12, %v10479_v39, 0  ;;  %v16350_v31 = vld [vmem:[#allocation28_spill] sm:$0xff]  ;;  %v15217_v19 = vsub.f32 %v9301_v49, %v15198_v33  ;;  %v10481_v49 = vld [vmem:[%s15897_s4 + $0x218] sm:$0xff] }
 0x550   : > { %16347 = vst [vmem:[#allocation11_spill] sm:$0xff] %v15192_v43  ;;  %9532 = vmatpush1.msra.mxu1 %v9531_v11  ;;  %v15202_v29 = vadd.f32 %v7194_v40, %v16348_v44  ;;  %v7083_v59 = vpop.f32.mrf.mxu0  ;;  %v7199_v4 = vadd.f32 %v7198_v41, %v7070_v53  ;;  %v10480_v11 = vld [vmem:[%s15897_s4 + $0x210] sm:$0xff]  ;;  %9043 = vmatprep.mubr.f32.mxu0 %v16087_v62 }
 0x551   : > { %9538 = vmatprep.subr.mxu1 %v9537_v13  ;;  %9153 = vmatmul.mubr.f32.gmra.mxu1 %v16340_v34  ;;  %v7084_v12 = vadd.f32 %v7083_v59, %v15039_v42  ;;  %v7200_v26 = vpop.f32.mrf.mxu1  ;;  %v16354_v44 = vld [vmem:[#allocation29_spill] sm:$0xff] }
 0x552   : > { %16349 = vst [vmem:[#allocation21_spill] sm:$0xff] %v15202_v29  ;;  %9544 = vmatpush1.msra.mxu1 %v9543_v36  ;;  %v15212_v40 = vadd.f32 %v7199_v4, %v16350_v31  ;;  %v7085_v53 = vpop.f32.mrf.mxu0  ;;  %v7201_v41 = vadd.f32 %v7200_v26, %v7072_v30  ;;  %9158 = vmatprep.mubr.f32.mxu1 %v16087_v62  ;;  %v15223_v36 = vand.u32 4294901760, %v9304_v10  ;;  %v9307_v30 = vsel %vm1400_vm12, %v10480_v11, 0 }
 0x553   : > { %9550 = vmatprep.subr.mxu1 %v9549_v47  ;;  %v7086_v42 = vadd.f32 %v7085_v53, %v15044_v56  ;;  %v7205_v34 = vpop.f32.mrf.mxu1  ;;  %9045 = vmatmul.mubr.f32.gmra.mxu0 %v14818_v8  ;;  %v16039_v47 = vand.u32 4294901760, %v15217_v19  ;;  %v15237_v26 = vand.u32 4294901760, %v9307_v30  ;;  %v9310_v53 = vsel %vm1400_vm12, %v10481_v49, 0 }
 0x554   : > { %16351 = vst [vmem:[#allocation22_spill] sm:$0xff] %v15212_v40  ;;  %9556 = vmatpush1.msra.mxu1 %v9555_v32  ;;  %v15221_v39 = vadd.f32 %v7201_v41, %v16352_v3  ;;  %v7206_v13 = vadd.f32 %v7205_v34, %v7077_v20  ;;  %9050 = vmatprep.mubr.f32.mxu0 %v16087_v62  ;;  %v16358_v41 = vld [vmem:[#allocation19_spill] sm:$0xff] }
 0x555   : > { %9816 = vmatprep.subr.mxu1 %v15037_v38  ;;  %9160 = vmatmul.mubr.f32.gmra.mxu1 %v14775_v55  ;;  %v7207_v56 = vpop.f32.mrf.mxu1  ;;  %v16356_v55 = vld [vmem:[#allocation18_spill] sm:$0xff]  ;;  %v15244_v31 = vsub.f32 %v9304_v10, %v15223_v36  ;;  %v15257_v10 = vsub.f32 %v9307_v30, %v15237_v26 }
 0x556   : > { %16353 = vst [vmem:[#allocation6_spill] sm:$0xff] %v15221_v39  ;;  %9165 = vmatprep.mubr.f32.mxu1 %v16087_v62  ;;  %v15234_v59 = vadd.f32 %v7206_v13, %v16354_v44  ;;  %v7208_v20 = vadd.f32 %v7207_v56, %v7079_v35  ;;  %v15259_v13 = vand.u32 4294901760, %v9310_v53  ;;  %v9400_v44 = vsub.f32 %v15217_v19, %v16039_v47 }
 0x557   : > { %v7212_v4 = vpop.f32.mrf.mxu1  ;;  %9052 = vmatmul.mubr.f32.gmra.mxu0 %v14836_v24 }
 0x558   : > { %16355 = vst [vmem:[#allocation23_spill] sm:$0xff] %v15234_v59  ;;  %v15241_v11 = vadd.f32 %v7208_v20, %v16356_v55  ;;  %v7213_v32 = vadd.f32 %v7212_v4, %v7084_v12  ;;  %9057 = vmatprep.mubr.f32.mxu0 %v16087_v62  ;;  %v10482_v12 = vld [vmem:[%s15897_s4 + $0x220] sm:$0xff]  ;;  %v10483_v4 = vld [vmem:[%s15897_s4 + $0x228] sm:$0xff]  ;;  %v16043_v55 = vand.u32 4294901760, %v15257_v10 }
 0x559   : > { %9167 = vmatmul.mubr.f32.gmra.mxu1 %v14792_v2  ;;  %v7214_v35 = vpop.f32.mrf.mxu1  ;;  %v16360_v2 = vld [vmem:[#allocation20_spill] sm:$0xff]  ;;  %v9313_v30 = vsel %vm1400_vm12, %v10482_v12, 0  ;;  %v9316_v12 = vsel %vm1400_vm12, %v10483_v4, 0 }
 0x55a   : > { %16357 = vst [vmem:[#allocation16_spill] sm:$0xff] %v15241_v11  ;;  %9172 = vmatprep.mubr.f32.mxu1 %v16087_v62  ;;  %v15251_v34 = vadd.f32 %v7213_v32, %v16358_v41  ;;  %v7215_v3 = vadd.f32 %v7214_v35, %v7086_v42  ;;  %v16038_v42 = vand.u32 4294901760, %v15244_v31  ;;  %v15278_v32 = vsub.f32 %v9310_v53, %v15259_v13  ;;  %v10484_v53 = vld [vmem:[%s15897_s4 + $0x230] sm:$0xff] }
 0x55b   : > { %9059 = vmatmul.mubr.f32.gmra.mxu0 %v14860_v15  ;;  %v9401_v35 = vand.u32 4294901760, %v9400_v44  ;;  %v15284_v41 = vand.u32 4294901760, %v9313_v30  ;;  %v9422_v44 = vsub.f32 %v15257_v10, %v16043_v55  ;;  %v15300_v1 = vand.u32 4294901760, %v9316_v12 }
 0x55c   : > { %16359 = vst [vmem:[#allocation10_spill] sm:$0xff] %v15251_v34  ;;  %v15263_v56 = vadd.f32 %v7215_v3, %v16360_v2  ;;  %v7418_v49 = vpop.f32.mrf.mxu0  ;;  %9064 = vmatprep.mubr.f32.mxu0 %v16087_v62  ;;  %v9319_v16 = vsel %vm1400_vm12, %v10484_v53, 0 }
 0x55d   : > { %9174 = vmatmul.mubr.f32.gmra.mxu1 %v14818_v8  ;;  %v9411_v8 = vsub.f32 %v15244_v31, %v16038_v42  ;;  %v16046_v42 = vand.u32 4294901760, %v15278_v32  ;;  %v15298_v47 = vsub.f32 %v9313_v30, %v15284_v41  ;;  %v10485_v30 = vld [vmem:[%s15897_s4 + $0x238] sm:$0xff]  ;;  %v15322_v17 = vsub.f32 %v9316_v12, %v15300_v1 }
 0x55e   : > { %16361 = vst [vmem:[#allocation5_spill] sm:$0xff] %v15263_v56  ;;  %9179 = vmatprep.mubr.f32.mxu1 %v16087_v62  ;;  %v7420_v20 = vpop.f32.mrf.mxu0  ;;  %v15324_v57 = vand.u32 4294901760, %v9319_v16  ;;  %v9322_v56 = vsel %vm1400_vm12, %v10485_v30, 0 }
 0x55f   : > { %9066 = vmatmul.mubr.f32.gmra.mxu0 %v14882_v48  ;;  %v9433_v53 = vsub.f32 %v15278_v32, %v16046_v42  ;;  %v16048_v34 = vand.u32 4294901760, %v15322_v17  ;;  %v15344_v59 = vand.u32 4294901760, %v9322_v56 }
 0x560   : > { %9396 = vmatprep.mubr.f32.mxu0 %v16087_v62  ;;  %v15342_v11 = vsub.f32 %v9319_v16, %v15324_v57 }
 0x561   : > { %9181 = vmatmul.mubr.f32.gmra.mxu1 %v14836_v24  ;;  %v7429_v3 = vpop.f32.mrf.mxu0  ;;  %v9412_v24 = vand.u32 4294901760, %v9411_v8 }
 0x562   : > { %9186 = vmatprep.mubr.f32.mxu1 %v16087_v62 }
 0x563   : > { %v7431_v2 = vpop.f32.mrf.mxu0  ;;  %9402 = vmatmul.mubr.f32.vlgmr.msra.gmra.mxu0 %v9401_v35 }
 0x564   : > { %9675 = vmatpush1.msra.mxu0 %v15070_v22  ;;  %9407 = vmatprep.mubr.f32.mxu0 %v16087_v62 }
 0x565   : > { %9188 = vmatmul.mubr.f32.gmra.mxu1 %v14860_v15  ;;  %v7440_v4 = vpop.f32.mrf.mxu0  ;;  %v7607_v18 = vpop.f32.mrf.mxu1  ;;  %9678 = vmatprep.subr.mxu0 %v15088_v50  ;;  %v9423_v15 = vand.u32 4294901760, %v9422_v44 }
 0x566   : > { %9193 = vmatprep.mubr.f32.mxu1 %v16087_v62  ;;  %v15307_v55 = vadd.f32 %v7607_v18, %v7418_v49  ;;  %9681 = vmatpush1.msra.mxu0 %v15091_v6  ;;  %v16047_v49 = vand.u32 4294901760, %v15298_v47 }
 0x567   : > { %v7442_v35 = vpop.f32.mrf.mxu0  ;;  %v7609_v8 = vpop.f32.mrf.mxu1  ;;  %9684 = vmatprep.subr.mxu0 %v15103_v25  ;;  %9413 = vmatmul.mubr.f32.gmra.mxu0 %v9412_v24  ;;  %v9434_v24 = vand.u32 4294901760, %v9433_v53 }
 0x568   : > { %v15318_v18 = vadd.f32 %v7609_v8, %v7420_v20  ;;  %9687 = vmatpush1.msra.mxu0 %v15111_v61  ;;  %9418 = vmatprep.mubr.f32.mxu0 %v16087_v62  ;;  %v9444_v30 = vsub.f32 %v15298_v47, %v16047_v49  ;;  %v15361_v49 = vsub.f32 %v9322_v56, %v15344_v59 }
 0x569   : > { %9195 = vmatmul.mubr.f32.gmra.mxu1 %v14882_v48  ;;  %v7451_v44 = vpop.f32.mrf.mxu0  ;;  %9690 = vmatprep.subr.mxu0 %v15120_v37  ;;  %v16362_v48 = vand.u32 4294901760, %v15049_v28 }
 0x56a   : > { %v7614_v20 = vpop.f32.mrf.mxu1  ;;  %9693 = vmatpush1.msra.mxu0 %v15128_v46  ;;  %9589 = vmatprep.mubr.f32.mxu1 %v16087_v62  ;;  %v16049_v39 = vand.u32 4294901760, %v15361_v49 }
 0x56b   : > { %v15333_v12 = vadd.f32 %v7614_v20, %v7429_v3  ;;  %v7453_v8 = vpop.f32.mrf.mxu0  ;;  %9963 = vmatprep.subr.mxu0 %v16362_v48  ;;  %9424 = vmatmul.mubr.f32.gmra.mxu0 %v9423_v15  ;;  %v9445_v20 = vand.u32 4294901760, %v9444_v30 }
 0x56c   : > { %v7616_v42 = vpop.f32.mrf.mxu1  ;;  %9429 = vmatprep.mubr.f32.mxu0 %v16087_v62 }
 0x56d   : > { %9591 = vmatmul.mubr.f32.vlgmr.msra.gmra.mxu1 %v15198_v33  ;;  %v15348_v3 = vadd.f32 %v7616_v42, %v7431_v2  ;;  %v7462_v28 = vpop.f32.mrf.mxu0  ;;  %v9455_v42 = vsub.f32 %v15322_v17, %v16048_v34 }
 0x56e   : > { %9818 = vmatpush1.msra.mxu1 %v15046_v63  ;;  %9596 = vmatprep.mubr.f32.mxu1 %v16087_v62  ;;  %v7621_v15 = vpop.f32.mrf.mxu1 }
 0x56f   : > { %9820 = vmatprep.subr.mxu1 %v15058_v7  ;;  %v15353_v53 = vadd.f32 %v7621_v15, %v7440_v4  ;;  %v7464_v16 = vpop.f32.mrf.mxu0  ;;  %9435 = vmatmul.mubr.f32.gmra.mxu0 %v9434_v24  ;;  %v9456_v34 = vand.u32 4294901760, %v9455_v42 }
 0x570   : > { %9822 = vmatpush1.msra.mxu1 %v15060_v51  ;;  %v7623_v48 = vpop.f32.mrf.mxu1  ;;  %9440 = vmatprep.mubr.f32.mxu0 %v16087_v62 }
 0x571   : > { %9824 = vmatprep.subr.mxu1 %v15072_v54  ;;  %9598 = vmatmul.mubr.f32.gmra.mxu1 %v15223_v36  ;;  %v15365_v4 = vadd.f32 %v7623_v48, %v7442_v35  ;;  %v7473_v15 = vpop.f32.mrf.mxu0  ;;  %v16363_v35 = vand.u32 4294901760, %v15342_v11 }
 0x572   : > { %9826 = vmatpush1.msra.mxu1 %v15076_v58  ;;  %v7628_v24 = vpop.f32.mrf.mxu1  ;;  %9603 = vmatprep.mubr.f32.mxu1 %v16087_v62 }
 0x573   : > { %9828 = vmatprep.subr.mxu1 %v15096_v23  ;;  %v15371_v30 = vadd.f32 %v7628_v24, %v7451_v44  ;;  %v7475_v56 = vpop.f32.mrf.mxu0  ;;  %9446 = vmatmul.mubr.f32.gmra.mxu0 %v9445_v20  ;;  %v9466_v48 = vsub.f32 %v15342_v11, %v16363_v35 }
 0x574   : > { %9830 = vmatpush1.msra.mxu1 %v15106_v52  ;;  %v7630_v2 = vpop.f32.mrf.mxu1  ;;  %9451 = vmatprep.mubr.f32.mxu0 %v16087_v62 }
 0x575   : > { %10106 = vmatprep.subr.mxu1 %v15037_v38  ;;  %9605 = vmatmul.mubr.f32.gmra.mxu1 %v15237_v26  ;;  %v15380_v40 = vadd.f32 %v7630_v2, %v7453_v8  ;;  %v7484_v44 = vpop.f32.mrf.mxu0  ;;  %v9467_v29 = vand.u32 4294901760, %v9466_v48  ;;  %v9477_v38 = vsub.f32 %v15361_v49, %v16049_v39 }
 0x576   : > { %9610 = vmatprep.mubr.f32.mxu1 %v16087_v62  ;;  %v7635_v20 = vpop.f32.mrf.mxu1 }
 0x577   : > { %v15384_v42 = vadd.f32 %v7635_v20, %v7462_v28  ;;  %v7486_v24 = vpop.f32.mrf.mxu0  ;;  %9457 = vmatmul.mubr.f32.gmra.mxu0 %v9456_v34  ;;  %v9478_v34 = vand.u32 4294901760, %v9477_v38 }
 0x578   : > { %v7637_v35 = vpop.f32.mrf.mxu1  ;;  %9462 = vmatprep.mubr.f32.mxu0 %v16087_v62 }
 0x579   : > { %9612 = vmatmul.mubr.f32.gmra.mxu1 %v15259_v13  ;;  %v15391_v8 = vadd.f32 %v7637_v35, %v7464_v16 }
 0x57a   : > { %9617 = vmatprep.mubr.f32.mxu1 %v16087_v62  ;;  %v7495_v2 = vpop.f32.mrf.mxu0  ;;  %v7642_v43 = vpop.f32.mrf.mxu1 }
 0x57b   : > { %v15394_v28 = vadd.f32 %v7642_v43, %v7473_v15  ;;  %9468 = vmatmul.mubr.f32.gmra.mxu0 %v9467_v29 }
 0x57c   : > { %v7497_v48 = vpop.f32.mrf.mxu0  ;;  %v7644_v20 = vpop.f32.mrf.mxu1  ;;  %9473 = vmatprep.mubr.f32.mxu0 %v16087_v62 }
 0x57d   : > { %9619 = vmatmul.mubr.f32.gmra.mxu1 %v15284_v41  ;;  %v15398_v39 = vadd.f32 %v7644_v20, %v7475_v56 }
 0x57e   : > { %9624 = vmatprep.mubr.f32.mxu1 %v16087_v62  ;;  %v7649_v16 = vpop.f32.mrf.mxu1  ;;  %v7745_v35 = vpop.f32.mrf.mxu0 }
 0x57f   : > { %v15401_v21 = vadd.f32 %v7649_v16, %v7484_v44  ;;  %v7746_v45 = vadd.f32 %v7745_v35, %v15307_v55  ;;  %9479 = vmatmul.mubr.f32.gmra.mxu0 %v9478_v34  ;;  %v16364_v34 = vand.u32 4294901760, %v15070_v22  ;;  %v16365_v35 = vand.u32 4294901760, %v15088_v50 }
 0x580   : > { %v7651_v43 = vpop.f32.mrf.mxu1  ;;  %v7747_v29 = vpop.f32.mrf.mxu0  ;;  %9726 = vmatprep.mubr.f32.mxu0 %v16087_v62  ;;  %v16368_v50 = vand.u32 4294901760, %v15111_v61 }
 0x581   : > { %9626 = vmatmul.mubr.f32.gmra.mxu1 %v15300_v1  ;;  %v15406_v15 = vadd.f32 %v7651_v43, %v7486_v24  ;;  %v7748_v56 = vadd.f32 %v7747_v29, %v15318_v18 }
 0x582   : > { %9631 = vmatprep.mubr.f32.mxu1 %v16087_v62 }
 0x583   : > { %v7656_v38 = vpop.f32.mrf.mxu1  ;;  %v7753_v20 = vpop.f32.mrf.mxu0  ;;  %9729 = vmatmul.mubr.f32.vlgmr.msra.gmra.mxu0 %v15217_v19 }
 0x584   : > { %v15411_v44 = vadd.f32 %v7656_v38, %v7495_v2  ;;  %v7754_v55 = vadd.f32 %v7753_v20, %v15333_v12  ;;  %9967 = vmatpush1.msra.mxu0 %v16364_v34  ;;  %v16366_v2 = vand.u32 4294901760, %v15091_v6  ;;  %9734 = vmatprep.mubr.f32.mxu0 %v16087_v62  ;;  %v16367_v12 = vand.u32 4294901760, %v15103_v25 }
 0x585   : > { %9633 = vmatmul.mubr.f32.gmra.mxu1 %v15324_v57  ;;  %v7658_v16 = vpop.f32.mrf.mxu1  ;;  %v7755_v24 = vpop.f32.mrf.mxu0  ;;  %9971 = vmatprep.subr.mxu0 %v16365_v35  ;;  %v16369_v6 = vand.u32 4294901760, %v15120_v37  ;;  %v16370_v20 = vand.u32 4294901760, %v15128_v46 }
 0x586   : > { %9638 = vmatprep.mubr.f32.mxu1 %v16087_v62  ;;  %v15420_v18 = vadd.f32 %v7658_v16, %v7497_v48  ;;  %v7756_v43 = vadd.f32 %v7755_v24, %v15348_v3  ;;  %9975 = vmatpush1.msra.mxu0 %v16366_v2 }
 0x587   : > { %9979 = vmatprep.subr.mxu0 %v16367_v12  ;;  %9737 = vmatmul.mubr.f32.gmra.mxu0 %v15244_v31 }
 0x588   : > { %v7761_v22 = vpop.f32.mrf.mxu0  ;;  %v7883_v29 = vpop.f32.mrf.mxu1  ;;  %9983 = vmatpush1.msra.mxu0 %v16368_v50  ;;  %9742 = vmatprep.mubr.f32.mxu0 %v16087_v62 }
 0x589   : > { %9640 = vmatmul.mubr.f32.gmra.mxu1 %v15344_v59  ;;  %v7762_v48 = vadd.f32 %v7761_v22, %v15353_v53  ;;  %v15433_v3 = vadd.f32 %v7883_v29, %v7746_v45  ;;  %9987 = vmatprep.subr.mxu0 %v16369_v6  ;;  %v16371_v45 = vand.u32 4294901760, %v15217_v19 }
 0x58a   : > { %v7763_v25 = vpop.f32.mrf.mxu0  ;;  %v7885_v38 = vpop.f32.mrf.mxu1  ;;  %9991 = vmatpush1.msra.mxu0 %v16370_v20  ;;  %9863 = vmatprep.mubr.f32.mxu1 %v16087_v62 }
 0x58b   : > { %v7764_v34 = vadd.f32 %v7763_v25, %v15365_v4  ;;  %v15442_v61 = vadd.f32 %v7885_v38, %v7748_v56  ;;  %9745 = vmatmul.mubr.f32.gmra.mxu0 %v15257_v10 }
 0x58c   : > { %9750 = vmatprep.mubr.f32.mxu0 %v16087_v62 }
 0x58d   : > { %9867 = vmatmul.mubr.f32.vlgmr.msra.gmra.mxu1 %v16371_v45  ;;  %v7769_v37 = vpop.f32.mrf.mxu0  ;;  %v7892_v53 = vpop.f32.mrf.mxu1 }
 0x58e   : > { %10108 = vmatpush1.msra.mxu1 %v15046_v63  ;;  %9872 = vmatprep.mubr.f32.mxu1 %v16087_v62  ;;  %v7770_v46 = vadd.f32 %v7769_v37, %v15371_v30  ;;  %v15451_v16 = vadd.f32 %v7892_v53, %v7754_v55  ;;  %v16372_v63 = vand.u32 4294901760, %v15244_v31 }
 0x58f   : > { %10110 = vmatprep.subr.mxu1 %v15058_v7  ;;  %v7771_v4 = vpop.f32.mrf.mxu0  ;;  %v7894_v56 = vpop.f32.mrf.mxu1  ;;  %9753 = vmatmul.mubr.f32.gmra.mxu0 %v15278_v32 }
 0x590   : > { %10112 = vmatpush1.msra.mxu1 %v15060_v51  ;;  %v7772_v19 = vadd.f32 %v7771_v4, %v15380_v40  ;;  %v15457_v24 = vadd.f32 %v7894_v56, %v7756_v43  ;;  %9758 = vmatprep.mubr.f32.mxu0 %v16087_v62 }
 0x591   : > { %10114 = vmatprep.subr.mxu1 %v15072_v54  ;;  %9876 = vmatmul.mubr.f32.gmra.mxu1 %v16372_v63 }
 0x592   : > { %10116 = vmatpush1.msra.mxu1 %v15076_v58  ;;  %v7777_v7 = vpop.f32.mrf.mxu0  ;;  %v7901_v30 = vpop.f32.mrf.mxu1  ;;  %9881 = vmatprep.mubr.f32.mxu1 %v16087_v62  ;;  %v16373_v58 = vand.u32 4294901760, %v15257_v10  ;;  %v16374_v10 = vand.u32 4294901760, %v15278_v32  ;;  %v16375_v32 = vand.u32 4294901760, %v15298_v47 }
 0x593   : > { %10118 = vmatprep.subr.mxu1 %v15096_v23  ;;  %v7778_v51 = vadd.f32 %v7777_v7, %v15384_v42  ;;  %v15467_v40 = vadd.f32 %v7901_v30, %v7762_v48  ;;  %9761 = vmatmul.mubr.f32.gmra.mxu0 %v15298_v47  ;;  %v16376_v47 = vand.u32 4294901760, %v15322_v17 }
 0x594   : > { %10120 = vmatpush1.msra.mxu1 %v15106_v52  ;;  %v7779_v54 = vpop.f32.mrf.mxu0  ;;  %v7903_v31 = vpop.f32.mrf.mxu1  ;;  %9766 = vmatprep.mubr.f32.mxu0 %v16087_v62 }
 0x595   : > { %9885 = vmatmul.mubr.f32.gmra.mxu1 %v16373_v58  ;;  %v7780_v55 = vadd.f32 %v7779_v54, %v15391_v8  ;;  %v15474_v35 = vadd.f32 %v7903_v31, %v7764_v34 }
 0x596   : > { %9890 = vmatprep.mubr.f32.mxu1 %v16087_v62  ;;  %v7785_v23 = vpop.f32.mrf.mxu0  ;;  %v7910_v42 = vpop.f32.mrf.mxu1 }
 0x597   : > { %v7786_v43 = vadd.f32 %v7785_v23, %v15394_v28  ;;  %v15479_v52 = vadd.f32 %v7910_v42, %v7770_v46  ;;  %9769 = vmatmul.mubr.f32.gmra.mxu0 %v15322_v17  ;;  %v16377_v17 = vand.u32 4294901760, %v15342_v11 }
 0x598   : > { %v7787_v2 = vpop.f32.mrf.mxu0  ;;  %v7912_v12 = vpop.f32.mrf.mxu1  ;;  %9774 = vmatprep.mubr.f32.mxu0 %v16087_v62 }
 0x599   : > { %9894 = vmatmul.mubr.f32.gmra.mxu1 %v16374_v10  ;;  %v7788_v8 = vadd.f32 %v7787_v2, %v15398_v39  ;;  %v15485_v22 = vadd.f32 %v7912_v12, %v7772_v19 }
 0x59a   : > { %9899 = vmatprep.mubr.f32.mxu1 %v16087_v62  ;;  %v7793_v29 = vpop.f32.mrf.mxu0  ;;  %v7919_v50 = vpop.f32.mrf.mxu1 }
 0x59b   : > { %v7794_v28 = vadd.f32 %v7793_v29, %v15401_v21  ;;  %v15490_v48 = vadd.f32 %v7919_v50, %v7778_v51  ;;  %9777 = vmatmul.mubr.f32.gmra.mxu0 %v15342_v11  ;;  %v16378_v11 = vand.u32 4294901760, %v15361_v49 }
 0x59c   : > { %v7795_v6 = vpop.f32.mrf.mxu0  ;;  %v7921_v25 = vpop.f32.mrf.mxu1  ;;  %9782 = vmatprep.mubr.f32.mxu0 %v16087_v62 }
 0x59d   : > { %9903 = vmatmul.mubr.f32.gmra.mxu1 %v16375_v32  ;;  %v7796_v39 = vadd.f32 %v7795_v6, %v15406_v15  ;;  %v15496_v38 = vadd.f32 %v7921_v25, %v7780_v55 }
 0x59e   : > { %9908 = vmatprep.mubr.f32.mxu1 %v16087_v62  ;;  %v7801_v20 = vpop.f32.mrf.mxu0  ;;  %v7928_v34 = vpop.f32.mrf.mxu1 }
 0x59f   : > { %v7802_v21 = vadd.f32 %v7801_v20, %v15411_v44  ;;  %v15501_v45 = vadd.f32 %v7928_v34, %v7786_v43  ;;  %9785 = vmatmul.mubr.f32.gmra.mxu0 %v15361_v49 }
 0x5a0   : > { %v7803_v37 = vpop.f32.mrf.mxu0  ;;  %v7930_v53 = vpop.f32.mrf.mxu1  ;;  %10024 = vmatprep.mubr.f32.mxu0 %v16087_v62 }
 0x5a1   : > { %9912 = vmatmul.mubr.f32.gmra.mxu1 %v16376_v47  ;;  %v7804_v15 = vadd.f32 %v7803_v37, %v15420_v18  ;;  %v15507_v46 = vadd.f32 %v7930_v53, %v7788_v8 }
 0x5a2   : > { %9917 = vmatprep.mubr.f32.mxu1 %v16087_v62  ;;  %v7937_v4 = vpop.f32.mrf.mxu1  ;;  %v8042_v56 = vpop.f32.mrf.mxu0 }
 0x5a3   : > { %v15511_v44 = vadd.f32 %v7937_v4, %v7794_v28  ;;  %v8043_v19 = vadd.f32 %v8042_v56, %v15433_v3  ;;  %10026 = vmatmul.mubr.f32.vlgmr.msra.gmra.mxu0 %v15198_v33  ;;  %v16379_v4 = vld [vmem:[#allocation3_spill] sm:$0xff] }
 0x5a4   : > { %v7939_v63 = vpop.f32.mrf.mxu1  ;;  %v8044_v7 = vpop.f32.mrf.mxu0  ;;  %10031 = vmatprep.mubr.f32.mxu0 %v16087_v62 }
 0x5a5   : > { %9921 = vmatmul.mubr.f32.gmra.mxu1 %v16377_v17  ;;  %v15517_v18 = vadd.f32 %v7939_v63, %v7796_v39  ;;  %v8045_v30 = vadd.f32 %v8044_v7, %v15442_v61  ;;  %v16380_v7 = vld [vmem:[#allocation4_spill] sm:$0xff] }
 0x5a6   : > { %9926 = vmatprep.mubr.f32.mxu1 %v16087_v62  ;;  %v7946_v51 = vpop.f32.mrf.mxu1 }
 0x5a7   : > { %v15522_v54 = vadd.f32 %v7946_v51, %v7802_v21  ;;  %v8049_v31 = vpop.f32.mrf.mxu0  ;;  %10033 = vmatmul.mubr.f32.gmra.mxu0 %v15223_v36 }
 0x5a8   : > { %v8050_v3 = vadd.f32 %v8049_v31, %v15451_v16  ;;  %v7948_v58 = vpop.f32.mrf.mxu1  ;;  %10038 = vmatprep.mubr.f32.mxu0 %v16087_v62  ;;  %v16381_v31 = vld [vmem:[#allocation11_spill] sm:$0xff] }
 0x5a9   : > { %9930 = vmatmul.mubr.f32.gmra.mxu1 %v16378_v11  ;;  %v15528_v55 = vadd.f32 %v7948_v58, %v7804_v15  ;;  %v8051_v23 = vpop.f32.mrf.mxu0 }
 0x5aa   : > { %v8052_v61 = vadd.f32 %v8051_v23, %v15457_v24  ;;  %10153 = vmatprep.mubr.f32.mxu1 %v16087_v62  ;;  %v8171_v42 = vpop.f32.mrf.mxu1 }
 0x5ab   : > { %v8056_v43 = vpop.f32.mrf.mxu0  ;;  %v8172_v2 = vadd.f32 %v8171_v42, %v8043_v19  ;;  %10040 = vmatmul.mubr.f32.gmra.mxu0 %v15237_v26 }
 0x5ac   : > { %v8057_v16 = vadd.f32 %v8056_v43, %v15467_v40  ;;  %v8173_v12 = vpop.f32.mrf.mxu1  ;;  %10045 = vmatprep.mubr.f32.mxu0 %v16087_v62 }
 0x5ad   : > { %v15536_v49 = vadd.f32 %v8172_v2, %v15066_v14  ;;  %10155 = vmatmul.mubr.f32.vlgmr.msra.gmra.mxu1 %v15198_v33  ;;  %v8058_v10 = vpop.f32.mrf.mxu0  ;;  %v8174_v8 = vadd.f32 %v8173_v12, %v8045_v30 }
 0x5ae   : > { %v8059_v24 = vadd.f32 %v8058_v10, %v15474_v35  ;;  %10160 = vmatprep.mubr.f32.mxu1 %v16087_v62 }
 0x5af   : > { %v15543_v29 = vadd.f32 %v8174_v8, %v15081_v9  ;;  %v8063_v40 = vpop.f32.mrf.mxu0  ;;  %10047 = vmatmul.mubr.f32.gmra.mxu0 %v15259_v13 }
 0x5b0   : > { %v8064_v50 = vadd.f32 %v8063_v40, %v15479_v52  ;;  %v8178_v28 = vpop.f32.mrf.mxu1  ;;  %10052 = vmatprep.mubr.f32.mxu0 %v16087_v62 }
 0x5b1   : > { %v8179_v14 = vadd.f32 %v8178_v28, %v8050_v3  ;;  %10162 = vmatmul.mubr.f32.gmra.mxu1 %v15223_v36  ;;  %v8065_v33 = vpop.f32.mrf.mxu0 }
 0x5b2   : > { %v8066_v6 = vadd.f32 %v8065_v33, %v15485_v22  ;;  %v8180_v35 = vpop.f32.mrf.mxu1  ;;  %10167 = vmatprep.mubr.f32.mxu1 %v16087_v62 }
 0x5b3   : > { %v15552_v9 = vadd.f32 %v8179_v14, %v15099_v60  ;;  %v8181_v25 = vadd.f32 %v8180_v35, %v8052_v61  ;;  %v8070_v32 = vpop.f32.mrf.mxu0  ;;  %10054 = vmatmul.mubr.f32.gmra.mxu0 %v15284_v41  ;;  %v16382_v61 = vld [vmem:[#allocation21_spill] sm:$0xff] }
 0x5b4   : > { %v8071_v52 = vadd.f32 %v8070_v32, %v15490_v48  ;;  %v8185_v39 = vpop.f32.mrf.mxu1  ;;  %10059 = vmatprep.mubr.f32.mxu0 %v16087_v62 }
 0x5b5   : > { %v15557_v36 = vadd.f32 %v8181_v25, %v15117_v27  ;;  %v8186_v20 = vadd.f32 %v8185_v39, %v8057_v16  ;;  %10169 = vmatmul.mubr.f32.gmra.mxu1 %v15237_v26  ;;  %v8072_v22 = vpop.f32.mrf.mxu0  ;;  %v16383_v16 = vld [vmem:[#allocation22_spill] sm:$0xff]  ;;  %v16386_v25 = vld [vmem:[#allocation16_spill] sm:$0xff] }
 0x5b6   : > { %v8073_v34 = vadd.f32 %v8072_v22, %v15496_v38  ;;  %v8187_v60 = vpop.f32.mrf.mxu1  ;;  %10174 = vmatprep.mubr.f32.mxu1 %v16087_v62  ;;  %v16387_v22 = vld [vmem:[#allocation10_spill] sm:$0xff] }
 0x5b7   : > { %v15564_v21 = vadd.f32 %v8186_v20, %v15133_v0  ;;  %v8188_v48 = vadd.f32 %v8187_v60, %v8059_v24  ;;  %v8077_v37 = vpop.f32.mrf.mxu0  ;;  %10061 = vmatmul.mubr.f32.gmra.mxu0 %v15300_v1  ;;  %v16384_v24 = vld [vmem:[#allocation6_spill] sm:$0xff] }
 0x5b8   : > { %v8078_v53 = vadd.f32 %v8077_v37, %v15501_v45  ;;  %v8192_v27 = vpop.f32.mrf.mxu1  ;;  %10066 = vmatprep.mubr.f32.mxu0 %v16087_v62 }
 0x5b9   : > { %v15569_v26 = vadd.f32 %v8188_v48, %v15146_v5  ;;  %v8193_v47 = vadd.f32 %v8192_v27, %v8064_v50  ;;  %10176 = vmatmul.mubr.f32.gmra.mxu1 %v15259_v13  ;;  %v8079_v38 = vpop.f32.mrf.mxu0  ;;  %v16388_v48 = vld [vmem:[#allocation5_spill] sm:$0xff] }
 0x5ba   : > { %v8080_v15 = vadd.f32 %v8079_v38, %v15507_v46  ;;  %v8194_v0 = vpop.f32.mrf.mxu1  ;;  %10181 = vmatprep.mubr.f32.mxu1 %v16087_v62 }
 0x5bb   : > { %v15576_v56 = vadd.f32 %v8193_v47, %v16379_v4  ;;  %v8195_v45 = vadd.f32 %v8194_v0, %v8066_v6  ;;  %v8084_v19 = vpop.f32.mrf.mxu0  ;;  %10068 = vmatmul.mubr.f32.gmra.mxu0 %v15324_v57 }
 0x5bc   : > { %v8085_v63 = vadd.f32 %v8084_v19, %v15511_v44  ;;  %v8199_v5 = vpop.f32.mrf.mxu1  ;;  %10073 = vmatprep.mubr.f32.mxu0 %v16087_v62 }
 0x5bd   : > { %v15581_v13 = vadd.f32 %v8195_v45, %v16380_v7  ;;  %v8200_v17 = vadd.f32 %v8199_v5, %v8071_v52  ;;  %10183 = vmatmul.mubr.f32.gmra.mxu1 %v15284_v41  ;;  %v8086_v46 = vpop.f32.mrf.mxu0 }
 0x5be   : > { %v8087_v30 = vadd.f32 %v8086_v46, %v15517_v18  ;;  %v8201_v51 = vpop.f32.mrf.mxu1  ;;  %10188 = vmatprep.mubr.f32.mxu1 %v16087_v62 }
 0x5bf   : > { %v15588_v3 = vadd.f32 %v8200_v17, %v16381_v31  ;;  %v8202_v44 = vadd.f32 %v8201_v51, %v8073_v34  ;;  %v8091_v58 = vpop.f32.mrf.mxu0  ;;  %10075 = vmatmul.mubr.f32.gmra.mxu0 %v15344_v59 }
 0x5c0   : > { %v8092_v11 = vadd.f32 %v8091_v58, %v15522_v54  ;;  %v8206_v23 = vpop.f32.mrf.mxu1 }
 0x5c1   : > { %v15593_v41 = vadd.f32 %v8202_v44, %v16382_v61  ;;  %v8207_v42 = vadd.f32 %v8206_v23, %v8078_v53  ;;  %10190 = vmatmul.mubr.f32.gmra.mxu1 %v15300_v1  ;;  %v8093_v18 = vpop.f32.mrf.mxu0 }
 0x5c2   : > { %v8094_v43 = vadd.f32 %v8093_v18, %v15528_v55  ;;  %v8208_v2 = vpop.f32.mrf.mxu1  ;;  %10195 = vmatprep.mubr.f32.mxu1 %v16087_v62  ;;  %v16385_v55 = vld [vmem:[#allocation23_spill] sm:$0xff] }
 0x5c3   : > { %v15599_v12 = vadd.f32 %v8207_v42, %v16383_v16  ;;  %v8209_v10 = vadd.f32 %v8208_v2, %v8080_v15  ;;  %v8394_v54 = vpop.f32.mrf.mxu0 }
 0x5c4   : > { %v8213_v8 = vpop.f32.mrf.mxu1 }
 0x5c5   : > { %v15602_v40 = vadd.f32 %v8209_v10, %v16384_v24  ;;  %v8214_v50 = vadd.f32 %v8213_v8, %v8085_v63  ;;  %10197 = vmatmul.mubr.f32.gmra.mxu1 %v15324_v57  ;;  %v8396_v28 = vpop.f32.mrf.mxu0 }
 0x5c6   : > { %v8215_v1 = vpop.f32.mrf.mxu1  ;;  %10202 = vmatprep.mubr.f32.mxu1 %v16087_v62 }
 0x5c7   : > { %v15607_v14 = vadd.f32 %v8214_v50, %v16385_v55  ;;  %v8216_v33 = vadd.f32 %v8215_v1, %v8087_v30  ;;  %v8405_v6 = vpop.f32.mrf.mxu0 }
 0x5c8   : > { %v8220_v35 = vpop.f32.mrf.mxu1 }
 0x5c9   : > { %v15610_v32 = vadd.f32 %v8216_v33, %v16386_v25  ;;  %v8221_v52 = vadd.f32 %v8220_v35, %v8092_v11  ;;  %10204 = vmatmul.mubr.f32.gmra.mxu1 %v15344_v59  ;;  %v8407_v39 = vpop.f32.mrf.mxu0 }
 0x5ca   : > { %v8222_v20 = vpop.f32.mrf.mxu1 }
 0x5cb   : > { %v15614_v57 = vadd.f32 %v8221_v52, %v16387_v22  ;;  %v8223_v34 = vadd.f32 %v8222_v20, %v8094_v43  ;;  %v8416_v60 = vpop.f32.mrf.mxu0 }
 0x5cc   : > { %v8583_v62 = vpop.f32.mrf.mxu1 }
 0x5cd   : > { %v15617_v37 = vadd.f32 %v8223_v34, %v16388_v48  ;;  %v8584_v53 = vadd.f32 %v8583_v62, %v8394_v54  ;;  %v8418_v27 = vpop.f32.mrf.mxu0 }
 0x5ce   : > { %v8585_v47 = vpop.f32.mrf.mxu1 }
 0x5cf   : > { %v8586_v38 = vadd.f32 %v8585_v47, %v8396_v28  ;;  %v8427_v15 = vpop.f32.mrf.mxu0 }
 0x5d0   : > { %v8590_v0 = vpop.f32.mrf.mxu1 }
 0x5d1   : > { %v8591_v4 = vadd.f32 %v8590_v0, %v8405_v6  ;;  %v8429_v45 = vpop.f32.mrf.mxu0 }
 0x5d2   : > { %v8592_v59 = vpop.f32.mrf.mxu1 }
 0x5d3   : > { %v8593_v19 = vadd.f32 %v8592_v59, %v8407_v39  ;;  %v8438_v63 = vpop.f32.mrf.mxu0 }
 0x5d4   : > { %v8597_v5 = vpop.f32.mrf.mxu1 }
 0x5d5   : > { %v8598_v7 = vadd.f32 %v8597_v5, %v8416_v60  ;;  %v8440_v17 = vpop.f32.mrf.mxu0 }
 0x5d6   : > { %v8599_v46 = vpop.f32.mrf.mxu1 }
 0x5d7   : > { %v8600_v30 = vadd.f32 %v8599_v46, %v8418_v27  ;;  %v8449_v51 = vpop.f32.mrf.mxu0 }
 0x5d8   : > { %v8604_v31 = vpop.f32.mrf.mxu1 }
 0x5d9   : > { %v8605_v44 = vadd.f32 %v8604_v31, %v8427_v15  ;;  %v8451_v58 = vpop.f32.mrf.mxu0 }
 0x5da   : > { %v8606_v11 = vpop.f32.mrf.mxu1 }
 0x5db   : > { %v8607_v23 = vadd.f32 %v8606_v11, %v8429_v45  ;;  %v8460_v61 = vpop.f32.mrf.mxu0 }
 0x5dc   : > { %v8611_v42 = vpop.f32.mrf.mxu1 }
 0x5dd   : > { %v8612_v18 = vadd.f32 %v8611_v42, %v8438_v63  ;;  %v8462_v43 = vpop.f32.mrf.mxu0 }
 0x5de   : > { %v8613_v2 = vpop.f32.mrf.mxu1 }
 0x5df   : > { %v8614_v16 = vadd.f32 %v8613_v2, %v8440_v17  ;;  %v8471_v10 = vpop.f32.mrf.mxu0 }
 0x5e0   : > { %v8618_v54 = vpop.f32.mrf.mxu1 }
 0x5e1   : > { %v8619_v8 = vadd.f32 %v8618_v54, %v8449_v51  ;;  %v8473_v24 = vpop.f32.mrf.mxu0 }
 0x5e2   : > { %v8620_v50 = vpop.f32.mrf.mxu1 }
 0x5e3   : > { %v8621_v28 = vadd.f32 %v8620_v50, %v8451_v58  ;;  %v8721_v1 = vpop.f32.mrf.mxu0 }
 0x5e4   : > { %v8625_v55 = vpop.f32.mrf.mxu1  ;;  %v8722_v33 = vadd.f32 %v8721_v1, %v8584_v53 }
 0x5e5   : > { %v8626_v6 = vadd.f32 %v8625_v55, %v8460_v61  ;;  %v8723_v35 = vpop.f32.mrf.mxu0 }
 0x5e6   : > { %v8627_v25 = vpop.f32.mrf.mxu1  ;;  %v8724_v52 = vadd.f32 %v8723_v35, %v8586_v38 }
 0x5e7   : > { %v8628_v39 = vadd.f32 %v8627_v25, %v8462_v43  ;;  %v8729_v20 = vpop.f32.mrf.mxu0 }
 0x5e8   : > { %v8632_v22 = vpop.f32.mrf.mxu1  ;;  %v8730_v34 = vadd.f32 %v8729_v20, %v8591_v4 }
 0x5e9   : > { %v8633_v60 = vadd.f32 %v8632_v22, %v8471_v10  ;;  %v8731_v62 = vpop.f32.mrf.mxu0 }
 0x5ea   : > { %v8634_v48 = vpop.f32.mrf.mxu1  ;;  %v8732_v27 = vadd.f32 %v8731_v62, %v8593_v19 }
 0x5eb   : > { %v8635_v47 = vadd.f32 %v8634_v48, %v8473_v24  ;;  %v8737_v15 = vpop.f32.mrf.mxu0 }
 0x5ec   : > { %v8738_v0 = vadd.f32 %v8737_v15, %v8598_v7  ;;  %v8859_v45 = vpop.f32.mrf.mxu1 }
 0x5ed   : > { %v8860_v59 = vadd.f32 %v8859_v45, %v8722_v33  ;;  %v8739_v63 = vpop.f32.mrf.mxu0 }
 0x5ee   : > { %v8740_v5 = vadd.f32 %v8739_v63, %v8600_v30  ;;  %v8861_v53 = vpop.f32.mrf.mxu1 }
 0x5ef   : > { %v8862_v17 = vadd.f32 %v8861_v53, %v8724_v52  ;;  %v8745_v46 = vpop.f32.mrf.mxu0 }
 0x5f0   : > { %v8746_v51 = vadd.f32 %v8745_v46, %v8605_v44  ;;  %v8868_v38 = vpop.f32.mrf.mxu1 }
 0x5f1   : > { %v8869_v31 = vadd.f32 %v8868_v38, %v8730_v34  ;;  %v8747_v58 = vpop.f32.mrf.mxu0 }
 0x5f2   : > { %v8748_v11 = vadd.f32 %v8747_v58, %v8607_v23  ;;  %v8870_v4 = vpop.f32.mrf.mxu1 }
 0x5f3   : > { %v8871_v61 = vadd.f32 %v8870_v4, %v8732_v27  ;;  %v8753_v42 = vpop.f32.mrf.mxu0 }
 0x5f4   : > { %v8754_v43 = vadd.f32 %v8753_v42, %v8612_v18  ;;  %v8877_v19 = vpop.f32.mrf.mxu1 }
 0x5f5   : > { %v8878_v2 = vadd.f32 %v8877_v19, %v8738_v0  ;;  %v8755_v10 = vpop.f32.mrf.mxu0 }
 0x5f6   : > { %v8756_v7 = vadd.f32 %v8755_v10, %v8614_v16  ;;  %v8879_v54 = vpop.f32.mrf.mxu1 }
 0x5f7   : > { %v8880_v24 = vadd.f32 %v8879_v54, %v8740_v5  ;;  %v8761_v50 = vpop.f32.mrf.mxu0 }
 0x5f8   : > { %v8762_v30 = vadd.f32 %v8761_v50, %v8619_v8  ;;  %v8886_v1 = vpop.f32.mrf.mxu1 }
 0x5f9   : > { %v8887_v55 = vadd.f32 %v8886_v1, %v8746_v51  ;;  %v8763_v33 = vpop.f32.mrf.mxu0 }
 0x5fa   : > { %v8764_v44 = vadd.f32 %v8763_v33, %v8621_v28  ;;  %v8888_v35 = vpop.f32.mrf.mxu1 }
 0x5fb   : > { %v8889_v25 = vadd.f32 %v8888_v35, %v8748_v11  ;;  %v8769_v52 = vpop.f32.mrf.mxu0 }
 0x5fc   : > { %v8770_v23 = vadd.f32 %v8769_v52, %v8626_v6  ;;  %v8895_v20 = vpop.f32.mrf.mxu1 }
 0x5fd   : > { %v8896_v22 = vadd.f32 %v8895_v20, %v8754_v43  ;;  %v8771_v34 = vpop.f32.mrf.mxu0 }
 0x5fe   : > { %v8772_v18 = vadd.f32 %v8771_v34, %v8628_v39  ;;  %v8897_v62 = vpop.f32.mrf.mxu1 }
 0x5ff   : > { %v8898_v48 = vadd.f32 %v8897_v62, %v8756_v7  ;;  %v8777_v27 = vpop.f32.mrf.mxu0 }
 0x600   : > { %v8778_v16 = vadd.f32 %v8777_v27, %v8633_v60  ;;  %v8904_v15 = vpop.f32.mrf.mxu1 }
 0x601   : > { %v8905_v0 = vadd.f32 %v8904_v15, %v8762_v30  ;;  %v8779_v45 = vpop.f32.mrf.mxu0 }
 0x602   : > { %v8780_v8 = vadd.f32 %v8779_v45, %v8635_v47  ;;  %v8906_v63 = vpop.f32.mrf.mxu1 }
 0x603   : > { %v8907_v5 = vadd.f32 %v8906_v63, %v8764_v44  ;;  %v9018_v53 = vpop.f32.mrf.mxu0 }
 0x604   : > { %v9019_v46 = vadd.f32 %v9018_v53, %v8860_v59 }
 0x605   : > { %v8913_v28 = vpop.f32.mrf.mxu1  ;;  %v9020_v38 = vpop.f32.mrf.mxu0 }
 0x606   : > { %v8914_v51 = vadd.f32 %v8913_v28, %v8770_v23  ;;  %v9021_v58 = vadd.f32 %v9020_v38, %v8862_v17 }
 0x607   : > { %v8915_v6 = vpop.f32.mrf.mxu1  ;;  %v9025_v39 = vpop.f32.mrf.mxu0 }
 0x608   : > { %v8916_v11 = vadd.f32 %v8915_v6, %v8772_v18  ;;  %v9026_v43 = vadd.f32 %v9025_v39, %v8869_v31 }
 0x609   : > { %v8922_v4 = vpop.f32.mrf.mxu1  ;;  %v9027_v60 = vpop.f32.mrf.mxu0 }
 0x60a   : > { %v8923_v42 = vadd.f32 %v8922_v4, %v8778_v16  ;;  %v9028_v7 = vadd.f32 %v9027_v60, %v8871_v61 }
 0x60b   : > { %v8924_v19 = vpop.f32.mrf.mxu1  ;;  %v9032_v54 = vpop.f32.mrf.mxu0 }
 0x60c   : > { %v8925_v10 = vadd.f32 %v8924_v19, %v8780_v8  ;;  %v9033_v47 = vadd.f32 %v9032_v54, %v8878_v2 }
 0x60d   : > { %v9147_v50 = vpop.f32.mrf.mxu1  ;;  %v9034_v1 = vpop.f32.mrf.mxu0 }
 0x60e   : > { %v9148_v30 = vadd.f32 %v9147_v50, %v9019_v46  ;;  %v9035_v33 = vadd.f32 %v9034_v1, %v8880_v24 }
 0x60f   : > { %v9149_v59 = vpop.f32.mrf.mxu1  ;;  %v9039_v35 = vpop.f32.mrf.mxu0 }
 0x610   : > { %v15620_v44 = vadd.f32 %v9148_v30, %v15536_v49  ;;  %v9150_v17 = vadd.f32 %v9149_v59, %v9021_v58  ;;  %v9040_v52 = vadd.f32 %v9039_v35, %v8887_v55 }
 0x611   : > { %v9154_v23 = vpop.f32.mrf.mxu1  ;;  %v9041_v34 = vpop.f32.mrf.mxu0 }
 0x612   : > { %v15623_v31 = vadd.f32 %v9150_v17, %v15543_v29  ;;  %v9155_v20 = vadd.f32 %v9154_v23, %v9026_v43  ;;  %v9042_v61 = vadd.f32 %v9041_v34, %v8889_v25 }
 0x613   : > { %v9156_v18 = vpop.f32.mrf.mxu1  ;;  %v9046_v24 = vpop.f32.mrf.mxu0 }
 0x614   : > { %v15626_v2 = vadd.f32 %v9155_v20, %v15552_v9  ;;  %v9157_v62 = vadd.f32 %v9156_v18, %v9028_v7  ;;  %v9047_v27 = vadd.f32 %v9046_v24, %v8896_v22 }
 0x615   : > { %v9161_v16 = vpop.f32.mrf.mxu1  ;;  %v9048_v55 = vpop.f32.mrf.mxu0 }
 0x616   : > { %v15629_v49 = vadd.f32 %v9157_v62, %v15557_v36  ;;  %v9162_v15 = vadd.f32 %v9161_v16, %v9033_v47  ;;  %v9049_v45 = vadd.f32 %v9048_v55, %v8898_v48 }
 0x617   : > { %v9163_v8 = vpop.f32.mrf.mxu1  ;;  %v9053_v25 = vpop.f32.mrf.mxu0 }
 0x618   : > { %v15632_v29 = vadd.f32 %v9162_v15, %v15564_v21  ;;  %v9164_v63 = vadd.f32 %v9163_v8, %v9035_v33  ;;  %v9054_v53 = vadd.f32 %v9053_v25, %v8905_v0 }
 0x619   : > { %v9168_v28 = vpop.f32.mrf.mxu1  ;;  %v9055_v22 = vpop.f32.mrf.mxu0 }
 0x61a   : > { %v15635_v9 = vadd.f32 %v9164_v63, %v15569_v26  ;;  %v9169_v46 = vadd.f32 %v9168_v28, %v9040_v52  ;;  %v9056_v38 = vadd.f32 %v9055_v22, %v8907_v5 }
 0x61b   : > { %v9170_v6 = vpop.f32.mrf.mxu1  ;;  %v9060_v48 = vpop.f32.mrf.mxu0 }
 0x61c   : > { %16389 = vst [vmem:[#allocation13_spill] sm:$0xff] %v15635_v9  ;;  %v15638_v36 = vadd.f32 %v9169_v46, %v15576_v56  ;;  %v9171_v58 = vadd.f32 %v9170_v6, %v9042_v61  ;;  %v9061_v4 = vadd.f32 %v9060_v48, %v8914_v51 }
 0x61d   : > { %v9175_v39 = vpop.f32.mrf.mxu1  ;;  %v9062_v0 = vpop.f32.mrf.mxu0 }
 0x61e   : > { %16390 = vst [vmem:[#allocation17_spill] sm:$0xff] %v15638_v36  ;;  %v15641_v21 = vadd.f32 %v9171_v58, %v15581_v13  ;;  %v9176_v43 = vadd.f32 %v9175_v39, %v9047_v27  ;;  %v9063_v19 = vadd.f32 %v9062_v0, %v8916_v11 }
 0x61f   : > { %v9177_v60 = vpop.f32.mrf.mxu1  ;;  %v9067_v5 = vpop.f32.mrf.mxu0 }
 0x620   : > { %16391 = vst [vmem:[#allocation14_spill] sm:$0xff] %v15641_v21  ;;  %v15644_v26 = vadd.f32 %v9176_v43, %v15588_v3  ;;  %v9178_v7 = vadd.f32 %v9177_v60, %v9049_v45  ;;  %v9068_v54 = vadd.f32 %v9067_v5, %v8923_v42 }
 0x621   : > { %v9182_v47 = vpop.f32.mrf.mxu1  ;;  %v9069_v51 = vpop.f32.mrf.mxu0 }
 0x622   : > { %16392 = vst [vmem:[#allocation12_spill] sm:$0xff] %v15644_v26  ;;  %v15647_v56 = vadd.f32 %v9178_v7, %v15593_v41  ;;  %v9183_v50 = vadd.f32 %v9182_v47, %v9054_v53  ;;  %v9070_v30 = vadd.f32 %v9069_v51, %v8925_v10 }
 0x623   : > { %v9184_v1 = vpop.f32.mrf.mxu1  ;;  %v15652_v11 = vpop.f32.mrf.mxu0 }
 0x624   : > { %16393 = vst [vmem:[#allocation15_spill] sm:$0xff] %v15647_v56  ;;  %v15650_v13 = vadd.f32 %v9183_v50, %v15599_v12  ;;  %v9185_v33 = vadd.f32 %v9184_v1, %v9056_v38 }
 0x625   : > { %v9189_v59 = vpop.f32.mrf.mxu1  ;;  %v15657_v42 = vpop.f32.mrf.mxu0 }
 0x626   : > { %16394 = vst [vmem:[#allocation26_spill] sm:$0xff] %v15650_v13  ;;  %v15655_v3 = vadd.f32 %v9185_v33, %v15602_v40  ;;  %v9190_v17 = vadd.f32 %v9189_v59, %v9061_v4 }
 0x627   : > { %v9191_v35 = vpop.f32.mrf.mxu1  ;;  %v15662_v10 = vpop.f32.mrf.mxu0 }
 0x628   : > { %16395 = vst [vmem:[#allocation7_spill] sm:$0xff] %v15655_v3  ;;  %v15660_v41 = vadd.f32 %v9190_v17, %v15607_v14  ;;  %v9192_v52 = vadd.f32 %v9191_v35, %v9063_v19 }
 0x629   : > { %v9196_v23 = vpop.f32.mrf.mxu1  ;;  %v15667_v34 = vpop.f32.mrf.mxu0 }
 0x62a   : > { %16396 = vst [vmem:[#allocation25_spill] sm:$0xff] %v15660_v41  ;;  %v15665_v12 = vadd.f32 %v9192_v52, %v15610_v32  ;;  %v9197_v20 = vadd.f32 %v9196_v23, %v9068_v54 }
 0x62b   : > { %v9198_v61 = vpop.f32.mrf.mxu1  ;;  %v15672_v62 = vpop.f32.mrf.mxu0 }
 0x62c   : > { %16397 = vst [vmem:[#allocation24_spill] sm:$0xff] %v15665_v12  ;;  %v15670_v40 = vadd.f32 %v9197_v20, %v15614_v57  ;;  %v9199_v18 = vadd.f32 %v9198_v61, %v9070_v30 }
 0x62d   : > { %v9592_v24 = vpop.f32.mrf.mxu1  ;;  %v15677_v27 = vpop.f32.mrf.mxu0 }
 0x62e   : > { %16398 = vst [vmem:[#allocation8_spill] sm:$0xff] %v15670_v40  ;;  %v15675_v14 = vadd.f32 %v9199_v18, %v15617_v37  ;;  %v9593_v36 = vadd.f32 %v9592_v24, %v15652_v11 }
 0x62f   : > { %v9594_v16 = vpop.f32.mrf.mxu1  ;;  %v15679_v15 = vpop.f32.mrf.mxu0 }
 0x630   : > { %16399 = vst [vmem:[#allocation27_spill] sm:$0xff] %v15675_v14 }
 0x631   : > { %v9599_v32 = vpop.f32.mrf.mxu1  ;;  %v15681_v55 = vpop.f32.mrf.mxu0 }
 0x633   : > { %v15683_v45 = vpop.f32.mrf.mxu1  ;;  %v15685_v8 = vpop.f32.mrf.mxu0 }
 0x634   : > { %v9602_v11 = vadd.f32 %v15683_v45, %v15667_v34 }
 0x635   : > { %v15687_v57 = vpop.f32.mrf.mxu1  ;;  %v15689_v63 = vpop.f32.mrf.mxu0 }
 0x637   : > { %v15691_v25 = vpop.f32.mrf.mxu1  ;;  %v15693_v37 = vpop.f32.mrf.mxu0 }
 0x639   : > { %v15695_v53 = vpop.f32.mrf.mxu1  ;;  %v15697_v28 = vpop.f32.mrf.mxu0 }
 0x63b   : > { %v15699_v46 = vpop.f32.mrf.mxu1  ;;  %v15701_v22 = vpop.f32.mrf.mxu0 }
 0x63d   : > { %v15703_v38 = vpop.f32.mrf.mxu1  ;;  %v15705_v6 = vpop.f32.mrf.mxu0 }
 0x63e   : > { %16400 = vst [vmem:[#allocation28_spill] sm:$0xff] %v15705_v6 }
 0x63f   : > { %v15707_v58 = vpop.f32.mrf.mxu1  ;;  %v15709_v48 = vpop.f32.mrf.mxu0 }
 0x640   : > { %16401 = vst [vmem:[#allocation9_spill] sm:$0xff] %v15709_v48 }
 0x641   : > { %v15711_v4 = vpop.f32.mrf.mxu1  ;;  %v15713_v39 = vpop.f32.mrf.mxu0 }
 0x642   : > { %16402 = vst [vmem:[#allocation29_spill] sm:$0xff] %v15713_v39 }
 0x643   : > { %v15715_v43 = vpop.f32.mrf.mxu1  ;;  %v9730_v0 = vpop.f32.mrf.mxu0 }
 0x645   : > { %v15717_v19 = vpop.f32.mrf.mxu1  ;;  %v9732_v60 = vpop.f32.mrf.mxu0 }
 0x647   : > { %v15719_v7 = vpop.f32.mrf.mxu1  ;;  %v9738_v5 = vpop.f32.mrf.mxu0 }
 0x648   : > { %16403 = vst [vmem:[#allocation18_spill] sm:$0xff] %v15719_v7  ;;  %v9731_v7 = vadd.f32 %v9730_v0, %v9593_v36  ;;  %v9607_v36 = vadd.f32 %v15687_v57, %v15672_v62 }
 0x649   : > { %v15721_v54 = vpop.f32.mrf.mxu1  ;;  %v9740_v47 = vpop.f32.mrf.mxu0 }
 0x64a   : > { %16404 = vst [vmem:[#allocation19_spill] sm:$0xff] %v15721_v54 }
 0x64b   : > { %v15723_v50 = vpop.f32.mrf.mxu1  ;;  %v9746_v51 = vpop.f32.mrf.mxu0 }
 0x64c   : > { %16405 = vst [vmem:[#allocation20_spill] sm:$0xff] %v15723_v50 }
 0x64d   : > { %v9868_v30 = vpop.f32.mrf.mxu1  ;;  %v9748_v1 = vpop.f32.mrf.mxu0 }
 0x64f   : > { %v9870_v33 = vpop.f32.mrf.mxu1  ;;  %v15725_v59 = vpop.f32.mrf.mxu0 }
 0x651   : > { %v9877_v17 = vpop.f32.mrf.mxu1  ;;  %v15727_v35 = vpop.f32.mrf.mxu0 }
 0x653   : > { %v9879_v52 = vpop.f32.mrf.mxu1  ;;  %v15729_v23 = vpop.f32.mrf.mxu0 }
 0x655   : > { %v9886_v20 = vpop.f32.mrf.mxu1  ;;  %v15731_v61 = vpop.f32.mrf.mxu0 }
 0x657   : > { %v9888_v18 = vpop.f32.mrf.mxu1  ;;  %v15733_v14 = vpop.f32.mrf.mxu0 }
 0x658   : > { %16406 = vst [vmem:[#allocation3_spill] sm:$0xff] %v15733_v14 }
 0x659   : > { %v15735_v40 = vpop.f32.mrf.mxu1  ;;  %v15737_v12 = vpop.f32.mrf.mxu0 }
 0x65a   : > { %16407 = vst [vmem:[#allocation4_spill] sm:$0xff] %v15737_v12 }
 0x65b   : > { %v15739_v41 = vpop.f32.mrf.mxu1  ;;  %v15741_v3 = vpop.f32.mrf.mxu0 }
 0x65c   : > { %16408 = vst [vmem:[#allocation11_spill] sm:$0xff] %v15741_v3 }
 0x65d   : > { %v15743_v13 = vpop.f32.mrf.mxu1  ;;  %v15745_v56 = vpop.f32.mrf.mxu0 }
 0x65e   : > { %16409 = vst [vmem:[#allocation21_spill] sm:$0xff] %v15743_v13  ;;  %16410 = vst [vmem:[#allocation22_spill] sm:$0xff] %v15745_v56  ;;  %v9595_v56 = vadd.f32 %v9594_v16, %v15657_v42  ;;  %v9741_v16 = vadd.f32 %v9740_v47, %v9602_v11 }
 0x65f   : > { %v15747_v50 = vpop.f32.mrf.mxu1  ;;  %v15749_v39 = vpop.f32.mrf.mxu0 }
 0x660   : > { %16411 = vst [vmem:[#allocation6_spill] sm:$0xff] %v15747_v50  ;;  %16412 = vst [vmem:[#allocation23_spill] sm:$0xff] %v15749_v39  ;;  %v9600_v39 = vadd.f32 %v9599_v32, %v15662_v10  ;;  %v9880_v34 = vadd.f32 %v9879_v52, %v9741_v16 }
 0x661   : > { %v15751_v54 = vpop.f32.mrf.mxu1  ;;  %v15753_v48 = vpop.f32.mrf.mxu0 }
 0x662   : > { %16413 = vst [vmem:[#allocation16_spill] sm:$0xff] %v15751_v54  ;;  %16414 = vst [vmem:[#allocation10_spill] sm:$0xff] %v15753_v48  ;;  %v9733_v54 = vadd.f32 %v9732_v60, %v9595_v56  ;;  %v9869_v48 = vadd.f32 %v9868_v30, %v9731_v7  ;;  %v9739_v24 = vadd.f32 %v9738_v5, %v9600_v39 }
 0x663   : > { %v15755_v26 = vpop.f32.mrf.mxu1  ;;  %v10027_v21 = vpop.f32.mrf.mxu0  ;;  %v9609_v60 = vadd.f32 %v15691_v25, %v15677_v27  ;;  %v9747_v7 = vadd.f32 %v9746_v51, %v9607_v36  ;;  %v9621_v39 = vadd.f32 %v15703_v38, %v15685_v8 }
 0x664   : > { %16415 = vst [vmem:[#allocation5_spill] sm:$0xff] %v15755_v26  ;;  %v9878_v0 = vadd.f32 %v9877_v17, %v9739_v24 }
 0x665   : > { %v15757_v12 = vpop.f32.mrf.mxu1  ;;  %v10029_v3 = vpop.f32.mrf.mxu0  ;;  %v9887_v27 = vadd.f32 %v9886_v20, %v9747_v7  ;;  %v9763_v11 = vadd.f32 %v15729_v23, %v9621_v39  ;;  %v9635_v23 = vadd.f32 %v15717_v19, %v15701_v22  ;;  %v16418_v16 = vld [vmem:[#allocation21_spill] sm:$0xff] }
 0x666   : > { %16416 = vst [vmem:[#allocation30_spill] sm:$0xff] %v15757_v12  ;;  %v9871_v12 = vadd.f32 %v9870_v33, %v9733_v54 }
 0x667   : > { %v15760_v14 = vpop.f32.mrf.mxu1  ;;  %v10034_v50 = vpop.f32.mrf.mxu0 }
 0x668   : > { %16417 = vst [vmem:[#allocation31_spill] sm:$0xff] %v15760_v14  ;;  %v10028_v14 = vadd.f32 %v10027_v21, %v9869_v48  ;;  %v10030_v10 = vadd.f32 %v10029_v3, %v9871_v12  ;;  %v10035_v45 = vadd.f32 %v10034_v50, %v9878_v0  ;;  %v9614_v3 = vadd.f32 %v15695_v53, %v15679_v15 }
 0x669   : > { %v15763_v6 = vpop.f32.mrf.mxu1  ;;  %v10036_v9 = vpop.f32.mrf.mxu0  ;;  %v9616_v12 = vadd.f32 %v15699_v46, %v15681_v55  ;;  %v9905_v0 = vadd.f32 %v16418_v16, %v9763_v11  ;;  %v16432_v11 = vld [vmem:[#allocation19_spill] sm:$0xff] }
 0x66a   : > { %v10037_v5 = vadd.f32 %v10036_v9, %v9880_v34  ;;  %v9755_v50 = vadd.f32 %v15725_v59, %v9614_v3  ;;  %v9623_v9 = vadd.f32 %v15707_v58, %v15689_v63  ;;  %v16420_v34 = vld [vmem:[#allocation28_spill] sm:$0xff] }
 0x66b   : > { %v15766_v26 = vpop.f32.mrf.mxu1  ;;  %v10041_v13 = vpop.f32.mrf.mxu0  ;;  %v9757_v38 = vadd.f32 %v15727_v35, %v9616_v12 }
 0x66c   : > { %v10042_v15 = vadd.f32 %v10041_v13, %v9887_v27  ;;  %v9896_v13 = vadd.f32 %v15735_v40, %v9755_v50 }
 0x66d   : > { %v10156_v42 = vpop.f32.mrf.mxu1  ;;  %v10043_v32 = vpop.f32.mrf.mxu0  ;;  %v9898_v63 = vadd.f32 %v15739_v41, %v9757_v38  ;;  %v9765_v41 = vadd.f32 %v15731_v61, %v9623_v9  ;;  %v16424_v61 = vld [vmem:[#allocation17_spill] sm:$0xff] }
 0x66e   : > { %v10157_v56 = vadd.f32 %v10156_v42, %v10028_v14  ;;  %v9749_v14 = vadd.f32 %v9748_v1, %v9609_v60  ;;  %v9630_v42 = vadd.f32 %v15715_v43, %v15697_v28  ;;  %v16422_v28 = vld [vmem:[#allocation3_spill] sm:$0xff] }
 0x66f   : > { %v10158_v21 = vpop.f32.mrf.mxu1  ;;  %v10048_v48 = vpop.f32.mrf.mxu0 }
 0x670   : > { %v10210_v62 = vadd.f32 %v10157_v56, %v15620_v44  ;;  %v10159_v57 = vadd.f32 %v10158_v21, %v10030_v10  ;;  %v9889_v51 = vadd.f32 %v9888_v18, %v9749_v14  ;;  %v10049_v58 = vadd.f32 %v10048_v48, %v9896_v13 }
 0x671   : > { %v10163_v25 = vpop.f32.mrf.mxu1  ;;  %v10050_v47 = vpop.f32.mrf.mxu0 }
 0x672   : > { %10226 = vst [vmem:[%s15778_s18] sm:$0xff] %v10210_v62  ;;  %v10211_v54 = vadd.f32 %v10159_v57, %v15623_v31  ;;  %v10164_v44 = vadd.f32 %v10163_v25, %v10035_v45  ;;  %v10242_v30 = vmul.f32 %v10210_v62, %v10210_v62  ;;  %v9628_v31 = vadd.f32 %v15711_v4, %v15693_v37  ;;  %v16421_v45 = vld [vmem:[#allocation18_spill] sm:$0xff]  ;;  %v16425_v25 = vld [vmem:[#allocation4_spill] sm:$0xff] }
 0x673   : > { %v10165_v53 = vpop.f32.mrf.mxu1  ;;  %v10055_v1 = vpop.f32.mrf.mxu0  ;;  %v10044_v17 = vadd.f32 %v10043_v32, %v9889_v51  ;;  %v10051_v56 = vadd.f32 %v10050_v47, %v9898_v63  ;;  %v16423_v57 = vld [vmem:[#allocation6_spill] sm:$0xff]  ;;  %v9773_v39 = vadd.f32 %v16425_v25, %v9630_v42  ;;  %v16427_v51 = vld [vmem:[#allocation11_spill] sm:$0xff] }
 0x674   : > { %10227 = vst [vmem:[%s15778_s18 + $0x8] sm:$0xff] %v10211_v54  ;;  %v10212_v55 = vadd.f32 %v10164_v44, %v15626_v2  ;;  %v10166_v46 = vadd.f32 %v10165_v53, %v10037_v5  ;;  %v10258_v33 = vadd.f32 %v10211_v54, %v10210_v62  ;;  %v10243_v8 = vmul.f32 %v10211_v54, %v10211_v54  ;;  %v16426_v5 = vld [vmem:[#allocation16_spill] sm:$0xff] }
 0x675   : > { %v10170_v59 = vpop.f32.mrf.mxu1  ;;  %v10057_v20 = vpop.f32.mrf.mxu0  ;;  %v9637_v62 = vadd.f32 %v16421_v45, %v16420_v34  ;;  %v9771_v43 = vadd.f32 %v16422_v28, %v9628_v31  ;;  %v9907_v48 = vadd.f32 %v16423_v57, %v9765_v41  ;;  %v10056_v22 = vadd.f32 %v10055_v1, %v9905_v0  ;;  %v16429_v1 = vld [vmem:[#allocation5_spill] sm:$0xff] }
 0x676   : > { %10228 = vst [vmem:[%s15778_s18 + $0x10] sm:$0xff] %v10212_v55  ;;  %v10213_v2 = vadd.f32 %v10166_v46, %v15629_v49  ;;  %v10171_v52 = vadd.f32 %v10170_v59, %v10042_v15  ;;  %10259 = vadd.xlane.f32.xlu0 %v10258_v33  ;;  %v10282_v18 = vadd.f32 %v10243_v8, %v10242_v30  ;;  %v16428_v30 = vld [vmem:[#allocation14_spill] sm:$0xff]  ;;  %v16430_v59 = vld [vmem:[#allocation12_spill] sm:$0xff] }
 0x677   : > { %v10172_v37 = vpop.f32.mrf.mxu1  ;;  %v10244_v4 = vmul.f32 %v10212_v55, %v10212_v55  ;;  %v10062_v24 = vpop.f32.mrf.mxu0  ;;  %v9914_v54 = vadd.f32 %v16426_v5, %v9771_v43  ;;  %v9779_v15 = vadd.f32 %v16427_v51, %v9635_v23  ;;  %v10058_v53 = vadd.f32 %v10057_v20, %v9907_v48  ;;  %v16431_v20 = vld [vmem:[#allocation9_spill] sm:$0xff]  ;;  %v16437_v23 = vld [vmem:[#allocation15_spill] sm:$0xff]  ;;  %v16441_v48 = vld [vmem:[#allocation10_spill] sm:$0xff] }
 0x678   : > { %10229 = vst [vmem:[%s15778_s18 + $0x18] sm:$0xff] %v10213_v2  ;;  %v10214_v40 = vadd.f32 %v10171_v52, %v15632_v29  ;;  %v10173_v35 = vadd.f32 %v10172_v37, %v10044_v17  ;;  %10283 = vadd.xlane.f32.xlu1 %v10282_v18  ;;  %v10245_v36 = vmul.f32 %v10213_v2, %v10213_v2  ;;  %v16419_v29 = vld [vmem:[#allocation13_spill] sm:$0xff]  ;;  %v16434_v37 = vld [vmem:[#allocation20_spill] sm:$0xff] }
 0x679   : > { %v10261_v49 = vadd.f32 %v10213_v2, %v10212_v55  ;;  %v10177_v10 = vpop.f32.mrf.mxu1  ;;  %v10064_v7 = vpop.f32.mrf.mxu0  ;;  %v9916_v33 = vadd.f32 %v16429_v1, %v9773_v39  ;;  %v10063_v8 = vadd.f32 %v10062_v24, %v9914_v54  ;;  %v9642_v63 = vadd.f32 %v16432_v11, %v16431_v20  ;;  %v16436_v24 = vld [vmem:[#allocation30_spill] sm:$0xff] }
 0x67a   : > { %10230 = vst [vmem:[%s15778_s18 + $0x20] sm:$0xff] %v10214_v40  ;;  %v10215_v32 = vadd.f32 %v10173_v35, %v16419_v29  ;;  %v10178_v60 = vadd.f32 %v10177_v10, %v10049_v58  ;;  %v10285_v21 = vadd.f32 %v10245_v36, %v10244_v4  ;;  %v10246_v47 = vmul.f32 %v10214_v40, %v10214_v40  ;;  %v16433_v58 = vld [vmem:[#allocation29_spill] sm:$0xff]  ;;  %v16438_v10 = vld [vmem:[#allocation23_spill] sm:$0xff] }
 0x67b   : > { %v10179_v19 = vpop.f32.mrf.mxu1  ;;  %v10069_v14 = vpop.f32.mrf.mxu0  ;;  %v9644_v4 = vadd.f32 %v16434_v37, %v16433_v58  ;;  %v9923_v36 = vadd.f32 %v16436_v24, %v9779_v15  ;;  %v10065_v42 = vadd.f32 %v10064_v7, %v9916_v33  ;;  %v16439_v29 = vld [vmem:[#allocation31_spill] sm:$0xff] }
 0x67c   : > { %10231 = vst [vmem:[%s15778_s18 + $0x28] sm:$0xff] %v10215_v32  ;;  %v10216_v3 = vadd.f32 %v10178_v60, %v16424_v61  ;;  %v10180_v12 = vadd.f32 %v10179_v19, %v10051_v56  ;;  %10286 = vadd.xlane.f32.xlu0 %v10285_v21  ;;  %10262 = vadd.xlane.f32.xlu1 %v10261_v49 }
 0x67d   : > { %v10264_v27 = vadd.f32 %v10215_v32, %v10214_v40  ;;  %v10184_v44 = vpop.f32.mrf.mxu1  ;;  %v10247_v50 = vmul.f32 %v10215_v32, %v10215_v32  ;;  %v10071_v9 = vpop.f32.mrf.mxu0  ;;  %v16435_v40 = vld [vmem:[#allocation22_spill] sm:$0xff]  ;;  %v9787_v56 = vadd.f32 %v16438_v10, %v9642_v63  ;;  %v10070_v60 = vadd.f32 %v10069_v14, %v9923_v36 }
 0x67e   : > { %10232 = vst [vmem:[%s15778_s18 + $0x30] sm:$0xff] %v10216_v3  ;;  %v10217_v55 = vadd.f32 %v10180_v12, %v16428_v30  ;;  %v10185_v46 = vadd.f32 %v10184_v44, %v10056_v22  ;;  %v10248_v13 = vmul.f32 %v10216_v3, %v10216_v3  ;;  %v9781_v35 = vadd.f32 %v16435_v40, %v9637_v62  ;;  %v16440_v62 = vld [vmem:[#allocation26_spill] sm:$0xff]  ;;  %v16442_v12 = vld [vmem:[#allocation7_spill] sm:$0xff] }
 0x67f   : > { %v10186_v31 = vpop.f32.mrf.mxu1  ;;  %v10288_v38 = vadd.f32 %v10247_v50, %v10246_v47  ;;  %v10076_v21 = vpop.f32.mrf.mxu0  ;;  %v9789_v22 = vadd.f32 %v16441_v48, %v9644_v4  ;;  %v9932_v19 = vadd.f32 %v15763_v6, %v9787_v56  ;;  %v16443_v50 = vld [vmem:[#allocation25_spill] sm:$0xff] }
 0x680   : > { %10233 = vst [vmem:[%s15778_s18 + $0x38] sm:$0xff] %v10217_v55  ;;  %v10218_v17 = vadd.f32 %v10185_v46, %v16430_v59  ;;  %v10187_v2 = vadd.f32 %v10186_v31, %v10058_v53  ;;  %10265 = vadd.xlane.f32.xlu0 %v10264_v27  ;;  %v10267_v52 = vadd.f32 %v10217_v55, %v10216_v3  ;;  %v16444_v46 = vld [vmem:[#allocation24_spill] sm:$0xff] }
 0x681   : > { %v10249_v18 = vmul.f32 %v10217_v55, %v10217_v55  ;;  %10289 = vadd.xlane.f32.xlu1 %v10288_v38  ;;  %v10191_v49 = vpop.f32.mrf.mxu1  ;;  %v9925_v32 = vadd.f32 %v16439_v29, %v9781_v35  ;;  %v9934_v39 = vadd.f32 %v15766_v26, %v9789_v22  ;;  %v10077_v5 = vadd.f32 %v10076_v21, %v9932_v19  ;;  %v10078_v54 = vpop.f32.mrf.mxu0  ;;  %v16445_v31 = vld [vmem:[#allocation8_spill] sm:$0xff] }
 0x682   : > { %10234 = vst [vmem:[%s15778_s18 + $0x40] sm:$0xff] %v10218_v17  ;;  %v10219_v41 = vadd.f32 %v10187_v2, %v16437_v23  ;;  %v10192_v16 = vadd.f32 %v10191_v49, %v10063_v8  ;;  %v10250_v45 = vmul.f32 %v10218_v17, %v10218_v17  ;;  %v16446_v2 = vld [vmem:[#allocation27_spill] sm:$0xff] }
 0x683   : > { %v10291_v0 = vadd.f32 %v10249_v18, %v10248_v13  ;;  %v10193_v34 = vpop.f32.mrf.mxu1  ;;  %v10072_v3 = vadd.f32 %v10071_v9, %v9925_v32  ;;  %v10079_v55 = vadd.f32 %v10078_v54, %v9934_v39 }
 0x684   : > { %10235 = vst [vmem:[%s15778_s18 + $0x48] sm:$0xff] %v10219_v41  ;;  %v10220_v28 = vadd.f32 %v10192_v16, %v16440_v62  ;;  %v10194_v43 = vadd.f32 %v10193_v34, %v10065_v42  ;;  %10268 = vadd.xlane.f32.xlu0 %v10267_v52  ;;  %v10270_v7 = vadd.f32 %v10219_v41, %v10218_v17 }
 0x685   : > { %v10251_v57 = vmul.f32 %v10219_v41, %v10219_v41  ;;  %v10198_v61 = vpop.f32.mrf.mxu1 }
 0x686   : > { %10236 = vst [vmem:[%s15778_s18 + $0x50] sm:$0xff] %v10220_v28  ;;  %v10221_v14 = vadd.f32 %v10194_v43, %v16442_v12  ;;  %v10199_v27 = vadd.f32 %v10198_v61, %v10070_v60  ;;  %10271 = vadd.xlane.f32.xlu1 %v10270_v7  ;;  %v10252_v47 = vmul.f32 %v10220_v28, %v10220_v28 }
 0x687   : > { %v10294_v25 = vadd.f32 %v10251_v57, %v10250_v45  ;;  %v10200_v44 = vpop.f32.mrf.mxu1 }
 0x688   : > { %10237 = vst [vmem:[%s15778_s18 + $0x58] sm:$0xff] %v10221_v14  ;;  %v10222_v51 = vadd.f32 %v10199_v27, %v16443_v50  ;;  %v10201_v6 = vadd.f32 %v10200_v44, %v10072_v3  ;;  %10292 = vadd.xlane.f32.xlu0 %v10291_v0  ;;  %v10273_v15 = vadd.f32 %v10221_v14, %v10220_v28 }
 0x689   : > { %v10253_v53 = vmul.f32 %v10221_v14, %v10221_v14  ;;  %v10205_v30 = vpop.f32.mrf.mxu1 }
 0x68a   : > { %10238 = vst [vmem:[%s15778_s18 + $0x60] sm:$0xff] %v10222_v51  ;;  %v10223_v1 = vadd.f32 %v10201_v6, %v16444_v46  ;;  %v10206_v26 = vadd.f32 %v10205_v30, %v10077_v5  ;;  %10295 = vadd.xlane.f32.xlu1 %v10294_v25  ;;  %v10254_v9 = vmul.f32 %v10222_v51, %v10222_v51 }
 0x68b   : > { %v10297_v33 = vadd.f32 %v10253_v53, %v10252_v47  ;;  %v10207_v8 = vpop.f32.mrf.mxu1 }
 0x68c   : > { %10239 = vst [vmem:[%s15778_s18 + $0x68] sm:$0xff] %v10223_v1  ;;  %v10224_v38 = vadd.f32 %v10206_v26, %v16445_v31  ;;  %v10208_v13 = vadd.f32 %v10207_v8, %v10079_v55  ;;  %10274 = vadd.xlane.f32.xlu0 %v10273_v15  ;;  %v10276_v59 = vadd.f32 %v10223_v1, %v10222_v51 }
 0x68d   : > { %v10255_v17 = vmul.f32 %v10223_v1, %v10223_v1 }
 0x68e   : > { %10240 = vst [vmem:[%s15778_s18 + $0x70] sm:$0xff] %v10224_v38  ;;  %v10225_v52 = vadd.f32 %v10208_v13, %v16446_v2  ;;  %10277 = vadd.xlane.f32.xlu1 %v10276_v59  ;;  %v10256_v11 = vmul.f32 %v10224_v38, %v10224_v38 }
 0x68f   : > { %v10300_v18 = vadd.f32 %v10255_v17, %v10254_v9 }
 0x690   : > { %10241 = vst [vmem:[%s15778_s18 + $0x78] sm:$0xff] %v10225_v52  ;;  %10298 = vadd.xlane.f32.xlu0 %v10297_v33  ;;  %v10279_v20 = vadd.f32 %v10225_v52, %v10224_v38  ;;  %v10257_v63 = vmul.f32 %v10225_v52, %v10225_v52 }
 0x692   : > { %10301 = vadd.xlane.f32.xlu1 %v10300_v18  ;;  %v10303_v58 = vadd.f32 %v10257_v63, %v10256_v11 }
 0x694   : > { %10280 = vadd.xlane.f32.xlu0 %v10279_v20 }
 0x698   : > { %10304 = vadd.xlane.f32.xlu0 %v10303_v58 }
 0x6ff   : > { %v10260_v37 = vpop.xlane.xlu0 %10259 }
 0x700   : > { %10307 = vst.msk [vmem:[%s15856_s22] sm:$0xff] %vm10306_vm9, %v10260_v37 }
 0x701   : > { %v10284_v4 = vpop.xlane.xlu1 %10283 }
 0x702   : > { %10315 = vst.msk [vmem:[%s15856_s22 + $0x40] sm:$0xff] %vm10306_vm9, %v10284_v4 }
 0x705   : > { %v10287_v40 = vpop.xlane.xlu0 %10286  ;;  %v10263_v35 = vpop.xlane.xlu1 %10262 }
 0x706   : > { %10316 = vst.msk [vmem:[%s15856_s22 + $0x48] sm:$0xff] %vm10306_vm9, %v10287_v40  ;;  %10308 = vst.msk [vmem:[%s15856_s22 + $0x8] sm:$0xff] %vm10306_vm9, %v10263_v35 }
 0x709   : > { %v10266_v24 = vpop.xlane.xlu0 %10265 }
 0x70a   : > { %10309 = vst.msk [vmem:[%s15856_s22 + $0x10] sm:$0xff] %vm10306_vm9, %v10266_v24  ;;  %v10290_v36 = vpop.xlane.xlu1 %10289 }
 0x70b   : > { %10317 = vst.msk [vmem:[%s15856_s22 + $0x50] sm:$0xff] %vm10306_vm9, %v10290_v36 }
 0x70d   : > { %v10269_v49 = vpop.xlane.xlu0 %10268 }
 0x70e   : > { %10310 = vst.msk [vmem:[%s15856_s22 + $0x18] sm:$0xff] %vm10306_vm9, %v10269_v49 }
 0x70f   : > { %v10272_v42 = vpop.xlane.xlu1 %10271 }
 0x710   : > { %10311 = vst.msk [vmem:[%s15856_s22 + $0x20] sm:$0xff] %vm10306_vm9, %v10272_v42 }
 0x711   : > { %v10293_v23 = vpop.xlane.xlu0 %10292 }
 0x712   : > { %10318 = vst.msk [vmem:[%s15856_s22 + $0x58] sm:$0xff] %vm10306_vm9, %v10293_v23 }
 0x713   : > { %v10296_v41 = vpop.xlane.xlu1 %10295 }
 0x714   : > { %10319 = vst.msk [vmem:[%s15856_s22 + $0x60] sm:$0xff] %vm10306_vm9, %v10296_v41 }
 0x715   : > { %v10275_v16 = vpop.xlane.xlu0 %10274 }
 0x716   : > { %10312 = vst.msk [vmem:[%s15856_s22 + $0x28] sm:$0xff] %vm10306_vm9, %v10275_v16 }
 0x717   : > { %v10278_v0 = vpop.xlane.xlu1 %10277 }
 0x718   : > { %10313 = vst.msk [vmem:[%s15856_s22 + $0x30] sm:$0xff] %vm10306_vm9, %v10278_v0 }
 0x719   : > { %v10299_v10 = vpop.xlane.xlu0 %10298 }
 0x71a   : > { %10320 = vst.msk [vmem:[%s15856_s22 + $0x68] sm:$0xff] %vm10306_vm9, %v10299_v10 }
 0x71b   : > { %v10302_v56 = vpop.xlane.xlu1 %10301 }
 0x71c   : > { %10321 = vst.msk [vmem:[%s15856_s22 + $0x70] sm:$0xff] %vm10306_vm9, %v10302_v56 }
 0x71d   : > { %v10281_v29 = vpop.xlane.xlu0 %10280 }
 0x71e   : > { %10314 = vst.msk [vmem:[%s15856_s22 + $0x38] sm:$0xff] %vm10306_vm9, %v10281_v29 }
 0x721   : > { %v10305_v32 = vpop.xlane.xlu0 %10304 }
 0x722   : > { %10322 = vst.msk [vmem:[%s15856_s22 + $0x78] sm:$0xff] %vm10306_vm9, %v10305_v32 }
 0x723 PF: > { %s19_s27 = sadd.s32 1, %s10571_s27  }
 0x724   : > { %p16_p4 = scmp.ge.s32.totalorder %s19_s27, 4  }
 0x726   :  { %18 = sbr.rel (!%p16_p4) target bundleno = 1 (0x1), region = 98 }

</bundles_post_ra>
